<compile_context>
chip_gen: v5e
topology: v5e:2x2
jax: 0.10.0
libtpu: 0.0.40
codegen_flags: <defaults>
</compile_context>

<pallas_src>
import functools

import jax
import jax.numpy as jnp
import numpy as np
from jax.experimental import pallas as pl
from jax.experimental.pallas import tpu as pltpu

F32 = jnp.float32
BF16 = jnp.bfloat16


def _round_up(n, m):
    return (n + m - 1) // m * m


def _o(n):
    """Output spatial size of a k=3 / stride=2 / pad=1 window op."""
    return (n - 1) // 2 + 1


def _adaptive_avg4_matrix(H, W):
    """(16, H*W) averaging matrix implementing AdaptiveAvgPool2d((4, 4))."""
    A = np.zeros((16, H * W), np.float32)
    for oh in range(4):
        h0, h1 = (oh * H) // 4, -((-(oh + 1) * H) // 4)
        for ow in range(4):
            w0, w1 = (ow * W) // 4, -((-(ow + 1) * W) // 4)
            inv = 1.0 / float((h1 - h0) * (w1 - w0))
            for ih in range(h0, h1):
                A[oh * 4 + ow, ih * W + w0:ih * W + w1] = inv
    return A


# ---------------------------------------------------------------------------
# Fused kernel
# ---------------------------------------------------------------------------

def _make_router_kernel(BB, H1, W1, Hp, Wp, H2, W2, has_avg):
    """Fused BasicRouter forward for BB batch elements (one grid step)."""

    def _even_rows(x, n_out):
        """Indices 0,2,...,2*(n_out-1) along axis 1 (an outer axis): reshape trick."""
        n = x.shape[1]
        if n < 2 * n_out:  # odd extent -> append a dummy slab (dropped below)
            pad = jnp.zeros(x.shape[:1] + (2 * n_out - n,) + x.shape[2:], x.dtype)
            x = jnp.concatenate([x, pad], axis=1)
        x = x.reshape(x.shape[0], n_out, 2, *x.shape[2:])
        return x[:, :, 0]

    def _even_cols(x, n_out):
        """Indices 0,2,...,2*(n_out-1) along axis -2 (sublane axis): slices+concat."""
        return jnp.concatenate(
            [x[..., 2 * j:2 * j + 1, :] for j in range(n_out)], axis=-2)

    def kernel(patches_ref, w1_ref, sh1_ref, w2_ref, sh2_ref, *rest):
        if has_avg:
            avg_ref, rest = rest[0], rest[1:]
        (wfc1_ref, bfc1_ref, lng_ref, lnb_ref, wfc2_ref, bfc2_ref, o_ref) = rest

        # ---- conv1 + BN + ReLU: one (BB*H1*W1, 9*Cin) x (9*Cin, 128) matmul ----
        h1 = jnp.dot(patches_ref[...], w1_ref[...], preferred_element_type=F32)
        h1 = jnp.maximum(h1 + sh1_ref[...], 0.0)            # (BB*H1*W1, 128) f32
        h1 = h1.reshape(BB, H1, W1, 128)

        # ---- MaxPool2d(3, stride=2, pad=1): separable VPU max + downsample ----
        # Zero padding == -inf padding because h1 is post-ReLU (>= 0).
        zr = jnp.zeros((BB, 1, W1, 128), F32)
        xp = jnp.concatenate([zr, h1, zr], axis=1)          # (BB, H1+2, W1, 128)
        hm = jnp.maximum(jnp.maximum(xp[:, 0:H1, :, :], xp[:, 1:H1 + 1, :, :]),
                         xp[:, 2:H1 + 2, :, :])             # (BB, H1, W1, 128)
        hm = _even_rows(hm, Hp)                             # (BB, Hp, W1, 128)
        zc = jnp.zeros((BB, Hp, 1, 128), F32)
        wpad = jnp.concatenate([zc, hm, zc], axis=2)        # (BB, Hp, W1+2, 128)
        wm = jnp.maximum(jnp.maximum(wpad[:, :, 0:W1, :], wpad[:, :, 1:W1 + 1, :]),
                         wpad[:, :, 2:W1 + 2, :])           # (BB, Hp, W1, 128)
        pool = _even_cols(wm, Wp)                           # (BB, Hp, Wp, 128)

        # ---- conv2 + BN + ReLU: static-slice im2col + ONE K=1152 matmul ----
        zr2 = jnp.zeros((BB, 1, Wp, 128), F32)
        pp = jnp.concatenate([zr2, pool, zr2], axis=1)      # (BB, Hp+2, Wp, 128)
        zc2 = jnp.zeros((BB, Hp + 2, 1, 128), F32)
        pp = jnp.concatenate([zc2, pp, zc2], axis=2)        # (BB, Hp+2, Wp+2, 128)
        taps = []
        for dy in range(3):
            for dx in range(3):
                t = pp[:, dy:dy + 2 * H2, dx:dx + 2 * W2, :]
                t = _even_rows(t, H2)                       # (BB, H2, *, 128)
                t = _even_cols(t, W2)                       # (BB, H2, W2, 128)
                taps.append(t)
        tap9 = jnp.concatenate(taps, axis=-1)               # (BB, H2, W2, 1152)
        rows = [tap9[b, i] for b in range(BB) for i in range(H2)]   # (W2, 1152) each
        im2col = jnp.concatenate(rows, axis=0).astype(BF16)         # (BB*H2*W2, 1152)
        h2 = jnp.dot(im2col, w2_ref[...], preferred_element_type=F32)
        h2 = jnp.maximum(h2 + sh2_ref[...], 0.0)            # (BB*H2*W2, 128) f32
        h2 = h2.reshape(BB, H2 * W2, 128)

        # ---- AdaptiveAvgPool2d((4, 4)); identity when conv2 already yields 4x4 ----
        if has_avg:
            fmap = jnp.concatenate(
                [jnp.dot(avg_ref[...], h2[b], preferred_element_type=F32)[None]
                 for b in range(BB)], axis=0)               # (BB, 16, 128)
        else:
            fmap = h2                                       # (BB, 16, 128)

        # ---- fc1 (2048 -> 256) as ONE matmul; wfc1 rows pre-permuted to (p, c) ----
        feat = jnp.concatenate([fmap[:, p, :] for p in range(16)], axis=-1)
        feat = feat.astype(BF16)                            # (BB, 2048)
        h = jnp.dot(feat, wfc1_ref[...], preferred_element_type=F32) + bfc1_ref[...]
        h = jnp.maximum(h, 0.0)                             # (BB, 256)

        # ---- LayerNorm(256), f32 epilogue ----
        mu = jnp.mean(h, axis=-1, keepdims=True)
        var = jnp.mean(jnp.square(h - mu), axis=-1, keepdims=True)
        ln = (h - mu) * jax.lax.rsqrt(var + 1e-5) * lng_ref[...] + lnb_ref[...]

        # ---- fc2 (256 -> E, lane-padded to 128) + exact softmax ----
        logits = jnp.dot(ln.astype(BF16), wfc2_ref[...],
                         preferred_element_type=F32) + bfc2_ref[...]
        m = jnp.max(logits, axis=-1, keepdims=True)
        e = jnp.exp(logits - m)
        o_ref[...] = e / jnp.sum(e, axis=-1, keepdims=True)

    return kernel


# ---------------------------------------------------------------------------
# Parameters (PyTorch conventions) + one-time prep into kernel operands
# ---------------------------------------------------------------------------

def init_torch_params(key, in_channels, num_experts):
    """Random parameters in PyTorch nn.Module layouts / conventions."""
    ks = jax.random.split(key, 10)
    return {
        "conv1_w": 0.1 * jax.random.normal(ks[0], (128, in_channels, 3, 3), F32),
        "conv1_b": 0.01 * jax.random.normal(ks[1], (128,), F32),
        "bn1_gamma": 1.0 + 0.05 * jax.random.normal(ks[6], (128,), F32),
        "bn1_beta": 0.05 * jax.random.normal(ks[7], (128,), F32),
        "bn1_mean": 0.05 * jax.random.normal(ks[8], (128,), F32),
        "bn1_var": 1.0 + 0.05 * jnp.abs(jax.random.normal(ks[9], (128,), F32)),
        "conv2_w": 0.05 * jax.random.normal(ks[2], (128, 128, 3, 3), F32),
        "conv2_b": 0.01 * jax.random.normal(ks[3], (128,), F32),
        "bn2_gamma": jnp.ones((128,), F32),
        "bn2_beta": jnp.zeros((128,), F32),
        "bn2_mean": jnp.zeros((128,), F32),
        "bn2_var": jnp.ones((128,), F32),
        "fc1_w": 0.02 * jax.random.normal(ks[4], (256, 2048), F32),
        "fc1_b": jnp.zeros((256,), F32),
        "ln_gamma": jnp.ones((256,), F32),
        "ln_beta": jnp.zeros((256,), F32),
        "fc2_w": 0.05 * jax.random.normal(ks[5], (num_experts, 256), F32),
        "fc2_b": jnp.zeros((num_experts,), F32),
    }


def prepare_router_ops(tp, in_channels, H, W, num_experts, eps=1e-5):
    """One-time conversion of PyTorch-layout params into fused-kernel operands."""
    H1, W1 = _o(H), _o(W)          # conv1 output
    Hp, Wp = _o(H1), _o(W1)        # maxpool output
    H2, W2 = _o(Hp), _o(Wp)        # conv2 output

    def bn_fold(prefix, conv_b):
        scale = tp[f"{prefix}_gamma"] / jnp.sqrt(tp[f"{prefix}_var"] + eps)
        shift = tp[f"{prefix}_beta"] + (conv_b - tp[f"{prefix}_mean"]) * scale
        return scale, shift

    scale1, shift1 = bn_fold("bn1", tp["conv1_b"])
    scale2, shift2 = bn_fold("bn2", tp["conv2_b"])

    # conv1: im2col weight (9*Cin, 128), K order = (dy, dx, cin), BN scale folded.
    w1 = jnp.transpose(tp["conv1_w"], (2, 3, 1, 0)).reshape(9 * in_channels, 128)
    w1 = (w1 * scale1[None, :]).astype(BF16)

    # conv2: im2col weight (9*128, 128), K order = (dy, dx, cin), BN scale folded.
    w2 = jnp.transpose(tp["conv2_w"], (2, 3, 1, 0)).reshape(9 * 128, 128)
    w2 = (w2 * scale2[None, :]).astype(BF16)

    ops = {
        "w1": w1,
        "shift1": shift1.reshape(1, 128).astype(F32),
        "w2": w2,
        "shift2": shift2.reshape(1, 128).astype(F32),
    }
    # Adaptive avg-pool identity short-circuit: ship the averaging matrix only
    # when the conv2 output is not already 4x4.
    if (H2, W2) != (4, 4):
        ops["avgmat"] = jnp.asarray(_adaptive_avg4_matrix(H2, W2), F32)

    # fc1: PyTorch (256, 2048) acting on channel-major (c*16 + p) inputs ->
    # (2048, 256) with rows in (p, c) order, matching the in-kernel flatten.
    wfc1 = tp["fc1_w"].T.reshape(128, 16, 256).transpose(1, 0, 2).reshape(2048, 256)
    ops["wfc1"] = wfc1.astype(BF16)
    ops["bfc1"] = tp["fc1_b"].reshape(1, 256).astype(F32)
    ops["lng"] = tp["ln_gamma"].reshape(1, 256).astype(F32)
    ops["lnb"] = tp["ln_beta"].reshape(1, 256).astype(F32)

    # fc2: lane-pad the expert dim to 128 (dense stores, no masked vst); padded
    # lanes get a huge negative bias so softmax sends them to exactly 0.
    E = num_experts
    Ep = max(128, _round_up(E, 128))
    ops["wfc2"] = jnp.pad(tp["fc2_w"].T, ((0, 0), (0, Ep - E))).astype(BF16)
    ops["bfc2"] = jnp.pad(tp["fc2_b"], ((0, Ep - E),),
                          constant_values=-1e30).reshape(1, Ep).astype(F32)
    return ops


# ---------------------------------------------------------------------------
# Forward
# ---------------------------------------------------------------------------

@functools.partial(jax.jit, static_argnums=(2, 3))
def router_forward(ops, x_nchw, num_experts, block_batch=4):
    """Fused BasicRouter forward.  x_nchw: (B, Cin, H, W) float32 (PyTorch layout)."""
    B, Cin, H, W = x_nchw.shape
    H1, W1 = _o(H), _o(W)
    Hp, Wp = _o(H1), _o(W1)
    H2, W2 = _o(Hp), _o(Wp)
    K1 = 9 * Cin
    Ep = ops["bfc2"].shape[1]
    BB = max(1, min(block_batch, B))
    nsteps = -(-B // BB)
    B_pad = nsteps * BB

    # conv1 im2col on the tiny network input (XLA glue); K stays at 9*Cin -- no
    # zero padding to 128 in HBM.
    # TODO(synk): build these patches inside the kernel from an NHWC input to
    # drop this wrapper-side fusion entirely.
    x = jnp.transpose(x_nchw, (0, 2, 3, 1)).astype(F32)
    xpad = jnp.pad(x, ((0, 0), (1, max(0, 2 * H1 - H)), (1, max(0, 2 * W1 - W)), (0, 0)))
    taps = [xpad[:, dy:dy + 2 * H1 - 1:2, dx:dx + 2 * W1 - 1:2, :]
            for dy in range(3) for dx in range(3)]
    patches = jnp.concatenate(taps, axis=-1).reshape(B * H1 * W1, K1)
    if B_pad != B:
        patches = jnp.pad(patches, ((0, (B_pad - B) * H1 * W1), (0, 0)))
    patches = patches.astype(BF16)

    has_avg = "avgmat" in ops
    names = ["w1", "shift1", "w2", "shift2"]
    if has_avg:
        names.append("avgmat")
    names += ["wfc1", "bfc1", "lng", "lnb", "wfc2", "bfc2"]
    operands = [ops[k] for k in names]

    def _resident(a):
        # Whole array, same block every grid step (stays VMEM-resident).
        # TODO(synk): pipeline_mode=pl.Buffered(1) would single-buffer these
        # constants and halve their (small) VMEM footprint.
        zeros = (0,) * a.ndim
        return pl.BlockSpec(a.shape, lambda g, _z=zeros: _z)

    in_specs = [pl.BlockSpec((BB * H1 * W1, K1), lambda g: (g, 0))]
    in_specs += [_resident(a) for a in operands]

    out = pl.pallas_call(
        _make_router_kernel(BB, H1, W1, Hp, Wp, H2, W2, has_avg),
        grid=(nsteps,),
        in_specs=in_specs,
        out_specs=pl.BlockSpec((None, BB, Ep), lambda g: (g, 0, 0)),
        out_shape=jax.ShapeDtypeStruct((nsteps, BB, Ep), F32),
        compiler_params=pltpu.CompilerParams(
            dimension_semantics=("parallel",)),  # grid steps shard across v7x's 2 TCs
    )(patches, *operands)
    return out.reshape(B_pad, Ep)[:B, :num_experts]


# ---------------------------------------------------------------------------
# Pure-JAX reference (PyTorch semantics, f32) for tolerance testing
# ---------------------------------------------------------------------------

def router_reference(tp, x_nchw, num_experts, eps=1e-5):
    def conv3x3_s2(x, w, b):
        return jax.lax.conv_general_dilated(
            x, jnp.transpose(w, (2, 3, 1, 0)), window_strides=(2, 2),
            padding=((1, 1), (1, 1)),
            dimension_numbers=("NHWC", "HWIO", "NHWC")) + b

    def bn(x, g, beta, mean, var):
        return (x - mean) / jnp.sqrt(var + eps) * g + beta

    x = jnp.transpose(x_nchw, (0, 2, 3, 1)).astype(F32)
    h = jax.nn.relu(bn(conv3x3_s2(x, tp["conv1_w"], tp["conv1_b"]),
                       tp["bn1_gamma"], tp["bn1_beta"], tp["bn1_mean"], tp["bn1_var"]))
    h = jax.lax.reduce_window(h, -jnp.inf, jax.lax.max, (1, 3, 3, 1), (1, 2, 2, 1),
                              ((0, 0), (1, 1), (1, 1), (0, 0)))
    h = jax.nn.relu(bn(conv3x3_s2(h, tp["conv2_w"], tp["conv2_b"]),
                       tp["bn2_gamma"], tp["bn2_beta"], tp["bn2_mean"], tp["bn2_var"]))
    B, Hh, Ww, C = h.shape
    if (Hh, Ww) != (4, 4):
        A = jnp.asarray(_adaptive_avg4_matrix(Hh, Ww), F32)
        h = jnp.einsum("pq,bqc->bpc", A, h.reshape(B, Hh * Ww, C)).reshape(B, 4, 4, C)
    feat = jnp.transpose(h, (0, 3, 1, 2)).reshape(B, -1)     # PyTorch NCHW flatten
    z = jax.nn.relu(feat @ tp["fc1_w"].T + tp["fc1_b"])
    mu = z.mean(-1, keepdims=True)
    var = ((z - mu) ** 2).mean(-1, keepdims=True)
    z = (z - mu) / jnp.sqrt(var + 1e-5) * tp["ln_gamma"] + tp["ln_beta"]
    logits = z @ tp["fc2_w"].T + tp["fc2_b"]
    return jax.nn.softmax(logits, axis=-1)


if __name__ == "__main__":
    key = jax.random.PRNGKey(0)
    k_p, k_x = jax.random.split(key)
    in_channels, num_experts = 4, 8
    B, H, W = 8, 32, 32  # 32 -> conv1 16 -> maxpool 8 -> conv2 4 -> avgpool(4,4) identity

    torch_params = init_torch_params(k_p, in_channels, num_experts)
    ops = prepare_router_ops(torch_params, in_channels, H, W, num_experts)
    x = jax.random.normal(k_x, (B, in_channels, H, W), F32)  # NCHW, PyTorch convention

    out = router_forward(ops, x, num_experts, 4)
    out = jax.block_until_ready(out)

    ref = router_reference(torch_params, x, num_experts)

    assert out.shape == (B, num_experts), out.shape
    assert bool(jnp.all(jnp.isfinite(out)))
    assert bool(jnp.all(out >= 0.0))
    assert bool(jnp.allclose(jnp.sum(out, axis=-1), 1.0, atol=1e-4)), jnp.sum(out, axis=-1)
    err = float(jnp.max(jnp.abs(out - ref)))
    assert err < 4e-2, f"max |pallas - reference| = {err}"
    print("KERNEL_OK")
</pallas_src>

<mosaic_0001>
module attributes {stable_mosaic.version = 11 : i64} {
  func.func @kernel(%arg0: i32, %arg1: memref<1024x36xbf16, #tpu.memory_space<vmem>>, %arg2: memref<36x128xbf16, #tpu.memory_space<vmem>>, %arg3: memref<1x128xf32, #tpu.memory_space<vmem>>, %arg4: memref<1152x128xbf16, #tpu.memory_space<vmem>>, %arg5: memref<1x128xf32, #tpu.memory_space<vmem>>, %arg6: memref<2048x256xbf16, #tpu.memory_space<vmem>>, %arg7: memref<1x256xf32, #tpu.memory_space<vmem>>, %arg8: memref<1x256xf32, #tpu.memory_space<vmem>>, %arg9: memref<1x256xf32, #tpu.memory_space<vmem>>, %arg10: memref<256x128xbf16, #tpu.memory_space<vmem>>, %arg11: memref<1x128xf32, #tpu.memory_space<vmem>>, %arg12: memref<1x4x128xf32, #tpu.memory_space<vmem>>) attributes {dimension_semantics = [#tpu.dimension_semantics<parallel>], iteration_bounds = array<i64: 2>, scalar_prefetch = 0 : i64, scratch_operands = 0 : i64, tpu.core_type = #tpu.core_type<tc>, window_params = [{transform_indices = @transform_0, window_bounds = array<i64: 1024, 36>}, {pipeline_mode = #tpu.pipeline_mode<synchronous>, transform_indices = @transform_1, window_bounds = array<i64: 36, 128>}, {pipeline_mode = #tpu.pipeline_mode<synchronous>, transform_indices = @transform_2, window_bounds = array<i64: 1, 128>}, {pipeline_mode = #tpu.pipeline_mode<synchronous>, transform_indices = @transform_3, window_bounds = array<i64: 1152, 128>}, {pipeline_mode = #tpu.pipeline_mode<synchronous>, transform_indices = @transform_4, window_bounds = array<i64: 1, 128>}, {pipeline_mode = #tpu.pipeline_mode<synchronous>, transform_indices = @transform_5, window_bounds = array<i64: 2048, 256>}, {pipeline_mode = #tpu.pipeline_mode<synchronous>, transform_indices = @transform_6, window_bounds = array<i64: 1, 256>}, {pipeline_mode = #tpu.pipeline_mode<synchronous>, transform_indices = @transform_7, window_bounds = array<i64: 1, 256>}, {pipeline_mode = #tpu.pipeline_mode<synchronous>, transform_indices = @transform_8, window_bounds = array<i64: 1, 256>}, {pipeline_mode = #tpu.pipeline_mode<synchronous>, transform_indices = @transform_9, window_bounds = array<i64: 256, 128>}, {pipeline_mode = #tpu.pipeline_mode<synchronous>, transform_indices = @transform_10, window_bounds = array<i64: 1, 128>}, {transform_indices = @transform_11, window_bounds = array<i64: 1, 4, 128>}]} {
    %c0 = arith.constant 0 : index
    %c0_0 = arith.constant 0 : index
    %0 = vector.load %arg1[%c0, %c0_0] : memref<1024x36xbf16, #tpu.memory_space<vmem>>, vector<1024x36xbf16>
    %c0_1 = arith.constant 0 : index
    %c0_2 = arith.constant 0 : index
    %1 = vector.load %arg2[%c0_1, %c0_2] : memref<36x128xbf16, #tpu.memory_space<vmem>>, vector<36x128xbf16>
    %cst = arith.constant dense<0.000000e+00> : vector<1024x128xf32>
    %2 = tpu.matmul %0, %1, %cst {dimension_numbers = #tpu.dot_dimension_numbers<[1], [0], [0], [1], [0, 0, 1, 1], [], []>} : vector<1024x36xbf16>, vector<36x128xbf16>, vector<1024x128xf32> -> vector<1024x128xf32>
    %c0_3 = arith.constant 0 : index
    %c0_4 = arith.constant 0 : index
    %3 = vector.load %arg3[%c0_3, %c0_4] : memref<1x128xf32, #tpu.memory_space<vmem>>, vector<1x128xf32>
    %4 = vector.broadcast %3 : vector<1x128xf32> to vector<1024x128xf32>
    %5 = arith.addf %2, %4 : vector<1024x128xf32>
    %cst_5 = arith.constant 0.000000e+00 : f32
    %6 = vector.broadcast %cst_5 : f32 to vector<1024x128xf32>
    %7 = arith.maximumf %5, %6 : vector<1024x128xf32>
    %8 = vector.shape_cast %7 : vector<1024x128xf32> to vector<4x16x16x128xf32>
    %cst_6 = arith.constant 0.000000e+00 : f32
    %9 = vector.broadcast %cst_6 : f32 to vector<4x1x16x128xf32>
    %10 = tpu.concatenate %9, %8, %9 in 1 : vector<4x1x16x128xf32>, vector<4x16x16x128xf32>, vector<4x1x16x128xf32> -> vector<4x18x16x128xf32>
    %11 = vector.extract_strided_slice %10 {offsets = [0, 0, 0, 0], sizes = [4, 16, 16, 128], strides = [1, 1, 1, 1]} : vector<4x18x16x128xf32> to vector<4x16x16x128xf32>
    %12 = vector.extract_strided_slice %10 {offsets = [0, 1, 0, 0], sizes = [4, 16, 16, 128], strides = [1, 1, 1, 1]} : vector<4x18x16x128xf32> to vector<4x16x16x128xf32>
    %13 = arith.maximumf %11, %12 : vector<4x16x16x128xf32>
    %14 = vector.extract_strided_slice %10 {offsets = [0, 2, 0, 0], sizes = [4, 16, 16, 128], strides = [1, 1, 1, 1]} : vector<4x18x16x128xf32> to vector<4x16x16x128xf32>
    %15 = arith.maximumf %13, %14 : vector<4x16x16x128xf32>
    %16 = vector.shape_cast %15 : vector<4x16x16x128xf32> to vector<4x8x2x16x128xf32>
    %17 = vector.extract_strided_slice %16 {offsets = [0, 0, 0, 0, 0], sizes = [4, 8, 1, 16, 128], strides = [1, 1, 1, 1, 1]} : vector<4x8x2x16x128xf32> to vector<4x8x1x16x128xf32>
    %18 = vector.shape_cast %17 : vector<4x8x1x16x128xf32> to vector<4x8x16x128xf32>
    %cst_7 = arith.constant 0.000000e+00 : f32
    %19 = vector.broadcast %cst_7 : f32 to vector<4x8x1x128xf32>
    %20 = tpu.concatenate %19, %18, %19 in 2 : vector<4x8x1x128xf32>, vector<4x8x16x128xf32>, vector<4x8x1x128xf32> -> vector<4x8x18x128xf32>
    %21 = vector.extract_strided_slice %20 {offsets = [0, 0, 0, 0], sizes = [4, 8, 16, 128], strides = [1, 1, 1, 1]} : vector<4x8x18x128xf32> to vector<4x8x16x128xf32>
    %22 = vector.extract_strided_slice %20 {offsets = [0, 0, 1, 0], sizes = [4, 8, 16, 128], strides = [1, 1, 1, 1]} : vector<4x8x18x128xf32> to vector<4x8x16x128xf32>
    %23 = arith.maximumf %21, %22 : vector<4x8x16x128xf32>
    %24 = vector.extract_strided_slice %20 {offsets = [0, 0, 2, 0], sizes = [4, 8, 16, 128], strides = [1, 1, 1, 1]} : vector<4x8x18x128xf32> to vector<4x8x16x128xf32>
    %25 = arith.maximumf %23, %24 : vector<4x8x16x128xf32>
    %26 = vector.extract_strided_slice %25 {offsets = [0, 0, 0, 0], sizes = [4, 8, 1, 128], strides = [1, 1, 1, 1]} : vector<4x8x16x128xf32> to vector<4x8x1x128xf32>
    %27 = vector.extract_strided_slice %25 {offsets = [0, 0, 2, 0], sizes = [4, 8, 1, 128], strides = [1, 1, 1, 1]} : vector<4x8x16x128xf32> to vector<4x8x1x128xf32>
    %28 = vector.extract_strided_slice %25 {offsets = [0, 0, 4, 0], sizes = [4, 8, 1, 128], strides = [1, 1, 1, 1]} : vector<4x8x16x128xf32> to vector<4x8x1x128xf32>
    %29 = vector.extract_strided_slice %25 {offsets = [0, 0, 6, 0], sizes = [4, 8, 1, 128], strides = [1, 1, 1, 1]} : vector<4x8x16x128xf32> to vector<4x8x1x128xf32>
    %30 = vector.extract_strided_slice %25 {offsets = [0, 0, 8, 0], sizes = [4, 8, 1, 128], strides = [1, 1, 1, 1]} : vector<4x8x16x128xf32> to vector<4x8x1x128xf32>
    %31 = vector.extract_strided_slice %25 {offsets = [0, 0, 10, 0], sizes = [4, 8, 1, 128], strides = [1, 1, 1, 1]} : vector<4x8x16x128xf32> to vector<4x8x1x128xf32>
    %32 = vector.extract_strided_slice %25 {offsets = [0, 0, 12, 0], sizes = [4, 8, 1, 128], strides = [1, 1, 1, 1]} : vector<4x8x16x128xf32> to vector<4x8x1x128xf32>
    %33 = vector.extract_strided_slice %25 {offsets = [0, 0, 14, 0], sizes = [4, 8, 1, 128], strides = [1, 1, 1, 1]} : vector<4x8x16x128xf32> to vector<4x8x1x128xf32>
    %34 = tpu.concatenate %26, %27, %28, %29, %30, %31, %32, %33 in 2 : vector<4x8x1x128xf32>, vector<4x8x1x128xf32>, vector<4x8x1x128xf32>, vector<4x8x1x128xf32>, vector<4x8x1x128xf32>, vector<4x8x1x128xf32>, vector<4x8x1x128xf32>, vector<4x8x1x128xf32> -> vector<4x8x8x128xf32>
    %cst_8 = arith.constant 0.000000e+00 : f32
    %35 = vector.broadcast %cst_8 : f32 to vector<4x1x8x128xf32>
    %36 = tpu.concatenate %35, %34, %35 in 1 : vector<4x1x8x128xf32>, vector<4x8x8x128xf32>, vector<4x1x8x128xf32> -> vector<4x10x8x128xf32>
    %cst_9 = arith.constant 0.000000e+00 : f32
    %37 = vector.broadcast %cst_9 : f32 to vector<4x10x1x128xf32>
    %38 = tpu.concatenate %37, %36, %37 in 2 : vector<4x10x1x128xf32>, vector<4x10x8x128xf32>, vector<4x10x1x128xf32> -> vector<4x10x10x128xf32>
    %39 = vector.extract_strided_slice %38 {offsets = [0, 0, 0, 0], sizes = [4, 8, 8, 128], strides = [1, 1, 1, 1]} : vector<4x10x10x128xf32> to vector<4x8x8x128xf32>
    %40 = vector.shape_cast %39 : vector<4x8x8x128xf32> to vector<4x4x2x8x128xf32>
    %41 = vector.extract_strided_slice %40 {offsets = [0, 0, 0, 0, 0], sizes = [4, 4, 1, 8, 128], strides = [1, 1, 1, 1, 1]} : vector<4x4x2x8x128xf32> to vector<4x4x1x8x128xf32>
    %42 = vector.shape_cast %41 : vector<4x4x1x8x128xf32> to vector<4x4x8x128xf32>
    %43 = vector.extract_strided_slice %42 {offsets = [0, 0, 0, 0], sizes = [4, 4, 1, 128], strides = [1, 1, 1, 1]} : vector<4x4x8x128xf32> to vector<4x4x1x128xf32>
    %44 = vector.extract_strided_slice %42 {offsets = [0, 0, 2, 0], sizes = [4, 4, 1, 128], strides = [1, 1, 1, 1]} : vector<4x4x8x128xf32> to vector<4x4x1x128xf32>
    %45 = vector.extract_strided_slice %42 {offsets = [0, 0, 4, 0], sizes = [4, 4, 1, 128], strides = [1, 1, 1, 1]} : vector<4x4x8x128xf32> to vector<4x4x1x128xf32>
    %46 = vector.extract_strided_slice %42 {offsets = [0, 0, 6, 0], sizes = [4, 4, 1, 128], strides = [1, 1, 1, 1]} : vector<4x4x8x128xf32> to vector<4x4x1x128xf32>
    %47 = tpu.concatenate %43, %44, %45, %46 in 2 : vector<4x4x1x128xf32>, vector<4x4x1x128xf32>, vector<4x4x1x128xf32>, vector<4x4x1x128xf32> -> vector<4x4x4x128xf32>
    %48 = vector.extract_strided_slice %38 {offsets = [0, 0, 1, 0], sizes = [4, 8, 8, 128], strides = [1, 1, 1, 1]} : vector<4x10x10x128xf32> to vector<4x8x8x128xf32>
    %49 = vector.shape_cast %48 : vector<4x8x8x128xf32> to vector<4x4x2x8x128xf32>
    %50 = vector.extract_strided_slice %49 {offsets = [0, 0, 0, 0, 0], sizes = [4, 4, 1, 8, 128], strides = [1, 1, 1, 1, 1]} : vector<4x4x2x8x128xf32> to vector<4x4x1x8x128xf32>
    %51 = vector.shape_cast %50 : vector<4x4x1x8x128xf32> to vector<4x4x8x128xf32>
    %52 = vector.extract_strided_slice %51 {offsets = [0, 0, 0, 0], sizes = [4, 4, 1, 128], strides = [1, 1, 1, 1]} : vector<4x4x8x128xf32> to vector<4x4x1x128xf32>
    %53 = vector.extract_strided_slice %51 {offsets = [0, 0, 2, 0], sizes = [4, 4, 1, 128], strides = [1, 1, 1, 1]} : vector<4x4x8x128xf32> to vector<4x4x1x128xf32>
    %54 = vector.extract_strided_slice %51 {offsets = [0, 0, 4, 0], sizes = [4, 4, 1, 128], strides = [1, 1, 1, 1]} : vector<4x4x8x128xf32> to vector<4x4x1x128xf32>
    %55 = vector.extract_strided_slice %51 {offsets = [0, 0, 6, 0], sizes = [4, 4, 1, 128], strides = [1, 1, 1, 1]} : vector<4x4x8x128xf32> to vector<4x4x1x128xf32>
    %56 = tpu.concatenate %52, %53, %54, %55 in 2 : vector<4x4x1x128xf32>, vector<4x4x1x128xf32>, vector<4x4x1x128xf32>, vector<4x4x1x128xf32> -> vector<4x4x4x128xf32>
    %57 = vector.extract_strided_slice %38 {offsets = [0, 0, 2, 0], sizes = [4, 8, 8, 128], strides = [1, 1, 1, 1]} : vector<4x10x10x128xf32> to vector<4x8x8x128xf32>
    %58 = vector.shape_cast %57 : vector<4x8x8x128xf32> to vector<4x4x2x8x128xf32>
    %59 = vector.extract_strided_slice %58 {offsets = [0, 0, 0, 0, 0], sizes = [4, 4, 1, 8, 128], strides = [1, 1, 1, 1, 1]} : vector<4x4x2x8x128xf32> to vector<4x4x1x8x128xf32>
    %60 = vector.shape_cast %59 : vector<4x4x1x8x128xf32> to vector<4x4x8x128xf32>
    %61 = vector.extract_strided_slice %60 {offsets = [0, 0, 0, 0], sizes = [4, 4, 1, 128], strides = [1, 1, 1, 1]} : vector<4x4x8x128xf32> to vector<4x4x1x128xf32>
    %62 = vector.extract_strided_slice %60 {offsets = [0, 0, 2, 0], sizes = [4, 4, 1, 128], strides = [1, 1, 1, 1]} : vector<4x4x8x128xf32> to vector<4x4x1x128xf32>
    %63 = vector.extract_strided_slice %60 {offsets = [0, 0, 4, 0], sizes = [4, 4, 1, 128], strides = [1, 1, 1, 1]} : vector<4x4x8x128xf32> to vector<4x4x1x128xf32>
    %64 = vector.extract_strided_slice %60 {offsets = [0, 0, 6, 0], sizes = [4, 4, 1, 128], strides = [1, 1, 1, 1]} : vector<4x4x8x128xf32> to vector<4x4x1x128xf32>
    %65 = tpu.concatenate %61, %62, %63, %64 in 2 : vector<4x4x1x128xf32>, vector<4x4x1x128xf32>, vector<4x4x1x128xf32>, vector<4x4x1x128xf32> -> vector<4x4x4x128xf32>
    %66 = vector.extract_strided_slice %38 {offsets = [0, 1, 0, 0], sizes = [4, 8, 8, 128], strides = [1, 1, 1, 1]} : vector<4x10x10x128xf32> to vector<4x8x8x128xf32>
    %67 = vector.shape_cast %66 : vector<4x8x8x128xf32> to vector<4x4x2x8x128xf32>
    %68 = vector.extract_strided_slice %67 {offsets = [0, 0, 0, 0, 0], sizes = [4, 4, 1, 8, 128], strides = [1, 1, 1, 1, 1]} : vector<4x4x2x8x128xf32> to vector<4x4x1x8x128xf32>
    %69 = vector.shape_cast %68 : vector<4x4x1x8x128xf32> to vector<4x4x8x128xf32>
    %70 = vector.extract_strided_slice %69 {offsets = [0, 0, 0, 0], sizes = [4, 4, 1, 128], strides = [1, 1, 1, 1]} : vector<4x4x8x128xf32> to vector<4x4x1x128xf32>
    %71 = vector.extract_strided_slice %69 {offsets = [0, 0, 2, 0], sizes = [4, 4, 1, 128], strides = [1, 1, 1, 1]} : vector<4x4x8x128xf32> to vector<4x4x1x128xf32>
    %72 = vector.extract_strided_slice %69 {offsets = [0, 0, 4, 0], sizes = [4, 4, 1, 128], strides = [1, 1, 1, 1]} : vector<4x4x8x128xf32> to vector<4x4x1x128xf32>
    %73 = vector.extract_strided_slice %69 {offsets = [0, 0, 6, 0], sizes = [4, 4, 1, 128], strides = [1, 1, 1, 1]} : vector<4x4x8x128xf32> to vector<4x4x1x128xf32>
    %74 = tpu.concatenate %70, %71, %72, %73 in 2 : vector<4x4x1x128xf32>, vector<4x4x1x128xf32>, vector<4x4x1x128xf32>, vector<4x4x1x128xf32> -> vector<4x4x4x128xf32>
    %75 = vector.extract_strided_slice %38 {offsets = [0, 1, 1, 0], sizes = [4, 8, 8, 128], strides = [1, 1, 1, 1]} : vector<4x10x10x128xf32> to vector<4x8x8x128xf32>
    %76 = vector.shape_cast %75 : vector<4x8x8x128xf32> to vector<4x4x2x8x128xf32>
    %77 = vector.extract_strided_slice %76 {offsets = [0, 0, 0, 0, 0], sizes = [4, 4, 1, 8, 128], strides = [1, 1, 1, 1, 1]} : vector<4x4x2x8x128xf32> to vector<4x4x1x8x128xf32>
    %78 = vector.shape_cast %77 : vector<4x4x1x8x128xf32> to vector<4x4x8x128xf32>
    %79 = vector.extract_strided_slice %78 {offsets = [0, 0, 0, 0], sizes = [4, 4, 1, 128], strides = [1, 1, 1, 1]} : vector<4x4x8x128xf32> to vector<4x4x1x128xf32>
    %80 = vector.extract_strided_slice %78 {offsets = [0, 0, 2, 0], sizes = [4, 4, 1, 128], strides = [1, 1, 1, 1]} : vector<4x4x8x128xf32> to vector<4x4x1x128xf32>
    %81 = vector.extract_strided_slice %78 {offsets = [0, 0, 4, 0], sizes = [4, 4, 1, 128], strides = [1, 1, 1, 1]} : vector<4x4x8x128xf32> to vector<4x4x1x128xf32>
    %82 = vector.extract_strided_slice %78 {offsets = [0, 0, 6, 0], sizes = [4, 4, 1, 128], strides = [1, 1, 1, 1]} : vector<4x4x8x128xf32> to vector<4x4x1x128xf32>
    %83 = tpu.concatenate %79, %80, %81, %82 in 2 : vector<4x4x1x128xf32>, vector<4x4x1x128xf32>, vector<4x4x1x128xf32>, vector<4x4x1x128xf32> -> vector<4x4x4x128xf32>
    %84 = vector.extract_strided_slice %38 {offsets = [0, 1, 2, 0], sizes = [4, 8, 8, 128], strides = [1, 1, 1, 1]} : vector<4x10x10x128xf32> to vector<4x8x8x128xf32>
    %85 = vector.shape_cast %84 : vector<4x8x8x128xf32> to vector<4x4x2x8x128xf32>
    %86 = vector.extract_strided_slice %85 {offsets = [0, 0, 0, 0, 0], sizes = [4, 4, 1, 8, 128], strides = [1, 1, 1, 1, 1]} : vector<4x4x2x8x128xf32> to vector<4x4x1x8x128xf32>
    %87 = vector.shape_cast %86 : vector<4x4x1x8x128xf32> to vector<4x4x8x128xf32>
    %88 = vector.extract_strided_slice %87 {offsets = [0, 0, 0, 0], sizes = [4, 4, 1, 128], strides = [1, 1, 1, 1]} : vector<4x4x8x128xf32> to vector<4x4x1x128xf32>
    %89 = vector.extract_strided_slice %87 {offsets = [0, 0, 2, 0], sizes = [4, 4, 1, 128], strides = [1, 1, 1, 1]} : vector<4x4x8x128xf32> to vector<4x4x1x128xf32>
    %90 = vector.extract_strided_slice %87 {offsets = [0, 0, 4, 0], sizes = [4, 4, 1, 128], strides = [1, 1, 1, 1]} : vector<4x4x8x128xf32> to vector<4x4x1x128xf32>
    %91 = vector.extract_strided_slice %87 {offsets = [0, 0, 6, 0], sizes = [4, 4, 1, 128], strides = [1, 1, 1, 1]} : vector<4x4x8x128xf32> to vector<4x4x1x128xf32>
    %92 = tpu.concatenate %88, %89, %90, %91 in 2 : vector<4x4x1x128xf32>, vector<4x4x1x128xf32>, vector<4x4x1x128xf32>, vector<4x4x1x128xf32> -> vector<4x4x4x128xf32>
    %93 = vector.extract_strided_slice %38 {offsets = [0, 2, 0, 0], sizes = [4, 8, 8, 128], strides = [1, 1, 1, 1]} : vector<4x10x10x128xf32> to vector<4x8x8x128xf32>
    %94 = vector.shape_cast %93 : vector<4x8x8x128xf32> to vector<4x4x2x8x128xf32>
    %95 = vector.extract_strided_slice %94 {offsets = [0, 0, 0, 0, 0], sizes = [4, 4, 1, 8, 128], strides = [1, 1, 1, 1, 1]} : vector<4x4x2x8x128xf32> to vector<4x4x1x8x128xf32>
    %96 = vector.shape_cast %95 : vector<4x4x1x8x128xf32> to vector<4x4x8x128xf32>
    %97 = vector.extract_strided_slice %96 {offsets = [0, 0, 0, 0], sizes = [4, 4, 1, 128], strides = [1, 1, 1, 1]} : vector<4x4x8x128xf32> to vector<4x4x1x128xf32>
    %98 = vector.extract_strided_slice %96 {offsets = [0, 0, 2, 0], sizes = [4, 4, 1, 128], strides = [1, 1, 1, 1]} : vector<4x4x8x128xf32> to vector<4x4x1x128xf32>
    %99 = vector.extract_strided_slice %96 {offsets = [0, 0, 4, 0], sizes = [4, 4, 1, 128], strides = [1, 1, 1, 1]} : vector<4x4x8x128xf32> to vector<4x4x1x128xf32>
    %100 = vector.extract_strided_slice %96 {offsets = [0, 0, 6, 0], sizes = [4, 4, 1, 128], strides = [1, 1, 1, 1]} : vector<4x4x8x128xf32> to vector<4x4x1x128xf32>
    %101 = tpu.concatenate %97, %98, %99, %100 in 2 : vector<4x4x1x128xf32>, vector<4x4x1x128xf32>, vector<4x4x1x128xf32>, vector<4x4x1x128xf32> -> vector<4x4x4x128xf32>
    %102 = vector.extract_strided_slice %38 {offsets = [0, 2, 1, 0], sizes = [4, 8, 8, 128], strides = [1, 1, 1, 1]} : vector<4x10x10x128xf32> to vector<4x8x8x128xf32>
    %103 = vector.shape_cast %102 : vector<4x8x8x128xf32> to vector<4x4x2x8x128xf32>
    %104 = vector.extract_strided_slice %103 {offsets = [0, 0, 0, 0, 0], sizes = [4, 4, 1, 8, 128], strides = [1, 1, 1, 1, 1]} : vector<4x4x2x8x128xf32> to vector<4x4x1x8x128xf32>
    %105 = vector.shape_cast %104 : vector<4x4x1x8x128xf32> to vector<4x4x8x128xf32>
    %106 = vector.extract_strided_slice %105 {offsets = [0, 0, 0, 0], sizes = [4, 4, 1, 128], strides = [1, 1, 1, 1]} : vector<4x4x8x128xf32> to vector<4x4x1x128xf32>
    %107 = vector.extract_strided_slice %105 {offsets = [0, 0, 2, 0], sizes = [4, 4, 1, 128], strides = [1, 1, 1, 1]} : vector<4x4x8x128xf32> to vector<4x4x1x128xf32>
    %108 = vector.extract_strided_slice %105 {offsets = [0, 0, 4, 0], sizes = [4, 4, 1, 128], strides = [1, 1, 1, 1]} : vector<4x4x8x128xf32> to vector<4x4x1x128xf32>
    %109 = vector.extract_strided_slice %105 {offsets = [0, 0, 6, 0], sizes = [4, 4, 1, 128], strides = [1, 1, 1, 1]} : vector<4x4x8x128xf32> to vector<4x4x1x128xf32>
    %110 = tpu.concatenate %106, %107, %108, %109 in 2 : vector<4x4x1x128xf32>, vector<4x4x1x128xf32>, vector<4x4x1x128xf32>, vector<4x4x1x128xf32> -> vector<4x4x4x128xf32>
    %111 = vector.extract_strided_slice %38 {offsets = [0, 2, 2, 0], sizes = [4, 8, 8, 128], strides = [1, 1, 1, 1]} : vector<4x10x10x128xf32> to vector<4x8x8x128xf32>
    %112 = vector.shape_cast %111 : vector<4x8x8x128xf32> to vector<4x4x2x8x128xf32>
    %113 = vector.extract_strided_slice %112 {offsets = [0, 0, 0, 0, 0], sizes = [4, 4, 1, 8, 128], strides = [1, 1, 1, 1, 1]} : vector<4x4x2x8x128xf32> to vector<4x4x1x8x128xf32>
    %114 = vector.shape_cast %113 : vector<4x4x1x8x128xf32> to vector<4x4x8x128xf32>
    %115 = vector.extract_strided_slice %114 {offsets = [0, 0, 0, 0], sizes = [4, 4, 1, 128], strides = [1, 1, 1, 1]} : vector<4x4x8x128xf32> to vector<4x4x1x128xf32>
    %116 = vector.extract_strided_slice %114 {offsets = [0, 0, 2, 0], sizes = [4, 4, 1, 128], strides = [1, 1, 1, 1]} : vector<4x4x8x128xf32> to vector<4x4x1x128xf32>
    %117 = vector.extract_strided_slice %114 {offsets = [0, 0, 4, 0], sizes = [4, 4, 1, 128], strides = [1, 1, 1, 1]} : vector<4x4x8x128xf32> to vector<4x4x1x128xf32>
    %118 = vector.extract_strided_slice %114 {offsets = [0, 0, 6, 0], sizes = [4, 4, 1, 128], strides = [1, 1, 1, 1]} : vector<4x4x8x128xf32> to vector<4x4x1x128xf32>
    %119 = tpu.concatenate %115, %116, %117, %118 in 2 : vector<4x4x1x128xf32>, vector<4x4x1x128xf32>, vector<4x4x1x128xf32>, vector<4x4x1x128xf32> -> vector<4x4x4x128xf32>
    %120 = tpu.concatenate %47, %56, %65, %74, %83, %92, %101, %110, %119 in 3 : vector<4x4x4x128xf32>, vector<4x4x4x128xf32>, vector<4x4x4x128xf32>, vector<4x4x4x128xf32>, vector<4x4x4x128xf32>, vector<4x4x4x128xf32>, vector<4x4x4x128xf32>, vector<4x4x4x128xf32>, vector<4x4x4x128xf32> -> vector<4x4x4x1152xf32>
    %121 = vector.extract_strided_slice %120 {offsets = [0, 0, 0, 0], sizes = [1, 1, 4, 1152], strides = [1, 1, 1, 1]} : vector<4x4x4x1152xf32> to vector<1x1x4x1152xf32>
    %122 = vector.shape_cast %121 : vector<1x1x4x1152xf32> to vector<4x1152xf32>
    %123 = vector.extract_strided_slice %120 {offsets = [0, 1, 0, 0], sizes = [1, 1, 4, 1152], strides = [1, 1, 1, 1]} : vector<4x4x4x1152xf32> to vector<1x1x4x1152xf32>
    %124 = vector.shape_cast %123 : vector<1x1x4x1152xf32> to vector<4x1152xf32>
    %125 = vector.extract_strided_slice %120 {offsets = [0, 2, 0, 0], sizes = [1, 1, 4, 1152], strides = [1, 1, 1, 1]} : vector<4x4x4x1152xf32> to vector<1x1x4x1152xf32>
    %126 = vector.shape_cast %125 : vector<1x1x4x1152xf32> to vector<4x1152xf32>
    %127 = vector.extract_strided_slice %120 {offsets = [0, 3, 0, 0], sizes = [1, 1, 4, 1152], strides = [1, 1, 1, 1]} : vector<4x4x4x1152xf32> to vector<1x1x4x1152xf32>
    %128 = vector.shape_cast %127 : vector<1x1x4x1152xf32> to vector<4x1152xf32>
    %129 = vector.extract_strided_slice %120 {offsets = [1, 0, 0, 0], sizes = [1, 1, 4, 1152], strides = [1, 1, 1, 1]} : vector<4x4x4x1152xf32> to vector<1x1x4x1152xf32>
    %130 = vector.shape_cast %129 : vector<1x1x4x1152xf32> to vector<4x1152xf32>
    %131 = vector.extract_strided_slice %120 {offsets = [1, 1, 0, 0], sizes = [1, 1, 4, 1152], strides = [1, 1, 1, 1]} : vector<4x4x4x1152xf32> to vector<1x1x4x1152xf32>
    %132 = vector.shape_cast %131 : vector<1x1x4x1152xf32> to vector<4x1152xf32>
    %133 = vector.extract_strided_slice %120 {offsets = [1, 2, 0, 0], sizes = [1, 1, 4, 1152], strides = [1, 1, 1, 1]} : vector<4x4x4x1152xf32> to vector<1x1x4x1152xf32>
    %134 = vector.shape_cast %133 : vector<1x1x4x1152xf32> to vector<4x1152xf32>
    %135 = vector.extract_strided_slice %120 {offsets = [1, 3, 0, 0], sizes = [1, 1, 4, 1152], strides = [1, 1, 1, 1]} : vector<4x4x4x1152xf32> to vector<1x1x4x1152xf32>
    %136 = vector.shape_cast %135 : vector<1x1x4x1152xf32> to vector<4x1152xf32>
    %137 = vector.extract_strided_slice %120 {offsets = [2, 0, 0, 0], sizes = [1, 1, 4, 1152], strides = [1, 1, 1, 1]} : vector<4x4x4x1152xf32> to vector<1x1x4x1152xf32>
    %138 = vector.shape_cast %137 : vector<1x1x4x1152xf32> to vector<4x1152xf32>
    %139 = vector.extract_strided_slice %120 {offsets = [2, 1, 0, 0], sizes = [1, 1, 4, 1152], strides = [1, 1, 1, 1]} : vector<4x4x4x1152xf32> to vector<1x1x4x1152xf32>
    %140 = vector.shape_cast %139 : vector<1x1x4x1152xf32> to vector<4x1152xf32>
    %141 = vector.extract_strided_slice %120 {offsets = [2, 2, 0, 0], sizes = [1, 1, 4, 1152], strides = [1, 1, 1, 1]} : vector<4x4x4x1152xf32> to vector<1x1x4x1152xf32>
    %142 = vector.shape_cast %141 : vector<1x1x4x1152xf32> to vector<4x1152xf32>
    %143 = vector.extract_strided_slice %120 {offsets = [2, 3, 0, 0], sizes = [1, 1, 4, 1152], strides = [1, 1, 1, 1]} : vector<4x4x4x1152xf32> to vector<1x1x4x1152xf32>
    %144 = vector.shape_cast %143 : vector<1x1x4x1152xf32> to vector<4x1152xf32>
    %145 = vector.extract_strided_slice %120 {offsets = [3, 0, 0, 0], sizes = [1, 1, 4, 1152], strides = [1, 1, 1, 1]} : vector<4x4x4x1152xf32> to vector<1x1x4x1152xf32>
    %146 = vector.shape_cast %145 : vector<1x1x4x1152xf32> to vector<4x1152xf32>
    %147 = vector.extract_strided_slice %120 {offsets = [3, 1, 0, 0], sizes = [1, 1, 4, 1152], strides = [1, 1, 1, 1]} : vector<4x4x4x1152xf32> to vector<1x1x4x1152xf32>
    %148 = vector.shape_cast %147 : vector<1x1x4x1152xf32> to vector<4x1152xf32>
    %149 = vector.extract_strided_slice %120 {offsets = [3, 2, 0, 0], sizes = [1, 1, 4, 1152], strides = [1, 1, 1, 1]} : vector<4x4x4x1152xf32> to vector<1x1x4x1152xf32>
    %150 = vector.shape_cast %149 : vector<1x1x4x1152xf32> to vector<4x1152xf32>
    %151 = vector.extract_strided_slice %120 {offsets = [3, 3, 0, 0], sizes = [1, 1, 4, 1152], strides = [1, 1, 1, 1]} : vector<4x4x4x1152xf32> to vector<1x1x4x1152xf32>
    %152 = vector.shape_cast %151 : vector<1x1x4x1152xf32> to vector<4x1152xf32>
    %153 = tpu.concatenate %122, %124, %126, %128, %130, %132, %134, %136, %138, %140, %142, %144, %146, %148, %150, %152 in 0 : vector<4x1152xf32>, vector<4x1152xf32>, vector<4x1152xf32>, vector<4x1152xf32>, vector<4x1152xf32>, vector<4x1152xf32>, vector<4x1152xf32>, vector<4x1152xf32>, vector<4x1152xf32>, vector<4x1152xf32>, vector<4x1152xf32>, vector<4x1152xf32>, vector<4x1152xf32>, vector<4x1152xf32>, vector<4x1152xf32>, vector<4x1152xf32> -> vector<64x1152xf32>
    %154 = arith.truncf %153 : vector<64x1152xf32> to vector<64x1152xbf16>
    %c0_10 = arith.constant 0 : index
    %c0_11 = arith.constant 0 : index
    %155 = vector.load %arg4[%c0_10, %c0_11] : memref<1152x128xbf16, #tpu.memory_space<vmem>>, vector<1152x128xbf16>
    %cst_12 = arith.constant dense<0.000000e+00> : vector<64x128xf32>
    %156 = tpu.matmul %154, %155, %cst_12 {dimension_numbers = #tpu.dot_dimension_numbers<[1], [0], [0], [1], [0, 0, 1, 1], [], []>} : vector<64x1152xbf16>, vector<1152x128xbf16>, vector<64x128xf32> -> vector<64x128xf32>
    %c0_13 = arith.constant 0 : index
    %c0_14 = arith.constant 0 : index
    %157 = vector.load %arg5[%c0_13, %c0_14] : memref<1x128xf32, #tpu.memory_space<vmem>>, vector<1x128xf32>
    %158 = vector.broadcast %157 : vector<1x128xf32> to vector<64x128xf32>
    %159 = arith.addf %156, %158 : vector<64x128xf32>
    %cst_15 = arith.constant 0.000000e+00 : f32
    %160 = vector.broadcast %cst_15 : f32 to vector<64x128xf32>
    %161 = arith.maximumf %159, %160 : vector<64x128xf32>
    %162 = vector.shape_cast %161 : vector<64x128xf32> to vector<4x16x128xf32>
    %163 = vector.extract_strided_slice %162 {offsets = [0, 0, 0], sizes = [4, 1, 128], strides = [1, 1, 1]} : vector<4x16x128xf32> to vector<4x1x128xf32>
    %164 = vector.shape_cast %163 : vector<4x1x128xf32> to vector<4x128xf32>
    %165 = vector.extract_strided_slice %162 {offsets = [0, 1, 0], sizes = [4, 1, 128], strides = [1, 1, 1]} : vector<4x16x128xf32> to vector<4x1x128xf32>
    %166 = vector.shape_cast %165 : vector<4x1x128xf32> to vector<4x128xf32>
    %167 = vector.extract_strided_slice %162 {offsets = [0, 2, 0], sizes = [4, 1, 128], strides = [1, 1, 1]} : vector<4x16x128xf32> to vector<4x1x128xf32>
    %168 = vector.shape_cast %167 : vector<4x1x128xf32> to vector<4x128xf32>
    %169 = vector.extract_strided_slice %162 {offsets = [0, 3, 0], sizes = [4, 1, 128], strides = [1, 1, 1]} : vector<4x16x128xf32> to vector<4x1x128xf32>
    %170 = vector.shape_cast %169 : vector<4x1x128xf32> to vector<4x128xf32>
    %171 = vector.extract_strided_slice %162 {offsets = [0, 4, 0], sizes = [4, 1, 128], strides = [1, 1, 1]} : vector<4x16x128xf32> to vector<4x1x128xf32>
    %172 = vector.shape_cast %171 : vector<4x1x128xf32> to vector<4x128xf32>
    %173 = vector.extract_strided_slice %162 {offsets = [0, 5, 0], sizes = [4, 1, 128], strides = [1, 1, 1]} : vector<4x16x128xf32> to vector<4x1x128xf32>
    %174 = vector.shape_cast %173 : vector<4x1x128xf32> to vector<4x128xf32>
    %175 = vector.extract_strided_slice %162 {offsets = [0, 6, 0], sizes = [4, 1, 128], strides = [1, 1, 1]} : vector<4x16x128xf32> to vector<4x1x128xf32>
    %176 = vector.shape_cast %175 : vector<4x1x128xf32> to vector<4x128xf32>
    %177 = vector.extract_strided_slice %162 {offsets = [0, 7, 0], sizes = [4, 1, 128], strides = [1, 1, 1]} : vector<4x16x128xf32> to vector<4x1x128xf32>
    %178 = vector.shape_cast %177 : vector<4x1x128xf32> to vector<4x128xf32>
    %179 = vector.extract_strided_slice %162 {offsets = [0, 8, 0], sizes = [4, 1, 128], strides = [1, 1, 1]} : vector<4x16x128xf32> to vector<4x1x128xf32>
    %180 = vector.shape_cast %179 : vector<4x1x128xf32> to vector<4x128xf32>
    %181 = vector.extract_strided_slice %162 {offsets = [0, 9, 0], sizes = [4, 1, 128], strides = [1, 1, 1]} : vector<4x16x128xf32> to vector<4x1x128xf32>
    %182 = vector.shape_cast %181 : vector<4x1x128xf32> to vector<4x128xf32>
    %183 = vector.extract_strided_slice %162 {offsets = [0, 10, 0], sizes = [4, 1, 128], strides = [1, 1, 1]} : vector<4x16x128xf32> to vector<4x1x128xf32>
    %184 = vector.shape_cast %183 : vector<4x1x128xf32> to vector<4x128xf32>
    %185 = vector.extract_strided_slice %162 {offsets = [0, 11, 0], sizes = [4, 1, 128], strides = [1, 1, 1]} : vector<4x16x128xf32> to vector<4x1x128xf32>
    %186 = vector.shape_cast %185 : vector<4x1x128xf32> to vector<4x128xf32>
    %187 = vector.extract_strided_slice %162 {offsets = [0, 12, 0], sizes = [4, 1, 128], strides = [1, 1, 1]} : vector<4x16x128xf32> to vector<4x1x128xf32>
    %188 = vector.shape_cast %187 : vector<4x1x128xf32> to vector<4x128xf32>
    %189 = vector.extract_strided_slice %162 {offsets = [0, 13, 0], sizes = [4, 1, 128], strides = [1, 1, 1]} : vector<4x16x128xf32> to vector<4x1x128xf32>
    %190 = vector.shape_cast %189 : vector<4x1x128xf32> to vector<4x128xf32>
    %191 = vector.extract_strided_slice %162 {offsets = [0, 14, 0], sizes = [4, 1, 128], strides = [1, 1, 1]} : vector<4x16x128xf32> to vector<4x1x128xf32>
    %192 = vector.shape_cast %191 : vector<4x1x128xf32> to vector<4x128xf32>
    %193 = vector.extract_strided_slice %162 {offsets = [0, 15, 0], sizes = [4, 1, 128], strides = [1, 1, 1]} : vector<4x16x128xf32> to vector<4x1x128xf32>
    %194 = vector.shape_cast %193 : vector<4x1x128xf32> to vector<4x128xf32>
    %195 = tpu.concatenate %164, %166, %168, %170, %172, %174, %176, %178, %180, %182, %184, %186, %188, %190, %192, %194 in 1 : vector<4x128xf32>, vector<4x128xf32>, vector<4x128xf32>, vector<4x128xf32>, vector<4x128xf32>, vector<4x128xf32>, vector<4x128xf32>, vector<4x128xf32>, vector<4x128xf32>, vector<4x128xf32>, vector<4x128xf32>, vector<4x128xf32>, vector<4x128xf32>, vector<4x128xf32>, vector<4x128xf32>, vector<4x128xf32> -> vector<4x2048xf32>
    %196 = arith.truncf %195 : vector<4x2048xf32> to vector<4x2048xbf16>
    %c0_16 = arith.constant 0 : index
    %c0_17 = arith.constant 0 : index
    %197 = vector.load %arg6[%c0_16, %c0_17] : memref<2048x256xbf16, #tpu.memory_space<vmem>>, vector<2048x256xbf16>
    %cst_18 = arith.constant dense<0.000000e+00> : vector<4x256xf32>
    %198 = tpu.matmul %196, %197, %cst_18 {dimension_numbers = #tpu.dot_dimension_numbers<[1], [0], [0], [1], [0, 0, 1, 1], [], []>} : vector<4x2048xbf16>, vector<2048x256xbf16>, vector<4x256xf32> -> vector<4x256xf32>
    %c0_19 = arith.constant 0 : index
    %c0_20 = arith.constant 0 : index
    %199 = vector.load %arg7[%c0_19, %c0_20] : memref<1x256xf32, #tpu.memory_space<vmem>>, vector<1x256xf32>
    %200 = vector.broadcast %199 : vector<1x256xf32> to vector<4x256xf32>
    %201 = arith.addf %198, %200 : vector<4x256xf32>
    %cst_21 = arith.constant 0.000000e+00 : f32
    %202 = vector.broadcast %cst_21 : f32 to vector<4x256xf32>
    %203 = arith.maximumf %201, %202 : vector<4x256xf32>
    %cst_22 = arith.constant dense<0.000000e+00> : vector<4xf32>
    %204 = vector.multi_reduction <add>, %203, %cst_22 [1] : vector<4x256xf32> to vector<4xf32>
    %205 = vector.shape_cast %204 : vector<4xf32> to vector<4x1xf32>
    %cst_23 = arith.constant 2.560000e+02 : f32
    %206 = vector.broadcast %cst_23 : f32 to vector<4x1xf32>
    %207 = arith.divf %205, %206 : vector<4x1xf32>
    %208 = vector.broadcast %207 : vector<4x1xf32> to vector<4x256xf32>
    %209 = arith.subf %203, %208 : vector<4x256xf32>
    %210 = arith.mulf %209, %209 : vector<4x256xf32>
    %cst_24 = arith.constant dense<0.000000e+00> : vector<4xf32>
    %211 = vector.multi_reduction <add>, %210, %cst_24 [1] : vector<4x256xf32> to vector<4xf32>
    %212 = vector.shape_cast %211 : vector<4xf32> to vector<4x1xf32>
    %cst_25 = arith.constant 2.560000e+02 : f32
    %213 = vector.broadcast %cst_25 : f32 to vector<4x1xf32>
    %214 = arith.divf %212, %213 : vector<4x1xf32>
    %215 = vector.broadcast %207 : vector<4x1xf32> to vector<4x256xf32>
    %216 = arith.subf %203, %215 : vector<4x256xf32>
    %cst_26 = arith.constant 9.99999974E-6 : f32
    %217 = vector.broadcast %cst_26 : f32 to vector<4x1xf32>
    %218 = arith.addf %214, %217 : vector<4x1xf32>
    %219 = math.rsqrt %218 : vector<4x1xf32>
    %220 = vector.broadcast %219 : vector<4x1xf32> to vector<4x256xf32>
    %221 = arith.mulf %216, %220 : vector<4x256xf32>
    %c0_27 = arith.constant 0 : index
    %c0_28 = arith.constant 0 : index
    %222 = vector.load %arg8[%c0_27, %c0_28] : memref<1x256xf32, #tpu.memory_space<vmem>>, vector<1x256xf32>
    %223 = vector.broadcast %222 : vector<1x256xf32> to vector<4x256xf32>
    %224 = arith.mulf %221, %223 : vector<4x256xf32>
    %c0_29 = arith.constant 0 : index
    %c0_30 = arith.constant 0 : index
    %225 = vector.load %arg9[%c0_29, %c0_30] : memref<1x256xf32, #tpu.memory_space<vmem>>, vector<1x256xf32>
    %226 = vector.broadcast %225 : vector<1x256xf32> to vector<4x256xf32>
    %227 = arith.addf %224, %226 : vector<4x256xf32>
    %228 = arith.truncf %227 : vector<4x256xf32> to vector<4x256xbf16>
    %c0_31 = arith.constant 0 : index
    %c0_32 = arith.constant 0 : index
    %229 = vector.load %arg10[%c0_31, %c0_32] : memref<256x128xbf16, #tpu.memory_space<vmem>>, vector<256x128xbf16>
    %cst_33 = arith.constant dense<0.000000e+00> : vector<4x128xf32>
    %230 = tpu.matmul %228, %229, %cst_33 {dimension_numbers = #tpu.dot_dimension_numbers<[1], [0], [0], [1], [0, 0, 1, 1], [], []>} : vector<4x256xbf16>, vector<256x128xbf16>, vector<4x128xf32> -> vector<4x128xf32>
    %c0_34 = arith.constant 0 : index
    %c0_35 = arith.constant 0 : index
    %231 = vector.load %arg11[%c0_34, %c0_35] : memref<1x128xf32, #tpu.memory_space<vmem>>, vector<1x128xf32>
    %232 = vector.broadcast %231 : vector<1x128xf32> to vector<4x128xf32>
    %233 = arith.addf %230, %232 : vector<4x128xf32>
    %cst_36 = arith.constant dense<0xFF800000> : vector<4xf32>
    %234 = vector.multi_reduction <maximumf>, %233, %cst_36 [1] : vector<4x128xf32> to vector<4xf32>
    %235 = vector.shape_cast %234 : vector<4xf32> to vector<4x1xf32>
    %236 = vector.broadcast %235 : vector<4x1xf32> to vector<4x128xf32>
    %237 = arith.subf %233, %236 : vector<4x128xf32>
    %238 = math.exp %237 : vector<4x128xf32>
    %cst_37 = arith.constant dense<0.000000e+00> : vector<4xf32>
    %239 = vector.multi_reduction <add>, %238, %cst_37 [1] : vector<4x128xf32> to vector<4xf32>
    %240 = vector.shape_cast %239 : vector<4xf32> to vector<4x1xf32>
    %241 = vector.broadcast %240 : vector<4x1xf32> to vector<4x128xf32>
    %242 = arith.divf %238, %241 : vector<4x128xf32>
    %c0_38 = arith.constant 0 : index
    %c0_39 = arith.constant 0 : index
    %c0_40 = arith.constant 0 : index
    %243 = vector.load %arg12[%c0_38, %c0_39, %c0_40] : memref<1x4x128xf32, #tpu.memory_space<vmem>>, vector<1x4x128xf32>
    %244 = vector.shape_cast %243 : vector<1x4x128xf32> to vector<4x128xf32>
    %245 = vector.shape_cast %242 : vector<4x128xf32> to vector<1x4x128xf32>
    tpu.vector_store %arg12[%c0_38, %c0_39, %c0_40], %245 {strides = array<i32>} : memref<1x4x128xf32, #tpu.memory_space<vmem>>, vector<1x4x128xf32>,
    return
  }
  func.func @transform_0(%arg0: i32) -> (i32, i32) {
    %c0_i32 = arith.constant 0 : i32
    %c0_i32_0 = arith.constant 0 : i32
    return %arg0, %c0_i32 : i32, i32
  }
  func.func @transform_1(%arg0: i32) -> (i32, i32) {
    %c0_i32 = arith.constant 0 : i32
    %c0_i32_0 = arith.constant 0 : i32
    %c0_i32_1 = arith.constant 0 : i32
    return %c0_i32, %c0_i32_0 : i32, i32
  }
  func.func @transform_2(%arg0: i32) -> (i32, i32) {
    %c0_i32 = arith.constant 0 : i32
    %c0_i32_0 = arith.constant 0 : i32
    %c0_i32_1 = arith.constant 0 : i32
    return %c0_i32, %c0_i32_0 : i32, i32
  }
  func.func @transform_3(%arg0: i32) -> (i32, i32) {
    %c0_i32 = arith.constant 0 : i32
    %c0_i32_0 = arith.constant 0 : i32
    %c0_i32_1 = arith.constant 0 : i32
    return %c0_i32, %c0_i32_0 : i32, i32
  }
  func.func @transform_4(%arg0: i32) -> (i32, i32) {
    %c0_i32 = arith.constant 0 : i32
    %c0_i32_0 = arith.constant 0 : i32
    %c0_i32_1 = arith.constant 0 : i32
    return %c0_i32, %c0_i32_0 : i32, i32
  }
  func.func @transform_5(%arg0: i32) -> (i32, i32) {
    %c0_i32 = arith.constant 0 : i32
    %c0_i32_0 = arith.constant 0 : i32
    %c0_i32_1 = arith.constant 0 : i32
    return %c0_i32, %c0_i32_0 : i32, i32
  }
  func.func @transform_6(%arg0: i32) -> (i32, i32) {
    %c0_i32 = arith.constant 0 : i32
    %c0_i32_0 = arith.constant 0 : i32
    %c0_i32_1 = arith.constant 0 : i32
    return %c0_i32, %c0_i32_0 : i32, i32
  }
  func.func @transform_7(%arg0: i32) -> (i32, i32) {
    %c0_i32 = arith.constant 0 : i32
    %c0_i32_0 = arith.constant 0 : i32
    %c0_i32_1 = arith.constant 0 : i32
    return %c0_i32, %c0_i32_0 : i32, i32
  }
  func.func @transform_8(%arg0: i32) -> (i32, i32) {
    %c0_i32 = arith.constant 0 : i32
    %c0_i32_0 = arith.constant 0 : i32
    %c0_i32_1 = arith.constant 0 : i32
    return %c0_i32, %c0_i32_0 : i32, i32
  }
  func.func @transform_9(%arg0: i32) -> (i32, i32) {
    %c0_i32 = arith.constant 0 : i32
    %c0_i32_0 = arith.constant 0 : i32
    %c0_i32_1 = arith.constant 0 : i32
    return %c0_i32, %c0_i32_0 : i32, i32
  }
  func.func @transform_10(%arg0: i32) -> (i32, i32) {
    %c0_i32 = arith.constant 0 : i32
    %c0_i32_0 = arith.constant 0 : i32
    %c0_i32_1 = arith.constant 0 : i32
    return %c0_i32, %c0_i32_0 : i32, i32
  }
  func.func @transform_11(%arg0: i32) -> (i32, i32, i32) {
    %c0_i32 = arith.constant 0 : i32
    %c0_i32_0 = arith.constant 0 : i32
    %c0_i32_1 = arith.constant 0 : i32
    return %arg0, %c0_i32, %c0_i32_0 : i32, i32, i32
  }
}

</mosaic_0001>

<bundles_post_ra>
// kernel: router_forward.1
= control target key start
LH: loop header
LB: loop body
LE: loop exit
PB: predicated region body
PF: predicated region fallthrough
CT: control target
= control target key end

     0   :  { %s15244_s0 = inlined_call_operand.vmem [shape: bf16[2048,36], index: 0, kind: input, shape index: {}]   ;;  %s15245_s1 = inlined_call_operand.vmem [shape: bf16[36,128], index: 1, kind: input, shape index: {}]   ;;  %s15246_s2 = inlined_call_operand.vmem [shape: f32[1,128], index: 2, kind: input, shape index: {}]   ;;  %s15247_s3 = inlined_call_operand.vmem [shape: bf16[1152,128], index: 3, kind: input, shape index: {}]   ;;  %s15248_s4 = inlined_call_operand.vmem [shape: f32[1,128], index: 4, kind: input, shape index: {}]   ;;  %s15249_s5 = inlined_call_operand.vmem [shape: bf16[2048,256], index: 5, kind: input, shape index: {}]   ;;  %s15250_s6 = inlined_call_operand.vmem [shape: f32[1,256], index: 6, kind: input, shape index: {}]   ;;  %s15251_s7 = inlined_call_operand.vmem [shape: f32[1,256], index: 7, kind: input, shape index: {}]   ;;  %s15252_s8 = inlined_call_operand.vmem [shape: f32[1,256], index: 8, kind: input, shape index: {}]   ;;  %s15253_s9 = inlined_call_operand.vmem [shape: bf16[256,128], index: 9, kind: input, shape index: {}]   ;;  %s15254_s10 = inlined_call_operand.vmem [shape: f32[1,128], index: 10, kind: input, shape index: {}]   ;;  %s15255_s11 = inlined_call_operand.hbm [shape: f32[2,4,128], index: 11, kind: output, shape index: {}]  }
   0x1   :  { %15364 = sst [smem:[#allocation66_spill]] %s15244_s0 }
   0x2   :  { %15365 = sst [smem:[#allocation67_spill]] %s15245_s1 }
   0x3   :  { %16 = vsyncpa [#allocation3], 0 }
   0x4   :  { %18 = vsyncpa [#allocation3 + $0x1], 0  ;;  %s10111_s17 = smov 0   ;;  %s10113_s18 = smov 0  }
   0x5   :  { %s10115_s19 = smov 0   ;;  %s10117_s20 = smov 0  }
   0x6 LB: > { %s10132_s21 = sadd.s32 4294967295, %s10047_s20   ;;  %s7794_s22 = sadd.s32 4294967294, %s10047_s20   ;;  %s10047_s20 = sphi %s10117_s20, %s15682_s20   ;;  %s10043_s19 = sphi %s10115_s19, %s15681_s19   ;;  %s10039_s18 = sphi %s10113_s18, %s15680_s18   ;;  %s10035_s17 = sphi %s10111_s17, %s15679_s17  }
   0x7   : > { %s10136_s23 = sadd.s32 1, %s10047_s20   ;;  %s267_s24 = sadd.s32 1, %s10043_s19 }
   0x8   : > { %s264_s25 = ssub.s32 %s10047_s20, %s10136_s23  ;;  %p277_p0 = scmp.ne.s32.totalorder %s10043_s19, %s10039_s18 }
   0x9   : > { %p265_p1 = scmp.eq.s32.totalorder %s264_s25, 0  ;;  %p278_p2 = scmp.eq.s32.totalorder %s10132_s21, 1 }
   0xa   : > { %p283_p3 = scmp.ne.s32.totalorder %s10039_s18, %s10035_s17  ;;  %p284_p4 = scmp.eq.s32.totalorder %s7794_s22, 1 }
   0xb   : > { %s10147_s26 = scalar_select %p265_p1, %s10043_s19, %s267_s24  }
   0xc   : > { %p10149_p5 = por %p278_p2, %p277_p0  ;;  %p10153_p6 = por %p284_p4, %p283_p3 }
   0xd   : > { %p7797_p7 = scmp.ge.s32.totalorder %s10047_s20, 1  ;;  %p341_p8 = scmp.lt.s32.totalorder %s10047_s20, 3 }
   0xf   : > { %p342_p9 = pnand %p7797_p7, %p341_p8 }
  0x11   : > { %345 = sbr.rel (%p342_p9) target bundleno = 2282 (0x8ea), region = 64 }
  0x16   : > { %s15368_s1 = sld [smem:[#allocation67_spill]]  ;;  %s7799_s12 = sshll.u32 %s10132_s21, 7  ;;  %vm1053_vm0 = vcmask 1041408   ;;  %vm860_vm1 = vcmask 293888   ;;  %v10196_v16 = vld [vmem:[%s15246_s2] ss:$0 sm:$0xff] }
  0x17   : > { %p382_p10 = scmp.lt.s32.totalorder %s7799_s12, 255  ;;  %s15369_s0 = sld [smem:[#allocation66_spill]]  ;;  %vm1706_vm2 = vcmask 1040384   ;;  %vm2027_vm3 = vcmask 1046528   ;;  %vm2316_vm4 = vcmask 1045504   ;;  %vm3181_vm5 = vcmask 1042432  }
  0x18   : > { %vm3214_vm6 = vcmask 1043456   ;;  %vm3247_vm7 = vcmask 1044480   ;;  %vm5380_vm8 = vcmask 1041409   ;;  %vm5383_vm9 = vcmask 1042434  }
  0x19   : > { %s15684_s12 = smov (!%p382_p10, %s7799_s12), 255  ;;  %vm5386_vm10 = vcmask 1043459  }
  0x1a   : > { %s7800_s15 = sshll.u32 %s15684_s12, 2 }
  0x1c   : > { %v520_v0 = vld [vmem:[%s15368_s1 + $0x10] sm:$0x3]  ;;  %v9574_v4 = vld [vmem:[%s15368_s1 + $0x8] sm:$0xff]  ;;  %v9573_v5 = vld [vmem:[%s15368_s1] sm:$0xff] }
  0x1d   : > { %v854_v1 = vunpack.c.l.b16 %v520_v0  ;;  %s10173_s29 = scalar_lea.vmem %s15369_s0, %s7800_s15  ;;  %s378_s0 = sand.u32 1, %s10039_s18  }
  0x1e   : > { %v9509_v6 = vld [vmem:[%s10173_s29] sm:$0xff]  ;;  %v9510_v7 = vld [vmem:[%s10173_s29 + $0x8] sm:$0xff]  ;;  %v9511_v8 = vld [vmem:[%s10173_s29 + $0x10] sm:$0xff]  ;;  %s7798_s12 = sshll.u32 %s378_s0, 2 }
  0x1f   : > { %v857_v2 = vpack.c.b16 %v854_v1, %v854_v1  ;;  %v9512_v9 = vld [vmem:[%s10173_s29 + $0x18] sm:$0xff]  ;;  %v9513_v10 = vld [vmem:[%s10173_s29 + $0x20] sm:$0xff]  ;;  %v9514_v11 = vld [vmem:[%s10173_s29 + $0x28] sm:$0xff]  ;;  %s380_s16 = scalar_lea.vmem [#allocation2], %s7798_s12  ;;  %s10005_s12 = scalar_lea.hbm %s15255_s11, 8 }
  0x20   : > { %v9515_v12 = vld [vmem:[%s10173_s29 + $0x30] sm:$0xff]  ;;  %v9516_v13 = vld [vmem:[%s10173_s29 + $0x38] sm:$0xff]  ;;  %v9517_v14 = vld [vmem:[%s10173_s29 + $0x40] sm:$0xff]  ;;  %s7732_s22 = sshll.u32 %s380_s16, 4  ;;  %s7733_s22 = int_to_ptr.vmem [resolvable:$true] %s7732_s22 }
  0x21   : > { %v1055_v3 = vsel %vm1053_vm0, %v857_v2, 0  ;;  %v9518_v20 = vld [vmem:[%s10173_s29 + $0x48] sm:$0xff]  ;;  %v9519_v36 = vld [vmem:[%s10173_s29 + $0x50] sm:$0xff] }
  0x22   : > { %1062 = vmatpush.bf16.msra.mxu0 %v1055_v3  ;;  %9920 = vmatpush.bf16.msra.mxu2 %v1055_v3 }
  0x23   : > { %9921 = vmatpush.bf16.msra.mxu3 %v1055_v3  ;;  %9919 = vmatpush.bf16.msra.mxu1 %v1055_v3 }
  0x26   : > { %1063 = vmatpush.bf16.msra.mxu0 %v9574_v4  ;;  %9923 = vmatpush.bf16.msra.mxu2 %v9574_v4 }
  0x27   : > { %9924 = vmatpush.bf16.msra.mxu3 %v9574_v4  ;;  %9922 = vmatpush.bf16.msra.mxu1 %v9574_v4 }
  0x2a   : > { %1064 = vmatpush.bf16.msra.mxu0 %v9573_v5  ;;  %9926 = vmatpush.bf16.msra.mxu2 %v9573_v5 }
  0x2b   : > { %9927 = vmatpush.bf16.msra.mxu3 %v9573_v5  ;;  %9925 = vmatpush.bf16.msra.mxu1 %v9573_v5 }
  0x2d   : > { %8065 = vmatmul.msk.bf16.vlgmr.msra.gmra.mxu0 %vm860_vm1, %v9509_v6 }
  0x3d   : > { %8066 = vmatmul.msk.bf16.gmra.mxu0 %vm860_vm1, %v9510_v7  ;;  %v9555_v7 = vld [vmem:[%s10173_s29 + $0x170] sm:$0xff] }
  0x3e   : > { %8111 = vmatmul.msk.bf16.vlgmr.msra.gmra.mxu2 %vm860_vm1, %v9555_v7 }
  0x4d   : > { %8067 = vmatmul.msk.bf16.gmra.mxu0 %vm860_vm1, %v9511_v8  ;;  %v9564_v8 = vld [vmem:[%s10173_s29 + $0x1b8] sm:$0xff] }
  0x4e   : > { %8120 = vmatmul.msk.bf16.vlgmr.msra.gmra.mxu3 %vm860_vm1, %v9564_v8 }
  0x5d   : > { %8068 = vmatmul.msk.bf16.gmra.mxu0 %vm860_vm1, %v9512_v9 }
  0x6d   : > { %8069 = vmatmul.msk.bf16.gmra.mxu0 %vm860_vm1, %v9513_v10  ;;  %v9520_v10 = vld [vmem:[%s10173_s29 + $0x58] sm:$0xff] }
  0x7d   : > { %8070 = vmatmul.msk.bf16.gmra.mxu0 %vm860_vm1, %v9514_v11 }
  0x8d   : > { %8071 = vmatmul.msk.bf16.gmra.mxu0 %vm860_vm1, %v9515_v12 }
  0x9d   : > { %8072 = vmatmul.msk.bf16.gmra.mxu0 %vm860_vm1, %v9516_v13 }
  0xaa   : > { %v1066_v15 = vpop.f32.mrf.mxu0 }
  0xab   : > { %v1067_v18 = vadd.f32 %v10196_v16, %v1066_v15 }
  0xad   : > { %8073 = vmatmul.msk.bf16.gmra.mxu0 %vm860_vm1, %v9517_v14  ;;  %v1386_v19 = vmax.f32 %v1067_v18, 0.0 }
  0xaf   : > { %v1514_v23 = vmax.f32 %v1386_v19, 0.0 }
  0xb2   : > { %v1068_v17 = vpop.f32.mrf.mxu0 }
  0xb3   : > { %v1069_v24 = vadd.f32 %v10196_v16, %v1068_v17 }
  0xb5   : > { %v1387_v27 = vmax.f32 %v1069_v24, 0.0  ;;  %v9565_v24 = vld [vmem:[%s10173_s29 + $0x1c0] sm:$0xff] }
  0xb6   : > { %8121 = vmatmul.msk.bf16.gmra.mxu3 %vm860_vm1, %v9565_v24 }
  0xb7   : > { %v1515_v31 = vmax.f32 %v1387_v27, 0.0 }
  0xba   : > { %v1071_v21 = vpop.f32.mrf.mxu0 }
  0xbb   : > { %v1072_v22 = vadd.f32 %v10196_v16, %v1071_v21 }
  0xbd   : > { %v1388_v25 = vmax.f32 %v1072_v22, 0.0  ;;  %8074 = vmatmul.msk.bf16.gmra.mxu0 %vm860_vm1, %v9518_v20 }
  0xbf   : > { %v1578_v26 = vmax.f32 %v1514_v23, %v1388_v25  ;;  %v9556_v23 = vld [vmem:[%s10173_s29 + $0x178] sm:$0xff] }
  0xc0   : > { %8112 = vmatmul.msk.bf16.gmra.mxu2 %vm860_vm1, %v9556_v23 }
  0xc1   : > { %v1707_v29 = vrot.slane %v1578_v26, 7  ;;  %v9521_v26 = vld [vmem:[%s10173_s29 + $0x60] sm:$0xff] }
  0xc2   : > { %v1073_v28 = vpop.f32.mrf.mxu0 }
  0xc3   : > { %v1074_v30 = vadd.f32 %v10196_v16, %v1073_v28  ;;  %v1899_v33 = vsel %vm1706_vm2, 0.0, %v1707_v29 }
  0xc4   : > { %v2028_v37 = vrot.slane %v1899_v33, 1  ;;  %v2317_v39 = vrot.slane %v1899_v33, 2 }
  0xc5   : > { %v1389_v32 = vmax.f32 %v1074_v30, 0.0 }
  0xc7   : > { %v1579_v34 = vmax.f32 %v1515_v31, %v1389_v32 }
  0xc9   : > { %v1708_v35 = vrot.slane %v1579_v34, 7 }
  0xca   : > { %v1076_v38 = vpop.f32.mrf.mxu0 }
  0xcb   : > { %v1709_v40 = vsel %vm1706_vm2, %v1707_v29, %v1708_v35  ;;  %v1931_v41 = vsel %vm1706_vm2, %v1708_v35, 0.0  ;;  %v1077_v42 = vadd.f32 %v10196_v16, %v1076_v38 }
  0xcc   : > { %v2029_v43 = vrot.slane %v1709_v40, 1  ;;  %v2031_v44 = vrot.slane %v1931_v41, 1  ;;  %v2318_v45 = vrot.slane %v1709_v40, 2  ;;  %v2320_v46 = vrot.slane %v1931_v41, 2 }
  0xcd   : > { %v1390_v47 = vmax.f32 %v1077_v42, 0.0  ;;  %8075 = vmatmul.msk.bf16.gmra.mxu0 %vm860_vm1, %v9519_v36 }
  0xce   : > { %v2030_v48 = vsel %vm2027_vm3, %v2028_v37, %v2029_v43  ;;  %v2032_v49 = vsel %vm2027_vm3, %v2029_v43, %v2031_v44  ;;  %v2319_v50 = vsel %vm2316_vm4, %v2317_v39, %v2318_v45  ;;  %v2321_v51 = vsel %vm2316_vm4, %v2318_v45, %v2320_v46 }
  0xcf   : > { %v2252_v52 = vmax.f32 %v1899_v33, %v2030_v48  ;;  %v2253_v53 = vmax.f32 %v1709_v40, %v2032_v49  ;;  %v1516_v54 = vmax.f32 %v1388_v25, %v1390_v47 }
  0xd1   : > { %v2541_v55 = vmax.f32 %v2252_v52, %v2319_v50  ;;  %v10214_v56 = vmax.f32 %v2253_v53, %v2321_v51 }
  0xd2   : > { %v1078_v57 = vpop.f32.mrf.mxu0 }
  0xd3   : > { %v2637_v58 = vrot.slane %v2541_v55, 1  ;;  %v2701_v59 = vrot.slane %v2541_v55, 2  ;;  %v1079_v60 = vadd.f32 %v10196_v16, %v1078_v57  ;;  %v2765_v61 = vrot.slane %v2541_v55, 3 }
  0xd4   : > { %v2861_v63 = vrot.slane %v10214_v56, 4  ;;  %v2925_v2 = vrot.slane %v10214_v56, 5  ;;  %v2989_v4 = vrot.slane %v10214_v56, 6 }
  0xd5   : > { %v3117_v62 = vsel %vm1706_vm2, %v2541_v55, %v2637_v58  ;;  %v1391_v1 = vmax.f32 %v1079_v60, 0.0 }
  0xd6   : > { %v3149_v0 = vsel %vm1053_vm0, %v3117_v62, %v2701_v59  ;;  %v9557_v62 = vld [vmem:[%s10173_s29 + $0x180] sm:$0xff] }
  0xd7   : > { %v3182_v3 = vsel %vm3181_vm5, %v3149_v0, %v2765_v61  ;;  %v1517_v6 = vmax.f32 %v1389_v32, %v1391_v1  ;;  %8113 = vmatmul.msk.bf16.gmra.mxu2 %vm860_vm1, %v9557_v62 }
  0xd8   : > { %v3215_v5 = vsel %vm3214_vm6, %v3182_v3, %v2861_v63  ;;  %v9566_v63 = vld [vmem:[%s10173_s29 + $0x1c8] sm:$0xff]  ;;  %v3053_v3 = vrot.slane %v10214_v56, 7 }
  0xd9   : > { %v3248_v9 = vsel %vm3247_vm7, %v3215_v5, %v2925_v2  ;;  %v9522_v2 = vld [vmem:[%s10173_s29 + $0x68] sm:$0xff]  ;;  %8122 = vmatmul.msk.bf16.gmra.mxu3 %vm860_vm1, %v9566_v63 }
  0xda   : > { %v10229_v11 = vsel %vm2316_vm4, %v3248_v9, %v2989_v4  ;;  %v1081_v12 = vpop.f32.mrf.mxu0 }
  0xdb   : > { %v1082_v13 = vadd.f32 %v10196_v16, %v1081_v12  ;;  %v10269_v8 = vsel %vm2027_vm3, %v10229_v11, %v3053_v3 }
  0xdd   : > { %v1392_v14 = vmax.f32 %v1082_v13, 0.0  ;;  %8076 = vmatmul.msk.bf16.gmra.mxu0 %vm860_vm1, %v9520_v10 }
  0xdf   : > { %v1580_v15 = vmax.f32 %v1516_v54, %v1392_v14 }
  0xe1   : > { %v1710_v18 = vrot.slane %v1580_v15, 7 }
  0xe2   : > { %v1083_v17 = vpop.f32.mrf.mxu0 }
  0xe3   : > { %v1084_v19 = vadd.f32 %v10196_v16, %v1083_v17  ;;  %v1900_v21 = vsel %vm1706_vm2, 0.0, %v1710_v18 }
  0xe4   : > { %v2033_v27 = vrot.slane %v1900_v21, 1  ;;  %v2322_v29 = vrot.slane %v1900_v21, 2 }
  0xe5   : > { %v1393_v20 = vmax.f32 %v1084_v19, 0.0  ;;  %v9567_v19 = vld [vmem:[%s10173_s29 + $0x1d0] sm:$0xff] }
  0xe7   : > { %v1581_v22 = vmax.f32 %v1517_v6, %v1393_v20 }
  0xe9   : > { %v1711_v25 = vrot.slane %v1581_v22, 7  ;;  %8123 = vmatmul.msk.bf16.gmra.mxu3 %vm860_vm1, %v9567_v19 }
  0xea   : > { %v1086_v28 = vpop.f32.mrf.mxu0 }
  0xeb   : > { %v1712_v30 = vsel %vm1706_vm2, %v1710_v18, %v1711_v25  ;;  %v1932_v31 = vsel %vm1706_vm2, %v1711_v25, 0.0  ;;  %v1087_v32 = vadd.f32 %v10196_v16, %v1086_v28  ;;  %v9558_v18 = vld [vmem:[%s10173_s29 + $0x188] sm:$0xff] }
  0xec   : > { %v2034_v33 = vrot.slane %v1712_v30, 1  ;;  %v2036_v34 = vrot.slane %v1932_v31, 1  ;;  %v2323_v35 = vrot.slane %v1712_v30, 2  ;;  %v2325_v36 = vrot.slane %v1932_v31, 2  ;;  %8114 = vmatmul.msk.bf16.gmra.mxu2 %vm860_vm1, %v9558_v18 }
  0xed   : > { %v1394_v37 = vmax.f32 %v1087_v32, 0.0  ;;  %8077 = vmatmul.msk.bf16.gmra.mxu0 %vm860_vm1, %v9521_v26 }
  0xee   : > { %v2035_v38 = vsel %vm2027_vm3, %v2033_v27, %v2034_v33  ;;  %v2037_v39 = vsel %vm2027_vm3, %v2034_v33, %v2036_v34  ;;  %v2324_v40 = vsel %vm2316_vm4, %v2322_v29, %v2323_v35  ;;  %v2326_v41 = vsel %vm2316_vm4, %v2323_v35, %v2325_v36 }
  0xef   : > { %v2254_v42 = vmax.f32 %v1900_v21, %v2035_v38  ;;  %v2255_v43 = vmax.f32 %v1712_v30, %v2037_v39  ;;  %v1518_v44 = vmax.f32 %v1392_v14, %v1394_v37  ;;  %v9523_v21 = vld [vmem:[%s10173_s29 + $0x70] sm:$0xff] }
  0xf1   : > { %v2543_v45 = vmax.f32 %v2254_v42, %v2324_v40  ;;  %v2544_v46 = vmax.f32 %v2255_v43, %v2326_v41 }
  0xf2   : > { %v1088_v47 = vpop.f32.mrf.mxu0 }
  0xf3   : > { %v2638_v48 = vrot.slane %v2543_v45, 1  ;;  %v2702_v49 = vrot.slane %v2543_v45, 2  ;;  %v1089_v50 = vadd.f32 %v10196_v16, %v1088_v47  ;;  %v2766_v51 = vrot.slane %v2543_v45, 3 }
  0xf4   : > { %v2862_v53 = vrot.slane %v2544_v46, 4  ;;  %v2926_v57 = vrot.slane %v2544_v46, 5  ;;  %v2990_v59 = vrot.slane %v2544_v46, 6  ;;  %v3054_v0 = vrot.slane %v2544_v46, 7 }
  0xf5   : > { %v3118_v52 = vsel %vm1706_vm2, %v2543_v45, %v2638_v48  ;;  %v1395_v55 = vmax.f32 %v1089_v50, 0.0 }
  0xf6   : > { %v3150_v54 = vsel %vm1053_vm0, %v3118_v52, %v2702_v49 }
  0xf7   : > { %v3183_v58 = vsel %vm3181_vm5, %v3150_v54, %v2766_v51  ;;  %v1519_v61 = vmax.f32 %v1393_v20, %v1395_v55  ;;  %v9559_v55 = vld [vmem:[%s10173_s29 + $0x190] sm:$0xff] }
  0xf8   : > { %v3216_v60 = vsel %vm3214_vm6, %v3183_v58, %v2862_v53 }
  0xf9   : > { %v3249_v1 = vsel %vm3247_vm7, %v3216_v60, %v2926_v57  ;;  %v9568_v57 = vld [vmem:[%s10173_s29 + $0x1d8] sm:$0xff] }
  0xfa   : > { %v1091_v4 = vpop.f32.mrf.mxu0  ;;  %v3281_v5 = vsel %vm2316_vm4, %v3249_v1, %v2990_v59  ;;  %v9524_v60 = vld [vmem:[%s10173_s29 + $0x78] sm:$0xff]  ;;  %8124 = vmatmul.msk.bf16.gmra.mxu3 %vm860_vm1, %v9568_v57 }
  0xfb   : > { %v1092_v6 = vadd.f32 %v10196_v16, %v1091_v4  ;;  %v10265_v7 = vsel %vm2027_vm3, %v3281_v5, %v3054_v0 }
  0xfc   : > { %8115 = vmatmul.msk.bf16.gmra.mxu2 %vm860_vm1, %v9559_v55 }
  0xfd   : > { %v1396_v56 = vmax.f32 %v1092_v6, 0.0  ;;  %8078 = vmatmul.msk.bf16.gmra.mxu0 %vm860_vm1, %v9522_v2 }
  0xff   : > { %v1582_v9 = vmax.f32 %v1518_v44, %v1396_v56 }
 0x101   : > { %v1713_v12 = vrot.slane %v1582_v9, 7 }
 0x102   : > { %v1093_v10 = vpop.f32.mrf.mxu0 }
 0x103   : > { %v1094_v13 = vadd.f32 %v10196_v16, %v1093_v10  ;;  %v1901_v15 = vsel %vm1706_vm2, 0.0, %v1713_v12  ;;  %v9551_v10 = vld [vmem:[%s10173_s29 + $0x150] sm:$0xff] }
 0x104   : > { %v2038_v22 = vrot.slane %v1901_v15, 1  ;;  %v2327_v11 = vrot.slane %v1901_v15, 2  ;;  %8107 = vmatmul.msk.bf16.vlgmr.msra.gmra.mxu1 %vm860_vm1, %v9551_v10  ;;  %v9571_v10 = vld [vmem:[%s10173_s29 + $0x1f0] sm:$0xff] }
 0x105   : > { %v1397_v14 = vmax.f32 %v1094_v13, 0.0  ;;  %v9569_v13 = vld [vmem:[%s10173_s29 + $0x1e0] sm:$0xff] }
 0x107   : > { %v1583_v17 = vmax.f32 %v1519_v61, %v1397_v14 }
 0x109   : > { %v1714_v20 = vrot.slane %v1583_v17, 7 }
 0x10a   : > { %v1096_v23 = vpop.f32.mrf.mxu0  ;;  %8125 = vmatmul.msk.bf16.gmra.mxu3 %vm860_vm1, %v9569_v13  ;;  %v9582_v13 = vld [vmem:[%s15247_s3 + $0x38] sm:$0xff] }
 0x10b   : > { %v1715_v24 = vsel %vm1706_vm2, %v1713_v12, %v1714_v20  ;;  %v1933_v25 = vsel %vm1706_vm2, %v1714_v20, 0.0  ;;  %v1097_v26 = vadd.f32 %v10196_v16, %v1096_v23  ;;  %v9560_v12 = vld [vmem:[%s10173_s29 + $0x198] sm:$0xff]  ;;  %5106 = vmatpush.bf16.msrb.mxu1 %v9582_v13 }
 0x10c   : > { %v2039_v27 = vrot.slane %v1715_v24, 1  ;;  %v2041_v28 = vrot.slane %v1933_v25, 1  ;;  %v2328_v29 = vrot.slane %v1715_v24, 2  ;;  %v2330_v30 = vrot.slane %v1933_v25, 2  ;;  %8116 = vmatmul.msk.bf16.gmra.mxu2 %vm860_vm1, %v9560_v12 }
 0x10d   : > { %v1398_v31 = vmax.f32 %v1097_v26, 0.0  ;;  %8079 = vmatmul.msk.bf16.gmra.mxu0 %vm860_vm1, %v9523_v21 }
 0x10e   : > { %v2040_v32 = vsel %vm2027_vm3, %v2038_v22, %v2039_v27  ;;  %v2042_v33 = vsel %vm2027_vm3, %v2039_v27, %v2041_v28  ;;  %v2329_v34 = vsel %vm2316_vm4, %v2327_v11, %v2328_v29  ;;  %v2331_v35 = vsel %vm2316_vm4, %v2328_v29, %v2330_v30 }
 0x10f   : > { %v2256_v36 = vmax.f32 %v1901_v15, %v2040_v32  ;;  %v2257_v37 = vmax.f32 %v1715_v24, %v2042_v33  ;;  %v1520_v38 = vmax.f32 %v1396_v56, %v1398_v31  ;;  %v9525_v15 = vld [vmem:[%s10173_s29 + $0x80] sm:$0xff] }
 0x111   : > { %v2545_v39 = vmax.f32 %v2256_v36, %v2329_v34  ;;  %v2546_v40 = vmax.f32 %v2257_v37, %v2331_v35 }
 0x112   : > { %v1098_v41 = vpop.f32.mrf.mxu0 }
 0x113   : > { %v2639_v42 = vrot.slane %v2545_v39, 1  ;;  %v2703_v43 = vrot.slane %v2545_v39, 2  ;;  %v1099_v44 = vadd.f32 %v10196_v16, %v1098_v41  ;;  %v2767_v45 = vrot.slane %v2545_v39, 3 }
 0x114   : > { %v2863_v47 = vrot.slane %v2546_v40, 4  ;;  %v2927_v50 = vrot.slane %v2546_v40, 5  ;;  %v2991_v52 = vrot.slane %v2546_v40, 6  ;;  %v3055_v58 = vrot.slane %v2546_v40, 7 }
 0x115   : > { %v3119_v46 = vsel %vm1706_vm2, %v2545_v39, %v2639_v42  ;;  %v1399_v49 = vmax.f32 %v1099_v44, 0.0 }
 0x116   : > { %v3151_v48 = vsel %vm1053_vm0, %v3119_v46, %v2703_v43 }
 0x117   : > { %v3184_v51 = vsel %vm3181_vm5, %v3151_v48, %v2767_v45  ;;  %v1521_v54 = vmax.f32 %v1397_v14, %v1399_v49 }
 0x118   : > { %v3217_v53 = vsel %vm3214_vm6, %v3184_v51, %v2863_v47  ;;  %v9561_v51 = vld [vmem:[%s10173_s29 + $0x1a0] sm:$0xff] }
 0x119   : > { %v3250_v59 = vsel %vm3247_vm7, %v3217_v53, %v2927_v50  ;;  %v9552_v50 = vld [vmem:[%s10173_s29 + $0x158] sm:$0xff] }
 0x11a   : > { %v3282_v61 = vsel %vm2316_vm4, %v3250_v59, %v2991_v52  ;;  %v1101_v62 = vpop.f32.mrf.mxu0  ;;  %v9570_v52 = vld [vmem:[%s10173_s29 + $0x1e8] sm:$0xff]  ;;  %8108 = vmatmul.msk.bf16.gmra.mxu1 %vm860_vm1, %v9552_v50 }
 0x11b   : > { %v10300_v63 = vsel %vm2027_vm3, %v3282_v61, %v3055_v58  ;;  %v1102_v0 = vadd.f32 %v10196_v16, %v1101_v62  ;;  %8126 = vmatmul.msk.bf16.gmra.mxu3 %vm860_vm1, %v9570_v52  ;;  %v9528_v52 = vld [vmem:[%s10173_s29 + $0x98] sm:$0xff] }
 0x11c   : > { %8117 = vmatmul.msk.bf16.gmra.mxu2 %vm860_vm1, %v9561_v51 }
 0x11d   : > { %v1400_v1 = vmax.f32 %v1102_v0, 0.0  ;;  %8080 = vmatmul.msk.bf16.gmra.mxu0 %vm860_vm1, %v9524_v60 }
 0x11f   : > { %v1584_v2 = vmax.f32 %v1520_v38, %v1400_v1 }
 0x121   : > { %v1716_v4 = vrot.slane %v1584_v2, 7 }
 0x122   : > { %v1103_v3 = vpop.f32.mrf.mxu0 }
 0x123   : > { %v1104_v5 = vadd.f32 %v10196_v16, %v1103_v3  ;;  %v1902_v56 = vsel %vm1706_vm2, 0.0, %v1716_v4 }
 0x124   : > { %v2043_v17 = vrot.slane %v1902_v56, 1  ;;  %v2332_v19 = vrot.slane %v1902_v56, 2 }
 0x125   : > { %v1401_v6 = vmax.f32 %v1104_v5, 0.0  ;;  %v9527_v5 = vld [vmem:[%s10173_s29 + $0x90] sm:$0xff] }
 0x127   : > { %v1585_v9 = vmax.f32 %v1521_v54, %v1401_v6  ;;  %v9526_v54 = vld [vmem:[%s10173_s29 + $0x88] sm:$0xff] }
 0x129   : > { %v1717_v14 = vrot.slane %v1585_v9, 7  ;;  %v9562_v9 = vld [vmem:[%s10173_s29 + $0x1a8] sm:$0xff] }
 0x12a   : > { %v1106_v18 = vpop.f32.mrf.mxu0 }
 0x12b   : > { %v1718_v20 = vsel %vm1706_vm2, %v1716_v4, %v1717_v14  ;;  %v1934_v21 = vsel %vm1706_vm2, %v1717_v14, 0.0  ;;  %v1107_v22 = vadd.f32 %v10196_v16, %v1106_v18  ;;  %v9590_v14 = vld [vmem:[%s15247_s3 + $0x78] sm:$0xff]  ;;  %8127 = vmatmul.msk.bf16.gmra.mxu3 %vm860_vm1, %v9571_v10  ;;  %v10049_v10 = vmov 0.0  }
 0x12c   : > { %v2044_v23 = vrot.slane %v1718_v20, 1  ;;  %v2046_v11 = vrot.slane %v1934_v21, 1  ;;  %v2333_v24 = vrot.slane %v1718_v20, 2  ;;  %v2335_v25 = vrot.slane %v1934_v21, 2  ;;  %8118 = vmatmul.msk.bf16.gmra.mxu2 %vm860_vm1, %v9562_v9 }
 0x12d   : > { %v1402_v26 = vmax.f32 %v1107_v22, 0.0  ;;  %8081 = vmatmul.msk.bf16.gmra.mxu0 %vm860_vm1, %v9525_v15  ;;  %v9598_v15 = vld [vmem:[%s15247_s3 + $0xb8] sm:$0xff]  ;;  %5135 = vmatpush.bf16.msrb.mxu2 %v9590_v14 }
 0x12e   : > { %v2045_v27 = vsel %vm2027_vm3, %v2043_v17, %v2044_v23  ;;  %v2047_v28 = vsel %vm2027_vm3, %v2044_v23, %v2046_v11  ;;  %v2334_v29 = vsel %vm2316_vm4, %v2332_v19, %v2333_v24  ;;  %v2336_v30 = vsel %vm2316_vm4, %v2333_v24, %v2335_v25  ;;  %5164 = vmatpush.bf16.msrb.mxu3 %v9598_v15  ;;  %v9581_v25 = vld [vmem:[%s15247_s3 + $0x30] sm:$0xff]  ;;  %v10438_v15 = vpop.f32.mrf.mxu2 }
 0x12f   : > { %v2258_v31 = vmax.f32 %v1902_v56, %v2045_v27  ;;  %v2259_v32 = vmax.f32 %v1718_v20, %v2047_v28  ;;  %v1522_v33 = vmax.f32 %v1400_v1, %v1402_v26  ;;  %v9553_v56 = vld [vmem:[%s10173_s29 + $0x160] sm:$0xff]  ;;  %v9589_v26 = vld [vmem:[%s15247_s3 + $0x70] sm:$0xff]  ;;  %5107 = vmatpush.bf16.msrb.mxu1 %v9581_v25  ;;  %v9576_v25 = vld [vmem:[%s15247_s3 + $0x8] sm:$0xff] }
 0x130   : > { %8109 = vmatmul.msk.bf16.gmra.mxu1 %vm860_vm1, %v9553_v56  ;;  %v9597_v27 = vld [vmem:[%s15247_s3 + $0xb0] sm:$0xff] }
 0x131   : > { %v2547_v34 = vmax.f32 %v2258_v31, %v2334_v29  ;;  %v2548_v35 = vmax.f32 %v2259_v32, %v2336_v30  ;;  %5136 = vmatpush.bf16.msrb.mxu2 %v9589_v26 }
 0x132   : > { %v1108_v36 = vpop.f32.mrf.mxu0  ;;  %5165 = vmatpush.bf16.msrb.mxu3 %v9597_v27 }
 0x133   : > { %v2640_v37 = vrot.slane %v2547_v34, 1  ;;  %v2704_v38 = vrot.slane %v2547_v34, 2  ;;  %v1109_v39 = vadd.f32 %v10196_v16, %v1108_v36  ;;  %v2768_v40 = vrot.slane %v2547_v34, 3  ;;  %v9580_v36 = vld [vmem:[%s15247_s3 + $0x28] sm:$0xff] }
 0x134   : > { %v2864_v42 = vrot.slane %v2548_v35, 4  ;;  %v2928_v45 = vrot.slane %v2548_v35, 5  ;;  %v2992_v47 = vrot.slane %v2548_v35, 6  ;;  %v3056_v53 = vrot.slane %v2548_v35, 7  ;;  %5108 = vmatpush.bf16.msrb.mxu1 %v9580_v36  ;;  %v9575_v36 = vld [vmem:[%s15247_s3] sm:$0xff] }
 0x135   : > { %v3120_v41 = vsel %vm1706_vm2, %v2547_v34, %v2640_v37  ;;  %v1403_v44 = vmax.f32 %v1109_v39, 0.0  ;;  %v9588_v37 = vld [vmem:[%s15247_s3 + $0x68] sm:$0xff] }
 0x136   : > { %v3152_v43 = vsel %vm1053_vm0, %v3120_v41, %v2704_v38  ;;  %v9596_v38 = vld [vmem:[%s15247_s3 + $0xa8] sm:$0xff]  ;;  %5137 = vmatpush.bf16.msrb.mxu2 %v9588_v37  ;;  %v9583_v37 = vld [vmem:[%s15247_s3 + $0x40] sm:$0xff] }
 0x137   : > { %v3185_v46 = vsel %vm3181_vm5, %v3152_v43, %v2768_v40  ;;  %v1523_v49 = vmax.f32 %v1401_v6, %v1403_v44  ;;  %5166 = vmatpush.bf16.msrb.mxu3 %v9596_v38  ;;  %v9579_v44 = vld [vmem:[%s15247_s3 + $0x20] sm:$0xff] }
 0x138   : > { %v3218_v48 = vsel %vm3214_vm6, %v3185_v46, %v2864_v42  ;;  %v9595_v46 = vld [vmem:[%s15247_s3 + $0xa0] sm:$0xff]  ;;  %5109 = vmatpush.bf16.msrb.mxu1 %v9579_v44 }
 0x139   : > { %v3251_v55 = vsel %vm3247_vm7, %v3218_v48, %v2928_v45  ;;  %v9587_v45 = vld [vmem:[%s15247_s3 + $0x60] sm:$0xff] }
 0x13a   : > { %v1111_v57 = vpop.f32.mrf.mxu0  ;;  %v3283_v58 = vsel %vm2316_vm4, %v3251_v55, %v2992_v47  ;;  %5138 = vmatpush.bf16.msrb.mxu2 %v9587_v45  ;;  %v9554_v55 = vld [vmem:[%s10173_s29 + $0x168] sm:$0xff]  ;;  %v9591_v38 = vld [vmem:[%s15247_s3 + $0x80] sm:$0xff] }
 0x13b   : > { %v10335_v59 = vadd.f32 %v10196_v16, %v1111_v57  ;;  %v10339_v60 = vsel %vm2027_vm3, %v3283_v58, %v3056_v53  ;;  %5167 = vmatpush.bf16.msrb.mxu3 %v9595_v46  ;;  %v9563_v57 = vld [vmem:[%s10173_s29 + $0x1b0] sm:$0xff]  ;;  %v9572_v58 = vld [vmem:[%s10173_s29 + $0x1f8] sm:$0xff]  ;;  %v9529_v45 = vld [vmem:[%s10173_s29 + $0xa0] sm:$0xff] }
 0x13c   : > { %8119 = vmatmul.msk.bf16.gmra.mxu2 %vm860_vm1, %v9563_v57  ;;  %8128 = vmatmul.msk.bf16.gmra.mxu3 %vm860_vm1, %v9572_v58 }
 0x13d   : > { %v1404_v61 = vmax.f32 %v10335_v59, 0.0  ;;  %8082 = vmatmul.msk.bf16.gmra.mxu0 %vm860_vm1, %v9526_v54  ;;  %v9584_v59 = vld [vmem:[%s15247_s3 + $0x48] sm:$0xff] }
 0x13f   : > { %v1586_v62 = vmax.f32 %v1522_v33, %v1404_v61 }
 0x140   : > { %8110 = vmatmul.msk.bf16.gmra.mxu1 %vm860_vm1, %v9554_v55 }
 0x141   : > { %v1719_v2 = vrot.slane %v1586_v62, 7 }
 0x142   : > { %v1113_v0 = vpop.f32.mrf.mxu0 }
 0x143   : > { %v10346_v1 = vadd.f32 %v10196_v16, %v1113_v0  ;;  %v1903_v6 = vsel %vm1706_vm2, 0.0, %v1719_v2  ;;  %v9578_v0 = vld [vmem:[%s15247_s3 + $0x18] sm:$0xff] }
 0x144   : > { %v2048_v18 = vrot.slane %v1903_v6, 1  ;;  %v2337_v19 = vrot.slane %v1903_v6, 2  ;;  %5110 = vmatpush.bf16.msrb.mxu1 %v9578_v0 }
 0x145   : > { %v1405_v3 = vmax.f32 %v10346_v1, 0.0 }
 0x147   : > { %v1587_v4 = vmax.f32 %v1523_v49, %v1405_v3 }
 0x149   : > { %v1720_v12 = vrot.slane %v1587_v4, 7  ;;  %v9594_v4 = vld [vmem:[%s15247_s3 + $0x98] sm:$0xff] }
 0x14a   : > { %v1116_v17 = vpop.f32.mrf.mxu0  ;;  %5168 = vmatpush.bf16.msrb.mxu3 %v9594_v4 }
 0x14b   : > { %v1721_v20 = vsel %vm1706_vm2, %v1719_v2, %v1720_v12  ;;  %v1935_v21 = vsel %vm1706_vm2, %v1720_v12, 0.0  ;;  %v1117_v51 = vadd.f32 %v10196_v16, %v1116_v17  ;;  %v9586_v2 = vld [vmem:[%s15247_s3 + $0x58] sm:$0xff]  ;;  %v3377_v12 = vrot.slane %v10049_v10, 7  ;;  %v10440_v17 = vpop.f32.mrf.mxu3 }
 0x14c   : > { %v2049_v22 = vrot.slane %v1721_v20, 1  ;;  %v2051_v23 = vrot.slane %v1935_v21, 1  ;;  %v2338_v11 = vrot.slane %v1721_v20, 2  ;;  %v2340_v24 = vrot.slane %v1935_v21, 2  ;;  %5139 = vmatpush.bf16.msrb.mxu2 %v9586_v2 }
 0x14d   : > { %8083 = vmatmul.msk.bf16.gmra.mxu0 %vm860_vm1, %v9527_v5  ;;  %v1406_v56 = vmax.f32 %v1117_v51, 0.0  ;;  %v3476_v51 = vsel %vm1706_vm2, %v3377_v12, 0.0 }
 0x14e   : > { %v2050_v28 = vsel %vm2027_vm3, %v2048_v18, %v2049_v22  ;;  %v2052_v29 = vsel %vm2027_vm3, %v2049_v22, %v2051_v23  ;;  %v2339_v30 = vsel %vm2316_vm4, %v2337_v19, %v2338_v11  ;;  %v2341_v31 = vsel %vm2316_vm4, %v2338_v11, %v2340_v24  ;;  %v9577_v18 = vld [vmem:[%s15247_s3 + $0x10] sm:$0xff] }
 0x14f   : > { %v2260_v32 = vmax.f32 %v1903_v6, %v2050_v28  ;;  %v2261_v33 = vmax.f32 %v1721_v20, %v2052_v29  ;;  %v9585_v19 = vld [vmem:[%s15247_s3 + $0x50] sm:$0xff]  ;;  %v1524_v21 = vmax.f32 %v1404_v61, %v1406_v56  ;;  %5111 = vmatpush.bf16.msrb.mxu1 %v9577_v18  ;;  %v3379_v22 = vrot.slane %v10265_v7, 7  ;;  %v9592_v61 = vld [vmem:[%s15247_s3 + $0x88] sm:$0xff] }
 0x150   : > { %v9593_v20 = vld [vmem:[%s15247_s3 + $0x90] sm:$0xff]  ;;  %5140 = vmatpush.bf16.msrb.mxu2 %v9585_v19  ;;  %v10455_v23 = vsel %vm1706_vm2, 0.0, %v3377_v12 }
 0x151   : > { %v2549_v34 = vmax.f32 %v2260_v32, %v2339_v30  ;;  %v10384_v35 = vmax.f32 %v2261_v33, %v2341_v31  ;;  %5169 = vmatpush.bf16.msrb.mxu3 %v9593_v20  ;;  %v3522_v28 = vrot.slane %v10455_v23, 1  ;;  %v3548_v29 = vrot.slane %v10455_v23, 2 }
 0x152   : > { %v1118_v39 = vpop.f32.mrf.mxu0  ;;  %v10476_v30 = vsel %vm1706_vm2, 0.0, %v3379_v22  ;;  %v3574_v1 = vrot.slane %v10455_v23, 3  ;;  %v3639_v46 = vrot.slane %v10455_v23, 4 }
 0x153   : > { %v2641_v40 = vrot.slane %v2549_v34, 1  ;;  %v2705_v41 = vrot.slane %v2549_v34, 2  ;;  %v2769_v42 = vrot.slane %v2549_v34, 3  ;;  %v2865_v47 = vrot.slane %v10384_v35, 4  ;;  %5112 = vmatpush.bf16.msrb.mxu1 %v9576_v25 }
 0x154   : > { %v2929_v49 = vrot.slane %v10384_v35, 5  ;;  %v2993_v53 = vrot.slane %v10384_v35, 6  ;;  %v1119_v13 = vadd.f32 %v10196_v16, %v1118_v39  ;;  %5141 = vmatpush.bf16.msrb.mxu2 %v9584_v59  ;;  %v10495_v39 = vpop.f32.mrf.mxu3  ;;  %v3743_v56 = vsel %vm1706_vm2, %v3548_v29, %v3574_v1 }
 0x155   : > { %v3121_v43 = vsel %vm1706_vm2, %v2549_v34, %v2641_v40  ;;  %5170 = vmatpush.bf16.msrb.mxu3 %v9592_v61  ;;  %v10481_v34 = vpop.f32.mrf.mxu2  ;;  %v3523_v40 = vrot.slane %v10476_v30, 1  ;;  %v3640_v25 = vrot.slane %v10476_v30, 4  ;;  %v3717_v59 = vrot.slane %v3476_v51, 5 }
 0x156   : > { %v3153_v48 = vsel %vm1053_vm0, %v3121_v43, %v2705_v41  ;;  %v1407_v11 = vmax.f32 %v1119_v13, 0.0  ;;  %v3600_v41 = vsel %vm1706_vm2, %v10455_v23, %v3522_v28  ;;  %v3756_v61 = vsel %vm1053_vm0, %v3743_v56, %v3639_v46 }
 0x157   : > { %v3186_v50 = vsel %vm3181_vm5, %v3153_v48, %v2769_v42  ;;  %5113 = vmatpush.bf16.msrb.mxu1 %v9575_v36  ;;  %v3665_v42 = vsel %vm1706_vm2, %v3522_v28, %v3548_v29  ;;  %v3549_v48 = vrot.slane %v10476_v30, 2  ;;  %v3601_v55 = vsel %vm1706_vm2, %v10476_v30, %v3523_v40 }
 0x158   : > { %v3219_v54 = vsel %vm3214_vm6, %v3186_v50, %v2865_v47  ;;  %v1525_v31 = vmax.f32 %v1405_v3, %v1407_v11  ;;  %5142 = vmatpush.bf16.msrb.mxu2 %v9583_v37  ;;  %v3678_v50 = vsel %vm1053_vm0, %v3665_v42, %v3574_v1  ;;  %v3381_v36 = vrot.slane %v10339_v60, 7 }
 0x159   : > { %v3252_v62 = vsel %vm3247_vm7, %v3219_v54, %v2929_v49  ;;  %5171 = vmatpush.bf16.msrb.mxu3 %v9591_v38  ;;  %v3613_v49 = vsel %vm1053_vm0, %v3600_v41, %v3548_v29  ;;  %v3666_v18 = vsel %vm1706_vm2, %v3523_v40, %v3549_v48  ;;  %v3614_v11 = vsel %vm1053_vm0, %v3601_v55, %v3549_v48 }
 0x15a   : > { %v10427_v5 = vsel %vm2316_vm4, %v3252_v62, %v2993_v53  ;;  %v1121_v6 = vpop.f32.mrf.mxu0  ;;  %v10540_v40 = vsel %vm3181_vm5, %v3613_v49, %v3574_v1  ;;  %v10543_v41 = vsel %vm3181_vm5, %v3678_v50, %v3639_v46  ;;  %v10557_v49 = vsel %vm1706_vm2, 0.0, %v3381_v36 }
 0x15b   : > { %v10432_v9 = vadd.f32 %v10196_v16, %v1121_v6  ;;  %v3575_v6 = vrot.slane %v10476_v30, 3  ;;  %v3478_v30 = vsel %vm1706_vm2, %v3379_v22, 0.0  ;;  %15371 = vst [vmem:[#allocation6_spill] sm:$0xff] %v10543_v41  ;;  %v3550_v56 = vrot.slane %v10557_v49, 2 }
 0x15c   : > { %v3718_v1 = vrot.slane %v3478_v30, 5 }
 0x15d   : > { %v1408_v14 = vmax.f32 %v10432_v9, 0.0  ;;  %8084 = vmatmul.msk.bf16.gmra.mxu0 %vm860_vm1, %v9528_v52  ;;  %v10519_v19 = vpop.f32.mrf.mxu2  ;;  %v3679_v29 = vsel %vm1053_vm0, %v3666_v18, %v3575_v6  ;;  %v10534_v37 = vsel %vm3181_vm5, %v3614_v11, %v3575_v6 }
 0x15e   : > { %15370 = vst [vmem:[#allocation5_spill] sm:$0xff] %v10534_v37 }
 0x15f   : > { %v1588_v24 = vmax.f32 %v1524_v21, %v1408_v14 }
 0x161   : > { %v1722_v32 = vrot.slane %v1588_v24, 7 }
 0x162   : > { %v1123_v26 = vpop.f32.mrf.mxu0 }
 0x163   : > { %v10469_v27 = vadd.f32 %v10196_v16, %v1123_v26  ;;  %v1904_v43 = vsel %vm1706_vm2, 0.0, %v1722_v32 }
 0x164   : > { %v2053_v57 = vrot.slane %v1904_v43, 1  ;;  %v2342_v10 = vrot.slane %v1904_v43, 2 }
 0x165   : > { %v1409_v33 = vmax.f32 %v10469_v27, 0.0  ;;  %v10559_v50 = vpop.f32.mrf.mxu2 }
 0x167   : > { %v1589_v3 = vmax.f32 %v1525_v31, %v1409_v33  ;;  %v3744_v31 = vsel %vm1706_vm2, %v3549_v48, %v3575_v6  ;;  %v3524_v6 = vrot.slane %v10557_v49, 1 }
 0x168   : > { %v3757_v60 = vsel %vm1053_vm0, %v3744_v31, %v3640_v25 }
 0x169   : > { %v1723_v44 = vrot.slane %v1589_v3, 7 }
 0x16a   : > { %v1126_v47 = vpop.f32.mrf.mxu0 }
 0x16b   : > { %v1724_v52 = vsel %vm1706_vm2, %v1722_v32, %v1723_v44  ;;  %v1936_v53 = vsel %vm1706_vm2, %v1723_v44, 0.0  ;;  %v1127_v54 = vadd.f32 %v10196_v16, %v1126_v47  ;;  %v1346_v32 = vpop.f32.mrf.mxu3  ;;  %v10551_v44 = vsel %vm3181_vm5, %v3756_v61, %v3717_v59 }
 0x16c   : > { %v2054_v58 = vrot.slane %v1724_v52, 1  ;;  %v2056_v62 = vrot.slane %v1936_v53, 1  ;;  %v2343_v0 = vrot.slane %v1724_v52, 2  ;;  %v2345_v2 = vrot.slane %v1936_v53, 2 }
 0x16d   : > { %v1410_v4 = vmax.f32 %v1127_v54, 0.0  ;;  %8085 = vmatmul.msk.bf16.gmra.mxu0 %vm860_vm1, %v9529_v45  ;;  %v4211_v45 = vrot.slane %v10534_v37, 4  ;;  %v10564_v54 = vsel %vm3181_vm5, %v3757_v60, %v3718_v1  ;;  %v3641_v59 = vrot.slane %v10557_v49, 4 }
 0x16e   : > { %v2055_v12 = vsel %vm2027_vm3, %v2053_v57, %v2054_v58  ;;  %v2057_v13 = vsel %vm2027_vm3, %v2054_v58, %v2056_v62  ;;  %v2344_v24 = vsel %vm2316_vm4, %v2342_v10, %v2343_v0  ;;  %v2346_v26 = vsel %vm2316_vm4, %v2343_v0, %v2345_v2  ;;  %15373 = vst [vmem:[#allocation8_spill] sm:$0xff] %v10564_v54 }
 0x16f   : > { %v2262_v20 = vmax.f32 %v1904_v43, %v2055_v12  ;;  %v2263_v21 = vmax.f32 %v1724_v52, %v2057_v13  ;;  %v10523_v23 = vmax.f32 %v1408_v14, %v1410_v4  ;;  %v10547_v43 = vsel %vm3181_vm5, %v3679_v29, %v3640_v25  ;;  %v9530_v4 = vld [vmem:[%s10173_s29 + $0xa8] sm:$0xff] }
 0x170   : > { %15372 = vst [vmem:[#allocation7_spill] sm:$0xff] %v10547_v43  ;;  %v4212_v53 = vrot.slane %v10547_v43, 4  ;;  %v10573_v62 = vadd.f32 %v10196_v16, %v10440_v17  ;;  %v3576_v13 = vrot.slane %v10557_v49, 3  ;;  %v10583_v27 = vsel %vm3214_vm6, %v10540_v40, %v4211_v45 }
 0x171   : > { %v2551_v28 = vmax.f32 %v2262_v20, %v2344_v24  ;;  %v2552_v9 = vmax.f32 %v2263_v21, %v2346_v26  ;;  %v3480_v17 = vsel %vm1706_vm2, %v3381_v36, 0.0  ;;  %v4213_v21 = vrot.slane %v10564_v54, 4 }
 0x172   : > { %v1128_v14 = vpop.f32.mrf.mxu0  ;;  %15374 = vst [vmem:[#allocation9_spill] sm:$0xff] %v10573_v62  ;;  %v10592_v20 = vsel %vm3214_vm6, %v10543_v41, %v4212_v53  ;;  %v15257_v24 = vmax.f32 %v10573_v62, 0.0  ;;  %v1347_v61 = vadd.f32 %v10196_v16, %v1346_v32  ;;  %v3667_v29 = vsel %vm1706_vm2, %v3524_v6, %v3550_v56 }
 0x173   : > { %v2642_v38 = vrot.slane %v2551_v28, 1  ;;  %v2706_v3 = vrot.slane %v2551_v28, 2  ;;  %v1129_v42 = vadd.f32 %v10196_v16, %v1128_v14  ;;  %v2770_v7 = vrot.slane %v2551_v28, 3  ;;  %v10595_v11 = vpop.f32.mrf.mxu3 }
 0x174   : > { %v2866_v47 = vrot.slane %v2552_v9, 4  ;;  %v2930_v51 = vrot.slane %v2552_v9, 5  ;;  %v2994_v55 = vrot.slane %v2552_v9, 6  ;;  %v3058_v0 = vrot.slane %v2552_v9, 7 }
 0x175   : > { %v3122_v22 = vsel %vm1706_vm2, %v2551_v28, %v2642_v38  ;;  %v1411_v48 = vmax.f32 %v1129_v42, 0.0  ;;  %v3602_v28 = vsel %vm1706_vm2, %v10557_v49, %v3524_v6  ;;  %v3719_v31 = vrot.slane %v3480_v17, 5  ;;  %v10608_v38 = vpop.f32.mrf.mxu2 }
 0x176   : > { %v3154_v46 = vsel %vm1053_vm0, %v3122_v22, %v2706_v3  ;;  %v3745_v36 = vsel %vm1706_vm2, %v3550_v56, %v3576_v13  ;;  %v1498_v30 = vmax.f32 %v1347_v61, 0.0  ;;  %v3615_v60 = vsel %vm1053_vm0, %v3602_v28, %v3550_v56 }
 0x177   : > { %v3187_v52 = vsel %vm3181_vm5, %v3154_v46, %v2770_v7  ;;  %v10569_v58 = vmax.f32 %v1409_v33, %v1411_v48  ;;  %v3680_v22 = vsel %vm1053_vm0, %v3667_v29, %v3576_v13  ;;  %v3758_v48 = vsel %vm1053_vm0, %v3745_v36, %v3641_v59 }
 0x178   : > { %v3220_v57 = vsel %vm3214_vm6, %v3187_v52, %v2866_v47  ;;  %v1570_v45 = vmax.f32 %v15257_v24, %v1498_v30  ;;  %v10639_v6 = vsel %vm3181_vm5, %v3615_v60, %v3576_v13  ;;  %v3057_v17 = vrot.slane %v10384_v35, 7 }
 0x179   : > { %v3253_v2 = vsel %vm3247_vm7, %v3220_v57, %v2930_v51  ;;  %v10627_v57 = vld [vmem:[%s15246_s2] ss:$0 sm:$0xff]  ;;  %15377 = vst [vmem:[#allocation12_spill] sm:$0xff] %v10639_v6 }
 0x17a   : > { %v1131_v10 = vpop.f32.mrf.mxu0  ;;  %v3285_v12 = vsel %vm2316_vm4, %v3253_v2, %v2994_v55 }
 0x17b   : > { %v10587_v33 = vadd.f32 %v10196_v16, %v1131_v10  ;;  %v3317_v18 = vsel %vm2027_vm3, %v3285_v12, %v3058_v0  ;;  %v10643_v10 = vsel %vm3181_vm5, %v3680_v22, %v3641_v59  ;;  %v1351_v28 = vpop.f32.mrf.mxu3 }
 0x17c   : > { %v3383_v25 = vrot.slane %v3317_v18, 7  ;;  %15378 = vst [vmem:[#allocation13_spill] sm:$0xff] %v10643_v10  ;;  %v10660_v35 = vadd.f32 %v10627_v57, %v1351_v28 }
 0x17d   : > { %v1412_v26 = vmax.f32 %v10587_v33, 0.0  ;;  %8086 = vmatmul.msk.bf16.gmra.mxu0 %vm860_vm1, %v9530_v4  ;;  %v1307_v33 = vadd.f32 %v10627_v57, %v10608_v38 }
 0x17e   : > { %v3449_v9 = vsel %vm1706_vm2, 0.0, %v3383_v25  ;;  %v3482_v14 = vsel %vm1706_vm2, %v3383_v25, 0.0  ;;  %v10649_v25 = vsel %vm3181_vm5, %v3758_v48, %v3719_v31 }
 0x17f   : > { %v1590_v16 = vmax.f32 %v10523_v23, %v1412_v26  ;;  %v3525_v32 = vrot.slane %v3449_v9, 1  ;;  %v3551_v3 = vrot.slane %v3449_v9, 2  ;;  %v3577_v42 = vrot.slane %v3449_v9, 3  ;;  %15379 = vst [vmem:[#allocation14_spill] sm:$0xff] %v10649_v25 }
 0x180   : > { %v3642_v7 = vrot.slane %v3449_v9, 4  ;;  %v3720_v52 = vrot.slane %v3482_v14, 5 }
 0x181   : > { %v3603_v1 = vsel %vm1706_vm2, %v3449_v9, %v3525_v32  ;;  %v3668_v47 = vsel %vm1706_vm2, %v3525_v32, %v3551_v3  ;;  %v3746_v46 = vsel %vm1706_vm2, %v3551_v3, %v3577_v42  ;;  %v1725_v55 = vrot.slane %v1590_v16, 7  ;;  %v10662_v9 = vpop.f32.mrf.mxu2 }
 0x182   : > { %v1133_v23 = vpop.f32.mrf.mxu0  ;;  %v3616_v49 = vsel %vm1053_vm0, %v3603_v1, %v3551_v3  ;;  %v3681_v51 = vsel %vm1053_vm0, %v3668_v47, %v3577_v42  ;;  %v3759_v53 = vsel %vm1053_vm0, %v3746_v46, %v3642_v7  ;;  %v4420_v16 = vsel %vm3214_vm6, %v10551_v44, %v4213_v21 }
 0x183   : > { %v10630_v0 = vadd.f32 %v10627_v57, %v1133_v23  ;;  %v10633_v2 = vsel %vm3181_vm5, %v3616_v49, %v3577_v42  ;;  %v10636_v4 = vsel %vm3181_vm5, %v3681_v51, %v3642_v7  ;;  %v10652_v61 = vsel %vm3181_vm5, %v3759_v53, %v3720_v52  ;;  %v9531_v7 = vld [vmem:[%s10173_s29 + $0xb0] sm:$0xff] }
 0x184   : > { %15375 = vst [vmem:[#allocation10_spill] sm:$0xff] %v10633_v2  ;;  %v4238_v56 = vrot.slane %v10633_v2, 4  ;;  %v4239_v12 = vrot.slane %v10636_v4, 4  ;;  %v4240_v29 = vrot.slane %v10652_v61, 4  ;;  %v1905_v31 = vsel %vm1706_vm2, 0.0, %v1725_v55 }
 0x185   : > { %15376 = vst [vmem:[#allocation11_spill] sm:$0xff] %v10636_v4  ;;  %v1413_v18 = vmax.f32 %v10630_v0, 0.0  ;;  %v15260_v3 = vmax.f32 %v10660_v35, 0.0  ;;  %v10677_v42 = vsel %vm2027_vm3, %v10427_v5, %v3057_v17  ;;  %v2347_v21 = vrot.slane %v1905_v31, 2 }
 0x186   : > { %15380 = vst [vmem:[#allocation15_spill] sm:$0xff] %v10652_v61  ;;  %v4427_v13 = vsel %vm3214_vm6, %v10639_v6, %v4238_v56  ;;  %v4428_v59 = vsel %vm3214_vm6, %v10643_v10, %v4239_v12  ;;  %v4429_v32 = vsel %vm3214_vm6, %v10649_v25, %v4240_v29 }
 0x187   : > { %v1591_v14 = vmax.f32 %v10569_v58, %v1413_v18  ;;  %v4490_v36 = vpack.c.bf16 %v4427_v13, %v10583_v27  ;;  %v4491_v30 = vpack.c.bf16 %v4428_v59, %v10592_v20  ;;  %v4492_v58 = vpack.c.bf16 %v4429_v32, %v4420_v16 }
 0x188   : > { %v2058_v27 = vrot.slane %v1905_v31, 1  ;;  %v10682_v20 = vmax.f32 %v1570_v45, %v15260_v3 }
 0x189   : > { %v1726_v60 = vrot.slane %v1591_v14, 7  ;;  %5114 = vmatmul.bf16.vlgmr.msrb.gmra.mxu1 %v4490_v36  ;;  %5143 = vmatmul.bf16.vlgmr.msrb.gmra.mxu2 %v4491_v30  ;;  %v1311_v28 = vpop.f32.mrf.mxu2  ;;  %v10696_v30 = vadd.f32 %v10627_v57, %v10495_v39 }
 0x18a   : > { %v1136_v22 = vpop.f32.mrf.mxu0  ;;  %5172 = vmatmul.bf16.vlgmr.msrb.gmra.mxu3 %v4492_v58 }
 0x18b   : > { %v1727_v1 = vsel %vm1706_vm2, %v1725_v55, %v1726_v60  ;;  %v1937_v47 = vsel %vm1706_vm2, %v1726_v60, 0.0  ;;  %v1137_v5 = vadd.f32 %v10627_v57, %v1136_v22  ;;  %15381 = vst [vmem:[#allocation16_spill] sm:$0xff] %v10696_v30 }
 0x18c   : > { %v2059_v46 = vrot.slane %v1727_v1, 1  ;;  %v2061_v48 = vrot.slane %v1937_v47, 1  ;;  %v2348_v23 = vrot.slane %v1727_v1, 2  ;;  %v2350_v49 = vrot.slane %v1937_v47, 2 }
 0x18d   : > { %v1414_v51 = vmax.f32 %v1137_v5, 0.0  ;;  %8087 = vmatmul.msk.bf16.gmra.mxu0 %vm860_vm1, %v9531_v7 }
 0x18e   : > { %v2060_v52 = vsel %vm2027_vm3, %v2058_v27, %v2059_v46  ;;  %v2062_v45 = vsel %vm2027_vm3, %v2059_v46, %v2061_v48  ;;  %v2349_v53 = vsel %vm2316_vm4, %v2347_v21, %v2348_v23  ;;  %v2351_v55 = vsel %vm2316_vm4, %v2348_v23, %v2350_v49  ;;  %v9532_v23 = vld [vmem:[%s10173_s29 + $0xb8] sm:$0xff] }
 0x18f   : > { %v2264_v56 = vmax.f32 %v1905_v31, %v2060_v52  ;;  %v2265_v12 = vmax.f32 %v1727_v1, %v2062_v45  ;;  %v1528_v17 = vmax.f32 %v1412_v26, %v1414_v51  ;;  %v1349_v31 = vadd.f32 %v10627_v57, %v10595_v11  ;;  %v1353_v52 = vpop.f32.mrf.mxu3 }
 0x190   : > { %v15256_v1 = vmax.f32 %v10696_v30, 0.0  ;;  %v1482_v48 = vmax.f32 %v1307_v33, 0.0 }
 0x191   : > { %v2553_v13 = vmax.f32 %v2264_v56, %v2349_v53  ;;  %v2554_v59 = vmax.f32 %v2265_v12, %v2351_v55  ;;  %v1313_v11 = vpop.f32.mrf.mxu2  ;;  %v1499_v38 = vmax.f32 %v1349_v31, 0.0  ;;  %v1791_v56 = vrot.slane %v10682_v20, 7 }
 0x192   : > { %v1138_v29 = vpop.f32.mrf.mxu0  ;;  %v1562_v55 = vmax.f32 %v1482_v48, 0.0  ;;  %v1309_v12 = vadd.f32 %v10627_v57, %v10662_v9 }
 0x193   : > { %v2643_v14 = vrot.slane %v2553_v13, 1  ;;  %v2707_v36 = vrot.slane %v2553_v13, 2  ;;  %v1139_v16 = vadd.f32 %v10627_v57, %v1138_v29  ;;  %v2771_v32 = vrot.slane %v2553_v13, 3 }
 0x194   : > { %v2867_v26 = vrot.slane %v2554_v59, 4  ;;  %v2931_v27 = vrot.slane %v2554_v59, 5  ;;  %v2995_v22 = vrot.slane %v2554_v59, 6  ;;  %v3059_v5 = vrot.slane %v2554_v59, 7 }
 0x195   : > { %v3123_v60 = vsel %vm1706_vm2, %v2553_v13, %v2643_v14  ;;  %v1415_v7 = vmax.f32 %v1139_v16, 0.0  ;;  %v1571_v0 = vmax.f32 %v15256_v1, %v1499_v38  ;;  %v10724_v13 = vadd.f32 %v10627_v57, %v1353_v52 }
 0x196   : > { %v3155_v58 = vsel %vm1053_vm0, %v3123_v60, %v2707_v36  ;;  %v10727_v59 = vadd.f32 %v10627_v57, %v1311_v28  ;;  %v10730_v14 = vadd.f32 %v10627_v57, %v1313_v11  ;;  %v1483_v36 = vmax.f32 %v1309_v12, 0.0 }
 0x197   : > { %v3188_v39 = vsel %vm3181_vm5, %v3155_v58, %v2771_v32  ;;  %v1529_v47 = vmax.f32 %v1413_v18, %v1415_v7  ;;  %v15259_v16 = vmax.f32 %v10724_v13, 0.0  ;;  %v1927_v60 = vsel %vm1706_vm2, 0.0, %v1791_v56 }
 0x198   : > { %v3221_v21 = vsel %vm3214_vm6, %v3188_v39, %v2867_v26  ;;  %v1484_v32 = vmax.f32 %v10727_v59, 0.0  ;;  %v15258_v20 = vmax.f32 %v10730_v14, 0.0  ;;  %v1563_v31 = vmax.f32 %v1483_v36, 0.0  ;;  %v10741_v39 = vpop.f32.mrf.mxu3 }
 0x199   : > { %v3254_v46 = vsel %vm3247_vm7, %v3221_v21, %v2931_v27  ;;  %v1635_v33 = vmax.f32 %v1571_v0, %v15259_v16  ;;  %v1316_v28 = vpop.f32.mrf.mxu2  ;;  %v2457_v21 = vrot.slane %v1927_v60, 2 }
 0x19a   : > { %v3286_v49 = vsel %vm2316_vm4, %v3254_v46, %v2995_v22  ;;  %v1141_v51 = vpop.f32.mrf.mxu0  ;;  %v2168_v22 = vrot.slane %v1927_v60, 1 }
 0x19b   : > { %v10714_v45 = vsel %vm2027_vm3, %v3286_v49, %v3059_v5  ;;  %v1142_v53 = vadd.f32 %v10627_v57, %v1141_v51  ;;  %v1792_v7 = vrot.slane %v1635_v33, 7  ;;  %v1627_v5 = vmax.f32 %v1563_v31, %v15258_v20 }
 0x19c   : > { %15382 = vst [vmem:[#allocation17_spill] sm:$0xff] %v10714_v45 }
 0x19d   : > { %v1416_v18 = vmax.f32 %v1142_v53, 0.0  ;;  %8088 = vmatmul.msk.bf16.gmra.mxu0 %vm860_vm1, %v9532_v23  ;;  %v1793_v46 = vsel %vm1706_vm2, %v1791_v56, %v1792_v7  ;;  %v1959_v38 = vsel %vm1706_vm2, %v1792_v7, 0.0  ;;  %v9533_v56 = vld [vmem:[%s10173_s29 + $0xc0] sm:$0xff] }
 0x19e   : > { %v2169_v23 = vrot.slane %v1793_v46, 1  ;;  %v2171_v49 = vrot.slane %v1959_v38, 1  ;;  %v2458_v51 = vrot.slane %v1793_v46, 2  ;;  %v2460_v53 = vrot.slane %v1959_v38, 2 }
 0x19f   : > { %v1592_v29 = vmax.f32 %v1528_v17, %v1416_v18  ;;  %v1626_v17 = vmax.f32 %v1562_v55, %v1484_v32  ;;  %v1780_v18 = vrot.slane %v1627_v5, 7 }
 0x1a0   : > { %v2170_v12 = vsel %vm2027_vm3, %v2168_v22, %v2169_v23  ;;  %v2459_v36 = vsel %vm2316_vm4, %v2457_v21, %v2458_v51 }
 0x1a1   : > { %v1728_v58 = vrot.slane %v1592_v29, 7  ;;  %v1779_v27 = vrot.slane %v1626_v17, 7  ;;  %v2172_v29 = vsel %vm2027_vm3, %v2169_v23, %v2171_v49  ;;  %v10757_v49 = vpop.f32.mrf.mxu2 }
 0x1a2   : > { %v1143_v9 = vpop.f32.mrf.mxu0  ;;  %v2309_v31 = vmax.f32 %v1793_v46, %v2172_v29 }
 0x1a3   : > { %v1144_v26 = vadd.f32 %v10627_v57, %v1143_v9  ;;  %v1906_v52 = vsel %vm1706_vm2, 0.0, %v1728_v58  ;;  %v1923_v0 = vsel %vm1706_vm2, 0.0, %v1779_v27  ;;  %v2308_v9 = vmax.f32 %v1927_v60, %v2170_v12  ;;  %v10768_v12 = vpop.f32.mrf.mxu3 }
 0x1a4   : > { %v1781_v17 = vsel %vm1706_vm2, %v1779_v27, %v1780_v18  ;;  %v2352_v7 = vrot.slane %v1906_v52, 2  ;;  %v2148_v46 = vrot.slane %v1923_v0, 1  ;;  %v2437_v20 = vrot.slane %v1923_v0, 2 }
 0x1a5   : > { %v1417_v11 = vmax.f32 %v1144_v26, 0.0  ;;  %v2063_v26 = vrot.slane %v1906_v52, 1  ;;  %v10759_v21 = vmax.f32 %v2308_v9, %v2459_v36  ;;  %v2149_v27 = vrot.slane %v1781_v17, 1 }
 0x1a6   : > { %v1955_v36 = vsel %vm1706_vm2, %v1780_v18, 0.0  ;;  %v2438_v18 = vrot.slane %v1781_v17, 2 }
 0x1a7   : > { %v1593_v48 = vmax.f32 %v1529_v47, %v1417_v11  ;;  %v2461_v47 = vsel %vm2316_vm4, %v2458_v51, %v2460_v53  ;;  %15383 = vst [vmem:[#allocation18_spill] sm:$0xff] %v10759_v21  ;;  %v2151_v1 = vrot.slane %v1955_v36, 1 }
 0x1a8   : > { %v10761_v60 = vmax.f32 %v2309_v31, %v2461_v47 }
 0x1a9   : > { %v1729_v55 = vrot.slane %v1593_v48, 7 }
 0x1aa   : > { %v1146_v33 = vpop.f32.mrf.mxu0  ;;  %15384 = vst [vmem:[#allocation19_spill] sm:$0xff] %v10761_v60 }
 0x1ab   : > { %v1730_v11 = vsel %vm1706_vm2, %v1728_v58, %v1729_v55  ;;  %v1938_v5 = vsel %vm1706_vm2, %v1729_v55, 0.0 }
 0x1ac   : > { %v2064_v38 = vrot.slane %v1730_v11, 1  ;;  %v2066_v22 = vrot.slane %v1938_v5, 1  ;;  %v2353_v48 = vrot.slane %v1730_v11, 2  ;;  %v2355_v23 = vrot.slane %v1938_v5, 2 }
 0x1ad   : > { %8089 = vmatmul.msk.bf16.gmra.mxu0 %vm860_vm1, %v9533_v56  ;;  %v2150_v56 = vsel %vm2027_vm3, %v2148_v46, %v2149_v27  ;;  %v2440_v46 = vrot.slane %v1955_v36, 2 }
 0x1ae   : > { %v2065_v51 = vsel %vm2027_vm3, %v2063_v26, %v2064_v38  ;;  %v2067_v58 = vsel %vm2027_vm3, %v2064_v38, %v2066_v22  ;;  %v2354_v53 = vsel %vm2316_vm4, %v2352_v7, %v2353_v48  ;;  %v2356_v55 = vsel %vm2316_vm4, %v2353_v48, %v2355_v23 }
 0x1af   : > { %v2266_v29 = vmax.f32 %v1906_v52, %v2065_v51  ;;  %v2267_v5 = vmax.f32 %v1730_v11, %v2067_v58  ;;  %v1317_v38 = vadd.f32 %v10627_v57, %v1316_v28  ;;  %v1147_v22 = vadd.f32 %v10627_v57, %v1146_v33 }
 0x1b0   : > { %v2152_v52 = vsel %vm2027_vm3, %v2149_v27, %v2151_v1  ;;  %v2300_v11 = vmax.f32 %v1923_v0, %v2150_v56  ;;  %v2441_v1 = vsel %vm2316_vm4, %v2438_v18, %v2440_v46  ;;  %v10785_v27 = vpop.f32.mrf.mxu3 }
 0x1b1   : > { %v2555_v9 = vmax.f32 %v2266_v29, %v2354_v53  ;;  %v2556_v31 = vmax.f32 %v2267_v5, %v2356_v55  ;;  %v2301_v58 = vmax.f32 %v1781_v17, %v2152_v52  ;;  %v10777_v53 = vpop.f32.mrf.mxu2  ;;  %v2439_v29 = vsel %vm2316_vm4, %v2437_v20, %v2438_v18  ;;  %v9534_v20 = vld [vmem:[%s10173_s29 + $0xc8] sm:$0xff] }
 0x1b2   : > { %v1148_v47 = vpop.f32.mrf.mxu0  ;;  %v1486_v33 = vmax.f32 %v1317_v38, 0.0  ;;  %v10783_v0 = vmax.f32 %v2300_v11, %v2439_v29 }
 0x1b3   : > { %v2644_v24 = vrot.slane %v2555_v9, 1  ;;  %v2708_v26 = vrot.slane %v2555_v9, 2  ;;  %v2772_v7 = vrot.slane %v2555_v9, 3  ;;  %v2868_v23 = vrot.slane %v2556_v31, 4 }
 0x1b4   : > { %v2932_v55 = vrot.slane %v2556_v31, 5  ;;  %v2996_v5 = vrot.slane %v2556_v31, 6  ;;  %15385 = vst [vmem:[#allocation20_spill] sm:$0xff] %v10783_v0  ;;  %v3060_v17 = vrot.slane %v2556_v31, 7  ;;  %v10792_v56 = vmax.f32 %v1484_v32, %v1486_v33 }
 0x1b5   : > { %v3124_v48 = vsel %vm1706_vm2, %v2555_v9, %v2644_v24  ;;  %v10788_v9 = vmax.f32 %v2301_v58, %v2441_v1  ;;  %v1149_v11 = vadd.f32 %v10627_v57, %v1148_v47  ;;  %v9535_v1 = vld [vmem:[%s10173_s29 + $0xd0] sm:$0xff] }
 0x1b6   : > { %v3156_v51 = vsel %vm1053_vm0, %v3124_v48, %v2708_v26  ;;  %v10795_v26 = vpop.f32.mrf.mxu1 }
 0x1b7   : > { %v3189_v28 = vsel %vm3181_vm5, %v3156_v51, %v2772_v7  ;;  %15386 = vst [vmem:[#allocation21_spill] sm:$0xff] %v10788_v9  ;;  %v1418_v7 = vmax.f32 %v1147_v22, 0.0  ;;  %v1419_v51 = vmax.f32 %v1149_v11, 0.0 }
 0x1b8   : > { %v3222_v24 = vsel %vm3214_vm6, %v3189_v28, %v2868_v23  ;;  %v10806_v46 = vpop.f32.mrf.mxu3 }
 0x1b9   : > { %v3255_v36 = vsel %vm3247_vm7, %v3222_v24, %v2932_v55  ;;  %v1530_v59 = vmax.f32 %v1418_v7, 0.0  ;;  %v10804_v23 = vpop.f32.mrf.mxu2  ;;  %v1531_v29 = vmax.f32 %v1419_v51, 0.0 }
 0x1ba   : > { %v3287_v38 = vsel %vm2316_vm4, %v3255_v36, %v2996_v5  ;;  %v1151_v48 = vpop.f32.mrf.mxu0 }
 0x1bb   : > { %v10799_v52 = vsel %vm2027_vm3, %v3287_v38, %v3060_v17  ;;  %v1152_v31 = vadd.f32 %v10627_v57, %v1151_v48 }
 0x1bc   : > { %15387 = vst [vmem:[#allocation22_spill] sm:$0xff] %v10799_v52 }
 0x1bd   : > { %8090 = vmatmul.msk.bf16.gmra.mxu0 %vm860_vm1, %v9534_v20  ;;  %v1420_v32 = vmax.f32 %v1152_v31, 0.0 }
 0x1be   : > { %v10809_v28 = vpop.f32.mrf.mxu1 }
 0x1bf   : > { %v1594_v18 = vmax.f32 %v1530_v59, %v1420_v32 }
 0x1c1   : > { %v1731_v22 = vrot.slane %v1594_v18, 7  ;;  %v1326_v20 = vpop.f32.mrf.mxu2 }
 0x1c2   : > { %v1153_v58 = vpop.f32.mrf.mxu0 }
 0x1c3   : > { %v1154_v55 = vadd.f32 %v10627_v57, %v1153_v58  ;;  %v1907_v47 = vsel %vm1706_vm2, 0.0, %v1731_v22  ;;  %v10816_v58 = vpop.f32.mrf.mxu3 }
 0x1c4   : > { %v2068_v17 = vrot.slane %v1907_v47, 1  ;;  %v2357_v38 = vrot.slane %v1907_v47, 2 }
 0x1c5   : > { %v1421_v33 = vmax.f32 %v1154_v55, 0.0 }
 0x1c6   : > { %v10819_v55 = vpop.f32.mrf.mxu1 }
 0x1c7   : > { %v1595_v5 = vmax.f32 %v1531_v29, %v1421_v33  ;;  %15388 = vst [vmem:[#allocation23_spill] sm:$0xff] %v10819_v55 }
 0x1c9   : > { %v1732_v24 = vrot.slane %v1595_v5, 7  ;;  %v1328_v37 = vpop.f32.mrf.mxu2 }
 0x1ca   : > { %v1156_v36 = vpop.f32.mrf.mxu0 }
 0x1cb   : > { %v1733_v7 = vsel %vm1706_vm2, %v1731_v22, %v1732_v24  ;;  %v1939_v48 = vsel %vm1706_vm2, %v1732_v24, 0.0  ;;  %v1157_v31 = vadd.f32 %v10627_v57, %v1156_v36 }
 0x1cc   : > { %v2069_v11 = vrot.slane %v1733_v7, 1  ;;  %v2071_v59 = vrot.slane %v1939_v48, 1  ;;  %v2358_v18 = vrot.slane %v1733_v7, 2  ;;  %v2360_v51 = vrot.slane %v1939_v48, 2 }
 0x1cd   : > { %8091 = vmatmul.msk.bf16.gmra.mxu0 %vm860_vm1, %v9535_v1  ;;  %v1422_v3 = vmax.f32 %v1157_v31, 0.0  ;;  %v9536_v31 = vld [vmem:[%s10173_s29 + $0xd8] sm:$0xff] }
 0x1ce   : > { %v2070_v29 = vsel %vm2027_vm3, %v2068_v17, %v2069_v11  ;;  %v2072_v5 = vsel %vm2027_vm3, %v2069_v11, %v2071_v59  ;;  %v2359_v22 = vsel %vm2316_vm4, %v2357_v38, %v2358_v18  ;;  %v2361_v24 = vsel %vm2316_vm4, %v2358_v18, %v2360_v51  ;;  %v10830_v17 = vpop.f32.mrf.mxu3  ;;  %v10832_v59 = vpop.f32.mrf.mxu1 }
 0x1cf   : > { %v2268_v36 = vmax.f32 %v1907_v47, %v2070_v29  ;;  %v2269_v16 = vmax.f32 %v1733_v7, %v2072_v5  ;;  %v1532_v43 = vmax.f32 %v1420_v32, %v1422_v3  ;;  %15389 = vst [vmem:[#allocation24_spill] sm:$0xff] %v10832_v59  ;;  %v10836_v38 = vadd.f32 %v10627_v57, %v10777_v53 }
 0x1d0   : > { %v1327_v47 = vadd.f32 %v10627_v57, %v1326_v20 }
 0x1d1   : > { %v10825_v54 = vmax.f32 %v2268_v36, %v2359_v22  ;;  %v10827_v48 = vmax.f32 %v2269_v16, %v2361_v24  ;;  %v15265_v32 = vmax.f32 %v10836_v38, 0.0 }
 0x1d2   : > { %v1158_v1 = vpop.f32.mrf.mxu0  ;;  %v1490_v18 = vmax.f32 %v1327_v47, 0.0 }
 0x1d3   : > { %v1159_v61 = vadd.f32 %v10627_v57, %v1158_v1 }
 0x1d4   : > { %v1566_v5 = vmax.f32 %v15265_v32, %v1490_v18  ;;  %v9537_v32 = vld [vmem:[%s10173_s29 + $0xe0] sm:$0xff] }
 0x1d5   : > { %v1423_v11 = vmax.f32 %v1159_v61, 0.0  ;;  %v1331_v61 = vpop.f32.mrf.mxu2 }
 0x1d6   : > { %v10845_v53 = vpop.f32.mrf.mxu3  ;;  %v10848_v20 = vadd.f32 %v10627_v57, %v1331_v61 }
 0x1d7   : > { %v1533_v7 = vmax.f32 %v1421_v33, %v1423_v11  ;;  %v10850_v33 = vpop.f32.mrf.mxu1  ;;  %v10860_v11 = vadd.f32 %v10627_v57, %v10804_v23 }
 0x1d8   : > { %15390 = vst [vmem:[#allocation25_spill] sm:$0xff] %v10848_v20  ;;  %v15266_v24 = vmax.f32 %v10848_v20, 0.0 }
 0x1d9   : > { %15391 = vst [vmem:[#allocation26_spill] sm:$0xff] %v10850_v33 }
 0x1da   : > { %v1161_v16 = vpop.f32.mrf.mxu0 }
 0x1db   : > { %v1162_v3 = vadd.f32 %v10627_v57, %v1161_v16 }
 0x1dd   : > { %v1424_v51 = vmax.f32 %v1162_v3, 0.0  ;;  %8092 = vmatmul.msk.bf16.gmra.mxu0 %vm860_vm1, %v9536_v31  ;;  %v1329_v31 = vadd.f32 %v10627_v57, %v1328_v37  ;;  %v1333_v18 = vpop.f32.mrf.mxu2 }
 0x1df   : > { %v1596_v29 = vmax.f32 %v1532_v43, %v1424_v51  ;;  %v1630_v43 = vmax.f32 %v1566_v5, %v15266_v24  ;;  %v10870_v5 = vadd.f32 %v10627_v57, %v1333_v18  ;;  %v10872_v24 = vpop.f32.mrf.mxu3  ;;  %v15394_v18 = vmax.f32 %v10860_v11, 0.0 }
 0x1e1   : > { %v1734_v36 = vrot.slane %v1596_v29, 7  ;;  %15392 = vst [vmem:[#allocation27_spill] sm:$0xff] %v10870_v5  ;;  %v1785_v62 = vrot.slane %v1630_v43, 7  ;;  %v15276_v20 = vmax.f32 %v10870_v5, 0.0 }
 0x1e2   : > { %v1163_v22 = vpop.f32.mrf.mxu0 }
 0x1e3   : > { %v10854_v1 = vadd.f32 %v10627_v57, %v1163_v22  ;;  %v1908_v16 = vsel %vm1706_vm2, 0.0, %v1734_v36  ;;  %v1491_v22 = vmax.f32 %v1329_v31, 0.0 }
 0x1e4   : > { %v2073_v23 = vrot.slane %v1908_v16, 1  ;;  %v2362_v2 = vrot.slane %v1908_v16, 2 }
 0x1e5   : > { %v15270_v47 = vmax.f32 %v10854_v1, 0.0  ;;  %v1567_v6 = vmax.f32 %v15394_v18, %v1491_v22  ;;  %v15397_v5 = vmax.f32 %v10854_v1, 0.0 }
 0x1e7   : > { %v1597_v3 = vmax.f32 %v1533_v7, %v15270_v47  ;;  %v10877_v47 = vpop.f32.mrf.mxu1 }
 0x1e8   : > { %15393 = vst [vmem:[#allocation28_spill] sm:$0xff] %v10877_v47 }
 0x1e9   : > { %v1735_v29 = vrot.slane %v1597_v3, 7 }
 0x1ea   : > { %v1166_v4 = vpop.f32.mrf.mxu0 }
 0x1eb   : > { %v1736_v37 = vsel %vm1706_vm2, %v1734_v36, %v1735_v29  ;;  %v1940_v25 = vsel %vm1706_vm2, %v1735_v29, 0.0  ;;  %v1167_v7 = vadd.f32 %v10627_v57, %v1166_v4 }
 0x1ec   : > { %v2074_v61 = vrot.slane %v1736_v37, 1  ;;  %v2076_v3 = vrot.slane %v1940_v25, 1  ;;  %v2363_v31 = vrot.slane %v1736_v37, 2  ;;  %v2365_v10 = vrot.slane %v1940_v25, 2 }
 0x1ed   : > { %v1426_v30 = vmax.f32 %v1167_v7, 0.0  ;;  %8093 = vmatmul.msk.bf16.gmra.mxu0 %vm860_vm1, %v9537_v32  ;;  %v1297_v25 = vadd.f32 %v10627_v57, %v10438_v15  ;;  %v1925_v32 = vsel %vm1706_vm2, 0.0, %v1785_v62 }
 0x1ee   : > { %v2075_v36 = vsel %vm2027_vm3, %v2073_v23, %v2074_v61  ;;  %v2077_v29 = vsel %vm2027_vm3, %v2074_v61, %v2076_v3  ;;  %v2364_v4 = vsel %vm2316_vm4, %v2362_v2, %v2363_v31  ;;  %v2366_v47 = vsel %vm2316_vm4, %v2363_v31, %v2365_v10 }
 0x1ef   : > { %v2270_v33 = vmax.f32 %v1908_v16, %v2075_v36  ;;  %v2271_v59 = vmax.f32 %v1736_v37, %v2077_v29  ;;  %v1534_v43 = vmax.f32 %v1424_v51, %v1426_v30  ;;  %v1631_v23 = vmax.f32 %v1567_v6, %v15276_v20  ;;  %v10896_v37 = vpop.f32.mrf.mxu3  ;;  %v1291_v30 = vpop.f32.mrf.mxu1 }
 0x1f0   : > { %v1478_v2 = vmax.f32 %v1297_v25, 0.0  ;;  %v1302_v10 = vadd.f32 %v10627_v57, %v10519_v19  ;;  %v2158_v16 = vrot.slane %v1925_v32, 1  ;;  %15395 = vst [vmem:[#allocation29_spill] sm:$0xff] %v10896_v37  ;;  %v2447_v31 = vrot.slane %v1925_v32, 2  ;;  %v9538_v37 = vld [vmem:[%s10173_s29 + $0xe8] sm:$0xff] }
 0x1f1   : > { %v2559_v22 = vmax.f32 %v2270_v33, %v2364_v4  ;;  %v10889_v7 = vmax.f32 %v2271_v59, %v2366_v47  ;;  %v1786_v47 = vrot.slane %v1631_v23, 7  ;;  %v10903_v36 = vadd.f32 %v10627_v57, %v1291_v30 }
 0x1f2   : > { %v1168_v18 = vpop.f32.mrf.mxu0  ;;  %v1480_v20 = vmax.f32 %v1302_v10, 0.0 }
 0x1f3   : > { %v2646_v61 = vrot.slane %v2559_v22, 1  ;;  %v2710_v3 = vrot.slane %v2559_v22, 2  ;;  %v2774_v15 = vrot.slane %v2559_v22, 3  ;;  %v1169_v33 = vadd.f32 %v10627_v57, %v1168_v18  ;;  %15396 = vst [vmem:[#allocation30_spill] sm:$0xff] %v10903_v36 }
 0x1f4   : > { %v2870_v51 = vrot.slane %v10889_v7, 4  ;;  %v1787_v4 = vsel %vm1706_vm2, %v1785_v62, %v1786_v47  ;;  %v1957_v25 = vsel %vm1706_vm2, %v1786_v47, 0.0  ;;  %v15278_v30 = vmax.f32 %v10903_v36, 0.0 }
 0x1f5   : > { %v3126_v59 = vsel %vm1706_vm2, %v2559_v22, %v2646_v61  ;;  %v1427_v29 = vmax.f32 %v1169_v33, 0.0  ;;  %v2159_v18 = vrot.slane %v1787_v4, 1  ;;  %v2161_v23 = vrot.slane %v1957_v25, 1 }
 0x1f6   : > { %v3158_v6 = vsel %vm1053_vm0, %v3126_v59, %v2710_v3  ;;  %v2448_v61 = vrot.slane %v1787_v4, 2  ;;  %v2450_v59 = vrot.slane %v1957_v25, 2  ;;  %v1560_v10 = vmax.f32 %v15278_v30, %v1478_v2 }
 0x1f7   : > { %v3191_v19 = vsel %vm3181_vm5, %v3158_v6, %v2774_v15  ;;  %v1535_v3 = vmax.f32 %v15397_v5, %v1427_v29  ;;  %v2160_v15 = vsel %vm2027_vm3, %v2158_v16, %v2159_v18  ;;  %v2162_v33 = vsel %vm2027_vm3, %v2159_v18, %v2161_v23  ;;  %v10927_v16 = vpop.f32.mrf.mxu3 }
 0x1f8   : > { %v3224_v22 = vsel %vm3214_vm6, %v3191_v19, %v2870_v51  ;;  %v2449_v62 = vsel %vm2316_vm4, %v2447_v31, %v2448_v61  ;;  %v2304_v6 = vmax.f32 %v1925_v32, %v2160_v15  ;;  %v2305_v51 = vmax.f32 %v1787_v4, %v2162_v33  ;;  %15400 = vst [vmem:[#allocation33_spill] sm:$0xff] %v10927_v16  ;;  %v10939_v33 = vpop.f32.mrf.mxu2 }
 0x1f9   : > { %v2451_v19 = vsel %vm2316_vm4, %v2448_v61, %v2450_v59  ;;  %v10924_v25 = vmax.f32 %v1560_v10, %v1480_v20  ;;  %15402 = vst [vmem:[#allocation35_spill] sm:$0xff] %v10939_v33 }
 0x1fa   : > { %v1171_v47 = vpop.f32.mrf.mxu0  ;;  %v2593_v5 = vmax.f32 %v2304_v6, %v2449_v62  ;;  %v10922_v29 = vmax.f32 %v2305_v51, %v2451_v19  ;;  %v2998_v6 = vrot.slane %v10889_v7, 6  ;;  %v3062_v19 = vrot.slane %v10889_v7, 7 }
 0x1fb   : > { %v10920_v1 = vadd.f32 %v10627_v57, %v1171_v47  ;;  %15399 = vst [vmem:[#allocation32_spill] sm:$0xff] %v10924_v25  ;;  %v2934_v47 = vrot.slane %v10889_v7, 5 }
 0x1fc   : > { %15398 = vst [vmem:[#allocation31_spill] sm:$0xff] %v10922_v29  ;;  %v2663_v31 = vrot.slane %v2593_v5, 1  ;;  %v2727_v4 = vrot.slane %v2593_v5, 2  ;;  %v2791_v18 = vrot.slane %v2593_v5, 3  ;;  %v2887_v23 = vrot.slane %v10922_v29, 4 }
 0x1fd   : > { %8094 = vmatmul.msk.bf16.gmra.mxu0 %vm860_vm1, %v9538_v37  ;;  %v15279_v32 = vmax.f32 %v10920_v1, 0.0  ;;  %v3257_v10 = vsel %vm3247_vm7, %v3224_v22, %v2934_v47 }
 0x1fe   : > { %v3143_v2 = vsel %vm1706_vm2, %v2593_v5, %v2663_v31  ;;  %v9539_v31 = vld [vmem:[%s10173_s29 + $0xf0] sm:$0xff] }
 0x1ff   : > { %v1598_v61 = vmax.f32 %v1534_v43, %v15279_v32  ;;  %v3175_v20 = vsel %vm1053_vm0, %v3143_v2, %v2727_v4  ;;  %v10945_v43 = vpop.f32.mrf.mxu3  ;;  %v3289_v4 = vsel %vm2316_vm4, %v3257_v10, %v2998_v6  ;;  %v10953_v2 = vpop.f32.mrf.mxu1  ;;  %v9970_v6 = vld [vmem:[%s15248_s4] ss:$0 sm:$0xff] }
 0x200   : > { %v3208_v37 = vsel %vm3181_vm5, %v3175_v20, %v2791_v18  ;;  %15403 = vst [vmem:[#allocation36_spill] sm:$0xff] %v10945_v43 }
 0x201   : > { %v10937_v15 = vsel %vm3214_vm6, %v3208_v37, %v2887_v23  ;;  %v10951_v23 = vsel %vm2027_vm3, %v3289_v4, %v3062_v19  ;;  %15404 = vst [vmem:[#allocation37_spill] sm:$0xff] %v10953_v2  ;;  %v1737_v7 = vrot.slane %v1598_v61, 7 }
 0x202   : > { %v1173_v59 = vpop.f32.mrf.mxu0  ;;  %15401 = vst [vmem:[#allocation34_spill] sm:$0xff] %v10937_v15 }
 0x203   : > { %v1174_v62 = vadd.f32 %v10627_v57, %v1173_v59  ;;  %v10956_v59 = vpop.f32.mrf.mxu2 }
 0x204   : > { %15405 = vst [vmem:[#allocation38_spill] sm:$0xff] %v10956_v59 }
 0x205   : > { %v1429_v51 = vmax.f32 %v1174_v62, 0.0 }
 0x207   : > { %v1599_v5 = vmax.f32 %v1535_v3, %v1429_v51  ;;  %v10959_v62 = vpop.f32.mrf.mxu3  ;;  %v1909_v3 = vsel %vm1706_vm2, 0.0, %v1737_v7  ;;  %v5115_v19 = vpop.f32.mrf.mxu1 }
 0x208   : > { %15406 = vst [vmem:[#allocation39_spill] sm:$0xff] %v10959_v62  ;;  %v2078_v10 = vrot.slane %v1909_v3, 1  ;;  %v2367_v4 = vrot.slane %v1909_v3, 2  ;;  %v5116_v29 = vadd.f32 %v9970_v6, %v5115_v19  ;;  %v9541_v19 = vld [vmem:[%s10173_s29 + $0x100] sm:$0xff] }
 0x209   : > { %v1738_v20 = vrot.slane %v1599_v5, 7 }
 0x20a   : > { %v1176_v18 = vpop.f32.mrf.mxu0 }
 0x20b   : > { %v1739_v37 = vsel %vm1706_vm2, %v1737_v7, %v1738_v20  ;;  %v1941_v47 = vsel %vm1706_vm2, %v1738_v20, 0.0  ;;  %v9540_v7 = vld [vmem:[%s10173_s29 + $0xf8] sm:$0xff]  ;;  %v1177_v36 = vadd.f32 %v10627_v57, %v1176_v18  ;;  %v15409_v18 = vmax.f32 %v10920_v1, 0.0 }
 0x20c   : > { %v2079_v5 = vrot.slane %v1739_v37, 1  ;;  %v2368_v61 = vrot.slane %v1739_v37, 2  ;;  %v2370_v30 = vrot.slane %v1941_v47, 2  ;;  %v5144_v32 = vpop.f32.mrf.mxu2 }
 0x20d   : > { %8095 = vmatmul.msk.bf16.gmra.mxu0 %vm860_vm1, %v9539_v31  ;;  %v2081_v31 = vrot.slane %v1941_v47, 1  ;;  %v5145_v33 = vadd.f32 %v5144_v32, %v5116_v29  ;;  %v1430_v45 = vmax.f32 %v1177_v36, 0.0 }
 0x20e   : > { %v2080_v15 = vsel %vm2027_vm3, %v2078_v10, %v2079_v5  ;;  %v2369_v59 = vsel %vm2316_vm4, %v2367_v4, %v2368_v61  ;;  %v2371_v16 = vsel %vm2316_vm4, %v2368_v61, %v2370_v30 }
 0x20f   : > { %v2082_v62 = vsel %vm2027_vm3, %v2079_v5, %v2081_v31  ;;  %v2272_v25 = vmax.f32 %v1909_v3, %v2080_v15  ;;  %v5173_v47 = vpop.f32.mrf.mxu3  ;;  %v1536_v29 = vmax.f32 %v15409_v18, %v1430_v45 }
 0x210   : > { %v2273_v20 = vmax.f32 %v1739_v37, %v2082_v62  ;;  %v10974_v10 = vadd.f32 %v5173_v47, %v5145_v33 }
 0x211   : > { %v2561_v2 = vmax.f32 %v2272_v25, %v2369_v59 }
 0x212   : > { %v1178_v22 = vpop.f32.mrf.mxu0  ;;  %v10972_v55 = vmax.f32 %v2273_v20, %v2371_v16  ;;  %15408 = vst [vmem:[#allocation41_spill] sm:$0xff] %v10974_v10 }
 0x213   : > { %v2647_v15 = vrot.slane %v2561_v2, 1  ;;  %v2711_v37 = vrot.slane %v2561_v2, 2  ;;  %v1179_v62 = vadd.f32 %v10627_v57, %v1178_v22  ;;  %v2775_v3 = vrot.slane %v2561_v2, 3 }
 0x214   : > { %15407 = vst [vmem:[#allocation40_spill] sm:$0xff] %v10972_v55  ;;  %v2871_v25 = vrot.slane %v10972_v55, 4 }
 0x215   : > { %v3127_v30 = vsel %vm1706_vm2, %v2561_v2, %v2647_v15  ;;  %v1431_v32 = vmax.f32 %v1179_v62, 0.0 }
 0x216   : > { %v3159_v16 = vsel %vm1053_vm0, %v3127_v30, %v2711_v37 }
 0x217   : > { %v3192_v36 = vsel %vm3181_vm5, %v3159_v16, %v2775_v3  ;;  %v1537_v6 = vmax.f32 %v1429_v51, %v1431_v32 }
 0x218   : > { %v10985_v59 = vsel %vm3214_vm6, %v3192_v36, %v2871_v25 }
 0x219   : > { %15410 = vst [vmem:[#allocation42_spill] sm:$0xff] %v10985_v59 }
 0x21a   : > { %v1181_v43 = vpop.f32.mrf.mxu0 }
 0x21b   : > { %v1182_v5 = vadd.f32 %v10627_v57, %v1181_v43 }
 0x21d   : > { %8096 = vmatmul.msk.bf16.gmra.mxu0 %vm860_vm1, %v9540_v7  ;;  %v1432_v1 = vmax.f32 %v1182_v5, 0.0 }
 0x21f   : > { %v1600_v61 = vmax.f32 %v1536_v29, %v1432_v1 }
 0x221   : > { %v1740_v47 = vrot.slane %v1600_v61, 7 }
 0x222   : > { %v1183_v33 = vpop.f32.mrf.mxu0 }
 0x223   : > { %v1184_v2 = vadd.f32 %v10627_v57, %v1183_v33  ;;  %v1910_v51 = vsel %vm1706_vm2, 0.0, %v1740_v47 }
 0x224   : > { %v2083_v43 = vrot.slane %v1910_v51, 1  ;;  %v2372_v3 = vrot.slane %v1910_v51, 2 }
 0x225   : > { %v1433_v31 = vmax.f32 %v1184_v2, 0.0 }
 0x227   : > { %v1601_v7 = vmax.f32 %v1537_v6, %v1433_v31 }
 0x229   : > { %v1741_v15 = vrot.slane %v1601_v7, 7 }
 0x22a   : > { %v1186_v22 = vpop.f32.mrf.mxu0 }
 0x22b   : > { %v1187_v45 = vadd.f32 %v10627_v57, %v1186_v22  ;;  %v1742_v30 = vsel %vm1706_vm2, %v1740_v47, %v1741_v15  ;;  %v1942_v18 = vsel %vm1706_vm2, %v1741_v15, 0.0 }
 0x22c   : > { %v2084_v25 = vrot.slane %v1742_v30, 1  ;;  %v2086_v16 = vrot.slane %v1942_v18, 1  ;;  %v2373_v36 = vrot.slane %v1742_v30, 2  ;;  %v2375_v29 = vrot.slane %v1942_v18, 2 }
 0x22d   : > { %8097 = vmatmul.msk.bf16.gmra.mxu0 %vm860_vm1, %v9541_v19  ;;  %v1434_v4 = vmax.f32 %v1187_v45, 0.0 }
 0x22e   : > { %v2085_v33 = vsel %vm2027_vm3, %v2083_v43, %v2084_v25  ;;  %v2087_v6 = vsel %vm2027_vm3, %v2084_v25, %v2086_v16  ;;  %v2374_v19 = vsel %vm2316_vm4, %v2372_v3, %v2373_v36  ;;  %v2376_v22 = vsel %vm2316_vm4, %v2373_v36, %v2375_v29 }
 0x22f   : > { %v1538_v20 = vmax.f32 %v1432_v1, %v1434_v4  ;;  %v2274_v5 = vmax.f32 %v1910_v51, %v2085_v33  ;;  %v2275_v2 = vmax.f32 %v1742_v30, %v2087_v6  ;;  %v9542_v1 = vld [vmem:[%s10173_s29 + $0x108] sm:$0xff] }
 0x231   : > { %v2563_v4 = vmax.f32 %v2274_v5, %v2374_v19  ;;  %v2564_v61 = vmax.f32 %v2275_v2, %v2376_v22 }
 0x232   : > { %v1188_v37 = vpop.f32.mrf.mxu0 }
 0x233   : > { %v1189_v62 = vadd.f32 %v10627_v57, %v1188_v37  ;;  %v2648_v15 = vrot.slane %v2563_v4, 1  ;;  %v2712_v37 = vrot.slane %v2563_v4, 2  ;;  %v2776_v43 = vrot.slane %v2563_v4, 3 }
 0x234   : > { %v2872_v18 = vrot.slane %v2564_v61, 4  ;;  %v2936_v30 = vrot.slane %v2564_v61, 5  ;;  %v3000_v16 = vrot.slane %v2564_v61, 6  ;;  %v3064_v29 = vrot.slane %v2564_v61, 7  ;;  %v9543_v61 = vld [vmem:[%s10173_s29 + $0x110] sm:$0xff] }
 0x235   : > { %v1435_v32 = vmax.f32 %v1189_v62, 0.0  ;;  %v3128_v3 = vsel %vm1706_vm2, %v2563_v4, %v2648_v15 }
 0x236   : > { %v3160_v51 = vsel %vm1053_vm0, %v3128_v3, %v2712_v37 }
 0x237   : > { %v1539_v45 = vmax.f32 %v1433_v31, %v1435_v32  ;;  %v3193_v25 = vsel %vm3181_vm5, %v3160_v51, %v2776_v43 }
 0x238   : > { %v3226_v36 = vsel %vm3214_vm6, %v3193_v25, %v2872_v18 }
 0x239   : > { %v3259_v33 = vsel %vm3247_vm7, %v3226_v36, %v2936_v30 }
 0x23a   : > { %v1191_v7 = vpop.f32.mrf.mxu0  ;;  %v3291_v19 = vsel %vm2316_vm4, %v3259_v33, %v3000_v16 }
 0x23b   : > { %v11002_v47 = vadd.f32 %v10627_v57, %v1191_v7  ;;  %v11016_v5 = vsel %vm2027_vm3, %v3291_v19, %v3064_v29 }
 0x23d   : > { %v1436_v62 = vmax.f32 %v11002_v47, 0.0  ;;  %8098 = vmatmul.msk.bf16.gmra.mxu0 %vm860_vm1, %v9542_v1 }
 0x23f   : > { %v1602_v31 = vmax.f32 %v1538_v20, %v1436_v62 }
 0x241   : > { %v1743_v22 = vrot.slane %v1602_v31, 7 }
 0x242   : > { %v1193_v32 = vpop.f32.mrf.mxu0 }
 0x243   : > { %v11012_v6 = vadd.f32 %v10627_v57, %v1193_v32  ;;  %v1911_v1 = vsel %vm1706_vm2, 0.0, %v1743_v22  ;;  %v3378_v32 = vrot.slane %v10269_v8, 7 }
 0x244   : > { %v2088_v47 = vrot.slane %v1911_v1, 1  ;;  %v2377_v15 = vrot.slane %v1911_v1, 2 }
 0x245   : > { %v15283_v20 = vmax.f32 %v11012_v6, 0.0 }
 0x247   : > { %v1603_v2 = vmax.f32 %v1539_v45, %v15283_v20 }
 0x249   : > { %v1744_v4 = vrot.slane %v1603_v2, 7  ;;  %v3444_v2 = vsel %vm1706_vm2, 0.0, %v3378_v32 }
 0x24a   : > { %v1196_v7 = vpop.f32.mrf.mxu0 }
 0x24b   : > { %v1745_v37 = vsel %vm1706_vm2, %v1743_v22, %v1744_v4  ;;  %v1943_v43 = vsel %vm1706_vm2, %v1744_v4, 0.0  ;;  %v3380_v4 = vrot.slane %v10300_v63, 7 }
 0x24c   : > { %v2089_v3 = vrot.slane %v1745_v37, 1  ;;  %v2091_v18 = vrot.slane %v1943_v43, 1  ;;  %v2378_v51 = vrot.slane %v1745_v37, 2  ;;  %v2380_v31 = vrot.slane %v1943_v43, 2 }
 0x24d   : > { %8099 = vmatmul.msk.bf16.gmra.mxu0 %vm860_vm1, %v9543_v61  ;;  %v1197_v61 = vadd.f32 %v10627_v57, %v1196_v7  ;;  %v3830_v43 = vrot.slane %v3444_v2, 2 }
 0x24e   : > { %v2090_v45 = vsel %vm2027_vm3, %v2088_v47, %v2089_v3  ;;  %v2092_v30 = vsel %vm2027_vm3, %v2089_v3, %v2091_v18  ;;  %v2379_v25 = vsel %vm2316_vm4, %v2377_v15, %v2378_v51  ;;  %v2381_v16 = vsel %vm2316_vm4, %v2378_v51, %v2380_v31  ;;  %v9544_v15 = vld [vmem:[%s10173_s29 + $0x118] sm:$0xff]  ;;  %v11047_v31 = vld [vmem:[%s15246_s2] ss:$0 sm:$0xff] }
 0x24f   : > { %v2276_v36 = vmax.f32 %v1911_v1, %v2090_v45  ;;  %v2277_v29 = vmax.f32 %v1745_v37, %v2092_v30  ;;  %v3798_v47 = vrot.slane %v3444_v2, 1  ;;  %v3446_v3 = vsel %vm1706_vm2, 0.0, %v3380_v4 }
 0x250   : > { %v1438_v1 = vmax.f32 %v1197_v61, 0.0  ;;  %v3862_v18 = vrot.slane %v3444_v2, 3  ;;  %v3799_v7 = vrot.slane %v3446_v3, 1  ;;  %v3943_v59 = vrot.slane %v3446_v3, 4 }
 0x251   : > { %v11031_v33 = vmax.f32 %v2276_v36, %v2379_v25  ;;  %v11033_v19 = vmax.f32 %v2277_v29, %v2381_v16  ;;  %v3894_v51 = vsel %vm1706_vm2, %v3444_v2, %v3798_v47  ;;  %v3974_v45 = vsel %vm1706_vm2, %v3798_v47, %v3830_v43 }
 0x252   : > { %v1198_v22 = vpop.f32.mrf.mxu0  ;;  %v3831_v25 = vrot.slane %v3446_v3, 2  ;;  %v3863_v16 = vrot.slane %v3446_v3, 3  ;;  %v3910_v36 = vsel %vm1053_vm0, %v3894_v51, %v3830_v43  ;;  %v3990_v61 = vsel %vm1053_vm0, %v3974_v45, %v3862_v18 }
 0x253   : > { %15411 = vst [vmem:[#allocation43_spill] sm:$0xff] %v11031_v33  ;;  %v1199_v63 = vadd.f32 %v11047_v31, %v1198_v22  ;;  %v3895_v20 = vsel %vm1706_vm2, %v3446_v3, %v3799_v7  ;;  %v3942_v47 = vrot.slane %v3444_v2, 4  ;;  %v3479_v45 = vsel %vm1706_vm2, %v3380_v4, 0.0 }
 0x254   : > { %15412 = vst [vmem:[#allocation44_spill] sm:$0xff] %v11033_v19  ;;  %v3911_v10 = vsel %vm1053_vm0, %v3895_v20, %v3831_v25  ;;  %v15413_v3 = vmax.f32 %v11012_v6, 0.0 }
 0x255   : > { %v3927_v51 = vsel %vm3181_vm5, %v3911_v10, %v3863_v16  ;;  %v3477_v10 = vsel %vm1706_vm2, %v3378_v32, 0.0  ;;  %v15416_v32 = vrot.slane %v10951_v23, 7 }
 0x256   : > { %v4214_v2 = vrot.slane %v3927_v51, 4 }
 0x25a   : > { %v1201_v37 = vpop.f32.mrf.mxu0 }
 0x25b   : > { %v11041_v8 = vadd.f32 %v10627_v57, %v1201_v37  ;;  %v1540_v57 = vmax.f32 %v1436_v62, %v1438_v1  ;;  %v1439_v37 = vmax.f32 %v1199_v63, 0.0  ;;  %v3975_v62 = vsel %vm1706_vm2, %v3799_v7, %v3831_v25 }
 0x25c   : > { %v3991_v29 = vsel %vm1053_vm0, %v3975_v62, %v3863_v16  ;;  %v4006_v63 = vsel %vm3181_vm5, %v3990_v61, %v3942_v47  ;;  %v4039_v62 = vrot.slane %v3479_v45, 5 }
 0x25d   : > { %v15284_v30 = vmax.f32 %v11041_v8, 0.0  ;;  %8100 = vmatmul.msk.bf16.gmra.mxu0 %vm860_vm1, %v9544_v15  ;;  %v3926_v15 = vsel %vm3181_vm5, %v3910_v36, %v3862_v18  ;;  %v4007_v20 = vsel %vm3181_vm5, %v3991_v29, %v3943_v59  ;;  %v4070_v36 = vsel %vm1706_vm2, %v3830_v43, %v3862_v18 }
 0x25e   : > { %v1541_v7 = vmax.f32 %v15413_v3, %v1439_v37  ;;  %v4215_v19 = vrot.slane %v4007_v20, 4  ;;  %v11076_v4 = vsel %vm3214_vm6, %v3926_v15, %v4214_v2  ;;  %v4086_v43 = vsel %vm1053_vm0, %v4070_v36, %v3942_v47 }
 0x25f   : > { %v1604_v22 = vmax.f32 %v1540_v57, %v15284_v30  ;;  %15414 = vst [vmem:[#allocation45_spill] sm:$0xff] %v11076_v4  ;;  %v3453_v37 = vsel %vm1706_vm2, 0.0, %v15416_v32 }
 0x260   : > { %v11080_v29 = vsel %vm3214_vm6, %v4006_v63, %v4215_v19  ;;  %v9545_v19 = vld [vmem:[%s10173_s29 + $0x120] sm:$0xff]  ;;  %v3526_v45 = vrot.slane %v3453_v37, 1 }
 0x261   : > { %v1746_v30 = vrot.slane %v1604_v22, 7  ;;  %15415 = vst [vmem:[#allocation46_spill] sm:$0xff] %v11080_v29  ;;  %v4038_v22 = vrot.slane %v3477_v10, 5 }
 0x262   : > { %v1203_v1 = vpop.f32.mrf.mxu0 }
 0x263   : > { %v11067_v57 = vadd.f32 %v11047_v31, %v1203_v1  ;;  %v4071_v1 = vsel %vm1706_vm2, %v3831_v25, %v3863_v16  ;;  %v1912_v25 = vsel %vm1706_vm2, 0.0, %v1746_v30  ;;  %v4102_v63 = vsel %vm3181_vm5, %v4086_v43, %v4038_v22 }
 0x264   : > { %v4087_v6 = vsel %vm1053_vm0, %v4071_v1, %v3943_v59  ;;  %v2093_v3 = vrot.slane %v1912_v25, 1  ;;  %v3552_v43 = vrot.slane %v3453_v37, 2 }
 0x265   : > { %v15286_v61 = vmax.f32 %v11067_v57, 0.0  ;;  %v4103_v15 = vsel %vm3181_vm5, %v4087_v6, %v4039_v62 }
 0x266   : > { %v4216_v51 = vrot.slane %v4103_v15, 4  ;;  %v3669_v55 = vsel %vm1706_vm2, %v3526_v45, %v3552_v43 }
 0x267   : > { %v1605_v18 = vmax.f32 %v1541_v7, %v15286_v61  ;;  %v3578_v61 = vrot.slane %v3453_v37, 3 }
 0x268   : > { %v11094_v59 = vsel %vm3214_vm6, %v4102_v63, %v4216_v51 }
 0x269   : > { %v1747_v16 = vrot.slane %v1605_v18, 7  ;;  %15417 = vst [vmem:[#allocation47_spill] sm:$0xff] %v11094_v59  ;;  %v2382_v18 = vrot.slane %v1912_v25, 2 }
 0x26a   : > { %v1206_v47 = vpop.f32.mrf.mxu0 }
 0x26b   : > { %v1748_v2 = vsel %vm1706_vm2, %v1746_v30, %v1747_v16  ;;  %v1944_v20 = vsel %vm1706_vm2, %v1747_v16, 0.0  ;;  %v1207_v36 = vadd.f32 %v11047_v31, %v1206_v47  ;;  %v3604_v30 = vsel %vm1706_vm2, %v3453_v37, %v3526_v45 }
 0x26c   : > { %v2094_v7 = vrot.slane %v1748_v2, 1  ;;  %v2096_v10 = vrot.slane %v1944_v20, 1  ;;  %v2383_v62 = vrot.slane %v1748_v2, 2  ;;  %v2385_v1 = vrot.slane %v1944_v20, 2 }
 0x26d   : > { %v1442_v6 = vmax.f32 %v1207_v36, 0.0  ;;  %8101 = vmatmul.msk.bf16.gmra.mxu0 %vm860_vm1, %v9545_v19  ;;  %v15418_v16 = vmax.f32 %v11041_v8, 0.0  ;;  %v3617_v19 = vsel %vm1053_vm0, %v3604_v30, %v3552_v43 }
 0x26e   : > { %v2095_v32 = vsel %vm2027_vm3, %v2093_v3, %v2094_v7  ;;  %v2097_v22 = vsel %vm2027_vm3, %v2094_v7, %v2096_v10  ;;  %v2384_v47 = vsel %vm2316_vm4, %v2382_v18, %v2383_v62  ;;  %v2386_v20 = vsel %vm2316_vm4, %v2383_v62, %v2385_v1 }
 0x26f   : > { %v2278_v15 = vmax.f32 %v1912_v25, %v2095_v32  ;;  %v2279_v51 = vmax.f32 %v1748_v2, %v2097_v22  ;;  %v1542_v63 = vmax.f32 %v15418_v16, %v1442_v6  ;;  %v3389_v7 = vrot.slane %v11016_v5, 7 }
 0x270   : > { %v11112_v8 = vsel %vm3181_vm5, %v3617_v19, %v3578_v61  ;;  %v3643_v6 = vrot.slane %v3453_v37, 4  ;;  %v3682_v18 = vsel %vm1053_vm0, %v3669_v55, %v3578_v61  ;;  %v15420_v32 = vrot.slane %v10951_v23, 7  ;;  %v9546_v19 = vld [vmem:[%s10173_s29 + $0x128] sm:$0xff] }
 0x271   : > { %v2567_v36 = vmax.f32 %v2278_v15, %v2384_v47  ;;  %v2568_v3 = vmax.f32 %v2279_v51, %v2386_v20  ;;  %15419 = vst [vmem:[#allocation48_spill] sm:$0xff] %v11112_v8  ;;  %v3747_v5 = vsel %vm1706_vm2, %v3552_v43, %v3578_v61  ;;  %v3455_v15 = vsel %vm1706_vm2, 0.0, %v3389_v7 }
 0x272   : > { %v1208_v33 = vpop.f32.mrf.mxu0  ;;  %v3486_v45 = vsel %vm1706_vm2, %v15420_v32, 0.0  ;;  %v4265_v55 = vrot.slane %v11112_v8, 4  ;;  %v11125_v16 = vsel %vm3181_vm5, %v3682_v18, %v3643_v6  ;;  %v15422_v20 = vmax.f32 %v11067_v57, 0.0 }
 0x273   : > { %v2650_v10 = vrot.slane %v2567_v36, 1  ;;  %v2714_v25 = vrot.slane %v2567_v36, 2  ;;  %v1209_v2 = vadd.f32 %v11047_v31, %v1208_v33  ;;  %v2778_v62 = vrot.slane %v2567_v36, 3  ;;  %15421 = vst [vmem:[#allocation49_spill] sm:$0xff] %v11125_v16 }
 0x274   : > { %v2874_v22 = vrot.slane %v2568_v3, 4  ;;  %v2938_v51 = vrot.slane %v2568_v3, 5  ;;  %v3002_v23 = vrot.slane %v2568_v3, 6  ;;  %v3760_v43 = vsel %vm1053_vm0, %v3747_v5, %v3643_v6 }
 0x275   : > { %v3130_v1 = vsel %vm1706_vm2, %v2567_v36, %v2650_v10  ;;  %v1443_v33 = vmax.f32 %v1209_v2, 0.0  ;;  %v3066_v36 = vrot.slane %v2568_v3, 7  ;;  %v3553_v2 = vrot.slane %v3455_v15, 2 }
 0x276   : > { %v3162_v30 = vsel %vm1053_vm0, %v3130_v1, %v2714_v25  ;;  %v3527_v25 = vrot.slane %v3455_v15, 1  ;;  %v3579_v32 = vrot.slane %v3455_v15, 3  ;;  %v4266_v18 = vrot.slane %v11125_v16, 4 }
 0x277   : > { %v3195_v37 = vsel %vm3181_vm5, %v3162_v30, %v2778_v62  ;;  %v1543_v61 = vmax.f32 %v15422_v20, %v1443_v33  ;;  %v3721_v30 = vrot.slane %v3486_v45, 5  ;;  %v4436_v3 = vsel %vm3214_vm6, %v10540_v40, %v4265_v55 }
 0x278   : > { %v3228_v47 = vsel %vm3214_vm6, %v3195_v37, %v2874_v22  ;;  %v3644_v37 = vrot.slane %v3455_v15, 4  ;;  %v3670_v45 = vsel %vm1706_vm2, %v3527_v25, %v3553_v2  ;;  %v3748_v55 = vsel %vm1706_vm2, %v3553_v2, %v3579_v32 }
 0x279   : > { %v3261_v10 = vsel %vm3247_vm7, %v3228_v47, %v2938_v51  ;;  %v11142_v6 = vsel %vm3181_vm5, %v3760_v43, %v3721_v30  ;;  %v3605_v51 = vsel %vm1706_vm2, %v3455_v15, %v3527_v25  ;;  %v4437_v47 = vsel %vm3214_vm6, %v10543_v41, %v4266_v18 }
 0x27a   : > { %v1211_v62 = vpop.f32.mrf.mxu0  ;;  %v3293_v1 = vsel %vm2316_vm4, %v3261_v10, %v3002_v23  ;;  %15423 = vst [vmem:[#allocation50_spill] sm:$0xff] %v11142_v6  ;;  %v3683_v25 = vsel %vm1053_vm0, %v3670_v45, %v3579_v32 }
 0x27b   : > { %v11136_v22 = vadd.f32 %v11047_v31, %v1211_v62  ;;  %v3325_v57 = vsel %vm2027_vm3, %v3293_v1, %v3066_v36  ;;  %v3618_v62 = vsel %vm1053_vm0, %v3605_v51, %v3553_v2  ;;  %v3488_v1 = vsel %vm1706_vm2, %v3389_v7, 0.0 }
 0x27c   : > { %v3391_v33 = vrot.slane %v3325_v57, 7  ;;  %v3722_v41 = vrot.slane %v3488_v1, 5 }
 0x27d   : > { %v15291_v5 = vmax.f32 %v11136_v22, 0.0  ;;  %8102 = vmatmul.msk.bf16.gmra.mxu0 %vm860_vm1, %v9546_v19 }
 0x27e   : > { %v3457_v23 = vsel %vm1706_vm2, 0.0, %v3391_v33  ;;  %v3490_v20 = vsel %vm1706_vm2, %v3391_v33, 0.0  ;;  %v3761_v33 = vsel %vm1053_vm0, %v3748_v55, %v3644_v37 }
 0x27f   : > { %v1606_v43 = vmax.f32 %v1542_v63, %v15291_v5  ;;  %v3528_v36 = vrot.slane %v3457_v23, 1  ;;  %v3554_v10 = vrot.slane %v3457_v23, 2  ;;  %v3580_v19 = vrot.slane %v3457_v23, 3 }
 0x280   : > { %v3645_v15 = vrot.slane %v3457_v23, 4  ;;  %v3723_v8 = vrot.slane %v3490_v20, 5  ;;  %v11176_v20 = vsel %vm3181_vm5, %v3618_v62, %v3579_v32 }
 0x281   : > { %v3606_v30 = vsel %vm1706_vm2, %v3457_v23, %v3528_v36  ;;  %v3671_v18 = vsel %vm1706_vm2, %v3528_v36, %v3554_v10  ;;  %v3749_v57 = vsel %vm1706_vm2, %v3554_v10, %v3580_v19  ;;  %v1749_v51 = vrot.slane %v1606_v43, 7  ;;  %15426 = vst [vmem:[#allocation53_spill] sm:$0xff] %v11176_v20 }
 0x282   : > { %v1213_v16 = vpop.f32.mrf.mxu0  ;;  %v3619_v63 = vsel %vm1053_vm0, %v3606_v30, %v3554_v10  ;;  %v3684_v5 = vsel %vm1053_vm0, %v3671_v18, %v3580_v19  ;;  %v3762_v2 = vsel %vm1053_vm0, %v3749_v57, %v3645_v15  ;;  %v4267_v10 = vrot.slane %v11142_v6, 4 }
 0x283   : > { %v1214_v45 = vadd.f32 %v11047_v31, %v1213_v16  ;;  %v11167_v7 = vsel %vm3181_vm5, %v3619_v63, %v3580_v19  ;;  %v11170_v23 = vsel %vm3181_vm5, %v3684_v5, %v3645_v15  ;;  %v11179_v43 = vsel %vm3181_vm5, %v3683_v25, %v3644_v37 }
 0x284   : > { %15424 = vst [vmem:[#allocation51_spill] sm:$0xff] %v11167_v7  ;;  %v4292_v36 = vrot.slane %v11167_v7, 4  ;;  %v4293_v55 = vrot.slane %v11170_v23, 4  ;;  %v11182_v16 = vsel %vm3181_vm5, %v3762_v2, %v3723_v8  ;;  %v11189_v15 = vsel %vm3181_vm5, %v3761_v33, %v3722_v41  ;;  %v9547_v2 = vld [vmem:[%s10173_s29 + $0x130] sm:$0xff] }
 0x285   : > { %15425 = vst [vmem:[#allocation52_spill] sm:$0xff] %v11170_v23  ;;  %v1445_v30 = vmax.f32 %v1214_v45, 0.0  ;;  %v4294_v1 = vrot.slane %v11182_v16, 4  ;;  %v1913_v32 = vsel %vm1706_vm2, 0.0, %v1749_v51  ;;  %v4438_v8 = vsel %vm3214_vm6, %v10551_v44, %v4267_v10 }
 0x286   : > { %15427 = vst [vmem:[#allocation54_spill] sm:$0xff] %v11179_v43  ;;  %v4445_v5 = vsel %vm3214_vm6, %v11176_v20, %v4292_v36  ;;  %v4446_v19 = vsel %vm3214_vm6, %v11179_v43, %v4293_v55  ;;  %v2098_v41 = vrot.slane %v1913_v32, 1  ;;  %v2387_v45 = vrot.slane %v1913_v32, 2 }
 0x287   : > { %15428 = vst [vmem:[#allocation55_spill] sm:$0xff] %v11182_v16  ;;  %v1607_v62 = vmax.f32 %v1543_v61, %v1445_v30  ;;  %v4499_v37 = vpack.c.bf16 %v4445_v5, %v4436_v3  ;;  %v4500_v25 = vpack.c.bf16 %v4446_v19, %v4437_v47  ;;  %v4447_v18 = vsel %vm3214_vm6, %v11189_v15, %v4294_v1 }
 0x288   : > { %15429 = vst [vmem:[#allocation56_spill] sm:$0xff] %v11189_v15  ;;  %v4501_v63 = vpack.c.bf16 %v4447_v18, %v4438_v8  ;;  %v15430_v18 = vmax.f32 %v11136_v22, 0.0 }
 0x289   : > { %v1750_v57 = vrot.slane %v1607_v62, 7  ;;  %5119 = vmatmul.bf16.gmra.mxu1 %v4499_v37  ;;  %5148 = vmatmul.bf16.gmra.mxu2 %v4500_v25 }
 0x28a   : > { %v1216_v33 = vpop.f32.mrf.mxu0  ;;  %5177 = vmatmul.bf16.gmra.mxu3 %v4501_v63 }
 0x28b   : > { %v1751_v36 = vsel %vm1706_vm2, %v1749_v51, %v1750_v57  ;;  %v1945_v61 = vsel %vm1706_vm2, %v1750_v57, 0.0  ;;  %v1217_v3 = vadd.f32 %v11047_v31, %v1216_v33 }
 0x28c   : > { %v2099_v47 = vrot.slane %v1751_v36, 1  ;;  %v2101_v55 = vrot.slane %v1945_v61, 1  ;;  %v2388_v10 = vrot.slane %v1751_v36, 2  ;;  %v2390_v5 = vrot.slane %v1945_v61, 2 }
 0x28d   : > { %v1446_v19 = vmax.f32 %v1217_v3, 0.0  ;;  %8103 = vmatmul.msk.bf16.gmra.mxu0 %vm860_vm1, %v9547_v2 }
 0x28e   : > { %v2100_v1 = vsel %vm2027_vm3, %v2098_v41, %v2099_v47  ;;  %v2102_v62 = vsel %vm2027_vm3, %v2099_v47, %v2101_v55  ;;  %v2389_v37 = vsel %vm2316_vm4, %v2387_v45, %v2388_v10  ;;  %v2391_v51 = vsel %vm2316_vm4, %v2388_v10, %v2390_v5  ;;  %v9548_v5 = vld [vmem:[%s10173_s29 + $0x138] sm:$0xff] }
 0x28f   : > { %v2280_v25 = vmax.f32 %v1913_v32, %v2100_v1  ;;  %v2281_v8 = vmax.f32 %v1751_v36, %v2102_v62  ;;  %v1544_v57 = vmax.f32 %v15430_v18, %v1446_v19 }
 0x291   : > { %v2569_v63 = vmax.f32 %v2280_v25, %v2389_v37  ;;  %v11208_v33 = vmax.f32 %v2281_v8, %v2391_v51  ;;  %v1357_v37 = vadd.f32 %v11047_v31, %v10741_v39  ;;  %v1359_v51 = vadd.f32 %v11047_v31, %v10768_v12 }
 0x292   : > { %v1218_v61 = vpop.f32.mrf.mxu0 }
 0x293   : > { %v2651_v3 = vrot.slane %v2569_v63, 1  ;;  %v2715_v2 = vrot.slane %v2569_v63, 2  ;;  %v1219_v41 = vadd.f32 %v11047_v31, %v1218_v61  ;;  %v2779_v16 = vrot.slane %v2569_v63, 3 }
 0x294   : > { %v2875_v45 = vrot.slane %v11208_v33, 4  ;;  %v1503_v8 = vmax.f32 %v1359_v51, 0.0  ;;  %v11232_v61 = vadd.f32 %v11047_v31, %v10806_v46 }
 0x295   : > { %v3131_v47 = vsel %vm1706_vm2, %v2569_v63, %v2651_v3  ;;  %v1447_v36 = vmax.f32 %v1219_v41, 0.0  ;;  %v11228_v63 = vadd.f32 %v11047_v31, %v10785_v27 }
 0x296   : > { %v3163_v32 = vsel %vm1053_vm0, %v3131_v47, %v2715_v2  ;;  %v15431_v2 = vmax.f32 %v10660_v35, 0.0 }
 0x297   : > { %v3196_v22 = vsel %vm3181_vm5, %v3163_v32, %v2779_v16  ;;  %v1545_v10 = vmax.f32 %v1445_v30, %v1447_v36  ;;  %v1502_v16 = vmax.f32 %v1357_v37, 0.0  ;;  %v15296_v32 = vmax.f32 %v11232_v61, 0.0 }
 0x298   : > { %v11216_v55 = vsel %vm3214_vm6, %v3196_v22, %v2875_v45  ;;  %v15297_v45 = vmax.f32 %v11228_v63, 0.0  ;;  %v9549_v22 = vld [vmem:[%s10173_s29 + $0x140] sm:$0xff] }
 0x299   : > { %v1572_v12 = vmax.f32 %v15431_v2, %v1502_v16  ;;  %v11250_v16 = vadd.f32 %v11047_v31, %v10481_v34  ;;  %v1319_v34 = vadd.f32 %v11047_v31, %v10757_v49  ;;  %v15434_v49 = vmax.f32 %v10730_v14, 0.0 }
 0x29a   : > { %v1221_v19 = vpop.f32.mrf.mxu0 }
 0x29b   : > { %v1222_v1 = vadd.f32 %v11047_v31, %v1221_v19  ;;  %v1636_v46 = vmax.f32 %v1572_v12, %v15297_v45 }
 0x29d   : > { %v1448_v62 = vmax.f32 %v1222_v1, 0.0  ;;  %8104 = vmatmul.msk.bf16.gmra.mxu0 %vm860_vm1, %v9548_v5 }
 0x29f   : > { %v1608_v25 = vmax.f32 %v1544_v57, %v1448_v62  ;;  %v15432_v57 = vmax.f32 %v10724_v13, 0.0 }
 0x2a1   : > { %v1752_v3 = vrot.slane %v1608_v25, 7  ;;  %v1573_v41 = vmax.f32 %v15432_v57, %v1503_v8 }
 0x2a2   : > { %v1223_v18 = vpop.f32.mrf.mxu0 }
 0x2a3   : > { %v1224_v30 = vadd.f32 %v11047_v31, %v1223_v18  ;;  %v1914_v27 = vsel %vm1706_vm2, 0.0, %v1752_v3  ;;  %v1637_v5 = vmax.f32 %v1573_v41, %v15296_v32  ;;  %v11259_v41 = vadd.f32 %v11047_v31, %v10559_v50 }
 0x2a4   : > { %v2103_v19 = vrot.slane %v1914_v27, 1  ;;  %v2392_v1 = vrot.slane %v1914_v27, 2  ;;  %v2665_v50 = vrot.slane %v10759_v21, 1 }
 0x2a5   : > { %v1449_v39 = vmax.f32 %v1224_v30, 0.0  ;;  %v1795_v2 = vrot.slane %v1637_v5, 7 }
 0x2a7   : > { %v1609_v47 = vmax.f32 %v1545_v10, %v1449_v39  ;;  %v1794_v39 = vrot.slane %v1636_v46, 7 }
 0x2a9   : > { %v1753_v36 = vrot.slane %v1609_v47, 7  ;;  %v11268_v46 = vsel %vm1706_vm2, %v1794_v39, %v1795_v2 }
 0x2aa   : > { %v1226_v35 = vpop.f32.mrf.mxu0 }
 0x2ab   : > { %v1754_v13 = vsel %vm1706_vm2, %v1752_v3, %v1753_v36  ;;  %v1946_v10 = vsel %vm1706_vm2, %v1753_v36, 0.0 }
 0x2ac   : > { %v2104_v62 = vrot.slane %v1754_v13, 1  ;;  %v2106_v37 = vrot.slane %v1946_v10, 1  ;;  %v2393_v51 = vrot.slane %v1754_v13, 2  ;;  %v2395_v25 = vrot.slane %v1946_v10, 2 }
 0x2ad   : > { %8105 = vmatmul.msk.bf16.gmra.mxu0 %vm860_vm1, %v9549_v22  ;;  %v2729_v10 = vrot.slane %v10759_v21, 2 }
 0x2ae   : > { %v2105_v8 = vsel %vm2027_vm3, %v2103_v19, %v2104_v62  ;;  %v2107_v18 = vsel %vm2027_vm3, %v2104_v62, %v2106_v37  ;;  %v2394_v30 = vsel %vm2316_vm4, %v2392_v1, %v2393_v51  ;;  %v2396_v3 = vsel %vm2316_vm4, %v2393_v51, %v2395_v25 }
 0x2af   : > { %v2282_v12 = vmax.f32 %v1914_v27, %v2105_v8  ;;  %v2283_v57 = vmax.f32 %v1754_v13, %v2107_v18  ;;  %v1928_v1 = vsel %vm1706_vm2, 0.0, %v1794_v39  ;;  %v1487_v62 = vmax.f32 %v1319_v34, 0.0 }
 0x2b0   : > { %v1227_v25 = vadd.f32 %v11047_v31, %v1226_v35  ;;  %v2173_v8 = vrot.slane %v1928_v1, 1  ;;  %v2174_v18 = vrot.slane %v11268_v46, 1  ;;  %v3145_v35 = vsel %vm1706_vm2, %v10759_v21, %v2665_v50  ;;  %v15474_v21 = vld [vmem:[#allocation36_spill] sm:$0xff] }
 0x2b1   : > { %v2571_v47 = vmax.f32 %v2282_v12, %v2394_v30  ;;  %v11263_v36 = vmax.f32 %v2283_v57, %v2396_v3  ;;  %v2462_v22 = vrot.slane %v1928_v1, 2  ;;  %v9550_v12 = vld [vmem:[%s10173_s29 + $0x148] sm:$0xff]  ;;  %v1565_v32 = vmax.f32 %v15434_v49, %v1487_v62  ;;  %s9506_s29 = sshll.u32 %s10132_s21, 2  ;;  %s7720_s21 = scalar_lea.sflag [#allocation3], %s378_s0 }
 0x2b2   : > { %v1228_v19 = vpop.f32.mrf.mxu0  ;;  %v1450_v39 = vmax.f32 %v1227_v25, 0.0  ;;  %v11305_v14 = vsel %vm1053_vm0, %v3145_v35, %v2729_v10  ;;  %v2725_v49 = vrot.slane %v10783_v0, 2  ;;  %v15437_v25 = vmax.f32 %v10836_v38, 0.0  ;;  %s7730_s15 = scalar_lea.hbm %s15255_s11, %s9506_s29 }
 0x2b3   : > { %15433 = vst [vmem:[#allocation57_spill] sm:$0xff] %v11263_v36  ;;  %v2652_v27 = vrot.slane %v2571_v47, 1  ;;  %v2716_v5 = vrot.slane %v2571_v47, 2  ;;  %v2780_v37 = vrot.slane %v2571_v47, 3  ;;  %v2876_v30 = vrot.slane %v11263_v36, 4  ;;  %s7734_s24 = sshll.u32 %s7730_s15, 4  ;;  %s7735_s24 = int_to_ptr.hbm [resolvable:$true] %s7734_s24 }
 0x2b4   : > { %v2940_v57 = vrot.slane %v11263_v36, 5  ;;  %15436 = vst [vmem:[#allocation59_spill] sm:$0xff] %v11305_v14  ;;  %v1367_v38 = vadd.f32 %v11047_v31, %v10816_v58  ;;  %s9999_s25 = sshra.s32 %s7735_s24, 4  ;;  %s10000_s25 = int_to_ptr.hbm [resolvable:$true] %s9999_s25 }
 0x2b5   : > { %v3132_v51 = vsel %vm1706_vm2, %v2571_v47, %v2652_v27  ;;  %v3004_v27 = vrot.slane %v11263_v36, 6  ;;  %s10001_s1 = scalar_lea.hbm %s10000_s25, 4  ;;  %p10006_p0 = scmp.lt.s32.totalorder %s10000_s25, %s15255_s11 }
 0x2b6   : > { %v3164_v3 = vsel %vm1053_vm0, %v3132_v51, %v2716_v5  ;;  %v1960_v5 = vsel %vm1706_vm2, %v1795_v2, 0.0  ;;  %v2661_v2 = vrot.slane %v10783_v0, 1  ;;  %v1506_v10 = vmax.f32 %v1367_v38, 0.0  ;;  %p10002_p11 = scmp.ne.s32.totalorder %s10000_s25, %s10001_s1  ;;  %p10007_p1 = scmp.lt.s32.totalorder %s10005_s12, %s10001_s1 }
 0x2b7   : > { %v3197_v34 = vsel %vm3181_vm5, %v3164_v3, %v2780_v37  ;;  %v2175_v37 = vsel %vm2027_vm3, %v2173_v8, %v2174_v18  ;;  %v2463_v3 = vrot.slane %v11268_v46, 2  ;;  %v2176_v62 = vrot.slane %v1960_v5, 1 }
 0x2b8   : > { %v3230_v13 = vsel %vm3214_vm6, %v3197_v34, %v2876_v30  ;;  %v1628_v8 = vmax.f32 %v10792_v56, %v15437_v25  ;;  %v15438_v30 = vmax.f32 %v10860_v11, 0.0  ;;  %v3141_v56 = vsel %vm1706_vm2, %v10783_v0, %v2661_v2  ;;  %p10003_p12 = pnand %p10002_p11, %p10149_p5  ;;  %p10008_p2 = por %p10007_p1, %p10006_p0 }
 0x2b9   : > { %v3263_v51 = vsel %vm3247_vm7, %v3230_v13, %v2940_v57  ;;  %v2310_v57 = vmax.f32 %v1928_v1, %v2175_v37  ;;  %v2464_v35 = vsel %vm2316_vm4, %v2462_v22, %v2463_v3  ;;  %v11331_v11 = vadd.f32 %v11047_v31, %v10795_v26 }
 0x2ba   : > { %v11296_v50 = vsel %vm2316_vm4, %v3263_v51, %v3004_v27  ;;  %v1231_v47 = vpop.f32.mrf.mxu0  ;;  %v1546_v27 = vmax.f32 %v1450_v39, 0.0  ;;  %v1229_v51 = vadd.f32 %v11047_v31, %v1228_v19  ;;  %v1629_v45 = vmax.f32 %v1565_v32, %v15438_v30  ;;  %p10004_p13 = pneg %p10003_p12 }
 0x2bb   : > { %15435 = vst [vmem:[#allocation58_spill] sm:$0xff] %v11296_v50  ;;  %v11302_v13 = vadd.f32 %v11047_v31, %v1231_v47  ;;  %v1369_v19 = vadd.f32 %v11047_v31, %v10830_v17  ;;  %v15298_v39 = vrot.slane %v10799_v52, 7  ;;  %v1782_v32 = vrot.slane %v1628_v8, 7 }
 0x2bc   : > { %v2177_v22 = vsel %vm2027_vm3, %v2174_v18, %v2176_v62  ;;  %v2465_v37 = vrot.slane %v1960_v5, 2  ;;  %v11334_v30 = vmax.f32 %v2310_v57, %v2464_v35  ;;  %v1451_v58 = vmax.f32 %v1229_v51, 0.0  ;;  %p10009_p3 = pnand %p10008_p2, %p10004_p13 }
 0x2bd   : > { %v15300_v34 = vmax.f32 %v11302_v13, 0.0  ;;  %8106 = vmatmul.msk.bf16.gmra.mxu0 %vm860_vm1, %v9550_v12  ;;  %v11339_v25 = vsel %vm1053_vm0, %v3141_v56, %v2725_v49  ;;  %v1507_v47 = vmax.f32 %v1369_v19, 0.0  ;;  %v11347_v18 = vsel %vm1706_vm2, 0.0, %v15298_v39 }
 0x2be   : > { %15439 = vst [vmem:[#allocation60_spill] sm:$0xff] %v11339_v25  ;;  %v2311_v5 = vmax.f32 %v11268_v46, %v2177_v22  ;;  %v11352_v49 = vsel %vm1706_vm2, 0.0, %v1782_v32  ;;  %v2666_v57 = vrot.slane %v11334_v30, 1  ;;  %v1547_v51 = vmax.f32 %v1451_v58, 0.0 }
 0x2bf   : > { %v1610_v1 = vmax.f32 %v1546_v27, %v15300_v34  ;;  %v1783_v27 = vrot.slane %v1629_v45, 7  ;;  %15440 = vst [vmem:[#allocation61_spill] sm:$0xff] %v11347_v18  ;;  %v2466_v45 = vsel %vm2316_vm4, %v2463_v3, %v2465_v37  ;;  %v11359_v56 = vadd.f32 %v11047_v31, %v10809_v28 }
 0x2c0   : > { %v11366_v46 = vadd.f32 %v11047_v31, %v10845_v53  ;;  %v11370_v19 = vadd.f32 %v11047_v31, %v10872_v24  ;;  %v15441_v3 = vmax.f32 %v11228_v63, 0.0  ;;  %v11379_v37 = vmax.f32 %v2311_v5, %v2466_v45 }
 0x2c1   : > { %v1755_v26 = vrot.slane %v1610_v1, 7  ;;  %v11362_v38 = vsel %vm1706_vm2, %v1782_v32, %v1783_v27  ;;  %v2730_v53 = vrot.slane %v11334_v30, 2  ;;  %v2153_v58 = vrot.slane %v11352_v49, 1 }
 0x2c2   : > { %v1233_v12 = vpop.f32.mrf.mxu0  ;;  %v1574_v1 = vmax.f32 %v15441_v3, %v1506_v10  ;;  %v2442_v24 = vrot.slane %v11352_v49, 2  ;;  %v2794_v39 = vrot.slane %v11334_v30, 3  ;;  %v3146_v63 = vsel %vm1706_vm2, %v11334_v30, %v2666_v57 }
 0x2c3   : > { %v11342_v8 = vadd.f32 %v11047_v31, %v1233_v12  ;;  %v15442_v12 = vmax.f32 %v11232_v61, 0.0  ;;  %v1915_v28 = vsel %vm1706_vm2, 0.0, %v1755_v26  ;;  %v2154_v61 = vrot.slane %v11362_v38, 1 }
 0x2c4   : > { %v1956_v10 = vsel %vm1706_vm2, %v1783_v27, 0.0  ;;  %v2108_v45 = vrot.slane %v1915_v28, 1 }
 0x2c5   : > { %v15299_v35 = vmax.f32 %v11342_v8, 0.0  ;;  %v1575_v22 = vmax.f32 %v15442_v12, %v1507_v47  ;;  %v2397_v12 = vrot.slane %v1915_v28, 2  ;;  %v2155_v27 = vsel %vm2027_vm3, %v2153_v58, %v2154_v61 }
 0x2c6   : > { %v2302_v58 = vmax.f32 %v11352_v49, %v2155_v27 }
 0x2c7   : > { %v1611_v32 = vmax.f32 %v1547_v51, %v15299_v35  ;;  %v2443_v51 = vrot.slane %v11362_v38, 2 }
 0x2c9   : > { %v1756_v47 = vrot.slane %v1611_v32, 7  ;;  %v3178_v32 = vsel %vm1053_vm0, %v3146_v63, %v2730_v53 }
 0x2ca   : > { %v1236_v3 = vpop.f32.mrf.mxu0 }
 0x2cb   : > { %v1757_v2 = vsel %vm1706_vm2, %v1755_v26, %v1756_v47  ;;  %v1947_v17 = vsel %vm1706_vm2, %v1756_v47, 0.0  ;;  %v1237_v62 = vadd.f32 %v11047_v31, %v1236_v3  ;;  %v2156_v3 = vrot.slane %v1956_v10, 1 }
 0x2cc   : > { %v2109_v35 = vrot.slane %v1757_v2, 1  ;;  %v2111_v30 = vrot.slane %v1947_v17, 1  ;;  %v2398_v57 = vrot.slane %v1757_v2, 2  ;;  %v2400_v34 = vrot.slane %v1947_v17, 2 }
 0x2cd   : > { %v1454_v5 = vmax.f32 %v1237_v62, 0.0  ;;  %v15443_v17 = vmax.f32 %v11302_v13, 0.0  ;;  %v15444_v62 = vmax.f32 %v11366_v46, 0.0 }
 0x2ce   : > { %v2110_v6 = vsel %vm2027_vm3, %v2108_v45, %v2109_v35  ;;  %v2112_v23 = vsel %vm2027_vm3, %v2109_v35, %v2111_v30  ;;  %v2399_v26 = vsel %vm2316_vm4, %v2397_v12, %v2398_v57  ;;  %v2401_v47 = vsel %vm2316_vm4, %v2398_v57, %v2400_v34 }
 0x2cf   : > { %v2284_v7 = vmax.f32 %v1915_v28, %v2110_v6  ;;  %v2285_v15 = vmax.f32 %v1757_v2, %v2112_v23  ;;  %v11403_v43 = vmax.f32 %v15443_v17, %v1454_v5  ;;  %v1638_v63 = vmax.f32 %v1574_v1, %v15444_v62 }
 0x2d0   : > { %v15445_v35 = vmax.f32 %v11370_v19, 0.0  ;;  %v2890_v12 = vrot.slane %v11379_v37, 4  ;;  %v2444_v34 = vsel %vm2316_vm4, %v2442_v24, %v2443_v51  ;;  %v3211_v28 = vsel %vm3181_vm5, %v3178_v32, %v2794_v39  ;;  %v15447_v32 = vld [vmem:[#allocation17_spill] sm:$0xff] }
 0x2d1   : > { %v11413_v6 = vmax.f32 %v2284_v7, %v2399_v26  ;;  %v11415_v23 = vmax.f32 %v2285_v15, %v2401_v47  ;;  %v2645_v5 = vrot.slane %v10825_v54, 1  ;;  %v2157_v30 = vsel %vm2027_vm3, %v2154_v61, %v2156_v3  ;;  %v15452_v47 = vld [vmem:[#allocation26_spill] sm:$0xff] }
 0x2d2   : > { %v1639_v45 = vmax.f32 %v1575_v22, %v15445_v35  ;;  %v1238_v1 = vpop.f32.mrf.mxu0  ;;  %v2709_v22 = vrot.slane %v10825_v54, 2  ;;  %v2445_v24 = vrot.slane %v1956_v10, 2  ;;  %v11424_v7 = vmax.f32 %v2302_v58, %v2444_v34  ;;  %v15448_v35 = vld [vmem:[#allocation23_spill] sm:$0xff] }
 0x2d3   : > { %15446 = vst [vmem:[#allocation62_spill] sm:$0xff] %v11415_v23  ;;  %v1797_v15 = vrot.slane %v1638_v63, 7  ;;  %v1239_v27 = vadd.f32 %v11047_v31, %v1238_v1  ;;  %v3384_v17 = vrot.slane %v15447_v32, 7  ;;  %v2303_v62 = vmax.f32 %v11362_v38, %v2157_v30  ;;  %v15450_v1 = vld [vmem:[#allocation24_spill] sm:$0xff] }
 0x2d4   : > { %v1798_v57 = vrot.slane %v1639_v45, 7  ;;  %v11434_v61 = vadd.f32 %v11047_v31, %v15448_v35  ;;  %v15449_v3 = vrot.slane %v10677_v42, 7  ;;  %v3125_v45 = vsel %vm1706_vm2, %v10825_v54, %v2645_v5 }
 0x2d5   : > { %v1455_v10 = vmax.f32 %v1239_v27, 0.0  ;;  %v2446_v34 = vsel %vm2316_vm4, %v2443_v51, %v2445_v24  ;;  %v11447_v38 = vadd.f32 %v11047_v31, %v15450_v1  ;;  %v2662_v30 = vrot.slane %v11424_v7, 1 }
 0x2d6   : > { %v11439_v58 = vsel %vm1706_vm2, 0.0, %v15449_v3  ;;  %v11451_v27 = vsel %vm1706_vm2, 0.0, %v1797_v15  ;;  %v11454_v32 = vsel %vm1706_vm2, %v1797_v15, %v1798_v57  ;;  %v15451_v35 = vmax.f32 %v11342_v8, 0.0 }
 0x2d7   : > { %v3450_v5 = vsel %vm1706_vm2, 0.0, %v3384_v17  ;;  %v3800_v51 = vrot.slane %v11439_v58, 1  ;;  %v3832_v24 = vrot.slane %v11439_v58, 2  ;;  %v11463_v1 = vsel %vm1053_vm0, %v3125_v45, %v2709_v22 }
 0x2d8   : > { %v1549_v3 = vmax.f32 %v15451_v35, %v1455_v10  ;;  %v11466_v49 = vsel %vm3214_vm6, %v3211_v28, %v2890_v12  ;;  %v11468_v2 = vmax.f32 %v2303_v62, %v2446_v34  ;;  %v2178_v35 = vrot.slane %v11451_v27, 1 }
 0x2d9   : > { %v15313_v13 = vrot.slane %v11454_v32, 1  ;;  %v11479_v22 = vsel %vm1706_vm2, %v11424_v7, %v2662_v30  ;;  %v3801_v28 = vrot.slane %v3450_v5, 1  ;;  %v3864_v62 = vrot.slane %v11439_v58, 3  ;;  %v15453_v30 = vld [vmem:[#allocation28_spill] sm:$0xff] }
 0x2da   : > { %v1241_v8 = vpop.f32.mrf.mxu0  ;;  %v3833_v34 = vrot.slane %v3450_v5, 2  ;;  %v3896_v63 = vsel %vm1706_vm2, %v11439_v58, %v3800_v51  ;;  %v3976_v39 = vsel %vm1706_vm2, %v3800_v51, %v3832_v24  ;;  %v11490_v26 = vadd.f32 %v11047_v31, %v15452_v47 }
 0x2db   : > { %v11475_v53 = vadd.f32 %v11047_v31, %v1241_v8  ;;  %v2467_v8 = vrot.slane %v11451_v27, 2  ;;  %v11494_v10 = vadd.f32 %v11047_v31, %v15453_v30  ;;  %v3865_v12 = vrot.slane %v3450_v5, 3 }
 0x2dc   : > { %v11497_v15 = vsel %vm1706_vm2, %v1798_v57, 0.0  ;;  %v2180_v45 = vsel %vm2027_vm3, %v2178_v35, %v15313_v13  ;;  %v3897_v47 = vsel %vm1706_vm2, %v3450_v5, %v3801_v28  ;;  %v3912_v50 = vsel %vm1053_vm0, %v3896_v63, %v3832_v24 }
 0x2dd   : > { %v15454_v20 = vmax.f32 %v11475_v53, 0.0  ;;  %v3944_v30 = vrot.slane %v11439_v58, 4  ;;  %v3992_v18 = vsel %vm1053_vm0, %v3976_v39, %v3864_v62  ;;  %v3913_v57 = vsel %vm1053_vm0, %v3897_v47, %v3833_v34 }
 0x2de   : > { %v3945_v60 = vrot.slane %v3450_v5, 4  ;;  %v3977_v36 = vsel %vm1706_vm2, %v3801_v28, %v3833_v34  ;;  %v15455_v35 = vrot.slane %v10677_v42, 7  ;;  %v3483_v63 = vsel %vm1706_vm2, %v3384_v17, 0.0 }
 0x2df   : > { %v1612_v52 = vmax.f32 %v11403_v43, %v15454_v20  ;;  %v3929_v20 = vsel %vm3181_vm5, %v3913_v57, %v3865_v12  ;;  %v3993_v43 = vsel %vm1053_vm0, %v3977_v36, %v3865_v12  ;;  %v4072_v58 = vsel %vm1706_vm2, %v3832_v24, %v3864_v62 }
 0x2e0   : > { %v3481_v13 = vsel %vm1706_vm2, %v15455_v35, 0.0  ;;  %v4241_v5 = vrot.slane %v3929_v20, 4  ;;  %v4009_v28 = vsel %vm3181_vm5, %v3993_v43, %v3945_v60  ;;  %v3928_v42 = vsel %vm3181_vm5, %v3912_v50, %v3864_v62 }
 0x2e1   : > { %v1758_v9 = vrot.slane %v1612_v52, 7  ;;  %v4008_v47 = vsel %vm3181_vm5, %v3992_v18, %v3944_v30  ;;  %v4242_v35 = vrot.slane %v4009_v28, 4  ;;  %v4040_v14 = vrot.slane %v3481_v13, 5 }
 0x2e2   : > { %v1243_v51 = vpop.f32.mrf.mxu0  ;;  %v11527_v36 = vsel %vm3214_vm6, %v3928_v42, %v4241_v5  ;;  %v4041_v17 = vrot.slane %v3483_v63, 5  ;;  %v4073_v52 = vsel %vm1706_vm2, %v3833_v34, %v3865_v12  ;;  %v4088_v50 = vsel %vm1053_vm0, %v4072_v58, %v3944_v30  ;;  %v15458_v63 = vld [vmem:[#allocation29_spill] sm:$0xff] }
 0x2e3   : > { %v11520_v39 = vadd.f32 %v11047_v31, %v1243_v51  ;;  %15456 = vst [vmem:[#allocation17_spill] sm:$0xff] %v11527_v36  ;;  %v11533_v51 = vsel %vm3214_vm6, %v4008_v47, %v4242_v35  ;;  %v4089_v18 = vsel %vm1053_vm0, %v4073_v52, %v3945_v60  ;;  %v1916_v13 = vsel %vm1706_vm2, 0.0, %v1758_v9 }
 0x2e4   : > { %15457 = vst [vmem:[#allocation23_spill] sm:$0xff] %v11533_v51  ;;  %v4105_v12 = vsel %vm3181_vm5, %v4089_v18, %v4041_v17  ;;  %v2181_v34 = vrot.slane %v11497_v15, 1  ;;  %v1474_v43 = vmax.f32 %v11490_v26, 0.0  ;;  %v11547_v5 = vadd.f32 %v11047_v31, %v15458_v63 }
 0x2e5   : > { %v15316_v57 = vmax.f32 %v11520_v39, 0.0  ;;  %v4243_v30 = vrot.slane %v4105_v12, 4  ;;  %v2312_v60 = vmax.f32 %v11451_v27, %v2180_v45  ;;  %v1475_v58 = vmax.f32 %v11494_v10, 0.0 }
 0x2e6   : > { %v15459_v42 = vrot.slane %v11454_v32, 2  ;;  %v2113_v35 = vrot.slane %v1916_v13, 1  ;;  %v2402_v17 = vrot.slane %v1916_v13, 2  ;;  %v15461_v63 = vmax.f32 %v11434_v61, 0.0 }
 0x2e7   : > { %v1613_v62 = vmax.f32 %v1549_v3, %v15316_v57  ;;  %v4104_v3 = vsel %vm3181_vm5, %v4088_v50, %v4040_v14  ;;  %v15463_v24 = vmax.f32 %v11447_v38, 0.0  ;;  %v15464_v57 = vmax.f32 %v11475_v53, 0.0 }
 0x2e8   : > { %v2469_v47 = vsel %vm2316_vm4, %v2467_v8, %v15459_v42  ;;  %v11556_v26 = vsel %vm3214_vm6, %v4104_v3, %v4243_v30  ;;  %v1558_v42 = vmax.f32 %v15461_v63, %v1474_v43  ;;  %v15462_v30 = vld [vmem:[#allocation37_spill] sm:$0xff]  ;;  %v2790_v63 = vrot.slane %v11424_v7, 3 }
 0x2e9   : > { %v1759_v28 = vrot.slane %v1613_v62, 7  ;;  %15460 = vst [vmem:[#allocation24_spill] sm:$0xff] %v11556_v26  ;;  %v11563_v8 = vmax.f32 %v2312_v60, %v2469_v47  ;;  %v1294_v3 = vadd.f32 %v11047_v31, %v15462_v30  ;;  %v2886_v53 = vrot.slane %v11468_v2, 4 }
 0x2ea   : > { %v1246_v52 = vpop.f32.mrf.mxu0 }
 0x2eb   : > { %v1760_v18 = vsel %vm1706_vm2, %v1758_v9, %v1759_v28  ;;  %v1948_v12 = vsel %vm1706_vm2, %v1759_v28, 0.0  ;;  %v1247_v27 = vadd.f32 %v11047_v31, %v1246_v52 }
 0x2ec   : > { %v2114_v14 = vrot.slane %v1760_v18, 1  ;;  %v2116_v45 = vrot.slane %v1948_v12, 1  ;;  %v2403_v50 = vrot.slane %v1760_v18, 2  ;;  %v2405_v62 = vrot.slane %v1948_v12, 2 }
 0x2ed   : > { %v1458_v9 = vmax.f32 %v1247_v27, 0.0  ;;  %v1559_v12 = vmax.f32 %v15463_v24, %v1475_v58  ;;  %v15465_v27 = vrot.slane %v11454_v32, 1  ;;  %v1477_v24 = vmax.f32 %v1294_v3, 0.0 }
 0x2ee   : > { %v2115_v28 = vsel %vm2027_vm3, %v2113_v35, %v2114_v14  ;;  %v2117_v52 = vsel %vm2027_vm3, %v2114_v14, %v2116_v45  ;;  %v2404_v20 = vsel %vm2316_vm4, %v2402_v17, %v2403_v50  ;;  %v2406_v10 = vsel %vm2316_vm4, %v2403_v50, %v2405_v62  ;;  %v15466_v17 = vld [vmem:[#allocation35_spill] sm:$0xff]  ;;  %v15468_v62 = vld [vmem:[#allocation30_spill] sm:$0xff] }
 0x2ef   : > { %v2286_v60 = vmax.f32 %v1916_v13, %v2115_v28  ;;  %v2287_v47 = vmax.f32 %v1760_v18, %v2117_v52  ;;  %v11577_v43 = vmax.f32 %v15464_v57, %v1458_v9  ;;  %v2182_v35 = vsel %vm2027_vm3, %v15465_v27, %v2181_v34 }
 0x2f0   : > { %v2470_v14 = vrot.slane %v11497_v15, 2  ;;  %v1337_v45 = vadd.f32 %v11047_v31, %v15466_v17  ;;  %v2667_v50 = vrot.slane %v11563_v8, 1  ;;  %v15467_v18 = vrot.slane %v11424_v7, 2 }
 0x2f1   : > { %v2575_v13 = vmax.f32 %v2286_v60, %v2404_v20  ;;  %v11587_v58 = vmax.f32 %v2287_v47, %v2406_v10  ;;  %v15469_v15 = vmax.f32 %v15468_v62, 0.0  ;;  %v1510_v31 = vmax.f32 %v11547_v5, 0.0 }
 0x2f2   : > { %v3174_v34 = vsel %vm1053_vm0, %v11479_v22, %v15467_v18  ;;  %v1248_v9 = vpop.f32.mrf.mxu0  ;;  %v11598_v28 = vmax.f32 %v1559_v12, %v1477_v24  ;;  %v2313_v3 = vmax.f32 %v11454_v32, %v2182_v35  ;;  %v15470_v52 = vrot.slane %v11454_v32, 2  ;;  %v11607_v22 = vld [vmem:[%s15246_s2] ss:$0 sm:$0xff] }
 0x2f3   : > { %v1622_v30 = vmax.f32 %v1558_v42, %v15469_v15  ;;  %v2654_v20 = vrot.slane %v2575_v13, 1  ;;  %v2718_v10 = vrot.slane %v2575_v13, 2  ;;  %v1494_v7 = vmax.f32 %v1337_v45, 0.0 }
 0x2f4   : > { %v2471_v60 = vsel %vm2316_vm4, %v15470_v52, %v2470_v14  ;;  %v1249_v42 = vadd.f32 %v11607_v22, %v1248_v9  ;;  %v2731_v5 = vrot.slane %v11563_v8, 2  ;;  %v3147_v12 = vsel %vm1706_vm2, %v11563_v8, %v2667_v50  ;;  %v15472_v52 = vld [vmem:[#allocation25_spill] sm:$0xff] }
 0x2f5   : > { %v2782_v47 = vrot.slane %v2575_v13, 3  ;;  %v3134_v27 = vsel %vm1706_vm2, %v2575_v13, %v2654_v20  ;;  %v1773_v35 = vrot.slane %v1622_v30, 7  ;;  %v2878_v32 = vrot.slane %v11587_v58, 4 }
 0x2f6   : > { %v3166_v14 = vsel %vm1053_vm0, %v3134_v27, %v2718_v10  ;;  %v1459_v17 = vmax.f32 %v1249_v42, 0.0  ;;  %v15471_v45 = vmax.f32 %v11250_v16, 0.0  ;;  %v1774_v62 = vrot.slane %v11598_v28, 7  ;;  %v15478_v42 = vld [vmem:[#allocation38_spill] sm:$0xff] }
 0x2f7   : > { %v2942_v15 = vrot.slane %v11587_v58, 5  ;;  %v3199_v9 = vsel %vm3181_vm5, %v3166_v14, %v2782_v47  ;;  %v15473_v50 = vmax.f32 %v15472_v52, 0.0  ;;  %v1382_v13 = vadd.f32 %v11607_v22, %v15474_v21 }
 0x2f8   : > { %v1561_v18 = vmax.f32 %v1477_v24, %v15471_v45  ;;  %v3232_v30 = vsel %vm3214_vm6, %v3199_v9, %v2878_v32  ;;  %v15475_v20 = vmax.f32 %v11520_v39, 0.0  ;;  %v11630_v16 = vmax.f32 %v2313_v3, %v2471_v60  ;;  %v15477_v24 = vld [vmem:[#allocation33_spill] sm:$0xff] }
 0x2f9   : > { %v1568_v57 = vmax.f32 %v15473_v50, %v1494_v7  ;;  %v1379_v28 = vadd.f32 %v11607_v22, %v15477_v24  ;;  %v1339_v47 = vadd.f32 %v11607_v22, %v15478_v42  ;;  %v11637_v27 = vsel %vm3247_vm7, %v3232_v30, %v2942_v15 }
 0x2fa   : > { %v11628_v10 = vmax.f32 %v15475_v20, %v1459_v17  ;;  %15476 = vst [vmem:[#allocation26_spill] sm:$0xff] %v11630_v16  ;;  %v3207_v21 = vsel %vm3181_vm5, %v3174_v34, %v2790_v63  ;;  %v2795_v32 = vrot.slane %v11563_v8, 3  ;;  %v3179_v39 = vsel %vm1053_vm0, %v3147_v12, %v2731_v5  ;;  %v1251_v14 = vpop.f32.mrf.mxu0  ;;  %v15481_v34 = vld [vmem:[#allocation9_spill] sm:$0xff] }
 0x2fb   : > { %v11644_v3 = vsel %vm1706_vm2, 0.0, %v1773_v35  ;;  %v15479_v60 = vmax.f32 %v11259_v41, 0.0  ;;  %v11649_v45 = vsel %vm1706_vm2, %v1773_v35, %v1774_v62  ;;  %v11652_v15 = vadd.f32 %v11607_v22, %v1251_v14 }
 0x2fc   : > { %v15480_v63 = vmax.f32 %v11366_v46, 0.0  ;;  %v15482_v5 = vmax.f32 %v15481_v34, 0.0  ;;  %v1512_v52 = vmax.f32 %v1382_v13, 0.0  ;;  %v2891_v50 = vrot.slane %v11630_v16, 4 }
 0x2fd   : > { %v1625_v17 = vmax.f32 %v1561_v18, %v15479_v60  ;;  %v1511_v41 = vmax.f32 %v1379_v28, 0.0  ;;  %v1495_v18 = vmax.f32 %v1339_v47, 0.0  ;;  %v15318_v35 = vmax.f32 %v11652_v15, 0.0 }
 0x2fe   : > { %v1576_v8 = vmax.f32 %v15480_v63, %v1510_v31  ;;  %v11659_v12 = vmax.f32 %v1568_v57, %v15482_v5  ;;  %v11664_v30 = vsel %vm3214_vm6, %v3207_v21, %v2886_v53  ;;  %v3212_v20 = vsel %vm3181_vm5, %v3179_v39, %v2795_v32  ;;  %v15483_v57 = vld [vmem:[#allocation32_spill] sm:$0xff]  ;;  %v11679_v39 = vpop.f32.mrf.mxu1 }
 0x2ff   : > { %v2138_v24 = vrot.slane %v11644_v3, 1  ;;  %v2139_v46 = vrot.slane %v11649_v45, 1  ;;  %v1776_v42 = vrot.slane %v15483_v57, 7  ;;  %v1777_v13 = vrot.slane %v1625_v17, 7  ;;  %15484 = vst [vmem:[#allocation28_spill] sm:$0xff] %v11679_v39 }
 0x300   : > { %v1614_v28 = vmax.f32 %v11577_v43, %v15318_v35  ;;  %v1788_v21 = vrot.slane %v11659_v12, 7  ;;  %v11677_v32 = vmax.f32 %v1576_v8, %v1512_v52  ;;  %v11682_v14 = vsel %vm3214_vm6, %v3212_v20, %v2891_v50  ;;  %v15488_v43 = vld [vmem:[#allocation27_spill] sm:$0xff]  ;;  %v11727_v35 = vpop.f32.mrf.mxu3 }
 0x301   : > { %15485 = vst [vmem:[#allocation29_spill] sm:$0xff] %v11682_v14  ;;  %v15487_v17 = vmax.f32 %v11370_v19, 0.0  ;;  %v15489_v5 = vmax.f32 %v15488_v43, 0.0  ;;  %v2427_v53 = vrot.slane %v11644_v3, 2  ;;  %v11693_v12 = vsel %vm1706_vm2, %v1774_v62, 0.0 }
 0x302   : > { %v2140_v8 = vsel %vm2027_vm3, %v2138_v24, %v2139_v46  ;;  %v15319_v52 = vrot.slane %v11649_v45, 2  ;;  %v1253_v50 = vpop.f32.mrf.mxu0  ;;  %v11698_v20 = vsel %vm1706_vm2, 0.0, %v1776_v42  ;;  %v11701_v19 = vsel %vm1706_vm2, %v1776_v42, %v1777_v13  ;;  %15493 = vst [vmem:[#allocation35_spill] sm:$0xff] %v11727_v35 }
 0x303   : > { %v11687_v34 = vmax.f32 %v15487_v17, %v1511_v41  ;;  %v1569_v57 = vmax.f32 %v15489_v5, %v1495_v18  ;;  %v1761_v41 = vrot.slane %v1614_v28, 7  ;;  %v11704_v17 = vadd.f32 %v11607_v22, %v1253_v50  ;;  %v11714_v5 = vpop.f32.mrf.mxu2  ;;  %v15491_v28 = vld [vmem:[#allocation16_spill] sm:$0xff] }
 0x304   : > { %v11708_v62 = vsel %vm1706_vm2, 0.0, %v1788_v21  ;;  %v11712_v43 = vsel %vm1706_vm2, %v1777_v13, 0.0  ;;  %15490 = vst [vmem:[#allocation37_spill] sm:$0xff] %v11714_v5  ;;  %v2141_v47 = vrot.slane %v11693_v12, 1  ;;  %v2296_v42 = vmax.f32 %v11644_v3, %v2140_v8 }
 0x305   : > { %v15492_v31 = vmax.f32 %v15491_v28, 0.0  ;;  %v15322_v63 = vmax.f32 %v11704_v17, 0.0  ;;  %v2143_v9 = vrot.slane %v11698_v20, 1  ;;  %v2144_v7 = vrot.slane %v11701_v19, 1 }
 0x306   : > { %v2429_v13 = vsel %vm2316_vm4, %v2427_v53, %v15319_v52  ;;  %v2432_v24 = vrot.slane %v11698_v20, 2  ;;  %v2163_v3 = vrot.slane %v11708_v62, 1  ;;  %v15494_v28 = vrot.slane %v11677_v32, 7  ;;  %v5120_v35 = vpop.f32.mrf.mxu1 }
 0x307   : > { %v1633_v50 = vmax.f32 %v1569_v57, %v15492_v31  ;;  %v1917_v31 = vsel %vm1706_vm2, 0.0, %v1761_v41  ;;  %v1615_v57 = vmax.f32 %v11628_v10, %v15322_v63  ;;  %v2146_v53 = vrot.slane %v11712_v43, 1 }
 0x308   : > { %v11739_v18 = vsel %vm1706_vm2, 0.0, %v15494_v28  ;;  %v2430_v52 = vrot.slane %v11693_v12, 2  ;;  %v2142_v5 = vsel %vm2027_vm3, %v2139_v46, %v2141_v47  ;;  %v11744_v39 = vmax.f32 %v2296_v42, %v2429_v13  ;;  %v9983_v46 = vld [vmem:[%s15248_s4] ss:$0 sm:$0xff] }
 0x309   : > { %15495 = vst [vmem:[#allocation30_spill] sm:$0xff] %v11739_v18  ;;  %v1789_v14 = vrot.slane %v1633_v50, 7  ;;  %v1762_v16 = vrot.slane %v1615_v57, 7  ;;  %v2145_v10 = vsel %vm2027_vm3, %v2143_v9, %v2144_v7  ;;  %v2433_v63 = vrot.slane %v11701_v19, 2 }
 0x30a   : > { %v2435_v8 = vrot.slane %v11712_v43, 2  ;;  %v2118_v60 = vrot.slane %v1917_v31, 1  ;;  %v1256_v28 = vpop.f32.mrf.mxu0  ;;  %v2407_v25 = vrot.slane %v1917_v31, 2  ;;  %v5121_v47 = vadd.f32 %v9983_v46, %v5120_v35 }
 0x30b   : > { %v1763_v0 = vsel %vm1706_vm2, %v1761_v41, %v1762_v16  ;;  %v1949_v12 = vsel %vm1706_vm2, %v1762_v16, 0.0  ;;  %v2147_v59 = vsel %vm2027_vm3, %v2144_v7, %v2146_v53  ;;  %v2659_v43 = vrot.slane %v11744_v39, 1 }
 0x30c   : > { %v2119_v42 = vrot.slane %v1763_v0, 1  ;;  %v2121_v50 = vrot.slane %v1949_v12, 1  ;;  %v2408_v13 = vrot.slane %v1763_v0, 2  ;;  %v2410_v9 = vrot.slane %v1949_v12, 2  ;;  %v5149_v57 = vpop.f32.mrf.mxu2 }
 0x30d   : > { %v11757_v26 = vsel %vm1706_vm2, %v1788_v21, %v1789_v14  ;;  %v5150_v41 = vadd.f32 %v5149_v57, %v5121_v47  ;;  %v5178_v46 = vpop.f32.mrf.mxu3  ;;  %v2297_v53 = vmax.f32 %v11649_v45, %v2142_v5  ;;  %v2298_v21 = vmax.f32 %v11698_v20, %v2145_v10 }
 0x30e   : > { %v2120_v16 = vsel %vm2027_vm3, %v2118_v60, %v2119_v42  ;;  %v2122_v29 = vsel %vm2027_vm3, %v2119_v42, %v2121_v50  ;;  %v2409_v51 = vsel %vm2316_vm4, %v2407_v25, %v2408_v13  ;;  %v2411_v35 = vsel %vm2316_vm4, %v2408_v13, %v2410_v9  ;;  %v15497_v60 = vld [vmem:[#allocation39_spill] sm:$0xff] }
 0x30f   : > { %v2288_v4 = vmax.f32 %v1917_v31, %v2120_v16  ;;  %v2289_v36 = vmax.f32 %v1763_v0, %v2122_v29  ;;  %v11764_v7 = vadd.f32 %v5178_v46, %v5150_v41  ;;  %v2164_v47 = vrot.slane %v11757_v26, 1 }
 0x310   : > { %v1384_v42 = vadd.f32 %v11607_v22, %v15497_v60  ;;  %v2299_v25 = vmax.f32 %v11701_v19, %v2147_v59  ;;  %v15498_v50 = vrot.slane %v11649_v45, 2  ;;  %v2434_v0 = vsel %vm2316_vm4, %v2432_v24, %v2433_v63 }
 0x311   : > { %15496 = vst [vmem:[#allocation25_spill] sm:$0xff] %v11764_v7  ;;  %v2577_v9 = vmax.f32 %v2288_v4, %v2409_v51  ;;  %v11775_v31 = vmax.f32 %v2289_v36, %v2411_v35  ;;  %v2436_v29 = vsel %vm2316_vm4, %v2433_v63, %v2435_v8  ;;  %v2723_v20 = vrot.slane %v11744_v39, 2 }
 0x312   : > { %v2431_v13 = vsel %vm2316_vm4, %v15498_v50, %v2430_v52  ;;  %v3139_v5 = vsel %vm1706_vm2, %v11744_v39, %v2659_v43  ;;  %v1258_v10 = vpop.f32.mrf.mxu0  ;;  %v1958_v57 = vsel %vm1706_vm2, %v1789_v14, 0.0  ;;  %v3006_v59 = vrot.slane %v11587_v58, 6 }
 0x313   : > { %15499 = vst [vmem:[#allocation36_spill] sm:$0xff] %v11775_v31  ;;  %v2655_v45 = vrot.slane %v2577_v9, 1  ;;  %v2719_v19 = vrot.slane %v2577_v9, 2  ;;  %v2165_v4 = vsel %vm2027_vm3, %v2163_v3, %v2164_v47  ;;  %v2453_v36 = vrot.slane %v11757_v26, 2 }
 0x314   : > { %v1513_v51 = vmax.f32 %v1384_v42, 0.0  ;;  %v3070_v52 = vrot.slane %v11587_v58, 7  ;;  %v2783_v63 = vrot.slane %v2577_v9, 3  ;;  %v1257_v8 = vadd.f32 %v11607_v22, %v1256_v28 }
 0x315   : > { %v3135_v24 = vsel %vm1706_vm2, %v2577_v9, %v2655_v45  ;;  %v3297_v43 = vsel %vm2316_vm4, %v11637_v27, %v3006_v59  ;;  %v2166_v14 = vrot.slane %v1958_v57, 1  ;;  %v2879_v41 = vrot.slane %v11775_v31, 4 }
 0x316   : > { %v3167_v16 = vsel %vm1053_vm0, %v3135_v24, %v2719_v19  ;;  %v11794_v3 = vsel %vm2027_vm3, %v3297_v43, %v3070_v52  ;;  %v11796_v35 = vmax.f32 %v2297_v53, %v2431_v13  ;;  %v11798_v46 = vmax.f32 %v2298_v21, %v2434_v0 }
 0x317   : > { %v2943_v58 = vrot.slane %v11775_v31, 5  ;;  %v3200_v60 = vsel %vm3181_vm5, %v3167_v16, %v2783_v63  ;;  %v2787_v28 = vrot.slane %v11744_v39, 3  ;;  %v2306_v27 = vmax.f32 %v11708_v62, %v2165_v4 }
 0x318   : > { %15500 = vst [vmem:[#allocation33_spill] sm:$0xff] %v11796_v35  ;;  %v11805_v42 = vmax.f32 %v11687_v34, %v1513_v51  ;;  %v3233_v50 = vsel %vm3214_vm6, %v3200_v60, %v2879_v41  ;;  %v3171_v9 = vsel %vm1053_vm0, %v3139_v5, %v2723_v20  ;;  %v15503_v53 = vrot.slane %v11708_v62, 2 }
 0x319   : > { %15501 = vst [vmem:[#allocation38_spill] sm:$0xff] %v11798_v46  ;;  %v11813_v13 = vsel %vm3247_vm7, %v3233_v50, %v2943_v58  ;;  %v1462_v0 = vmax.f32 %v1257_v8, 0.0  ;;  %v11816_v39 = vmax.f32 %v2299_v25, %v2436_v29  ;;  %v2167_v45 = vsel %vm2027_vm3, %v2164_v47, %v2166_v14  ;;  %v15519_v14 = vld [vmem:[#allocation44_spill] sm:$0xff] }
 0x31a   : > { %15502 = vst [vmem:[#allocation9_spill] sm:$0xff] %v11805_v42  ;;  %v2454_v21 = vsel %vm2316_vm4, %v15503_v53, %v2453_v36  ;;  %v2455_v34 = vrot.slane %v1958_v57, 2  ;;  %v1261_v19 = vpop.f32.mrf.mxu0  ;;  %v2660_v4 = vrot.slane %v11798_v46, 1  ;;  %v2883_v20 = vrot.slane %v11796_v35, 4 }
 0x31b   : > { %15504 = vst [vmem:[#allocation32_spill] sm:$0xff] %v11813_v13  ;;  %v11822_v62 = vadd.f32 %v11607_v22, %v1261_v19  ;;  %v15506_v5 = vrot.slane %v10825_v54, 3  ;;  %v3204_v52 = vsel %vm3181_vm5, %v3171_v9, %v2787_v28  ;;  %v2595_v25 = vmax.f32 %v2306_v27, %v2454_v21 }
 0x31c   : > { %15505 = vst [vmem:[#allocation27_spill] sm:$0xff] %v11816_v39  ;;  %v15331_v29 = vrot.slane %v11805_v42, 7  ;;  %v15507_v47 = vrot.slane %v10827_v48, 4  ;;  %v2307_v63 = vmax.f32 %v11757_v26, %v2167_v45  ;;  %v15508_v24 = vmax.f32 %v11652_v15, 0.0  ;;  %v15515_v45 = vld [vmem:[#allocation43_spill] sm:$0xff] }
 0x31d   : > { %v3190_v51 = vsel %vm3181_vm5, %v11463_v1, %v15506_v5  ;;  %v1259_v43 = vadd.f32 %v11607_v22, %v1258_v10  ;;  %v15333_v54 = vmax.f32 %v11822_v62, 0.0  ;;  %v2456_v41 = vsel %vm2316_vm4, %v2453_v36, %v2455_v34 }
 0x31e   : > { %v3223_v57 = vsel %vm3214_vm6, %v3190_v51, %v15507_v47  ;;  %v1552_v8 = vmax.f32 %v15508_v24, %v1462_v0  ;;  %v15509_v16 = vrot.slane %v10827_v48, 5  ;;  %v11851_v28 = vsel %vm1706_vm2, %v11798_v46, %v2660_v4  ;;  %v15516_v4 = vld [vmem:[#allocation40_spill] sm:$0xff]  ;;  %v9605_v46 = vld [vmem:[%s15247_s3 + $0xf0] sm:$0xff] }
 0x31f   : > { %15510 = vst [vmem:[#allocation16_spill] sm:$0xff] %v11851_v28  ;;  %v11854_v27 = vsel %vm3214_vm6, %v3204_v52, %v2883_v20  ;;  %v2664_v36 = vrot.slane %v2595_v25, 1  ;;  %v15512_v50 = vrot.slane %v10827_v48, 6  ;;  %v11859_v53 = vmax.f32 %v2307_v63, %v2456_v41 }
 0x320   : > { %v3256_v58 = vsel %vm3247_vm7, %v3223_v57, %v15509_v16  ;;  %v1616_v10 = vmax.f32 %v1552_v8, %v15333_v54  ;;  %15511 = vst [vmem:[#allocation39_spill] sm:$0xff] %v11854_v27  ;;  %v15513_v21 = vrot.slane %v11677_v32, 7  ;;  %v2649_v34 = vrot.slane %v15515_v45, 1 }
 0x321   : > { %v3288_v9 = vsel %vm2316_vm4, %v3256_v58, %v15512_v50  ;;  %v1463_v19 = vmax.f32 %v1259_v43, 0.0  ;;  %v3395_v52 = vrot.slane %v11794_v3, 7  ;;  %v15517_v47 = vrot.slane %v10827_v48, 7 }
 0x322   : > { %v11866_v0 = vsel %vm1706_vm2, %v15513_v21, %v15331_v29  ;;  %v1263_v51 = vpop.f32.mrf.mxu0  ;;  %v2728_v63 = vrot.slane %v2595_v25, 2  ;;  %v1764_v24 = vrot.slane %v1616_v10, 7  ;;  %v2792_v43 = vrot.slane %v2595_v25, 3 }
 0x323   : > { %15514 = vst [vmem:[#allocation63_spill] sm:$0xff] %v11866_v0  ;;  %v11875_v57 = vsel %vm2027_vm3, %v3288_v9, %v15517_v47  ;;  %v11879_v8 = vadd.f32 %v11607_v22, %v1263_v51  ;;  %v3144_v41 = vsel %vm1706_vm2, %v2595_v25, %v2664_v36  ;;  %v2713_v58 = vrot.slane %v15515_v45, 2 }
 0x324   : > { %v2888_v50 = vrot.slane %v11859_v53, 4  ;;  %v3129_v48 = vsel %vm1706_vm2, %v15515_v45, %v2649_v34  ;;  %v15518_v9 = vmax.f32 %v11704_v17, 0.0  ;;  %v2952_v51 = vrot.slane %v11859_v53, 5 }
 0x325   : > { %v15332_v10 = vmax.f32 %v11879_v8, 0.0  ;;  %v3016_v47 = vrot.slane %v11859_v53, 6  ;;  %v11896_v36 = vsel %vm1706_vm2, 0.0, %v3395_v52  ;;  %v1918_v34 = vsel %vm1706_vm2, 0.0, %v1764_v24 }
 0x326   : > { %v1553_v21 = vmax.f32 %v15518_v9, %v1463_v19  ;;  %v3176_v19 = vsel %vm1053_vm0, %v3144_v41, %v2728_v63  ;;  %v11907_v29 = vsel %vm1053_vm0, %v3129_v48, %v2713_v58  ;;  %v3529_v60 = vrot.slane %v11896_v36, 1 }
 0x327   : > { %v2123_v59 = vrot.slane %v1918_v34, 1  ;;  %v3555_v63 = vrot.slane %v11896_v36, 2  ;;  %v3209_v41 = vsel %vm3181_vm5, %v3176_v19, %v2792_v43  ;;  %v15520_v12 = vrot.slane %v11468_v2, 5 }
 0x328   : > { %v1617_v17 = vmax.f32 %v1553_v21, %v15332_v10  ;;  %v2412_v58 = vrot.slane %v1918_v34, 2  ;;  %v3581_v19 = vrot.slane %v11896_v36, 3  ;;  %v15523_v54 = vrot.slane %v11379_v37, 6 }
 0x329   : > { %v3273_v16 = vsel %vm3247_vm7, %v11664_v30, %v15520_v12  ;;  %v3242_v30 = vsel %vm3214_vm6, %v3209_v41, %v2888_v50  ;;  %v15522_v12 = vrot.slane %v11468_v2, 6  ;;  %v2717_v41 = vrot.slane %v11413_v6, 2 }
 0x32a   : > { %v1765_v26 = vrot.slane %v1617_v17, 7  ;;  %v1266_v21 = vpop.f32.mrf.mxu0  ;;  %v15521_v17 = vrot.slane %v11379_v37, 5 }
 0x32c   : > { %v1766_v48 = vsel %vm1706_vm2, %v1764_v24, %v1765_v26  ;;  %v1950_v9 = vsel %vm1706_vm2, %v1765_v26, 0.0  ;;  %v3277_v15 = vsel %vm3247_vm7, %v11466_v49, %v15521_v17  ;;  %v3305_v24 = vsel %vm2316_vm4, %v3273_v16, %v15522_v12 }
 0x32d   : > { %v2124_v1 = vrot.slane %v1766_v48, 1  ;;  %v2126_v25 = vrot.slane %v1950_v9, 1  ;;  %v2413_v32 = vrot.slane %v1766_v48, 2  ;;  %v2415_v5 = vrot.slane %v1950_v9, 2 }
 0x32e   : > { %v2653_v9 = vrot.slane %v11413_v6, 1  ;;  %v3309_v50 = vsel %vm2316_vm4, %v3277_v15, %v15523_v54  ;;  %v3607_v16 = vsel %vm1706_vm2, %v11896_v36, %v3529_v60 }
 0x32f   : > { %v2125_v26 = vsel %vm2027_vm3, %v2123_v59, %v2124_v1  ;;  %v2127_v20 = vsel %vm2027_vm3, %v2124_v1, %v2126_v25  ;;  %v2414_v49 = vsel %vm2316_vm4, %v2412_v58, %v2413_v32  ;;  %v2416_v17 = vsel %vm2316_vm4, %v2413_v32, %v2415_v5 }
 0x330   : > { %v2290_v10 = vmax.f32 %v1918_v34, %v2125_v26  ;;  %v2291_v43 = vmax.f32 %v1766_v48, %v2127_v20  ;;  %v3646_v59 = vrot.slane %v11896_v36, 4  ;;  %v3672_v1 = vsel %vm1706_vm2, %v3529_v60, %v3555_v63 }
 0x331   : > { %v3275_v5 = vsel %vm3247_vm7, %v3242_v30, %v2952_v51  ;;  %v15524_v32 = vrot.slane %v11468_v2, 7  ;;  %v3494_v34 = vsel %vm1706_vm2, %v3395_v52, 0.0  ;;  %v3750_v36 = vsel %vm1706_vm2, %v3555_v63, %v3581_v19 }
 0x332   : > { %v2579_v25 = vmax.f32 %v2290_v10, %v2414_v49  ;;  %v2580_v58 = vmax.f32 %v2291_v43, %v2416_v17  ;;  %v1268_v15 = vpop.f32.mrf.mxu0  ;;  %v15525_v60 = vrot.slane %v11379_v37, 7  ;;  %v3620_v2 = vsel %vm1053_vm0, %v3607_v16, %v3555_v63 }
 0x333   : > { %v11947_v20 = vsel %vm2027_vm3, %v3305_v24, %v15524_v32  ;;  %v3080_v43 = vrot.slane %v11859_v53, 7  ;;  %v3685_v12 = vsel %vm1053_vm0, %v3672_v1, %v3581_v19  ;;  %v3307_v3 = vsel %vm2316_vm4, %v3275_v5, %v3016_v47 }
 0x334   : > { %v11957_v10 = vsel %vm2027_vm3, %v3309_v50, %v15525_v60  ;;  %v2656_v51 = vrot.slane %v2579_v25, 1  ;;  %v2720_v48 = vrot.slane %v2579_v25, 2  ;;  %v15336_v52 = vrot.slane %v11947_v20, 7 }
 0x335   : > { %v1267_v37 = vadd.f32 %v11607_v22, %v1266_v21  ;;  %v3763_v26 = vsel %vm1053_vm0, %v3750_v36, %v3646_v59  ;;  %v15335_v49 = vrot.slane %v11957_v10, 7  ;;  %v11972_v17 = vsel %vm3181_vm5, %v3620_v2, %v3581_v19 }
 0x336   : > { %v3136_v24 = vsel %vm1706_vm2, %v2579_v25, %v2656_v51  ;;  %15526 = vst [vmem:[#allocation43_spill] sm:$0xff] %v11972_v17  ;;  %v3724_v50 = vrot.slane %v3494_v34, 5  ;;  %v11977_v1 = vsel %vm3181_vm5, %v3685_v12, %v3646_v59  ;;  %v3339_v21 = vsel %vm2027_vm3, %v3307_v3, %v3080_v43 }
 0x337   : > { %v3168_v16 = vsel %vm1053_vm0, %v3136_v24, %v2720_v48  ;;  %15527 = vst [vmem:[#allocation40_spill] sm:$0xff] %v11977_v1  ;;  %v3133_v5 = vsel %vm1706_vm2, %v11413_v6, %v2653_v9  ;;  %v2784_v32 = vrot.slane %v2579_v25, 3  ;;  %v11988_v19 = vsel %vm1706_vm2, 0.0, %v15336_v52 }
 0x338   : > { %v11983_v36 = vsel %vm3181_vm5, %v3763_v26, %v3724_v50  ;;  %v2880_v34 = vrot.slane %v2580_v58, 4  ;;  %v1466_v60 = vmax.f32 %v1267_v37, 0.0  ;;  %v4319_v51 = vrot.slane %v11972_v17, 4  ;;  %v9614_v17 = vld [vmem:[%s15247_s3 + $0x138] sm:$0xff] }
 0x339   : > { %15528 = vst [vmem:[#allocation44_spill] sm:$0xff] %v11983_v36  ;;  %v11994_v59 = vsel %vm1706_vm2, 0.0, %v15335_v49  ;;  %v2944_v48 = vrot.slane %v2580_v58, 5  ;;  %v3201_v25 = vsel %vm3181_vm5, %v3168_v16, %v2784_v32  ;;  %v4320_v2 = vrot.slane %v11977_v1, 4  ;;  %5222 = vmatpush.bf16.msra.mxu2 %v9614_v17 }
 0x33a   : > { %v1271_v9 = vpop.f32.mrf.mxu0  ;;  %v3405_v43 = vrot.slane %v3339_v21, 7  ;;  %v3008_v12 = vrot.slane %v2580_v58, 6  ;;  %v3234_v24 = vsel %vm3214_vm6, %v3201_v25, %v2880_v34  ;;  %v3532_v37 = vrot.slane %v11988_v19, 1 }
 0x33b   : > { %v1272_v3 = vadd.f32 %v11607_v22, %v1271_v9  ;;  %v3072_v26 = vrot.slane %v2580_v58, 7  ;;  %v3267_v50 = vsel %vm3247_vm7, %v3234_v24, %v2944_v48  ;;  %v3534_v47 = vrot.slane %v11994_v59, 1 }
 0x33c   : > { %v15334_v53 = vrot.slane %v11875_v57, 7  ;;  %v15529_v63 = vmax.f32 %v11822_v62, 0.0  ;;  %v1269_v32 = vadd.f32 %v11607_v22, %v1268_v15  ;;  %v3299_v30 = vsel %vm2316_vm4, %v3267_v50, %v3008_v12 }
 0x33d   : > { %v1468_v21 = vmax.f32 %v1272_v3, 0.0  ;;  %v12009_v9 = vsel %vm2027_vm3, %v3299_v30, %v3072_v26  ;;  %v4321_v34 = vrot.slane %v11983_v36, 4  ;;  %v12013_v58 = vsel %vm1706_vm2, 0.0, %v3405_v43 }
 0x33e   : > { %v1554_v16 = vmax.f32 %v15529_v63, %v1466_v60  ;;  %v12016_v48 = vrot.slane %v11988_v19, 2  ;;  %v15530_v25 = vmax.f32 %v11331_v11, 0.0  ;;  %v12021_v15 = vrot.slane %v11994_v59, 2 }
 0x33f   : > { %v3610_v60 = vsel %vm1706_vm2, %v11988_v19, %v3532_v37  ;;  %v12028_v30 = vsel %vm1053_vm0, %v3133_v5, %v2717_v41  ;;  %v3612_v11 = vsel %vm1706_vm2, %v11994_v59, %v3534_v47  ;;  %v1467_v24 = vmax.f32 %v1269_v32, 0.0 }
 0x340   : > { %v1556_v62 = vmax.f32 %v1468_v21, %v15530_v25  ;;  %v1618_v63 = vmax.f32 %v1554_v16, %v1468_v21  ;;  %15531 = vst [vmem:[#allocation64_spill] sm:$0xff] %v12028_v30  ;;  %v12036_v26 = vsel %vm3214_vm6, %v10540_v40, %v4319_v51  ;;  %v15337_v50 = vrot.slane %v12013_v58, 1  ;;  %v15533_v25 = vld [vmem:[#allocation6_spill] sm:$0xff] }
 0x341   : > { %v12042_v16 = vsel %vm1706_vm2, 0.0, %v15334_v53  ;;  %v15532_v41 = vmax.f32 %v11434_v61, 0.0  ;;  %v12048_v3 = vsel %vm3214_vm6, %v15533_v25, %v4320_v2  ;;  %v12052_v32 = vsel %vm3214_vm6, %v10551_v44, %v4321_v34 }
 0x342   : > { %v1273_v21 = vpop.f32.mrf.mxu0  ;;  %v3623_v51 = vsel %vm1053_vm0, %v3610_v60, %v12016_v48  ;;  %v1767_v12 = vrot.slane %v1618_v63, 7  ;;  %v12058_v53 = vrot.slane %v11988_v19, 3  ;;  %v3625_v61 = vsel %vm1053_vm0, %v3612_v11, %v12021_v15 }
 0x343   : > { %v1620_v5 = vmax.f32 %v1556_v62, %v15532_v41  ;;  %v1274_v54 = vadd.f32 %v11607_v22, %v1273_v21  ;;  %v12063_v62 = vrot.slane %v12013_v58, 2  ;;  %v12066_v2 = vrot.slane %v11994_v59, 3 }
 0x344   : > { %v12070_v41 = vrot.slane %v12042_v16, 2  ;;  %v15534_v63 = vmax.f32 %v11879_v8, 0.0  ;;  %v3611_v11 = vsel %vm1706_vm2, %v12013_v58, %v15337_v50  ;;  %v12080_v21 = vsel %vm3181_vm5, %v3623_v51, %v12058_v53 }
 0x345   : > { %v1469_v60 = vmax.f32 %v1274_v54, 0.0  ;;  %v1770_v49 = vrot.slane %v1620_v5, 7  ;;  %v12084_v34 = vsel %vm3181_vm5, %v3625_v61, %v12066_v2  ;;  %v12087_v52 = vsel %vm1706_vm2, %v3405_v43, 0.0 }
 0x346   : > { %v1555_v22 = vmax.f32 %v15534_v63, %v1467_v24  ;;  %v12090_v8 = vrot.slane %v12042_v16, 3  ;;  %v1919_v54 = vsel %vm1706_vm2, 0.0, %v1767_v12  ;;  %v15535_v24 = vmax.f32 %v11359_v56, 0.0 }
 0x347   : > { %v3675_v51 = vsel %vm1706_vm2, %v3532_v37, %v12016_v48  ;;  %v12098_v5 = vrot.slane %v12013_v58, 3  ;;  %v12102_v61 = vsel %vm1053_vm0, %v3611_v11, %v12063_v62  ;;  %v15536_v36 = vmax.f32 %v11447_v38, 0.0 }
 0x348   : > { %v1557_v63 = vmax.f32 %v1469_v60, %v15535_v24  ;;  %v1619_v50 = vmax.f32 %v1555_v22, %v1469_v60  ;;  %v3677_v37 = vsel %vm1706_vm2, %v3534_v47, %v12021_v15  ;;  %v1920_v60 = vsel %vm1706_vm2, 0.0, %v1770_v49  ;;  %v9606_v47 = vld [vmem:[%s15247_s3 + $0xf8] sm:$0xff] }
 0x349   : > { %v2128_v24 = vrot.slane %v1919_v54, 1  ;;  %v3688_v11 = vsel %vm1053_vm0, %v3675_v51, %v12058_v53  ;;  %v2417_v43 = vrot.slane %v1919_v54, 2  ;;  %v2133_v18 = vrot.slane %v1920_v60, 1  ;;  %5193 = vmatpush.bf16.msra.mxu1 %v9606_v47 }
 0x34a   : > { %v1621_v1 = vmax.f32 %v1557_v63, %v15536_v36  ;;  %v1768_v56 = vrot.slane %v1619_v50, 7  ;;  %v2422_v51 = vrot.slane %v1920_v60, 2 }
 0x34c   : > { %v1769_v7 = vsel %vm1706_vm2, %v1767_v12, %v1768_v56  ;;  %v1771_v39 = vrot.slane %v1621_v1, 7  ;;  %v1951_v38 = vsel %vm1706_vm2, %v1768_v56, 0.0  ;;  %v9622_v12 = vld [vmem:[%s15247_s3 + $0x178] sm:$0xff] }
 0x34d   : > { %v2129_v36 = vrot.slane %v1769_v7, 1  ;;  %v2131_v50 = vrot.slane %v1951_v38, 1  ;;  %v2418_v63 = vrot.slane %v1769_v7, 2  ;;  %v2420_v22 = vrot.slane %v1951_v38, 2  ;;  %5251 = vmatpush.bf16.msra.mxu3 %v9622_v12  ;;  %5194 = vmatpush.bf16.msra.mxu1 %v9605_v46  ;;  %v9620_v46 = vld [vmem:[%s15247_s3 + $0x168] sm:$0xff] }
 0x34e   : > { %v1772_v0 = vsel %vm1706_vm2, %v1770_v49, %v1771_v39  ;;  %v1952_v1 = vsel %vm1706_vm2, %v1771_v39, 0.0  ;;  %v9613_v39 = vld [vmem:[%s15247_s3 + $0x130] sm:$0xff]  ;;  %v12178_v12 = vsel %vm3181_vm5, %v12102_v61, %v12098_v5  ;;  %v9603_v61 = vld [vmem:[%s15247_s3 + $0xe0] sm:$0xff] }
 0x34f   : > { %v2130_v56 = vsel %vm2027_vm3, %v2128_v24, %v2129_v36  ;;  %v2132_v38 = vsel %vm2027_vm3, %v2129_v36, %v2131_v50  ;;  %v2134_v42 = vrot.slane %v1772_v0, 1  ;;  %v2136_v28 = vrot.slane %v1952_v1, 1  ;;  %v9621_v36 = vld [vmem:[%s15247_s3 + $0x170] sm:$0xff]  ;;  %5223 = vmatpush.bf16.msra.mxu2 %v9613_v39 }
 0x350   : > { %v2292_v49 = vmax.f32 %v1919_v54, %v2130_v56  ;;  %v2293_v13 = vmax.f32 %v1769_v7, %v2132_v38  ;;  %v2419_v31 = vsel %vm2316_vm4, %v2417_v43, %v2418_v63  ;;  %v2421_v24 = vsel %vm2316_vm4, %v2418_v63, %v2420_v22 }
 0x351   : > { %v2135_v17 = vsel %vm2027_vm3, %v2133_v18, %v2134_v42  ;;  %v2137_v50 = vsel %vm2027_vm3, %v2134_v42, %v2136_v28  ;;  %v2423_v47 = vrot.slane %v1772_v0, 2  ;;  %v2425_v27 = vrot.slane %v1952_v1, 2  ;;  %v9604_v18 = vld [vmem:[%s15247_s3 + $0xe8] sm:$0xff]  ;;  %5252 = vmatpush.bf16.msra.mxu3 %v9621_v36 }
 0x352   : > { %v2294_v35 = vmax.f32 %v1920_v60, %v2135_v17  ;;  %v2295_v23 = vmax.f32 %v1772_v0, %v2137_v50  ;;  %v12143_v30 = vmax.f32 %v2292_v49, %v2419_v31  ;;  %v12145_v7 = vmax.f32 %v2293_v13, %v2421_v24  ;;  %v9612_v31 = vld [vmem:[%s15247_s3 + $0x128] sm:$0xff]  ;;  %5195 = vmatpush.bf16.msra.mxu1 %v9604_v18 }
 0x353   : > { %v2424_v54 = vsel %vm2316_vm4, %v2422_v51, %v2423_v47  ;;  %v15537_v43 = vrot.slane %v12009_v9, 7  ;;  %v3651_v42 = vrot.slane %v11994_v59, 4  ;;  %v15538_v13 = vrot.slane %v12013_v58, 1  ;;  %5224 = vmatpush.bf16.msra.mxu2 %v9612_v31 }
 0x354   : > { %v2426_v0 = vsel %vm2316_vm4, %v2423_v47, %v2425_v27  ;;  %v2583_v60 = vmax.f32 %v2294_v35, %v2424_v54  ;;  %v3690_v63 = vsel %vm1053_vm0, %v3677_v37, %v12066_v2  ;;  %v15539_v51 = vrot.slane %v11988_v19, 4 }
 0x355   : > { %v12151_v22 = vsel %vm1706_vm2, 0.0, %v15537_v43  ;;  %v3676_v28 = vsel %vm1706_vm2, %v15538_v13, %v12063_v62  ;;  %v2584_v1 = vmax.f32 %v2295_v23, %v2426_v0  ;;  %v15540_v35 = vrot.slane %v12080_v21, 4  ;;  %5253 = vmatpush.bf16.msra.mxu3 %v9620_v46  ;;  %v9619_v43 = vld [vmem:[%s15247_s3 + $0x160] sm:$0xff] }
 0x356   : > { %v12173_v59 = vsel %vm3181_vm5, %v3688_v11, %v15539_v51  ;;  %v3650_v56 = vrot.slane %v12013_v58, 4  ;;  %v2658_v37 = vrot.slane %v2583_v60, 1  ;;  %v2722_v38 = vrot.slane %v2583_v60, 2  ;;  %5196 = vmatpush.bf16.msra.mxu1 %v9603_v61 }
 0x357   : > { %v12184_v27 = vsel %vm3214_vm6, %v10540_v40, %v15540_v35  ;;  %v3530_v39 = vrot.slane %v12151_v22, 1  ;;  %v15541_v11 = vrot.slane %v12084_v34, 4  ;;  %v9611_v40 = vld [vmem:[%s15247_s3 + $0x120] sm:$0xff]  ;;  %v12202_v49 = vsel %vm1053_vm0, %v3676_v28, %v12098_v5 }
 0x358   : > { %v12205_v24 = vsel %vm3181_vm5, %v3690_v63, %v3651_v42  ;;  %v4374_v36 = vrot.slane %v12173_v59, 4  ;;  %v15543_v17 = vrot.slane %v11947_v20, 7  ;;  %v2786_v47 = vrot.slane %v2583_v60, 3  ;;  %5225 = vmatpush.bf16.msra.mxu2 %v9611_v40  ;;  %v9610_v40 = vld [vmem:[%s15247_s3 + $0x118] sm:$0xff] }
 0x359   : > { %v12192_v23 = vsel %vm3214_vm6, %v12178_v12, %v15541_v11  ;;  %15542 = vst [vmem:[#allocation6_spill] sm:$0xff] %v12205_v24  ;;  %v3138_v54 = vsel %vm1706_vm2, %v2583_v60, %v2658_v37  ;;  %v15544_v18 = vrot.slane %v11957_v10, 7  ;;  %v3753_v13 = vsel %vm1706_vm2, %v12016_v48, %v12058_v53  ;;  %5254 = vmatpush.bf16.msra.mxu3 %v9619_v43 }
 0x35a   : > { %v3502_v50 = vsel %vm1706_vm2, %v15543_v17, 0.0  ;;  %v2882_v28 = vrot.slane %v2584_v1, 4  ;;  %v3170_v20 = vsel %vm1053_vm0, %v3138_v54, %v2722_v38  ;;  %v3556_v0 = vrot.slane %v12151_v22, 2 }
 0x35b   : > { %v3506_v31 = vsel %vm1706_vm2, %v15544_v18, 0.0  ;;  %v3755_v60 = vsel %vm1706_vm2, %v12021_v15, %v12066_v2  ;;  %v2946_v46 = vrot.slane %v2584_v1, 5  ;;  %v3203_v63 = vsel %vm3181_vm5, %v3170_v20, %v2786_v47 }
 0x35c   : > { %v3608_v10 = vsel %vm1706_vm2, %v12151_v22, %v3530_v39  ;;  %v3727_v51 = vrot.slane %v3502_v50, 5  ;;  %v3010_v35 = vrot.slane %v2584_v1, 6  ;;  %v3236_v37 = vsel %vm3214_vm6, %v3203_v63, %v2882_v28  ;;  %5226 = vmatpush.bf16.msra.mxu2 %v9610_v40  ;;  %v9609_v63 = vld [vmem:[%s15247_s3 + $0x110] sm:$0xff] }
 0x35d   : > { %v3729_v53 = vrot.slane %v3506_v31, 5  ;;  %v15545_v48 = vrot.slane %v11988_v19, 4  ;;  %v3074_v11 = vrot.slane %v2584_v1, 7  ;;  %v3269_v15 = vsel %vm3247_vm7, %v3236_v37, %v2946_v46  ;;  %v9602_v1 = vld [vmem:[%s15247_s3 + $0xd8] sm:$0xff]  ;;  %v9601_v46 = vld [vmem:[%s15247_s3 + $0xd0] sm:$0xff] }
 0x35e   : > { %v3582_v2 = vrot.slane %v12151_v22, 3  ;;  %v3768_v17 = vsel %vm1053_vm0, %v3755_v60, %v3651_v42  ;;  %v3301_v50 = vsel %vm2316_vm4, %v3269_v15, %v3010_v35  ;;  %v3621_v47 = vsel %vm1053_vm0, %v3608_v10, %v3556_v0  ;;  %v9618_v42 = vld [vmem:[%s15247_s3 + $0x158] sm:$0xff]  ;;  %5197 = vmatpush.bf16.msra.mxu1 %v9602_v1 }
 0x35f   : > { %v3766_v38 = vsel %vm1053_vm0, %v3753_v13, %v15545_v48  ;;  %v4401_v61 = vrot.slane %v12205_v24, 4  ;;  %v12242_v19 = vsel %vm1706_vm2, %v12063_v62, %v12098_v5  ;;  %v3333_v54 = vsel %vm2027_vm3, %v3301_v50, %v3074_v11  ;;  %v15548_v5 = vld [vmem:[#allocation42_spill] sm:$0xff]  ;;  %5255 = vmatpush.bf16.msra.mxu3 %v9618_v42 }
 0x360   : > { %v12255_v43 = vsel %vm3181_vm5, %v3766_v38, %v3727_v51  ;;  %v15547_v62 = vrot.slane %v15516_v4, 5  ;;  %v15549_v31 = vrot.slane %v12042_v16, 1  ;;  %v3399_v28 = vrot.slane %v3333_v54, 7  ;;  %5227 = vmatpush.bf16.msra.mxu2 %v9609_v63 }
 0x361   : > { %15546 = vst [vmem:[#allocation65_spill] sm:$0xff] %v12255_v43  ;;  %v3647_v20 = vrot.slane %v12151_v22, 4  ;;  %v12267_v60 = vsel %vm3181_vm5, %v3768_v17, %v3729_v53  ;;  %v15551_v10 = vrot.slane %v15516_v4, 6  ;;  %v12279_v35 = vsel %vm3181_vm5, %v3621_v47, %v3582_v2  ;;  %v9617_v53 = vld [vmem:[%s15247_s3 + $0x150] sm:$0xff] }
 0x362   : > { %v3258_v18 = vsel %vm3247_vm7, %v15548_v5, %v15547_v62  ;;  %v3898_v13 = vsel %vm1706_vm2, %v12042_v16, %v15549_v31  ;;  %15550 = vst [vmem:[#allocation42_spill] sm:$0xff] %v12267_v60  ;;  %v3673_v22 = vsel %vm1706_vm2, %v3530_v39, %v3556_v0  ;;  %v3751_v37 = vsel %vm1706_vm2, %v3556_v0, %v3582_v2  ;;  %v9608_v62 = vld [vmem:[%s15247_s3 + $0x108] sm:$0xff] }
 0x363   : > { %v3290_v51 = vsel %vm2316_vm4, %v3258_v18, %v15551_v10  ;;  %v15552_v48 = vrot.slane %v15516_v4, 7  ;;  %v3465_v11 = vsel %vm1706_vm2, 0.0, %v3399_v28  ;;  %v15553_v15 = vrot.slane %v12009_v9, 7  ;;  %5198 = vmatpush.bf16.msra.mxu1 %v9601_v46  ;;  %v9600_v9 = vld [vmem:[%s15247_s3 + $0xc8] sm:$0xff]  ;;  %5256 = vmatpush.bf16.msra.mxu3 %v9617_v53 }
 0x364   : > { %v3498_v39 = vsel %vm1706_vm2, %v3399_v28, 0.0  ;;  %v3531_v50 = vrot.slane %v3465_v11, 1  ;;  %v3557_v47 = vrot.slane %v3465_v11, 2  ;;  %v3583_v1 = vrot.slane %v3465_v11, 3  ;;  %v9616_v28 = vld [vmem:[%s15247_s3 + $0x148] sm:$0xff]  ;;  %5228 = vmatpush.bf16.msra.mxu2 %v9608_v62 }
 0x365   : > { %v12289_v38 = vsel %vm2027_vm3, %v3290_v51, %v15552_v48  ;;  %v3496_v17 = vsel %vm1706_vm2, %v15553_v15, 0.0  ;;  %v3648_v40 = vrot.slane %v3465_v11, 4  ;;  %v3686_v42 = vsel %vm1053_vm0, %v3673_v22, %v3582_v2 }
 0x366   : > { %v3388_v0 = vrot.slane %v12289_v38, 7  ;;  %v3726_v4 = vrot.slane %v3498_v39, 5  ;;  %v3764_v54 = vsel %vm1053_vm0, %v3751_v37, %v3647_v20  ;;  %v3609_v2 = vsel %vm1706_vm2, %v3465_v11, %v3531_v50 }
 0x367   : > { %v3674_v18 = vsel %vm1706_vm2, %v3531_v50, %v3557_v47  ;;  %v3752_v31 = vsel %vm1706_vm2, %v3557_v47, %v3583_v1  ;;  %v3622_v63 = vsel %vm1053_vm0, %v3609_v2, %v3557_v47  ;;  %v3725_v48 = vrot.slane %v3496_v17, 5  ;;  %5199 = vmatpush.bf16.msra.mxu1 %v9600_v9  ;;  %v9599_v47 = vld [vmem:[%s15247_s3 + $0xc0] sm:$0xff]  ;;  %5257 = vmatpush.bf16.msra.mxu3 %v9616_v28 }
 0x368   : > { %v12308_v5 = vsel %vm1706_vm2, 0.0, %v3388_v0  ;;  %v3687_v10 = vsel %vm1053_vm0, %v3674_v18, %v3583_v1  ;;  %v3765_v51 = vsel %vm1053_vm0, %v3752_v31, %v3648_v40  ;;  %v12324_v37 = vsel %vm3181_vm5, %v3622_v63, %v3583_v1  ;;  %v9607_v1 = vld [vmem:[%s15247_s3 + $0x100] sm:$0xff] }
 0x369   : > { %v3803_v46 = vrot.slane %v12308_v5, 1  ;;  %v12321_v22 = vrot.slane %v12308_v5, 2  ;;  %v12327_v53 = vsel %vm3181_vm5, %v3687_v10, %v3648_v40  ;;  %v12330_v11 = vsel %vm3181_vm5, %v3765_v51, %v3726_v4  ;;  %5229 = vmatpush.bf16.msra.mxu2 %v9607_v1 }
 0x36a   : > { %v4346_v15 = vrot.slane %v12324_v37, 4  ;;  %v4347_v39 = vrot.slane %v12327_v53, 4  ;;  %v4348_v50 = vrot.slane %v12330_v11, 4  ;;  %v12346_v40 = vsel %vm3181_vm5, %v3686_v42, %v3647_v20 }
 0x36b   : > { %v3899_v17 = vsel %vm1706_vm2, %v12308_v5, %v3803_v46  ;;  %v12349_v4 = vsel %vm3181_vm5, %v3764_v54, %v3725_v48  ;;  %v12352_v9 = vrot.slane %v12308_v5, 3  ;;  %v3914_v62 = vsel %vm1053_vm0, %v3898_v13, %v12070_v41  ;;  %v9615_v13 = vld [vmem:[%s15247_s3 + $0x140] sm:$0xff]  ;;  %5200 = vmatpush.bf16.msra.mxu1 %v9599_v47 }
 0x36c   : > { %v4463_v2 = vsel %vm3214_vm6, %v12279_v35, %v4346_v15  ;;  %v4464_v18 = vsel %vm3214_vm6, %v12346_v40, %v4347_v39  ;;  %v4465_v20 = vsel %vm3214_vm6, %v12349_v4, %v4348_v50  ;;  %v3915_v42 = vsel %vm1053_vm0, %v3899_v17, %v12321_v22  ;;  %5258 = vmatpush.bf16.msra.mxu3 %v9615_v13 }
 0x36d   : > { %v4508_v54 = vpack.c.bf16 %v4463_v2, %v12036_v26  ;;  %v4509_v31 = vpack.c.bf16 %v4464_v18, %v12048_v3  ;;  %v4510_v28 = vpack.c.bf16 %v4465_v20, %v12052_v32  ;;  %v3931_v63 = vsel %vm3181_vm5, %v3915_v42, %v12352_v9 }
 0x36e   : > { %v12376_v10 = vsel %vm3181_vm5, %v12202_v49, %v3650_v56  ;;  %v12382_v3 = vsel %vm3214_vm6, %v15533_v25, %v4374_v36  ;;  %v3728_v26 = vrot.slane %v12087_v52, 5  ;;  %v4268_v32 = vrot.slane %v3931_v63, 4 }
 0x36f   : > { %5124 = vmatmul.bf16.gmra.mxu1 %v4508_v54  ;;  %5153 = vmatmul.bf16.gmra.mxu2 %v4509_v31  ;;  %v12389_v51 = vsel %vm3214_vm6, %v12376_v10, %v4401_v61  ;;  %v3767_v49 = vsel %vm1053_vm0, %v12242_v19, %v3650_v56  ;;  %v4375_v25 = vrot.slane %v12255_v43, 4  ;;  %v3930_v52 = vsel %vm3181_vm5, %v3914_v62, %v12090_v8 }
 0x370   : > { %5182 = vmatmul.bf16.gmra.mxu3 %v4510_v28  ;;  %v4402_v36 = vrot.slane %v12267_v60, 4  ;;  %v15554_v48 = vrot.slane %v15515_v45, 3  ;;  %v15555_v61 = vrot.slane %v11208_v33, 5  ;;  %v12408_v56 = vsel %vm3214_vm6, %v3930_v52, %v4268_v32 }
 0x371   : > { %v4517_v19 = vpack.c.bf16 %v12192_v23, %v12184_v27  ;;  %v15556_v39 = vrot.slane %v15519_v14, 4  ;;  %v15557_v45 = vrot.slane %v11208_v33, 6  ;;  %v15558_v47 = vrot.slane %v12042_v16, 1 }
 0x372   : > { %v3194_v15 = vsel %vm3181_vm5, %v11907_v29, %v15554_v48  ;;  %v3262_v58 = vsel %vm3247_vm7, %v11216_v55, %v15555_v61  ;;  %v4518_v1 = vpack.c.bf16 %v12389_v51, %v12382_v3  ;;  %v12425_v17 = vsel %vm3181_vm5, %v3767_v49, %v3728_v26 }
 0x373   : > { %v3227_v50 = vsel %vm3214_vm6, %v3194_v15, %v15556_v39  ;;  %v3294_v29 = vsel %vm2316_vm4, %v3262_v58, %v15557_v45  ;;  %v3978_v55 = vsel %vm1706_vm2, %v15558_v47, %v12070_v41  ;;  %v15559_v27 = vrot.slane %v15519_v14, 5 }
 0x374   : > { %v15560_v62 = vrot.slane %v11208_v33, 7  ;;  %v4474_v18 = vsel %vm3214_vm6, %v10551_v44, %v4375_v25  ;;  %v15561_v20 = vrot.slane %v15519_v14, 6  ;;  %v3946_v31 = vrot.slane %v12042_v16, 4 }
 0x375   : > { %v3260_v23 = vsel %vm3247_vm7, %v3227_v50, %v15559_v27  ;;  %v4483_v28 = vsel %vm3214_vm6, %v12425_v17, %v4402_v36  ;;  %v15562_v13 = vrot.slane %v15519_v14, 7  ;;  %v3994_v63 = vsel %vm1053_vm0, %v3978_v55, %v12090_v8 }
 0x376   : > { %v12433_v2 = vsel %vm2027_vm3, %v3294_v29, %v15560_v62  ;;  %v3292_v42 = vsel %vm2316_vm4, %v3260_v23, %v15561_v20  ;;  %v15563_v44 = vrot.slane %v11875_v57, 7  ;;  %v2657_v26 = vrot.slane %v12143_v30, 1 }
 0x377   : > { %v3392_v54 = vrot.slane %v12433_v2, 7  ;;  %v3324_v33 = vsel %vm2027_vm3, %v3292_v42, %v15562_v13  ;;  %v4074_v16 = vsel %vm1706_vm2, %v12070_v41, %v12090_v8  ;;  %v2721_v14 = vrot.slane %v12143_v30, 2 }
 0x378   : > { %v3485_v3 = vsel %vm1706_vm2, %v15563_v44, 0.0  ;;  %v3390_v32 = vrot.slane %v3324_v33, 7  ;;  %v2785_v49 = vrot.slane %v12143_v30, 3  ;;  %v2881_v52 = vrot.slane %v12145_v7, 4 }
 0x379   : > { %v12454_v51 = vsel %vm1706_vm2, 0.0, %v3392_v54  ;;  %v2945_v36 = vrot.slane %v12145_v7, 5  ;;  %v3979_v15 = vsel %vm1706_vm2, %v3803_v46, %v12321_v22  ;;  %v3009_v39 = vrot.slane %v12145_v7, 6 }
 0x37a   : > { %v3805_v25 = vrot.slane %v12454_v51, 1  ;;  %v3837_v57 = vrot.slane %v12454_v51, 2  ;;  %v3456_v48 = vsel %vm1706_vm2, 0.0, %v3390_v32  ;;  %v3869_v61 = vrot.slane %v12454_v51, 3 }
 0x37b   : > { %v3804_v41 = vrot.slane %v3456_v48, 1  ;;  %v3836_v8 = vrot.slane %v3456_v48, 2  ;;  %v3137_v50 = vsel %vm1706_vm2, %v12143_v30, %v2657_v26  ;;  %v4090_v29 = vsel %vm1053_vm0, %v4074_v16, %v3946_v31 }
 0x37c   : > { %v3901_v58 = vsel %vm1706_vm2, %v12454_v51, %v3805_v25  ;;  %v3868_v47 = vrot.slane %v3456_v48, 3  ;;  %v3995_v27 = vsel %vm1053_vm0, %v3979_v15, %v12352_v9  ;;  %v3947_v2 = vrot.slane %v12308_v5, 4 }
 0x37d   : > { %v3917_v45 = vsel %vm1053_vm0, %v3901_v58, %v3837_v57  ;;  %v3900_v55 = vsel %vm1706_vm2, %v3456_v48, %v3804_v41  ;;  %v3487_v20 = vsel %vm1706_vm2, %v3388_v0, 0.0  ;;  %v3073_v42 = vrot.slane %v12145_v7, 7 }
 0x37e   : > { %v3933_v46 = vsel %vm3181_vm5, %v3917_v45, %v3869_v61  ;;  %v3916_v23 = vsel %vm1053_vm0, %v3900_v55, %v3836_v8  ;;  %v3169_v13 = vsel %vm1053_vm0, %v3137_v50, %v2721_v14  ;;  %v4042_v44 = vrot.slane %v3485_v3, 5 }
 0x37f   : > { %v4295_v62 = vrot.slane %v3933_v46, 4  ;;  %v3932_v33 = vsel %vm3181_vm5, %v3916_v23, %v3868_v47  ;;  %v4519_v26 = vpack.c.bf16 %v4483_v28, %v4474_v18  ;;  %v4010_v15 = vsel %vm3181_vm5, %v3994_v63, %v3946_v31  ;;  %5129 = vmatmul.bf16.gmra.mxu1 %v4517_v19  ;;  %5158 = vmatmul.bf16.gmra.mxu2 %v4518_v1 }
 0x380   : > { %v4011_v58 = vsel %vm3181_vm5, %v3995_v27, %v3947_v2  ;;  %v4043_v0 = vrot.slane %v3487_v20, 5  ;;  %v4106_v45 = vsel %vm3181_vm5, %v4090_v29, %v4042_v44  ;;  %v3948_v14 = vrot.slane %v3456_v48, 4  ;;  %v15565_v20 = vld [vmem:[#allocation64_spill] sm:$0xff] }
 0x381   : > { %v12491_v16 = vsel %vm3214_vm6, %v3932_v33, %v4295_v62  ;;  %v4269_v5 = vrot.slane %v4011_v58, 4  ;;  %v3949_v3 = vrot.slane %v12454_v51, 4  ;;  %v3980_v18 = vsel %vm1706_vm2, %v3804_v41, %v3836_v8  ;;  %5187 = vmatmul.bf16.gmra.mxu3 %v4519_v26 }
 0x382   : > { %v3981_v28 = vsel %vm1706_vm2, %v3805_v25, %v3837_v57  ;;  %v3996_v31 = vsel %vm1053_vm0, %v3980_v18, %v3868_v47  ;;  %v3489_v55 = vsel %vm1706_vm2, %v3390_v32, 0.0  ;;  %v3491_v51 = vsel %vm1706_vm2, %v3392_v54, 0.0 }
 0x383   : > { %v3997_v63 = vsel %vm1053_vm0, %v3981_v28, %v3869_v61  ;;  %v12504_v50 = vsel %vm3214_vm6, %v4010_v15, %v4269_v5  ;;  %v4012_v19 = vsel %vm3181_vm5, %v3996_v31, %v3948_v14  ;;  %v4044_v48 = vrot.slane %v3489_v55, 5  ;;  %v15568_v5 = vld [vmem:[#allocation33_spill] sm:$0xff]  ;;  %v15572_v28 = vld [vmem:[#allocation36_spill] sm:$0xff] }
 0x384   : > { %v4013_v1 = vsel %vm3181_vm5, %v3997_v63, %v3949_v3  ;;  %v4045_v29 = vrot.slane %v3491_v51, 5  ;;  %v4075_v25 = vsel %vm1706_vm2, %v12321_v22, %v12352_v9  ;;  %v4076_v46 = vsel %vm1706_vm2, %v3836_v8, %v3868_v47  ;;  %v15574_v63 = vld [vmem:[#allocation32_spill] sm:$0xff] }
 0x385   : > { %v4296_v41 = vrot.slane %v4013_v1, 4  ;;  %v4077_v27 = vsel %vm1706_vm2, %v3837_v57, %v3869_v61  ;;  %v4091_v23 = vsel %vm1053_vm0, %v4075_v25, %v3947_v2  ;;  %v4092_v32 = vsel %vm1053_vm0, %v4076_v46, %v3948_v14  ;;  %v15566_v2 = vld [vmem:[#allocation62_spill] sm:$0xff]  ;;  %v15570_v14 = vld [vmem:[#allocation39_spill] sm:$0xff] }
 0x386   : > { %v15564_v62 = vrot.slane %v11413_v6, 3  ;;  %v4093_v44 = vsel %vm1053_vm0, %v4077_v27, %v3949_v3  ;;  %v4107_v22 = vsel %vm3181_vm5, %v4091_v23, %v4043_v0  ;;  %v4108_v9 = vsel %vm3181_vm5, %v4092_v32, %v4044_v48 }
 0x387   : > { %v12522_v33 = vsel %vm3214_vm6, %v4012_v19, %v4296_v41  ;;  %v4109_v8 = vsel %vm3181_vm5, %v4093_v44, %v4045_v29  ;;  %v4270_v61 = vrot.slane %v4107_v22, 4  ;;  %v3202_v6 = vsel %vm3181_vm5, %v3169_v13, %v2785_v49  ;;  %v15582_v44 = vld [vmem:[#allocation16_spill] sm:$0xff] }
 0x388   : > { %v3198_v54 = vsel %vm3181_vm5, %v15565_v20, %v15564_v62  ;;  %v4297_v47 = vrot.slane %v4109_v8, 4  ;;  %v15567_v26 = vrot.slane %v15566_v2, 4  ;;  %v3235_v58 = vsel %vm3214_vm6, %v3202_v6, %v2881_v52  ;;  %v15580_v20 = vld [vmem:[#allocation38_spill] sm:$0xff] }
 0x389   : > { %v15569_v0 = vrot.slane %v15568_v5, 5  ;;  %v12544_v18 = vsel %vm3214_vm6, %v4106_v45, %v4270_v61  ;;  %v15571_v30 = vrot.slane %v15566_v2, 5  ;;  %v3268_v13 = vsel %vm3247_vm7, %v3235_v58, %v2945_v36  ;;  %v15585_v61 = vld [vmem:[#allocation63_spill] sm:$0xff] }
 0x38a   : > { %v3231_v15 = vsel %vm3214_vm6, %v3198_v54, %v15567_v26  ;;  %v15573_v31 = vrot.slane %v15572_v28, 6  ;;  %v12557_v55 = vsel %vm3214_vm6, %v4108_v9, %v4297_v47  ;;  %v15575_v19 = vrot.slane %v15566_v2, 6  ;;  %v15583_v9 = vld [vmem:[#allocation9_spill] sm:$0xff]  ;;  %v15587_v47 = vld [vmem:[#allocation30_spill] sm:$0xff] }
 0x38b   : > { %v3270_v3 = vsel %vm3247_vm7, %v15570_v14, %v15569_v0  ;;  %v3264_v49 = vsel %vm3247_vm7, %v3231_v15, %v15571_v30  ;;  %v3300_v1 = vsel %vm2316_vm4, %v3268_v13, %v3009_v39  ;;  %v15576_v51 = vrot.slane %v15568_v5, 6 }
 0x38c   : > { %v3298_v52 = vsel %vm2316_vm4, %v15574_v63, %v15573_v31  ;;  %v3296_v45 = vsel %vm2316_vm4, %v3264_v49, %v15575_v19  ;;  %v15577_v41 = vrot.slane %v15566_v2, 7  ;;  %v15578_v25 = vrot.slane %v15572_v28, 7  ;;  %v15589_v19 = vld [vmem:[#allocation17_spill] sm:$0xff] }
 0x38d   : > { %v3302_v36 = vsel %vm2316_vm4, %v3270_v3, %v15576_v51  ;;  %v12581_v7 = vsel %vm2027_vm3, %v3300_v1, %v3073_v42  ;;  %v15579_v39 = vrot.slane %v15568_v5, 7  ;;  %v15581_v54 = vrot.slane %v15580_v20, 2  ;;  %v15592_v51 = vld [vmem:[#allocation23_spill] sm:$0xff] }
 0x38e   : > { %v12573_v29 = vsel %vm2027_vm3, %v3296_v45, %v15577_v41  ;;  %v12578_v46 = vsel %vm2027_vm3, %v3298_v52, %v15578_v25  ;;  %v15356_v62 = vrot.slane %v12581_v7, 7  ;;  %v15584_v42 = vrot.slane %v15583_v9, 7  ;;  %v15590_v45 = vld [vmem:[#allocation45_spill] sm:$0xff]  ;;  %v15595_v9 = vld [vmem:[#allocation24_spill] sm:$0xff] }
 0x38f   : > { %v12586_v27 = vsel %vm2027_vm3, %v3302_v36, %v15579_v39  ;;  %v3394_v23 = vrot.slane %v12573_v29, 7  ;;  %v15357_v32 = vrot.slane %v12578_v46, 7  ;;  %v12595_v22 = vsel %vm1053_vm0, %v15582_v44, %v15581_v54  ;;  %v15593_v36 = vld [vmem:[#allocation46_spill] sm:$0xff] }
 0x390   : > { %v12600_v8 = vsel %vm1706_vm2, %v15584_v42, 0.0  ;;  %v15586_v6 = vrot.slane %v15585_v61, 1  ;;  %v15588_v2 = vrot.slane %v15587_v47, 1  ;;  %v15355_v15 = vrot.slane %v12586_v27, 7  ;;  %v15596_v42 = vld [vmem:[#allocation47_spill] sm:$0xff] }
 0x391   : > { %v12614_v5 = vsel %vm1706_vm2, 0.0, %v3394_v23  ;;  %v12619_v0 = vsel %vm1706_vm2, 0.0, %v15357_v32  ;;  %v12624_v14 = vsel %vm1706_vm2, 0.0, %v15356_v62  ;;  %v15591_v1 = vpack.c.bf16 %v15589_v19, %v15590_v45 }
 0x392   : > { %v12607_v26 = vsel %vm2027_vm3, %v15588_v2, %v15586_v6  ;;  %v12629_v3 = vsel %vm1706_vm2, 0.0, %v15355_v15  ;;  %v3806_v30 = vrot.slane %v12614_v5, 1  ;;  %v3807_v49 = vrot.slane %v12619_v0, 1 }
 0x393   : > { %v3808_v13 = vrot.slane %v12624_v14, 1  ;;  %v3809_v28 = vrot.slane %v12629_v3, 1  ;;  %v12636_v31 = vrot.slane %v12614_v5, 2  ;;  %v12639_v63 = vrot.slane %v12619_v0, 2  ;;  %5201 = vmatmul.bf16.vlgmr.msra.gmra.mxu1 %v15591_v1 }
 0x394   : > { %v12642_v52 = vrot.slane %v12624_v14, 2  ;;  %v15594_v41 = vpack.c.bf16 %v15592_v51, %v15593_v36  ;;  %v12651_v25 = vrot.slane %v12629_v3, 2  ;;  %v12654_v39 = vrot.slane %v12614_v5, 3  ;;  %v9630_v51 = vld [vmem:[%s15247_s3 + $0x1b8] sm:$0xff] }
 0x395   : > { %v12657_v54 = vrot.slane %v12619_v0, 3  ;;  %v12660_v44 = vrot.slane %v12624_v14, 3  ;;  %v15597_v6 = vpack.c.bf16 %v15595_v9, %v15596_v42  ;;  %v12666_v2 = vrot.slane %v12629_v3, 3  ;;  %v9638_v36 = vld [vmem:[%s15247_s3 + $0x1f8] sm:$0xff]  ;;  %5280 = vmatpush.bf16.msrb.mxu1 %v9630_v51 }
 0x396   : > { %5230 = vmatmul.bf16.vlgmr.msra.gmra.mxu2 %v15594_v41  ;;  %v3902_v19 = vsel %vm1706_vm2, %v12614_v5, %v3806_v30  ;;  %v3903_v45 = vsel %vm1706_vm2, %v12619_v0, %v3807_v49  ;;  %v3904_v1 = vsel %vm1706_vm2, %v12624_v14, %v3808_v13  ;;  %v9646_v41 = vld [vmem:[%s15247_s3 + $0x238] sm:$0xff]  ;;  %v3905_v9 = vsel %vm1706_vm2, %v12629_v3, %v3809_v28 }
 0x397   : > { %5259 = vmatmul.bf16.vlgmr.msra.gmra.mxu3 %v15597_v6  ;;  %v3918_v42 = vsel %vm1053_vm0, %v3902_v19, %v12636_v31  ;;  %v3919_v6 = vsel %vm1053_vm0, %v3903_v45, %v12639_v63  ;;  %v3920_v58 = vsel %vm1053_vm0, %v3904_v1, %v12642_v52  ;;  %v3921_v48 = vsel %vm1053_vm0, %v3905_v9, %v12651_v25  ;;  %v9629_v19 = vld [vmem:[%s15247_s3 + $0x1b0] sm:$0xff] }
 0x398   : > { %v3934_v57 = vsel %vm3181_vm5, %v3918_v42, %v12654_v39  ;;  %v3935_v38 = vsel %vm3181_vm5, %v3919_v6, %v12657_v54  ;;  %v3936_v15 = vsel %vm3181_vm5, %v3920_v58, %v12660_v44  ;;  %v3937_v45 = vsel %vm3181_vm5, %v3921_v48, %v12666_v2  ;;  %5309 = vmatpush.bf16.msrb.mxu2 %v9638_v36  ;;  %v9637_v42 = vld [vmem:[%s15247_s3 + $0x1f0] sm:$0xff] }
 0x399   : > { %v4322_v1 = vrot.slane %v3935_v38, 4  ;;  %v3950_v9 = vrot.slane %v12614_v5, 4  ;;  %v3951_v62 = vrot.slane %v12619_v0, 4  ;;  %5338 = vmatpush.bf16.msrb.mxu3 %v9646_v41  ;;  %v4349_v58 = vrot.slane %v3937_v45, 4  ;;  %v9645_v38 = vld [vmem:[%s15247_s3 + $0x230] sm:$0xff]  ;;  %5281 = vmatpush.bf16.msrb.mxu1 %v9629_v19  ;;  %v9636_v41 = vld [vmem:[%s15247_s3 + $0x1e8] sm:$0xff] }
 0x39a   : > { %v3952_v51 = vrot.slane %v12624_v14, 4  ;;  %v3953_v6 = vrot.slane %v12629_v3, 4  ;;  %v3982_v32 = vsel %vm1706_vm2, %v3806_v30, %v12636_v31  ;;  %v3983_v5 = vsel %vm1706_vm2, %v3807_v49, %v12639_v63  ;;  %v9628_v49 = vld [vmem:[%s15247_s3 + $0x1a8] sm:$0xff] }
 0x39b   : > { %v12717_v48 = vsel %vm3214_vm6, %v3934_v57, %v4322_v1  ;;  %v3984_v0 = vsel %vm1706_vm2, %v3808_v13, %v12642_v52  ;;  %v3985_v14 = vsel %vm1706_vm2, %v3809_v28, %v12651_v25  ;;  %v12726_v3 = vsel %vm3214_vm6, %v3936_v15, %v4349_v58 }
 0x39c   : > { %v3998_v30 = vsel %vm1053_vm0, %v3982_v32, %v12654_v39  ;;  %v3999_v36 = vsel %vm1053_vm0, %v3983_v5, %v12657_v54  ;;  %v4000_v57 = vsel %vm1053_vm0, %v3984_v0, %v12660_v44  ;;  %v4001_v15 = vsel %vm1053_vm0, %v3985_v14, %v12666_v2  ;;  %5310 = vmatpush.bf16.msrb.mxu2 %v9637_v42  ;;  %v9644_v5 = vld [vmem:[%s15247_s3 + $0x228] sm:$0xff] }
 0x39d   : > { %v4014_v28 = vsel %vm3181_vm5, %v3998_v30, %v3950_v9  ;;  %v4015_v32 = vsel %vm3181_vm5, %v3999_v36, %v3951_v62  ;;  %v4016_v19 = vsel %vm3181_vm5, %v4000_v57, %v3952_v51  ;;  %v4017_v45 = vsel %vm3181_vm5, %v4001_v15, %v3953_v6  ;;  %5339 = vmatpush.bf16.msrb.mxu3 %v9645_v38 }
 0x39e   : > { %v4323_v1 = vrot.slane %v4015_v32, 4  ;;  %v3493_v58 = vsel %vm1706_vm2, %v3394_v23, 0.0  ;;  %v4350_v0 = vrot.slane %v4017_v45, 4  ;;  %v15598_v42 = vrot.slane %v12578_v46, 7  ;;  %5282 = vmatpush.bf16.msrb.mxu1 %v9628_v49  ;;  %v9627_v46 = vld [vmem:[%s15247_s3 + $0x1a0] sm:$0xff] }
 0x39f   : > { %v15599_v30 = vrot.slane %v12581_v7, 7  ;;  %v15600_v57 = vrot.slane %v12586_v27, 7  ;;  %v4046_v38 = vrot.slane %v3493_v58, 5  ;;  %v4078_v27 = vsel %vm1706_vm2, %v12636_v31, %v12654_v39  ;;  %v9635_v31 = vld [vmem:[%s15247_s3 + $0x1e0] sm:$0xff] }
 0x3a0   : > { %v3495_v14 = vsel %vm1706_vm2, %v15598_v42, 0.0  ;;  %v12764_v23 = vsel %vm3214_vm6, %v4014_v28, %v4323_v1  ;;  %v12770_v45 = vsel %vm3214_vm6, %v4016_v19, %v4350_v0  ;;  %v4079_v28 = vsel %vm1706_vm2, %v12639_v63, %v12657_v54  ;;  %5311 = vmatpush.bf16.msrb.mxu2 %v9636_v41 }
 0x3a1   : > { %v3497_v36 = vsel %vm1706_vm2, %v15599_v30, 0.0  ;;  %v3499_v29 = vsel %vm1706_vm2, %v15600_v57, 0.0  ;;  %v4047_v15 = vrot.slane %v3495_v14, 5  ;;  %v4080_v1 = vsel %vm1706_vm2, %v12642_v52, %v12660_v44  ;;  %5340 = vmatpush.bf16.msrb.mxu3 %v9644_v5  ;;  %v9643_v52 = vld [vmem:[%s15247_s3 + $0x220] sm:$0xff]  ;;  %v15606_v30 = vld [vmem:[#allocation18_spill] sm:$0xff]  ;;  %v15608_v57 = vld [vmem:[#allocation59_spill] sm:$0xff] }
 0x3a2   : > { %v4048_v32 = vrot.slane %v3497_v36, 5  ;;  %v4049_v7 = vrot.slane %v3499_v29, 5  ;;  %v4081_v19 = vsel %vm1706_vm2, %v12651_v25, %v12666_v2  ;;  %v4094_v58 = vsel %vm1053_vm0, %v4078_v27, %v3950_v9  ;;  %5283 = vmatpush.bf16.msrb.mxu1 %v9627_v46  ;;  %v15601_v9 = vld [vmem:[#allocation20_spill] sm:$0xff]  ;;  %v15611_v46 = vld [vmem:[#allocation57_spill] sm:$0xff] }
 0x3a3   : > { %v4095_v63 = vsel %vm1053_vm0, %v4079_v28, %v3951_v62  ;;  %v4096_v39 = vsel %vm1053_vm0, %v4080_v1, %v3952_v51  ;;  %v4097_v54 = vsel %vm1053_vm0, %v4081_v19, %v3953_v6  ;;  %v4110_v41 = vsel %vm3181_vm5, %v4094_v58, %v4046_v38  ;;  %v15603_v62 = vld [vmem:[#allocation60_spill] sm:$0xff]  ;;  %v15609_v38 = vld [vmem:[#allocation21_spill] sm:$0xff]  ;;  %v15616_v1 = vld [vmem:[#allocation31_spill] sm:$0xff] }
 0x3a4   : > { %v4111_v25 = vsel %vm3181_vm5, %v4095_v63, %v4047_v15  ;;  %v4112_v44 = vsel %vm3181_vm5, %v4096_v39, %v4048_v32  ;;  %v4113_v2 = vsel %vm3181_vm5, %v4097_v54, %v4049_v7  ;;  %v15602_v5 = vrot.slane %v15601_v9, 3  ;;  %5312 = vmatpush.bf16.msrb.mxu2 %v9635_v31  ;;  %v15618_v58 = vld [vmem:[#allocation34_spill] sm:$0xff]  ;;  %v9626_v39 = vld [vmem:[%s15247_s3 + $0x198] sm:$0xff] }
 0x3a5   : > { %v15604_v6 = vpack.c.bf16 %v12491_v16, %v12408_v56  ;;  %v15605_v0 = vpack.c.bf16 %v12522_v33, %v12504_v50  ;;  %v4324_v42 = vrot.slane %v4111_v25, 4  ;;  %v4351_v14 = vrot.slane %v4113_v2, 4  ;;  %v15613_v16 = vld [vmem:[#allocation19_spill] sm:$0xff]  ;;  %5341 = vmatpush.bf16.msrb.mxu3 %v9643_v52  ;;  %v15620_v2 = vld [vmem:[#allocation26_spill] sm:$0xff] }
 0x3a6   : > { %v3206_v51 = vsel %vm3181_vm5, %v15603_v62, %v15602_v5  ;;  %v15607_v36 = vrot.slane %v15606_v30, 3  ;;  %v15610_v15 = vrot.slane %v15609_v38, 4  ;;  %v15612_v56 = vpack.c.bf16 %v12557_v55, %v12544_v18  ;;  %v9634_v18 = vld [vmem:[%s15247_s3 + $0x1d8] sm:$0xff]  ;;  %v15622_v5 = vld [vmem:[#allocation29_spill] sm:$0xff]  ;;  %5284 = vmatpush.bf16.msrb.mxu1 %v9626_v39  ;;  %v9625_v30 = vld [vmem:[%s15247_s3 + $0x190] sm:$0xff] }
 0x3a7   : > { %5206 = vmatmul.bf16.gmra.mxu1 %v15604_v6  ;;  %5235 = vmatmul.bf16.gmra.mxu2 %v15605_v0  ;;  %v15614_v50 = vrot.slane %v15613_v16, 4  ;;  %v15615_v27 = vrot.slane %v15609_v38, 5  ;;  %v15617_v19 = vrot.slane %v15616_v1, 5  ;;  %v12838_v55 = vsel %vm3214_vm6, %v4110_v41, %v4324_v42  ;;  %v15631_v39 = vld [vmem:[#allocation61_spill] sm:$0xff] }
 0x3a8   : > { %v3210_v29 = vsel %vm3181_vm5, %v15608_v57, %v15607_v36  ;;  %v3239_v32 = vsel %vm3214_vm6, %v3206_v51, %v15610_v15  ;;  %5264 = vmatmul.bf16.gmra.mxu3 %v15612_v56  ;;  %v12841_v31 = vsel %vm3214_vm6, %v4112_v44, %v4351_v14  ;;  %v15619_v54 = vrot.slane %v15613_v16, 5  ;;  %v9642_v51 = vld [vmem:[%s15247_s3 + $0x218] sm:$0xff]  ;;  %5313 = vmatpush.bf16.msrb.mxu2 %v9634_v18 }
 0x3a9   : > { %v3243_v33 = vsel %vm3214_vm6, %v3210_v29, %v15614_v50  ;;  %v3272_v28 = vsel %vm3247_vm7, %v3239_v32, %v15615_v27  ;;  %v3274_v63 = vsel %vm3247_vm7, %v15618_v58, %v15617_v19  ;;  %v15621_v9 = vrot.slane %v15620_v2, 5  ;;  %5342 = vmatpush.bf16.msrb.mxu3 %v9642_v51  ;;  %v9624_v51 = vld [vmem:[%s15247_s3 + $0x188] sm:$0xff] }
 0x3aa   : > { %v3276_v25 = vsel %vm3247_vm7, %v3243_v33, %v15619_v54  ;;  %v15623_v44 = vrot.slane %v15609_v38, 6  ;;  %v15624_v6 = vrot.slane %v15616_v1, 6  ;;  %v15625_v42 = vrot.slane %v15613_v16, 6  ;;  %5285 = vmatpush.bf16.msrb.mxu1 %v9625_v30 }
 0x3ab   : > { %v3278_v62 = vsel %vm3247_vm7, %v15622_v5, %v15621_v9  ;;  %v15626_v36 = vrot.slane %v15620_v2, 6  ;;  %v15627_v29 = vrot.slane %v15609_v38, 7  ;;  %v15628_v32 = vrot.slane %v15616_v1, 7  ;;  %v9633_v1 = vld [vmem:[%s15247_s3 + $0x1d0] sm:$0xff] }
 0x3ac   : > { %v3304_v52 = vsel %vm2316_vm4, %v3272_v28, %v15623_v44  ;;  %v3306_v0 = vsel %vm2316_vm4, %v3274_v63, %v15624_v6  ;;  %v3308_v14 = vsel %vm2316_vm4, %v3276_v25, %v15625_v42  ;;  %v15629_v50 = vrot.slane %v15613_v16, 7  ;;  %v9641_v63 = vld [vmem:[%s15247_s3 + $0x210] sm:$0xff]  ;;  %5314 = vmatpush.bf16.msrb.mxu2 %v9633_v1 }
 0x3ad   : > { %v3310_v57 = vsel %vm2316_vm4, %v3278_v62, %v15626_v36  ;;  %v3336_v15 = vsel %vm2027_vm3, %v3304_v52, %v15627_v29  ;;  %v12876_v56 = vsel %vm2027_vm3, %v3306_v0, %v15628_v32  ;;  %v15630_v27 = vrot.slane %v15620_v2, 7  ;;  %5343 = vmatpush.bf16.msrb.mxu3 %v9641_v63  ;;  %v9623_v63 = vld [vmem:[%s15247_s3 + $0x180] sm:$0xff] }
 0x3ae   : > { %v12881_v33 = vsel %vm2027_vm3, %v3308_v14, %v15629_v50  ;;  %v3402_v19 = vrot.slane %v3336_v15, 7  ;;  %v15360_v38 = vrot.slane %v12876_v56, 7  ;;  %v12899_v25 = vrot.slane %v15631_v39, 2  ;;  %5286 = vmatpush.bf16.msrb.mxu1 %v9624_v51 }
 0x3af   : > { %v12886_v28 = vsel %vm2027_vm3, %v3310_v57, %v15630_v27  ;;  %v15359_v58 = vrot.slane %v12881_v33, 7  ;;  %v12902_v2 = vrot.slane %v15631_v39, 3  ;;  %v9632_v57 = vld [vmem:[%s15247_s3 + $0x1c8] sm:$0xff] }
 0x3b0   : > { %v15358_v16 = vrot.slane %v12886_v28, 7  ;;  %v12905_v18 = vsel %vm1706_vm2, 0.0, %v3402_v19  ;;  %v12910_v9 = vsel %vm1706_vm2, 0.0, %v15360_v38  ;;  %v12918_v62 = vsel %vm1706_vm2, %v3402_v19, 0.0  ;;  %v9640_v27 = vld [vmem:[%s15247_s3 + $0x208] sm:$0xff]  ;;  %5315 = vmatpush.bf16.msrb.mxu2 %v9632_v57 }
 0x3b1   : > { %v12915_v5 = vsel %vm1706_vm2, 0.0, %v15359_v58  ;;  %v3810_v52 = vrot.slane %v12905_v18, 1  ;;  %v3811_v6 = vrot.slane %v12910_v9, 1  ;;  %v12933_v14 = vrot.slane %v12905_v18, 2  ;;  %5344 = vmatpush.bf16.msrb.mxu3 %v9640_v27 }
 0x3b2   : > { %v12926_v44 = vsel %vm1706_vm2, 0.0, %v15358_v16  ;;  %v3812_v0 = vrot.slane %v12915_v5, 1  ;;  %v12936_v30 = vrot.slane %v12910_v9, 2  ;;  %v12939_v36 = vrot.slane %v12915_v5, 2  ;;  %5287 = vmatpush.bf16.msrb.mxu1 %v9623_v63 }
 0x3b3   : > { %v3813_v42 = vrot.slane %v12926_v44, 1  ;;  %v12945_v29 = vrot.slane %v12926_v44, 2  ;;  %v3874_v15 = vrot.slane %v12905_v18, 3  ;;  %v12949_v32 = vrot.slane %v12910_v9, 3 }
 0x3b4   : > { %v12952_v50 = vrot.slane %v12915_v5, 3  ;;  %v3877_v19 = vrot.slane %v12926_v44, 3  ;;  %v3906_v1 = vsel %vm1706_vm2, %v12905_v18, %v3810_v52  ;;  %v3907_v54 = vsel %vm1706_vm2, %v12910_v9, %v3811_v6 }
 0x3b5   : > { %v3908_v7 = vsel %vm1706_vm2, %v12915_v5, %v3812_v0  ;;  %v3909_v16 = vsel %vm1706_vm2, %v12926_v44, %v3813_v42  ;;  %v3922_v58 = vsel %vm1053_vm0, %v3906_v1, %v12933_v14  ;;  %v3923_v41 = vsel %vm1053_vm0, %v3907_v54, %v12936_v30 }
 0x3b6   : > { %v3924_v38 = vsel %vm1053_vm0, %v3908_v7, %v12939_v36  ;;  %v3925_v49 = vsel %vm1053_vm0, %v3909_v16, %v12945_v29  ;;  %v3938_v51 = vsel %vm3181_vm5, %v3922_v58, %v3874_v15  ;;  %v3939_v13 = vsel %vm3181_vm5, %v3923_v41, %v12949_v32  ;;  %v9631_v7 = vld [vmem:[%s15247_s3 + $0x1c0] sm:$0xff] }
 0x3b7   : > { %v3940_v60 = vsel %vm3181_vm5, %v3924_v38, %v12952_v50  ;;  %v3941_v1 = vsel %vm3181_vm5, %v3925_v49, %v3877_v19  ;;  %v4376_v43 = vrot.slane %v3939_v13, 4  ;;  %v3954_v54 = vrot.slane %v12905_v18, 4  ;;  %v9639_v13 = vld [vmem:[%s15247_s3 + $0x200] sm:$0xff]  ;;  %5316 = vmatpush.bf16.msrb.mxu2 %v9631_v7 }
 0x3b8   : > { %v3955_v24 = vrot.slane %v12910_v9, 4  ;;  %v4403_v58 = vrot.slane %v3941_v1, 4  ;;  %v3956_v16 = vrot.slane %v12915_v5, 4  ;;  %v3957_v41 = vrot.slane %v12926_v44, 4  ;;  %5345 = vmatpush.bf16.msrb.mxu3 %v9639_v13 }
 0x3b9   : > { %v3986_v38 = vsel %vm1706_vm2, %v3810_v52, %v12933_v14  ;;  %v15632_v49 = vpack.c.bf16 %v12726_v3, %v12717_v48  ;;  %v15633_v18 = vpack.c.bf16 %v12770_v45, %v12764_v23  ;;  %v13002_v9 = vsel %vm3214_vm6, %v3938_v51, %v4376_v43 }
 0x3ba   : > { %v3987_v5 = vsel %vm1706_vm2, %v3811_v6, %v12936_v30  ;;  %v3988_v44 = vsel %vm1706_vm2, %v3812_v0, %v12939_v36  ;;  %v15634_v52 = vrot.slane %v12876_v56, 7  ;;  %v15635_v48 = vpack.c.bf16 %v12841_v31, %v12838_v55 }
 0x3bb   : > { %5211 = vmatmul.bf16.gmra.mxu1 %v15632_v49  ;;  %5240 = vmatmul.bf16.gmra.mxu2 %v15633_v18  ;;  %v13015_v3 = vsel %vm3214_vm6, %v3940_v60, %v4403_v58  ;;  %v3989_v43 = vsel %vm1706_vm2, %v3813_v42, %v12945_v29  ;;  %v4002_v23 = vsel %vm1053_vm0, %v3986_v38, %v3874_v15  ;;  %v15636_v27 = vrot.slane %v12881_v33, 7 }
 0x3bc   : > { %v3503_v57 = vsel %vm1706_vm2, %v15634_v52, 0.0  ;;  %5269 = vmatmul.bf16.gmra.mxu3 %v15635_v48  ;;  %v4003_v45 = vsel %vm1053_vm0, %v3987_v5, %v12949_v32  ;;  %v4520_v56 = vpack.c.bf16 %v13015_v3, %v13002_v9  ;;  %v4004_v6 = vsel %vm1053_vm0, %v3988_v44, %v12952_v50 }
 0x3bd   : > { %v4005_v55 = vsel %vm1053_vm0, %v3989_v43, %v3877_v19  ;;  %v4018_v31 = vsel %vm3181_vm5, %v4002_v23, %v3954_v54  ;;  %v4019_v60 = vsel %vm3181_vm5, %v4003_v45, %v3955_v24  ;;  %v4020_v0 = vsel %vm3181_vm5, %v4004_v6, %v3956_v16 }
 0x3be   : > { %v4021_v42 = vsel %vm3181_vm5, %v4005_v55, %v3957_v41  ;;  %v3505_v63 = vsel %vm1706_vm2, %v15636_v27, 0.0  ;;  %v4377_v51 = vrot.slane %v4019_v60, 4  ;;  %v15637_v58 = vrot.slane %v12886_v28, 7 }
 0x3bf   : > { %v4404_v1 = vrot.slane %v4021_v42, 4  ;;  %v4050_v49 = vrot.slane %v12918_v62, 5  ;;  %v4051_v7 = vrot.slane %v3503_v57, 5  ;;  %v4052_v18 = vrot.slane %v3505_v63, 5 }
 0x3c0   : > { %v3507_v38 = vsel %vm1706_vm2, %v15637_v58, 0.0  ;;  %v4082_v5 = vsel %vm1706_vm2, %v12933_v14, %v3874_v15  ;;  %v4476_v44 = vsel %vm3214_vm6, %v4018_v31, %v4377_v51  ;;  %v4083_v13 = vsel %vm1706_vm2, %v12936_v30, %v12949_v32 }
 0x3c1   : > { %v4053_v9 = vrot.slane %v3507_v38, 5  ;;  %v4485_v33 = vsel %vm3214_vm6, %v4020_v0, %v4404_v1  ;;  %v4084_v28 = vsel %vm1706_vm2, %v12939_v36, %v12952_v50  ;;  %v4085_v62 = vsel %vm1706_vm2, %v12945_v29, %v3877_v19  ;;  %v15639_v29 = vld [vmem:[#allocation58_spill] sm:$0xff] }
 0x3c2   : > { %v4521_v52 = vpack.c.bf16 %v4485_v33, %v4476_v44  ;;  %v4098_v57 = vsel %vm1053_vm0, %v4082_v5, %v3954_v54  ;;  %v4099_v14 = vsel %vm1053_vm0, %v4083_v13, %v3955_v24  ;;  %v4100_v15 = vsel %vm1053_vm0, %v4084_v28, %v3956_v16  ;;  %v15644_v0 = vld [vmem:[#allocation22_spill] sm:$0xff] }
 0x3c3   : > { %v4101_v48 = vsel %vm1053_vm0, %v4085_v62, %v3957_v41  ;;  %v4114_v3 = vsel %vm3181_vm5, %v4098_v57, %v4050_v49  ;;  %v4115_v30 = vsel %vm3181_vm5, %v4099_v14, %v4051_v7  ;;  %v4116_v32 = vsel %vm3181_vm5, %v4100_v15, %v4052_v18  ;;  %v15646_v18 = vld [vmem:[#allocation53_spill] sm:$0xff]  ;;  %v15647_v5 = vld [vmem:[#allocation54_spill] sm:$0xff] }
 0x3c4   : > { %v4117_v36 = vsel %vm3181_vm5, %v4101_v48, %v4053_v9  ;;  %v4378_v50 = vrot.slane %v4115_v30, 4  ;;  %v15638_v43 = vrot.slane %v15611_v46, 7  ;;  %v2314_v24 = vmax.f32 %v15587_v47, %v12607_v26 }
 0x3c5   : > { %v15640_v54 = vrot.slane %v15585_v61, 2  ;;  %v15641_v16 = vrot.slane %v15587_v47, 2  ;;  %v4405_v23 = vrot.slane %v4117_v36, 4  ;;  %v15642_v55 = vrot.slane %v15631_v39, 1 }
 0x3c6   : > { %v3327_v19 = vsel %vm2027_vm3, %v15639_v29, %v15638_v43  ;;  %v4477_v6 = vsel %vm3214_vm6, %v4114_v3, %v4378_v50  ;;  %v4158_v31 = vrot.slane %v15631_v39, 4  ;;  %v15645_v42 = vrot.slane %v15644_v0, 7  ;;  %v15648_v43 = vld [vmem:[#allocation56_spill] sm:$0xff]  ;;  %v15653_v0 = vld [vmem:[#allocation27_spill] sm:$0xff] }
 0x3c7   : > { %v2474_v41 = vsel %vm2316_vm4, %v15641_v16, %v15640_v54  ;;  %v3393_v45 = vrot.slane %v3327_v19, 7  ;;  %v4146_v46 = vsel %vm1706_vm2, %v15631_v39, %v15642_v55  ;;  %v15643_v26 = vmov %v15642_v55 }
 0x3c8   : > { %v4166_v60 = vsel %vm1706_vm2, %v15643_v26, %v12899_v25  ;;  %v4486_v47 = vsel %vm3214_vm6, %v4116_v32, %v4405_v23  ;;  %v3484_v27 = vsel %vm1706_vm2, %v15645_v42, 0.0  ;;  %v4190_v63 = vsel %vm1706_vm2, %v12899_v25, %v12902_v2  ;;  %v15651_v26 = vld [vmem:[#allocation49_spill] sm:$0xff] }
 0x3c9   : > { %v3459_v51 = vsel %vm1706_vm2, 0.0, %v3393_v45  ;;  %v4522_v1 = vpack.c.bf16 %v4486_v47, %v4477_v6  ;;  %v2186_v39 = vrot.slane %v12600_v8, 1  ;;  %v13088_v7 = vmax.f32 %v2314_v24, %v2474_v41  ;;  %v15649_v41 = vld [vmem:[#allocation48_spill] sm:$0xff] }
 0x3ca   : > { %v4123_v58 = vrot.slane %v3459_v51, 1  ;;  %v4131_v38 = vrot.slane %v3459_v51, 2  ;;  %v4139_v49 = vrot.slane %v3459_v51, 3  ;;  %v4271_v9 = vrot.slane %v15646_v18, 4 }
 0x3cb   : > { %v4272_v44 = vrot.slane %v15647_v5, 4  ;;  %v4150_v33 = vsel %vm1053_vm0, %v4146_v46, %v12899_v25  ;;  %v4170_v13 = vsel %vm1053_vm0, %v4166_v60, %v12902_v2  ;;  %v4182_v28 = vrot.slane %v3484_v27, 5  ;;  %5216 = vmatmul.bf16.gmra.mxu1 %v4520_v56  ;;  %5245 = vmatmul.bf16.gmra.mxu2 %v4521_v52 }
 0x3cc   : > { %v4147_v62 = vsel %vm1706_vm2, %v3459_v51, %v4123_v58  ;;  %v4194_v57 = vsel %vm1053_vm0, %v4190_v63, %v4158_v31  ;;  %v4159_v15 = vrot.slane %v3459_v51, 4  ;;  %v4167_v48 = vsel %vm1706_vm2, %v4123_v58, %v4131_v38  ;;  %5274 = vmatmul.bf16.gmra.mxu3 %v4522_v1 }
 0x3cd   : > { %v4151_v14 = vsel %vm1053_vm0, %v4147_v62, %v4131_v38  ;;  %v4171_v25 = vsel %vm1053_vm0, %v4167_v48, %v4139_v49  ;;  %v3492_v30 = vsel %vm1706_vm2, %v3393_v45, 0.0  ;;  %v4191_v32 = vsel %vm1706_vm2, %v4131_v38, %v4139_v49  ;;  %v15650_v45 = vld [vmem:[#allocation51_spill] sm:$0xff] }
 0x3ce   : > { %v4155_v3 = vsel %vm3181_vm5, %v4151_v14, %v4139_v49  ;;  %v4175_v56 = vsel %vm3181_vm5, %v4171_v25, %v4159_v15  ;;  %v4183_v52 = vrot.slane %v3492_v30, 5  ;;  %v4195_v50 = vsel %vm1053_vm0, %v4191_v32, %v4159_v15  ;;  %v15655_v49 = vld [vmem:[#allocation50_spill] sm:$0xff] }
 0x3cf   : > { %v4298_v36 = vrot.slane %v4155_v3, 4  ;;  %v4273_v29 = vrot.slane %v15648_v43, 4  ;;  %v4154_v19 = vsel %vm3181_vm5, %v4150_v33, %v12902_v2  ;;  %v4174_v24 = vsel %vm3181_vm5, %v4170_v13, %v4158_v31  ;;  %v15652_v31 = vld [vmem:[#allocation52_spill] sm:$0xff]  ;;  %v15660_v15 = vld [vmem:[#allocation14_spill] sm:$0xff] }
 0x3d0   : > { %v4299_v54 = vrot.slane %v4175_v56, 4  ;;  %v4198_v16 = vsel %vm3181_vm5, %v4194_v57, %v4182_v28  ;;  %v13113_v23 = vsel %vm3214_vm6, %v15649_v41, %v4271_v9  ;;  %v4199_v55 = vsel %vm3181_vm5, %v4195_v50, %v4183_v52  ;;  %v15656_v9 = vld [vmem:[#allocation55_spill] sm:$0xff]  ;;  %v15658_v28 = vld [vmem:[#allocation12_spill] sm:$0xff]  ;;  %v15659_v57 = vld [vmem:[#allocation13_spill] sm:$0xff] }
 0x3d1   : > { %v13117_v6 = vsel %vm3214_vm6, %v15650_v45, %v4298_v36  ;;  %v13124_v2 = vsel %vm3214_vm6, %v15651_v26, %v4272_v44  ;;  %v4300_v47 = vrot.slane %v4199_v55, 4  ;;  %v2884_v42 = vrot.slane %v15653_v0, 4  ;;  %v15662_v56 = vld [vmem:[#allocation10_spill] sm:$0xff]  ;;  %v15663_v50 = vld [vmem:[#allocation11_spill] sm:$0xff]  ;;  %v15667_v55 = vld [vmem:[#allocation8_spill] sm:$0xff] }
 0x3d2   : > { %v4505_v46 = vpack.c.bf16 %v13117_v6, %v13113_v23  ;;  %v13128_v60 = vsel %vm3214_vm6, %v15652_v31, %v4299_v54  ;;  %v15654_v27 = vrot.slane %v15585_v61, 1  ;;  %v2475_v51 = vrot.slane %v12600_v8, 2  ;;  %v15665_v54 = vld [vmem:[#allocation5_spill] sm:$0xff]  ;;  %v15666_v41 = vld [vmem:[#allocation7_spill] sm:$0xff]  ;;  %v13228_v6 = vpop.f32.mrf.mxu3 }
 0x3d3   : > { %v4506_v1 = vpack.c.bf16 %v13128_v60, %v13124_v2  ;;  %v4244_v58 = vrot.slane %v4154_v19, 4  ;;  %v4245_v38 = vrot.slane %v4174_v24, 4  ;;  %v13139_v18 = vsel %vm3214_vm6, %v15655_v49, %v4273_v29  ;;  %v15664_v24 = vld [vmem:[#allocation15_spill] sm:$0xff] }
 0x3d4   : > { %v2187_v63 = vsel %vm2027_vm3, %v15654_v27, %v2186_v39  ;;  %v13143_v5 = vsel %vm3214_vm6, %v15656_v9, %v4300_v47  ;;  %v15657_v44 = vrot.slane %v15580_v20, 3  ;;  %v2668_v8 = vrot.slane %v13088_v7, 1 }
 0x3d5   : > { %v4246_v33 = vrot.slane %v4198_v16, 4  ;;  %v4507_v13 = vpack.c.bf16 %v13143_v5, %v13139_v18  ;;  %v4217_v62 = vrot.slane %v15658_v28, 4  ;;  %v4218_v14 = vrot.slane %v15659_v57, 4 }
 0x3d6   : > { %v3205_v39 = vsel %vm3181_vm5, %v12595_v22, %v15657_v44  ;;  %v4219_v48 = vrot.slane %v15660_v15, 4  ;;  %v2315_v3 = vmax.f32 %v15585_v61, %v2187_v63  ;;  %v2948_v25 = vrot.slane %v15653_v0, 5 }
 0x3d7   : > { %v3012_v20 = vrot.slane %v15653_v0, 6  ;;  %v15661_v22 = vrot.slane %v15585_v61, 2  ;;  %v3238_v32 = vsel %vm3214_vm6, %v3205_v39, %v2884_v42  ;;  %v2732_v36 = vrot.slane %v13088_v7, 2 }
 0x3d8   : > { %v4433_v52 = vsel %vm3214_vm6, %v15662_v56, %v4244_v58  ;;  %v4434_v43 = vsel %vm3214_vm6, %v15663_v50, %v4245_v38  ;;  %v3076_v29 = vrot.slane %v15653_v0, 7  ;;  %v3148_v19 = vsel %vm1706_vm2, %v13088_v7, %v2668_v8 }
 0x3d9   : > { %v2476_v30 = vsel %vm2316_vm4, %v15661_v22, %v2475_v51  ;;  %v4435_v61 = vsel %vm3214_vm6, %v15664_v24, %v4246_v33  ;;  %v4424_v16 = vsel %vm3214_vm6, %v15665_v54, %v4217_v62  ;;  %v4425_v45 = vsel %vm3214_vm6, %v15666_v41, %v4218_v14  ;;  %v15669_v54 = vld [vmem:[#allocation40_spill] sm:$0xff] }
 0x3da   : > { %v4426_v26 = vsel %vm3214_vm6, %v15667_v55, %v4219_v48  ;;  %v2604_v31 = vmax.f32 %v2315_v3, %v2476_v30  ;;  %v2796_v47 = vrot.slane %v13088_v7, 3  ;;  %v4496_v42 = vpack.c.bf16 %v4433_v52, %v4424_v16  ;;  %v15670_v55 = vld [vmem:[#allocation44_spill] sm:$0xff] }
 0x3db   : > { %v4497_v0 = vpack.c.bf16 %v4434_v43, %v4425_v45  ;;  %v3271_v27 = vsel %vm3247_vm7, %v3238_v32, %v2948_v25  ;;  %v3180_v63 = vsel %vm1053_vm0, %v3148_v19, %v2732_v36  ;;  %v4498_v51 = vpack.c.bf16 %v4435_v61, %v4426_v26  ;;  %v15668_v61 = vld [vmem:[#allocation43_spill] sm:$0xff] }
 0x3dc   : > { %v3303_v58 = vsel %vm2316_vm4, %v3271_v27, %v3012_v20  ;;  %5288 = vmatmul.bf16.vlgmr.msrb.gmra.mxu1 %v4496_v42  ;;  %v2892_v49 = vrot.slane %v2604_v31, 4  ;;  %v3213_v44 = vsel %vm3181_vm5, %v3180_v63, %v2796_v47  ;;  %v2956_v57 = vrot.slane %v2604_v31, 5 }
 0x3dd   : > { %5317 = vmatmul.bf16.vlgmr.msrb.gmra.mxu2 %v4497_v0  ;;  %v3335_v38 = vsel %vm2027_vm3, %v3303_v58, %v3076_v29  ;;  %5346 = vmatmul.bf16.vlgmr.msrb.gmra.mxu3 %v4498_v51  ;;  %v4325_v15 = vrot.slane %v12279_v35, 4  ;;  %v4326_v3 = vrot.slane %v12346_v40, 4  ;;  %v4327_v30 = vrot.slane %v12349_v4, 4 }
 0x3de   : > { %v3401_v9 = vrot.slane %v3335_v38, 7  ;;  %v3246_v14 = vsel %vm3214_vm6, %v3213_v44, %v2892_v49  ;;  %v3020_v19 = vrot.slane %v2604_v31, 6  ;;  %v3084_v42 = vrot.slane %v2604_v31, 7  ;;  %v13226_v49 = vpop.f32.mrf.mxu2 }
 0x3df   : > { %v3279_v24 = vsel %vm3247_vm7, %v3246_v14, %v2956_v57  ;;  %v4460_v4 = vsel %vm3214_vm6, %v15668_v61, %v4325_v15  ;;  %v4461_v16 = vsel %vm3214_vm6, %v15669_v54, %v4326_v3  ;;  %v4462_v26 = vsel %vm3214_vm6, %v15670_v55, %v4327_v30 }
 0x3e0   : > { %v3467_v7 = vsel %vm1706_vm2, 0.0, %v3401_v9  ;;  %v3500_v39 = vsel %vm1706_vm2, %v3401_v9, 0.0  ;;  %v3311_v51 = vsel %vm2316_vm4, %v3279_v24, %v3020_v19 }
 0x3e1   : > { %v4124_v8 = vrot.slane %v3467_v7, 1  ;;  %v4132_v33 = vrot.slane %v3467_v7, 2  ;;  %v4140_v28 = vrot.slane %v3467_v7, 3  ;;  %v4160_v62 = vrot.slane %v3467_v7, 4 }
 0x3e2   : > { %v4184_v48 = vrot.slane %v3500_v39, 5 }
 0x3e3   : > { %v4148_v25 = vsel %vm1706_vm2, %v3467_v7, %v4124_v8  ;;  %v4168_v20 = vsel %vm1706_vm2, %v4124_v8, %v4132_v33  ;;  %v4192_v22 = vsel %vm1706_vm2, %v4132_v33, %v4140_v28  ;;  %v13239_v7 = vld [vmem:[%s15248_s4] ss:$0 sm:$0xff] }
 0x3e4   : > { %v4152_v32 = vsel %vm1053_vm0, %v4148_v25, %v4132_v33  ;;  %v4172_v36 = vsel %vm1053_vm0, %v4168_v20, %v4140_v28  ;;  %v4196_v56 = vsel %vm1053_vm0, %v4192_v22, %v4160_v62  ;;  %v4379_v25 = vrot.slane %v12178_v12, 4 }
 0x3e5   : > { %v4156_v52 = vsel %vm3181_vm5, %v4152_v32, %v4140_v28  ;;  %v4176_v35 = vsel %vm3181_vm5, %v4172_v36, %v4160_v62  ;;  %v4200_v40 = vsel %vm3181_vm5, %v4196_v56, %v4184_v48  ;;  %v4380_v20 = vrot.slane %v12376_v10, 4 }
 0x3e6   : > { %v4352_v50 = vrot.slane %v4156_v52, 4  ;;  %v4353_v43 = vrot.slane %v4176_v35, 4  ;;  %v4354_v29 = vrot.slane %v4200_v40, 4  ;;  %v4381_v32 = vrot.slane %v12425_v17, 4 }
 0x3e7   : > { %v4478_v52 = vsel %vm3214_vm6, %v12080_v21, %v4379_v25  ;;  %v4479_v40 = vsel %vm3214_vm6, %v12173_v59, %v4380_v20  ;;  %v8539_v25 = vld [vmem:[%s15249_s5 + $0xf0] sm:$0xf]  ;;  %v9678_v20 = vld [vmem:[%s15249_s5 + $0xf4] sm:$0xf0] }
 0x3e8   : > { %v4469_v41 = vsel %vm3214_vm6, %v12324_v37, %v4352_v50  ;;  %v4470_v45 = vsel %vm3214_vm6, %v12327_v53, %v4353_v43  ;;  %v4471_v47 = vsel %vm3214_vm6, %v12330_v11, %v4354_v29  ;;  %v3343_v37 = vsel %vm2027_vm3, %v3311_v51, %v3084_v42  ;;  %v13223_v11 = vpop.f32.mrf.mxu1  ;;  %v15671_v50 = vld [vmem:[#allocation6_spill] sm:$0xff]  ;;  %v15672_v43 = vld [vmem:[#allocation65_spill] sm:$0xff] }
 0x3e9   : > { %v4514_v0 = vpack.c.bf16 %v4469_v41, %v4460_v4  ;;  %v4515_v27 = vpack.c.bf16 %v4470_v45, %v4461_v16  ;;  %v4516_v63 = vpack.c.bf16 %v4471_v47, %v4462_v26  ;;  %v3409_v53 = vrot.slane %v3343_v37, 7  ;;  %v15673_v29 = vld [vmem:[#allocation42_spill] sm:$0xff]  ;;  %v15674_v42 = vld [vmem:[#allocation41_spill] sm:$0xff] }
 0x3ea   : > { %v4480_v17 = vsel %vm3214_vm6, %v15672_v43, %v4381_v32  ;;  %v8540_v32 = vor.u32 %v9678_v20, %v8539_v25  ;;  %v9676_v43 = vld [vmem:[%s15249_s5 + $0xe4] sm:$0xf0]  ;;  %v8571_v20 = vld [vmem:[%s15249_s5 + $0x130] sm:$0xf] }
 0x3eb   : > { %v3475_v31 = vsel %vm1706_vm2, 0.0, %v3409_v53  ;;  %v3508_v18 = vsel %vm1706_vm2, %v3409_v53, 0.0 }
 0x3ec   : > { %5293 = vmatmul.bf16.gmra.mxu1 %v4505_v46  ;;  %v4125_v58 = vrot.slane %v3475_v31, 1  ;;  %v4133_v38 = vrot.slane %v3475_v31, 2  ;;  %v4141_v23 = vrot.slane %v3475_v31, 3  ;;  %v4161_v60 = vrot.slane %v3475_v31, 4  ;;  %7077 = vmatpush.bf16.msra.mxu2 %v8540_v32 }
 0x3ed   : > { %5322 = vmatmul.bf16.gmra.mxu2 %v4506_v1  ;;  %5351 = vmatmul.bf16.gmra.mxu3 %v4507_v13  ;;  %v4185_v44 = vrot.slane %v3508_v18, 5 }
 0x3ee   : > { %v4149_v2 = vsel %vm1706_vm2, %v3475_v31, %v4125_v58  ;;  %v4169_v1 = vsel %vm1706_vm2, %v4125_v58, %v4133_v38  ;;  %v4193_v5 = vsel %vm1706_vm2, %v4133_v38, %v4141_v23 }
 0x3ef   : > { %v4153_v13 = vsel %vm1053_vm0, %v4149_v2, %v4133_v38  ;;  %v4173_v9 = vsel %vm1053_vm0, %v4169_v1, %v4141_v23  ;;  %v4197_v8 = vsel %vm1053_vm0, %v4193_v5, %v4161_v60 }
 0x3f0   : > { %v5125_v46 = vpop.f32.mrf.mxu1  ;;  %v4157_v57 = vsel %vm3181_vm5, %v4153_v13, %v4141_v23  ;;  %v4177_v14 = vsel %vm3181_vm5, %v4173_v9, %v4161_v60  ;;  %v4201_v48 = vsel %vm3181_vm5, %v4197_v8, %v4185_v44  ;;  %v15675_v23 = vld [vmem:[#allocation25_spill] sm:$0xff] }
 0x3f1   : > { %v5126_v39 = vadd.f32 %v13239_v7, %v5125_v46  ;;  %v4406_v22 = vrot.slane %v4157_v57, 4  ;;  %v4407_v30 = vrot.slane %v4177_v14, 4  ;;  %v4408_v36 = vrot.slane %v4201_v48, 4  ;;  %v8475_v14 = vld [vmem:[%s15249_s5 + $0x70] sm:$0xf] }
 0x3f2   : > { %v5154_v33 = vpop.f32.mrf.mxu2  ;;  %v9662_v48 = vld [vmem:[%s15249_s5 + $0x74] sm:$0xf0] }
 0x3f3   : > { %v5155_v28 = vadd.f32 %v5154_v33, %v5126_v39  ;;  %v5183_v62 = vpop.f32.mrf.mxu3  ;;  %v4487_v35 = vsel %vm3214_vm6, %v12084_v34, %v4406_v22  ;;  %v4488_v12 = vsel %vm3214_vm6, %v15671_v50, %v4407_v30  ;;  %v4489_v19 = vsel %vm3214_vm6, %v15673_v29, %v4408_v36  ;;  %v8603_v22 = vld [vmem:[%s15249_s5 + $0x170] sm:$0xf]  ;;  %v9694_v30 = vld [vmem:[%s15249_s5 + $0x174] sm:$0xf0]  ;;  %v9692_v29 = vld [vmem:[%s15249_s5 + $0x164] sm:$0xf0] }
 0x3f4   : > { %v4523_v61 = vpack.c.bf16 %v4487_v35, %v4478_v52  ;;  %v4524_v21 = vpack.c.bf16 %v4488_v12, %v4479_v40  ;;  %v4525_v4 = vpack.c.bf16 %v4489_v19, %v4480_v17  ;;  %v8604_v36 = vor.u32 %v9694_v30, %v8603_v22  ;;  %v8467_v52 = vld [vmem:[%s15249_s5 + $0x60] sm:$0xf]  ;;  %v9660_v35 = vld [vmem:[%s15249_s5 + $0x64] sm:$0xf0]  ;;  %v9686_v22 = vld [vmem:[%s15249_s5 + $0x134] sm:$0xf0] }
 0x3f5   : > { %v5184_v3 = vadd.f32 %v5183_v62, %v5155_v28  ;;  %v8531_v40 = vld [vmem:[%s15249_s5 + $0xe0] sm:$0xf]  ;;  %v8468_v12 = vor.u32 %v9660_v35, %v8467_v52  ;;  %v8572_v32 = vor.u32 %v9686_v22, %v8571_v20  ;;  %v9652_v52 = vld [vmem:[%s15249_s5 + $0x24] sm:$0xf0]  ;;  %v9710_v20 = vld [vmem:[%s15249_s5 + $0x1f4] sm:$0xf0] }
 0x3f6   : > { %v8595_v17 = vld [vmem:[%s15249_s5 + $0x160] sm:$0xf]  ;;  %7090 = vmatpush.bf16.msra.mxu3 %v8604_v36  ;;  %v8731_v22 = vld [vmem:[%s15249_s5 + $0x270] sm:$0xf] }
 0x3f7   : > { %v8435_v36 = vld [vmem:[%s15249_s5 + $0x20] sm:$0xf] }
 0x3f8   : > { %v13245_v15 = vpop.f32.mrf.mxu1  ;;  %v8499_v35 = vld [vmem:[%s15249_s5 + $0xa0] sm:$0xf] }
 0x3fa   : > { %v13251_v56 = vpop.f32.mrf.mxu2 }
 0x3fb   : > { %v13261_v10 = vpop.f32.mrf.mxu3 }
 0x3fc   : > { %5298 = vmatmul.bf16.gmra.mxu1 %v4514_v0 }
 0x3fd   : > { %5327 = vmatmul.bf16.gmra.mxu2 %v4515_v27  ;;  %5356 = vmatmul.bf16.gmra.mxu3 %v4516_v63 }
 0x400   : > { %v5130_v24 = vpop.f32.mrf.mxu1 }
 0x401   : > { %v5131_v34 = vadd.f32 %v13239_v7, %v5130_v24  ;;  %v8532_v24 = vor.u32 %v9676_v43, %v8531_v40  ;;  %v9668_v43 = vld [vmem:[%s15249_s5 + $0xa4] sm:$0xf0] }
 0x402   : > { %v5159_v59 = vpop.f32.mrf.mxu2 }
 0x403   : > { %v5160_v54 = vadd.f32 %v5159_v59, %v5131_v34  ;;  %7078 = vmatpush.bf16.msra.mxu2 %v8532_v24  ;;  %v9658_v34 = vld [vmem:[%s15249_s5 + $0x54] sm:$0xf0]  ;;  %v8523_v59 = vld [vmem:[%s15249_s5 + $0xd0] sm:$0xf] }
 0x404   : > { %v5188_v16 = vpop.f32.mrf.mxu3 }
 0x405   : > { %v13270_v45 = vadd.f32 %v5188_v16, %v5160_v54  ;;  %v9674_v16 = vld [vmem:[%s15249_s5 + $0xd4] sm:$0xf0] }
 0x408   : > { %v13268_v41 = vpop.f32.mrf.mxu1 }
 0x40a   : > { %v13272_v55 = vpop.f32.mrf.mxu2 }
 0x40c   : > { %5303 = vmatmul.bf16.gmra.mxu1 %v4523_v61  ;;  %v13274_v26 = vpop.f32.mrf.mxu3  ;;  %v8596_v61 = vor.u32 %v9692_v29, %v8595_v17  ;;  %v8563_v17 = vld [vmem:[%s15249_s5 + $0x120] sm:$0xf]  ;;  %v9684_v29 = vld [vmem:[%s15249_s5 + $0x124] sm:$0xf0] }
 0x40d   : > { %5332 = vmatmul.bf16.gmra.mxu2 %v4524_v21  ;;  %5361 = vmatmul.bf16.gmra.mxu3 %v4525_v4  ;;  %v8459_v4 = vld [vmem:[%s15249_s5 + $0x50] sm:$0xf] }
 0x40e   : > { %7091 = vmatpush.bf16.msra.mxu3 %v8596_v61  ;;  %v8460_v54 = vor.u32 %v9658_v34, %v8459_v4  ;;  %v8500_v61 = vor.u32 %v9668_v43, %v8499_v35  ;;  %v8564_v4 = vor.u32 %v9684_v29, %v8563_v17  ;;  %v9742_v35 = vld [vmem:[%s15249_s5 + $0x2f4] sm:$0xf0]  ;;  %v8659_v17 = vld [vmem:[%s15249_s5 + $0x1e0] sm:$0xf]  ;;  %v9708_v29 = vld [vmem:[%s15249_s5 + $0x1e4] sm:$0xf0] }
 0x410   : > { %v5202_v47 = vpop.f32.mrf.mxu1 }
 0x411   : > { %v5203_v0 = vadd.f32 %v5202_v47, %v15674_v42  ;;  %v8587_v47 = vld [vmem:[%s15249_s5 + $0x150] sm:$0xf]  ;;  %v9690_v42 = vld [vmem:[%s15249_s5 + $0x154] sm:$0xf0] }
 0x418   : > { %v13277_v37 = vpop.f32.mrf.mxu1 }
 0x419   : > { %v5231_v27 = vpop.f32.mrf.mxu2 }
 0x41a   : > { %v5232_v63 = vadd.f32 %v5231_v27, %v5203_v0  ;;  %v5260_v51 = vpop.f32.mrf.mxu3  ;;  %v8524_v0 = vor.u32 %v9674_v16, %v8523_v59  ;;  %v8588_v27 = vor.u32 %v9690_v42, %v8587_v47  ;;  %v8427_v59 = vld [vmem:[%s15249_s5 + $0x10] sm:$0xf]  ;;  %v9666_v42 = vld [vmem:[%s15249_s5 + $0x94] sm:$0xf0] }
 0x41b   : > { %v8491_v16 = vld [vmem:[%s15249_s5 + $0x90] sm:$0xf] }
 0x41c   : > { %v13279_v53 = vadd.f32 %v5260_v51, %v5232_v63  ;;  %v8451_v63 = vld [vmem:[%s15249_s5 + $0x40] sm:$0xf]  ;;  %v9656_v51 = vld [vmem:[%s15249_s5 + $0x44] sm:$0xf0]  ;;  %7079 = vmatpush.bf16.msra.mxu2 %v8524_v0  ;;  %7092 = vmatpush.bf16.msra.mxu3 %v8588_v27  ;;  %v8555_v0 = vld [vmem:[%s15249_s5 + $0x110] sm:$0xf] }
 0x41d   : > { %v9682_v27 = vld [vmem:[%s15249_s5 + $0x114] sm:$0xf0] }
 0x421   : > { %v13281_v31 = vpop.f32.mrf.mxu2 }
 0x422   : > { %v13283_v58 = vpop.f32.mrf.mxu3 }
 0x424   : > { %v5207_v38 = vpop.f32.mrf.mxu1 }
 0x425   : > { %v5208_v46 = vadd.f32 %v5207_v38, %v15675_v23  ;;  %v8515_v38 = vld [vmem:[%s15249_s5 + $0xc0] sm:$0xf] }
 0x42a   : > { %v5236_v2 = vpop.f32.mrf.mxu2 }
 0x42b   : > { %v5237_v60 = vadd.f32 %v5236_v2, %v5208_v46  ;;  %v5265_v1 = vpop.f32.mrf.mxu3  ;;  %v8452_v46 = vor.u32 %v9656_v51, %v8451_v63  ;;  %v9672_v2 = vld [vmem:[%s15249_s5 + $0xc4] sm:$0xf0]  ;;  %v8492_v63 = vor.u32 %v9666_v42, %v8491_v16  ;;  %v8556_v51 = vor.u32 %v9682_v27, %v8555_v0  ;;  %v8651_v42 = vld [vmem:[%s15249_s5 + $0x1d0] sm:$0xf]  ;;  %v9706_v0 = vld [vmem:[%s15249_s5 + $0x1d4] sm:$0xf0] }
 0x42c   : > { %v13286_v18 = vpop.f32.mrf.mxu1 }
 0x42d   : > { %v13288_v5 = vadd.f32 %v5265_v1, %v5237_v60  ;;  %v8579_v60 = vld [vmem:[%s15249_s5 + $0x140] sm:$0xf]  ;;  %v9688_v1 = vld [vmem:[%s15249_s5 + $0x144] sm:$0xf0] }
 0x432   : > { %v13290_v13 = vpop.f32.mrf.mxu2 }
 0x433   : > { %v13292_v9 = vpop.f32.mrf.mxu3 }
 0x438   : > { %v5212_v44 = vpop.f32.mrf.mxu1 }
 0x439   : > { %v5213_v39 = vadd.f32 %v5212_v44, %v5184_v3  ;;  %v8476_v3 = vor.u32 %v9662_v48, %v8475_v14  ;;  %v9654_v14 = vld [vmem:[%s15249_s5 + $0x34] sm:$0xf0]  ;;  %v8507_v48 = vld [vmem:[%s15249_s5 + $0xb0] sm:$0xf] }
 0x43b   : > { %7064 = vmatpush.bf16.msra.mxu1 %v8476_v3  ;;  %v9670_v3 = vld [vmem:[%s15249_s5 + $0xb4] sm:$0xf0] }
 0x43c   : > { %v8508_v30 = vor.u32 %v9670_v3, %v8507_v48  ;;  %v8667_v3 = vld [vmem:[%s15249_s5 + $0x1f0] sm:$0xf] }
 0x43e   : > { %v5241_v8 = vpop.f32.mrf.mxu2 }
 0x43f   : > { %v5242_v33 = vadd.f32 %v5241_v8, %v5213_v39  ;;  %v5270_v28 = vpop.f32.mrf.mxu3  ;;  %7065 = vmatpush.bf16.msra.mxu1 %v8468_v12  ;;  %v8516_v39 = vor.u32 %v9672_v2, %v8515_v38  ;;  %v8580_v8 = vor.u32 %v9688_v1, %v8579_v60  ;;  %v8436_v12 = vor.u32 %v9652_v52, %v8435_v36  ;;  %v8419_v38 = vld [vmem:[%s15249_s5] sm:$0xf]  ;;  %v9726_v36 = vld [vmem:[%s15249_s5 + $0x274] sm:$0xf0]  ;;  %v8795_v52 = vld [vmem:[%s15249_s5 + $0x2f0] sm:$0xf] }
 0x440   : > { %v13294_v62 = vpop.f32.mrf.mxu1  ;;  %v8483_v2 = vld [vmem:[%s15249_s5 + $0x80] sm:$0xf]  ;;  %v8796_v43 = vor.u32 %v9742_v35, %v8795_v52 }
 0x441   : > { %v13296_v57 = vadd.f32 %v5270_v28, %v5242_v33  ;;  %7080 = vmatpush.bf16.msra.mxu2 %v8516_v39  ;;  %7093 = vmatpush.bf16.msra.mxu3 %v8580_v8  ;;  %v8443_v28 = vld [vmem:[%s15249_s5 + $0x30] sm:$0xf]  ;;  %v9664_v39 = vld [vmem:[%s15249_s5 + $0x84] sm:$0xf0]  ;;  %v8547_v8 = vld [vmem:[%s15249_s5 + $0x100] sm:$0xf] }
 0x442   : > { %v8444_v25 = vor.u32 %v9654_v14, %v8443_v28  ;;  %v9680_v28 = vld [vmem:[%s15249_s5 + $0x104] sm:$0xf0]  ;;  %v8484_v48 = vor.u32 %v9664_v39, %v8483_v2 }
 0x443   : > { %7066 = vmatpush.bf16.msra.mxu1 %v8460_v54  ;;  %v9650_v54 = vld [vmem:[%s15249_s5 + $0x14] sm:$0xf0] }
 0x444   : > { %v8428_v47 = vor.u32 %v9650_v54, %v8427_v59  ;;  %v9724_v59 = vld [vmem:[%s15249_s5 + $0x264] sm:$0xf0]  ;;  %v8787_v54 = vld [vmem:[%s15249_s5 + $0x2e0] sm:$0xf] }
 0x445   : > { %7081 = vmatpush.bf16.msra.mxu2 %v8508_v30  ;;  %7094 = vmatpush.bf16.msra.mxu3 %v8572_v32  ;;  %v8668_v32 = vor.u32 %v9710_v20, %v8667_v3  ;;  %v9704_v3 = vld [vmem:[%s15249_s5 + $0x1c4] sm:$0xf0] }
 0x446   : > { %v13325_v50 = vpop.f32.mrf.mxu2 }
 0x447   : > { %v13336_v19 = vpop.f32.mrf.mxu3  ;;  %7067 = vmatpush.bf16.msra.mxu1 %v8452_v46  ;;  %v9648_v46 = vld [vmem:[%s15249_s5 + $0x4] sm:$0xf0] }
 0x448   : > { %v13338_v21 = vpop.f32.mrf.mxu1  ;;  %v8420_v1 = vor.u32 %v9648_v46, %v8419_v38  ;;  %v9722_v38 = vld [vmem:[%s15249_s5 + $0x254] sm:$0xf0]  ;;  %v8779_v46 = vld [vmem:[%s15249_s5 + $0x2d0] sm:$0xf] }
 0x449   : > { %7082 = vmatpush.bf16.msra.mxu2 %v8500_v61  ;;  %7095 = vmatpush.bf16.msra.mxu3 %v8564_v4  ;;  %v8660_v61 = vor.u32 %v9708_v29, %v8659_v17  ;;  %v8723_v4 = vld [vmem:[%s15249_s5 + $0x260] sm:$0xf]  ;;  %v9702_v17 = vld [vmem:[%s15249_s5 + $0x1b4] sm:$0xf0] }
 0x44a   : > { %v8724_v16 = vor.u32 %v9724_v59, %v8723_v4  ;;  %v9718_v4 = vld [vmem:[%s15249_s5 + $0x234] sm:$0xf0]  ;;  %v8763_v59 = vld [vmem:[%s15249_s5 + $0x2b0] sm:$0xf] }
 0x44b   : > { %7068 = vmatpush.bf16.msra.mxu1 %v8444_v25  ;;  %v8548_v25 = vor.u32 %v9680_v28, %v8547_v8  ;;  %v8652_v8 = vor.u32 %v9706_v0, %v8651_v42 }
 0x44d   : > { %7083 = vmatpush.bf16.msra.mxu2 %v8492_v63  ;;  %7096 = vmatpush.bf16.msra.mxu3 %v8556_v51  ;;  %v8715_v51 = vld [vmem:[%s15249_s5 + $0x250] sm:$0xf] }
 0x44e   : > { %v13367_v23 = vpop.f32.mrf.mxu2  ;;  %v8716_v28 = vor.u32 %v9722_v38, %v8715_v51 }
 0x44f   : > { %v13378_v44 = vpop.f32.mrf.mxu3  ;;  %7069 = vmatpush.bf16.msra.mxu1 %v8436_v12  ;;  %v8732_v12 = vor.u32 %v9726_v36, %v8731_v22  ;;  %v8707_v22 = vld [vmem:[%s15249_s5 + $0x240] sm:$0xf] }
 0x450   : > { %v13380_v33 = vpop.f32.mrf.mxu1  ;;  %v8771_v36 = vld [vmem:[%s15249_s5 + $0x2c0] sm:$0xf] }
 0x451   : > { %7084 = vmatpush.bf16.msra.mxu2 %v8484_v48  ;;  %7097 = vmatpush.bf16.msra.mxu3 %v8548_v25  ;;  %v8643_v25 = vld [vmem:[%s15249_s5 + $0x1c0] sm:$0xf] }
 0x452   : > { %v8644_v20 = vor.u32 %v9704_v3, %v8643_v25  ;;  %v9732_v25 = vld [vmem:[%s15249_s5 + $0x2a4] sm:$0xf0]  ;;  %v8619_v3 = vld [vmem:[%s15249_s5 + $0x190] sm:$0xf] }
 0x453   : > { %7070 = vmatpush.bf16.msra.mxu1 %v8428_v47  ;;  %v9740_v47 = vld [vmem:[%s15249_s5 + $0x2e4] sm:$0xf0] }
 0x454   : > { %v8788_v63 = vor.u32 %v9740_v47, %v8787_v54  ;;  %v9734_v47 = vld [vmem:[%s15249_s5 + $0x2b4] sm:$0xf0] }
 0x455   : > { %7116 = vmatpush.bf16.msrb.mxu2 %v8732_v12  ;;  %7129 = vmatpush.bf16.msrb.mxu3 %v8796_v43  ;;  %v9736_v12 = vld [vmem:[%s15249_s5 + $0x2c4] sm:$0xf0]  ;;  %v8635_v43 = vld [vmem:[%s15249_s5 + $0x1b0] sm:$0xf]  ;;  %v8764_v38 = vor.u32 %v9734_v47, %v8763_v59 }
 0x456   : > { %v13409_v40 = vpop.f32.mrf.mxu2 }
 0x457   : > { %v13420_v24 = vpop.f32.mrf.mxu3  ;;  %7071 = vmatpush.bf16.msra.mxu1 %v8420_v1  ;;  %v9738_v1 = vld [vmem:[%s15249_s5 + $0x2d4] sm:$0xf0] }
 0x458   : > { %v8780_v48 = vor.u32 %v9738_v1, %v8779_v46 }
 0x459   : > { %v13422_v34 = vpop.f32.mrf.mxu1  ;;  %7117 = vmatpush.bf16.msrb.mxu2 %v8724_v16  ;;  %7130 = vmatpush.bf16.msrb.mxu3 %v8788_v63  ;;  %v8636_v63 = vor.u32 %v9702_v17, %v8635_v43 }
 0x45a   : > { %v5290_v42 = vadd.f32 %v13422_v34, %v13279_v53  ;;  %v8691_v34 = vld [vmem:[%s15249_s5 + $0x220] sm:$0xf] }
 0x45b   : > { %7103 = vmatpush.bf16.msrb.mxu1 %v8668_v32  ;;  %v9720_v32 = vld [vmem:[%s15249_s5 + $0x244] sm:$0xf0] }
 0x45c   : > { %v8708_v35 = vor.u32 %v9720_v32, %v8707_v22 }
 0x45d   : > { %7118 = vmatpush.bf16.msrb.mxu2 %v8716_v28  ;;  %7131 = vmatpush.bf16.msrb.mxu3 %v8780_v48  ;;  %v8755_v28 = vld [vmem:[%s15249_s5 + $0x2a0] sm:$0xf] }
 0x45f   : > { %7104 = vmatpush.bf16.msrb.mxu1 %v8660_v61  ;;  %v8772_v61 = vor.u32 %v9736_v12, %v8771_v36  ;;  %v8756_v36 = vor.u32 %v9732_v25, %v8755_v28  ;;  %v8747_v12 = vld [vmem:[%s15249_s5 + $0x290] sm:$0xf] }
 0x460   : > { %v13451_v60 = vpop.f32.mrf.mxu2  ;;  %v13462_v14 = vpop.f32.mrf.mxu3 }
 0x461   : > { %v13473_v30 = vpop.f32.mrf.mxu1  ;;  %7119 = vmatpush.bf16.msrb.mxu2 %v8708_v35  ;;  %7132 = vmatpush.bf16.msrb.mxu3 %v8772_v61  ;;  %v5319_v46 = vadd.f32 %v13451_v60, %v5290_v42  ;;  %v9716_v60 = vld [vmem:[%s15249_s5 + $0x224] sm:$0xf0]  ;;  %v9714_v35 = vld [vmem:[%s15249_s5 + $0x214] sm:$0xf0] }
 0x462   : > { %v8692_v48 = vor.u32 %v9716_v60, %v8691_v34 }
 0x463   : > { %7105 = vmatpush.bf16.msrb.mxu1 %v8652_v8  ;;  %v9700_v8 = vld [vmem:[%s15249_s5 + $0x1a4] sm:$0xf0]  ;;  %v5348_v22 = vadd.f32 %v13462_v14, %v5319_v46  ;;  %v9730_v14 = vld [vmem:[%s15249_s5 + $0x294] sm:$0xf0] }
 0x465   : > { %7133 = vmatpush.bf16.msrb.mxu3 %v8764_v38  ;;  %v13609_v59 = vmax.f32 %v5348_v22, 0.0  ;;  %v8739_v38 = vld [vmem:[%s15249_s5 + $0x280] sm:$0xf] }
 0x467   : > { %7106 = vmatpush.bf16.msrb.mxu1 %v8644_v20  ;;  %v9698_v20 = vld [vmem:[%s15249_s5 + $0x194] sm:$0xf0]  ;;  %v5389_v60 = vrot.slane %v13609_v59, 1  ;;  %v5396_v25 = vrot.slane %v13609_v59, 2 }
 0x468   : > { %v13508_v27 = vpop.f32.mrf.mxu2  ;;  %v13519_v2 = vpop.f32.mrf.mxu3  ;;  %v8620_v61 = vor.u32 %v9698_v20, %v8619_v3 }
 0x469   : > { %v5294_v39 = vpop.f32.mrf.mxu1  ;;  %7134 = vmatpush.bf16.msrb.mxu3 %v8756_v36 }
 0x46a   : > { %v5295_v52 = vadd.f32 %v5294_v39, %v13288_v5  ;;  %v8699_v5 = vld [vmem:[%s15249_s5 + $0x230] sm:$0xf]  ;;  %v8627_v39 = vld [vmem:[%s15249_s5 + $0x1a0] sm:$0xf] }
 0x46b   : > { %v8700_v51 = vor.u32 %v9718_v4, %v8699_v5  ;;  %7107 = vmatpush.bf16.msrb.mxu1 %v8636_v63  ;;  %v8628_v53 = vor.u32 %v9700_v8, %v8627_v39  ;;  %v8748_v4 = vor.u32 %v9730_v14, %v8747_v12  ;;  %v8675_v63 = vld [vmem:[%s15249_s5 + $0x200] sm:$0xf]  ;;  %v9728_v39 = vld [vmem:[%s15249_s5 + $0x284] sm:$0xf0] }
 0x46d   : > { %7120 = vmatpush.bf16.msrb.mxu2 %v8700_v51  ;;  %v9712_v51 = vld [vmem:[%s15249_s5 + $0x204] sm:$0xf0]  ;;  %7135 = vmatpush.bf16.msrb.mxu3 %v8748_v4 }
 0x46f   : > { %7108 = vmatpush.bf16.msrb.mxu1 %v8628_v53  ;;  %v8740_v53 = vor.u32 %v9728_v39, %v8739_v38 }
 0x470   : > { %v5323_v29 = vpop.f32.mrf.mxu2  ;;  %v5352_v16 = vpop.f32.mrf.mxu3 }
 0x471   : > { %v5324_v54 = vadd.f32 %v5323_v29, %v5295_v52  ;;  %v13563_v0 = vpop.f32.mrf.mxu1  ;;  %v8683_v52 = vld [vmem:[%s15249_s5 + $0x210] sm:$0xf]  ;;  %7121 = vmatpush.bf16.msrb.mxu2 %v8692_v48  ;;  %7136 = vmatpush.bf16.msrb.mxu3 %v8740_v53  ;;  %v5418_v53 = vrot.slane %v13609_v59, 5 }
 0x472   : > { %v8684_v5 = vor.u32 %v9714_v35, %v8683_v52  ;;  %v5218_v35 = vadd.f32 %v13338_v21, %v13270_v45  ;;  %v15676_v21 = vld [vmem:[#allocation28_spill] sm:$0xff] }
 0x473   : > { %v5353_v1 = vadd.f32 %v5352_v16, %v5324_v54  ;;  %v8611_v54 = vld [vmem:[%s15249_s5 + $0x180] sm:$0xf]  ;;  %v9696_v16 = vld [vmem:[%s15249_s5 + $0x184] sm:$0xf0]  ;;  %7109 = vmatpush.bf16.msrb.mxu1 %v8620_v61 }
 0x474   : > { %v8612_v42 = vor.u32 %v9696_v16, %v8611_v54 }
 0x475   : > { %v13602_v43 = vmax.f32 %v5353_v1, 0.0  ;;  %7122 = vmatpush.bf16.msrb.mxu2 %v8684_v5  ;;  %v8676_v1 = vor.u32 %v9712_v51, %v8675_v63  ;;  %v5247_v5 = vadd.f32 %v13367_v23, %v5218_v35  ;;  %v5410_v23 = vrot.slane %v13609_v59, 4 }
 0x477   : > { %v5379_v47 = vrot.slane %v13602_v43, 7  ;;  %7110 = vmatpush.bf16.msrb.mxu1 %v8612_v42  ;;  %v5390_v20 = vsel %vm5380_vm8, %v13602_v43, %v5389_v60  ;;  %v5404_v45 = vrot.slane %v13602_v43, 2  ;;  %v5118_v42 = vadd.f32 %v13239_v7, %v15676_v21 }
 0x478   : > { %v13591_v32 = vpop.f32.mrf.mxu2  ;;  %v13604_v17 = vpop.f32.mrf.mxu3  ;;  %v5276_v39 = vadd.f32 %v13378_v44, %v5247_v5  ;;  %v5123_v60 = vadd.f32 %v13239_v7, %v13223_v11  ;;  %v5133_v11 = vadd.f32 %v13239_v7, %v13268_v41  ;;  %v8923_v41 = vld [vmem:[%s15249_s5 + $0x3f0] sm:$0xf] }
 0x479   : > { %v5299_v29 = vpop.f32.mrf.mxu1  ;;  %v5381_v34 = vsel %vm5380_vm8, %v5379_v47, %v13609_v59  ;;  %7123 = vmatpush.bf16.msrb.mxu2 %v8676_v1  ;;  %v5403_v47 = vrot.slane %v13609_v59, 3 }
 0x47a   : > { %v5300_v46 = vadd.f32 %v5299_v29, %v13296_v57  ;;  %v5397_v57 = vrot.slane %v13602_v43, 1  ;;  %v5152_v35 = vadd.f32 %v13226_v49, %v5123_v60  ;;  %v8859_v49 = vld [vmem:[%s15249_s5 + $0x370] sm:$0xf] }
 0x47b   : > { %v5405_v38 = vsel %vm5380_vm8, %v5404_v45, %v5403_v47  ;;  %v5162_v47 = vadd.f32 %v13272_v55, %v5133_v11  ;;  %v9788_v11 = vld [vmem:[%s15249_s5 + $0x464] sm:$0xf0] }
 0x47c   : > { %v5398_v36 = vsel %vm5380_vm8, %v5397_v57, %v5396_v25  ;;  %v15677_v57 = vld [vmem:[#allocation37_spill] sm:$0xff] }
 0x480   : > { %v5328_v8 = vpop.f32.mrf.mxu2  ;;  %v5357_v48 = vpop.f32.mrf.mxu3 }
 0x481   : > { %v5329_v28 = vadd.f32 %v5328_v8, %v5300_v46  ;;  %v13636_v3 = vpop.f32.mrf.mxu1  ;;  %v5411_v46 = vrot.slane %v13602_v43, 3 }
 0x483   : > { %v5358_v22 = vadd.f32 %v5357_v48, %v5329_v28  ;;  %v5128_v28 = vadd.f32 %v13239_v7, %v13245_v15  ;;  %v5412_v48 = vsel %vm5380_vm8, %v5411_v46, %v5410_v23  ;;  %v9758_v7 = vld [vmem:[%s15249_s5 + $0x374] sm:$0xf0] }
 0x485   : > { %v13641_v52 = vmax.f32 %v5358_v22, 0.0 }
 0x487   : > { %v5382_v12 = vrot.slane %v13641_v52, 6  ;;  %v5391_v14 = vrot.slane %v13641_v52, 7  ;;  %v5399_v29 = vsel %vm5383_vm9, %v13641_v52, %v5398_v36  ;;  %v5406_v63 = vrot.slane %v13641_v52, 1 }
 0x488   : > { %v13649_v61 = vpop.f32.mrf.mxu2  ;;  %v13652_v4 = vpop.f32.mrf.mxu3  ;;  %v5413_v1 = vrot.slane %v13641_v52, 2  ;;  %v5421_v25 = vrot.slane %v13641_v52, 3 }
 0x489   : > { %v5384_v54 = vsel %vm5383_vm9, %v5382_v12, %v5381_v34  ;;  %v5392_v16 = vsel %vm5383_vm9, %v5391_v14, %v5390_v20  ;;  %v5304_v51 = vpop.f32.mrf.mxu1  ;;  %v5407_v8 = vsel %vm5383_vm9, %v5406_v63, %v5405_v38  ;;  %v5419_v34 = vrot.slane %v13602_v43, 4 }
 0x48a   : > { %v5147_v20 = vadd.f32 %v15677_v57, %v5118_v42  ;;  %v5305_v22 = vadd.f32 %v5304_v51, %v5276_v39  ;;  %v5414_v44 = vsel %vm5383_vm9, %v5413_v1, %v5412_v48  ;;  %v5157_v12 = vadd.f32 %v13251_v56, %v5128_v28  ;;  %v15678_v42 = vld [vmem:[#allocation35_spill] sm:$0xff]  ;;  %v8987_v1 = vld [vmem:[%s15249_s5 + $0x470] sm:$0xf] }
 0x48b   : > { %v5420_v36 = vsel %vm5380_vm8, %v5419_v34, %v5418_v53  ;;  %v5181_v51 = vadd.f32 %v13228_v6, %v5152_v35  ;;  %v9774_v6 = vld [vmem:[%s15249_s5 + $0x3f4] sm:$0xf0] }
 0x48c   : > { %v5422_v15 = vsel %vm5383_vm9, %v5421_v25, %v5420_v36  ;;  %v5176_v63 = vadd.f32 %v15678_v42, %v5147_v20  ;;  %v5186_v38 = vadd.f32 %v13261_v10, %v5157_v12  ;;  %v5191_v10 = vadd.f32 %v13274_v26, %v5162_v47  ;;  %v9790_v39 = vld [vmem:[%s15249_s5 + $0x474] sm:$0xf0]  ;;  %v8915_v36 = vld [vmem:[%s15249_s5 + $0x3e0] sm:$0xf] }
 0x48d   : > { %v5210_v23 = vadd.f32 %v13286_v18, %v5181_v51  ;;  %v8860_v18 = vor.u32 %v9758_v7, %v8859_v49  ;;  %v8988_v20 = vor.u32 %v9790_v39, %v8987_v1  ;;  %v8979_v12 = vld [vmem:[%s15249_s5 + $0x460] sm:$0xf]  ;;  %v8971_v51 = vld [vmem:[%s15249_s5 + $0x450] sm:$0xf]  ;;  %v5427_v49 = vrot.slane %v13602_v43, 5 }
 0x48e   : > { %v5205_v55 = vadd.f32 %v13277_v37, %v5176_v63  ;;  %v5215_v46 = vadd.f32 %v13294_v62, %v5186_v38  ;;  %v8924_v62 = vor.u32 %v9774_v6, %v8923_v41  ;;  %v5220_v42 = vadd.f32 %v13380_v33, %v5191_v10  ;;  %v9770_v33 = vld [vmem:[%s15249_s5 + $0x3d4] sm:$0xf0] }
 0x48f   : > { %v8980_v63 = vor.u32 %v9788_v11, %v8979_v12  ;;  %v5426_v38 = vrot.slane %v13609_v59, 6  ;;  %v5429_v7 = vrot.slane %v13641_v52, 4  ;;  %v9786_v6 = vld [vmem:[%s15249_s5 + $0x454] sm:$0xf0]  ;;  %v5434_v10 = vrot.slane %v13609_v59, 7 }
 0x490   : > { %v5333_v14 = vpop.f32.mrf.mxu2  ;;  %v5362_v45 = vpop.f32.mrf.mxu3  ;;  %v8827_v11 = vld [vmem:[%s15249_s5 + $0x330] sm:$0xf] }
 0x491   : > { %v5334_v5 = vadd.f32 %v5333_v14, %v5305_v22  ;;  %v8851_v22 = vld [vmem:[%s15249_s5 + $0x360] sm:$0xf] }
 0x493   : > { %v5363_v21 = vadd.f32 %v5362_v45, %v5334_v5  ;;  %v5234_v5 = vadd.f32 %v13281_v31, %v5205_v55  ;;  %v5239_v45 = vadd.f32 %v13290_v13, %v5210_v23  ;;  %v9754_v13 = vld [vmem:[%s15249_s5 + $0x354] sm:$0xf0]  ;;  %v5435_v55 = vrot.slane %v13602_v43, 6 }
 0x494   : > { %v5437_v23 = vrot.slane %v13641_v52, 5  ;;  %v8972_v43 = vor.u32 %v9786_v6, %v8971_v51 }
 0x495   : > { %v13693_v56 = vmax.f32 %v5363_v21, 0.0  ;;  %v5244_v21 = vadd.f32 %v13325_v50, %v5215_v46  ;;  %v8907_v50 = vld [vmem:[%s15249_s5 + $0x3d0] sm:$0xf]  ;;  %v5268_v1 = vadd.f32 %v13292_v9, %v5239_v45  ;;  %v5436_v59 = vsel %vm5380_vm8, %v5435_v55, %v5434_v10  ;;  %v8835_v9 = vld [vmem:[%s15249_s5 + $0x340] sm:$0xf] }
 0x497   : > { %v5385_v53 = vrot.slane %v13693_v56, 5  ;;  %v5393_v34 = vrot.slane %v13693_v56, 6  ;;  %v5400_v26 = vrot.slane %v13693_v56, 7  ;;  %v13716_v37 = vsel %vm5386_vm10, %v13693_v56, %v5407_v8  ;;  %v9756_v8 = vld [vmem:[%s15249_s5 + $0x364] sm:$0xf0] }
 0x498   : > { %v5415_v60 = vrot.slane %v13693_v56, 1  ;;  %v5423_v28 = vrot.slane %v13693_v56, 2  ;;  %v8852_v31 = vor.u32 %v9756_v8, %v8851_v22  ;;  %v5431_v41 = vrot.slane %v13693_v56, 3 }
 0x499   : > { %v5387_v48 = vsel %vm5386_vm10, %v5385_v53, %v5384_v54  ;;  %v5394_v25 = vsel %vm5386_vm10, %v5393_v34, %v5392_v16  ;;  %v5401_v57 = vsel %vm5386_vm10, %v5400_v26, %v5399_v29  ;;  %v9772_v29 = vld [vmem:[%s15249_s5 + $0x3e4] sm:$0xf0]  ;;  %v5439_v46 = vrot.slane %v13693_v56, 4 }
 0x49a   : > { %v13732_v35 = vpack.c.bf16 %v5387_v48, %v5387_v48  ;;  %v13734_v54 = vpack.c.bf16 %v5394_v25, %v5394_v25  ;;  %v13736_v16 = vpack.c.bf16 %v5401_v57, %v5401_v57  ;;  %v13748_v14 = vsel %vm5386_vm10, %v5415_v60, %v5414_v44  ;;  %v8843_v44 = vld [vmem:[%s15249_s5 + $0x350] sm:$0xf]  ;;  %v5306_v48 = vpop.f32.mrf.mxu1  ;;  %v9768_v25 = vld [vmem:[%s15249_s5 + $0x3c4] sm:$0xf0]  ;;  %v8963_v57 = vld [vmem:[%s15249_s5 + $0x440] sm:$0xf] }
 0x49b   : > { %v13752_v47 = vsel %vm5386_vm10, %v5423_v28, %v5422_v15  ;;  %v8916_v15 = vor.u32 %v9772_v29, %v8915_v36  ;;  %v5273_v39 = vadd.f32 %v13336_v19, %v5244_v21  ;;  %v5249_v53 = vadd.f32 %v13409_v40, %v5220_v42  ;;  %v9752_v19 = vld [vmem:[%s15249_s5 + $0x344] sm:$0xf0]  ;;  %v8899_v40 = vld [vmem:[%s15249_s5 + $0x3c0] sm:$0xf]  ;;  %v5335_v29 = vpop.f32.mrf.mxu2 }
 0x49c   : > { %7072 = vmatmul.bf16.vlgmr.msra.gmra.mxu1 %v13732_v35  ;;  %7085 = vmatmul.bf16.vlgmr.msra.gmra.mxu2 %v13734_v54  ;;  %v5428_v34 = vsel %vm5380_vm8, %v5427_v49, %v5426_v38  ;;  %v8844_v26 = vor.u32 %v9754_v13, %v8843_v44  ;;  %v5438_v56 = vsel %vm5383_vm9, %v5437_v23, %v5436_v59  ;;  %v5364_v49 = vpop.f32.mrf.mxu3 }
 0x49d   : > { %7098 = vmatmul.bf16.vlgmr.msra.gmra.mxu3 %v13736_v16  ;;  %7142 = vmatpush.bf16.msra.mxu1 %v8860_v18  ;;  %v8908_v18 = vor.u32 %v9770_v33, %v8907_v50  ;;  %v5297_v60 = vadd.f32 %v13563_v0, %v5268_v1  ;;  %v5302_v28 = vadd.f32 %v13636_v3, %v5273_v39  ;;  %v9746_v39 = vld [vmem:[%s15249_s5 + $0x314] sm:$0xf0] }
 0x49e   : > { %7155 = vmatpush.bf16.msra.mxu2 %v8924_v62  ;;  %7168 = vmatpush.bf16.msra.mxu3 %v8988_v20  ;;  %v5430_v62 = vsel %vm5383_vm9, %v5429_v7, %v5428_v34  ;;  %v9784_v20 = vld [vmem:[%s15249_s5 + $0x444] sm:$0xf0]  ;;  %v13817_v22 = vsel %vm5386_vm10, %v5439_v46, %v5438_v56  ;;  %v5278_v0 = vadd.f32 %v13420_v24, %v5249_v53  ;;  %v8891_v24 = vld [vmem:[%s15249_s5 + $0x3b0] sm:$0xf]  ;;  %v8947_v7 = vld [vmem:[%s15249_s5 + $0x420] sm:$0xf] }
 0x49f   : > { %v13802_v52 = vsel %vm5386_vm10, %v5431_v41, %v5430_v62  ;;  %v5263_v3 = vadd.f32 %v13283_v58, %v5234_v5  ;;  %v5326_v8 = vadd.f32 %v13591_v32, %v5297_v60  ;;  %v5331_v36 = vadd.f32 %v13649_v61, %v5302_v28  ;;  %v9750_v58 = vld [vmem:[%s15249_s5 + $0x334] sm:$0xf0]  ;;  %v8955_v61 = vld [vmem:[%s15249_s5 + $0x430] sm:$0xf]  ;;  %v9780_v41 = vld [vmem:[%s15249_s5 + $0x424] sm:$0xf0] }
 0x4a0   : > { %v8836_v12 = vor.u32 %v9752_v19, %v8835_v9  ;;  %v5307_v45 = vadd.f32 %v5306_v48, %v5278_v0  ;;  %v8900_v21 = vor.u32 %v9768_v25, %v8899_v40  ;;  %v8964_v42 = vor.u32 %v9784_v20, %v8963_v57  ;;  %v9766_v32 = vld [vmem:[%s15249_s5 + $0x3b4] sm:$0xf0]  ;;  %v8875_v53 = vld [vmem:[%s15249_s5 + $0x390] sm:$0xf]  ;;  %v9744_v19 = vld [vmem:[%s15249_s5 + $0x304] sm:$0xf0] }
 0x4a1   : > { %7143 = vmatpush.bf16.msra.mxu1 %v8852_v31  ;;  %v9782_v5 = vld [vmem:[%s15249_s5 + $0x434] sm:$0xf0]  ;;  %v5292_v44 = vadd.f32 %v13473_v30, %v5263_v3  ;;  %v8828_v13 = vor.u32 %v9750_v58, %v8827_v11  ;;  %v8892_v50 = vor.u32 %v9766_v32, %v8891_v24  ;;  %v13846_v33 = vpack.c.bf16 %v13716_v37, %v13716_v37  ;;  %v8819_v30 = vld [vmem:[%s15249_s5 + $0x320] sm:$0xf]  ;;  %v9776_v48 = vld [vmem:[%s15249_s5 + $0x404] sm:$0xf0] }
 0x4a2   : > { %7156 = vmatpush.bf16.msra.mxu2 %v8916_v15  ;;  %7169 = vmatpush.bf16.msra.mxu3 %v8980_v63  ;;  %v5336_v31 = vadd.f32 %v5335_v29, %v5307_v45  ;;  %v5355_v15 = vadd.f32 %v13604_v17, %v5326_v8  ;;  %v5360_v63 = vadd.f32 %v13652_v4, %v5331_v36  ;;  %v9748_v17 = vld [vmem:[%s15249_s5 + $0x324] sm:$0xf0]  ;;  %v8883_v4 = vld [vmem:[%s15249_s5 + $0x3a0] sm:$0xf]  ;;  %v9762_v34 = vld [vmem:[%s15249_s5 + $0x394] sm:$0xf0] }
 0x4a3   : > { %v13850_v51 = vpack.c.bf16 %v13748_v14, %v13748_v14  ;;  %v8956_v38 = vor.u32 %v9782_v5, %v8955_v61  ;;  %v13863_v37 = vpack.c.bf16 %v13752_v47, %v13752_v47  ;;  %v9764_v14 = vld [vmem:[%s15249_s5 + $0x3a4] sm:$0xf0]  ;;  %v5321_v6 = vadd.f32 %v13508_v27, %v5292_v44  ;;  %v8811_v27 = vld [vmem:[%s15249_s5 + $0x310] sm:$0xf]  ;;  %v8867_v40 = vld [vmem:[%s15249_s5 + $0x380] sm:$0xf] }
 0x4a4   : > { %v5365_v10 = vadd.f32 %v5364_v49, %v5336_v31  ;;  %v13877_v47 = vmax.f32 %v5355_v15, 0.0  ;;  %v13879_v55 = vmax.f32 %v5360_v63, 0.0  ;;  %v8820_v23 = vor.u32 %v9748_v17, %v8819_v30  ;;  %v8931_v28 = vld [vmem:[%s15249_s5 + $0x400] sm:$0xf]  ;;  %v9051_v57 = vld [vmem:[%s15249_s5 + $0x4f0] sm:$0xf] }
 0x4a5   : > { %7144 = vmatpush.bf16.msra.mxu1 %v8844_v26  ;;  %v8884_v46 = vor.u32 %v9764_v14, %v8883_v4  ;;  %v8948_v1 = vor.u32 %v9780_v41, %v8947_v7  ;;  %v8939_v26 = vld [vmem:[%s15249_s5 + $0x410] sm:$0xf]  ;;  %v5350_v62 = vadd.f32 %v13519_v2, %v5321_v6  ;;  %v8812_v9 = vor.u32 %v9746_v39, %v8811_v27  ;;  %v9760_v2 = vld [vmem:[%s15249_s5 + $0x384] sm:$0xf0]  ;;  %v9806_v20 = vld [vmem:[%s15249_s5 + $0x4f4] sm:$0xf0] }
 0x4a6   : > { %7157 = vmatpush.bf16.msra.mxu2 %v8908_v18  ;;  %7170 = vmatpush.bf16.msra.mxu3 %v8972_v43  ;;  %v9778_v18 = vld [vmem:[%s15249_s5 + $0x414] sm:$0xf0]  ;;  %v13901_v59 = vmax.f32 %v5365_v10, 0.0  ;;  %v8803_v43 = vld [vmem:[%s15249_s5 + $0x300] sm:$0xf]  ;;  %v8876_v56 = vor.u32 %v9762_v34, %v8875_v53  ;;  %v5446_v25 = vrot.slane %v13877_v47, 7  ;;  %v9052_v24 = vor.u32 %v9806_v20, %v9051_v57 }
 0x4a7   : > { %v8940_v60 = vor.u32 %v9778_v18, %v8939_v26  ;;  %v5448_v0 = vrot.slane %v13879_v55, 6  ;;  %v13929_v3 = vmax.f32 %v5350_v62, 0.0  ;;  %v9115_v8 = vld [vmem:[%s15249_s5 + $0x570] sm:$0xf]  ;;  %v9822_v36 = vld [vmem:[%s15249_s5 + $0x574] sm:$0xf0]  ;;  %v13968_v30 = vpack.c.bf16 %v13802_v52, %v13802_v52 }
 0x4a8   : > { %v5450_v29 = vrot.slane %v13901_v59, 5  ;;  %v9179_v11 = vld [vmem:[%s15249_s5 + $0x5f0] sm:$0xf]  ;;  %v9838_v45 = vld [vmem:[%s15249_s5 + $0x5f4] sm:$0xf0]  ;;  %v9116_v32 = vor.u32 %v9822_v36, %v9115_v8  ;;  %v13972_v4 = vpack.c.bf16 %v13817_v22, %v13817_v22 }
 0x4a9   : > { %7145 = vmatpush.bf16.msra.mxu1 %v8836_v12  ;;  %v8804_v12 = vor.u32 %v9744_v19, %v8803_v43  ;;  %v5447_v58 = vsel %vm5380_vm8, %v5446_v25, %v13929_v3  ;;  %v9043_v5 = vld [vmem:[%s15249_s5 + $0x4e0] sm:$0xf]  ;;  %v9804_v44 = vld [vmem:[%s15249_s5 + $0x4e4] sm:$0xf0]  ;;  %v9180_v31 = vor.u32 %v9838_v45, %v9179_v11  ;;  %v9035_v7 = vld [vmem:[%s15249_s5 + $0x4d0] sm:$0xf] }
 0x4aa   : > { %7158 = vmatpush.bf16.msra.mxu2 %v8900_v21  ;;  %7171 = vmatpush.bf16.msra.mxu3 %v8964_v42  ;;  %v8868_v21 = vor.u32 %v9760_v2, %v8867_v40  ;;  %v8932_v42 = vor.u32 %v9776_v48, %v8931_v28  ;;  %v5449_v61 = vsel %vm5383_vm9, %v5448_v0, %v5447_v58  ;;  %v9107_v63 = vld [vmem:[%s15249_s5 + $0x560] sm:$0xf]  ;;  %v9802_v52 = vld [vmem:[%s15249_s5 + $0x4d4] sm:$0xf0]  ;;  %v9099_v22 = vld [vmem:[%s15249_s5 + $0x550] sm:$0xf] }
 0x4ab   : > { %v5451_v15 = vsel %vm5386_vm10, %v5450_v29, %v5449_v61  ;;  %v9044_v17 = vor.u32 %v9804_v44, %v9043_v5  ;;  %v9818_v6 = vld [vmem:[%s15249_s5 + $0x554] sm:$0xf0]  ;;  %v9163_v10 = vld [vmem:[%s15249_s5 + $0x5d0] sm:$0xf]  ;;  %v9027_v27 = vld [vmem:[%s15249_s5 + $0x4c0] sm:$0xf] }
 0x4ac   : > { %7111 = vmatmul.bf16.vlgmr.msrb.gmra.mxu1 %v13846_v33  ;;  %7124 = vmatmul.bf16.vlgmr.msrb.gmra.mxu2 %v13850_v51  ;;  %v13974_v49 = vpack.c.bf16 %v5451_v15, %v5451_v15  ;;  %v9800_v53 = vld [vmem:[%s15249_s5 + $0x4c4] sm:$0xf0]  ;;  %v9091_v34 = vld [vmem:[%s15249_s5 + $0x540] sm:$0xf]  ;;  %v9019_v19 = vld [vmem:[%s15249_s5 + $0x4b0] sm:$0xf] }
 0x4ad   : > { %7137 = vmatmul.bf16.vlgmr.msrb.gmra.mxu3 %v13863_v37  ;;  %7146 = vmatpush.bf16.msra.mxu1 %v8828_v13  ;;  %v9820_v13 = vld [vmem:[%s15249_s5 + $0x564] sm:$0xf0]  ;;  %v9155_v18 = vld [vmem:[%s15249_s5 + $0x5c0] sm:$0xf]  ;;  %v9028_v43 = vor.u32 %v9800_v53, %v9027_v27  ;;  %v9798_v2 = vld [vmem:[%s15249_s5 + $0x4b4] sm:$0xf0] }
 0x4ae   : > { %7159 = vmatpush.bf16.msra.mxu2 %v8892_v50  ;;  %7172 = vmatpush.bf16.msra.mxu3 %v8956_v38  ;;  %v9171_v50 = vld [vmem:[%s15249_s5 + $0x5e0] sm:$0xf]  ;;  %v9836_v38 = vld [vmem:[%s15249_s5 + $0x5e4] sm:$0xf0]  ;;  %v9108_v14 = vor.u32 %v9820_v13, %v9107_v63  ;;  %v9147_v28 = vld [vmem:[%s15249_s5 + $0x5b0] sm:$0xf]  ;;  %v9020_v25 = vor.u32 %v9798_v2, %v9019_v19 }
 0x4af   : > { %v9172_v41 = vor.u32 %v9836_v38, %v9171_v50  ;;  %v9816_v26 = vld [vmem:[%s15249_s5 + $0x544] sm:$0xf0]  ;;  %v9830_v48 = vld [vmem:[%s15249_s5 + $0x5b4] sm:$0xf0]  ;;  %v9011_v20 = vld [vmem:[%s15249_s5 + $0x4a0] sm:$0xf] }
 0x4b0   : > { %v9832_v62 = vld [vmem:[%s15249_s5 + $0x5c4] sm:$0xf0]  ;;  %v9148_v0 = vor.u32 %v9830_v48, %v9147_v28  ;;  %v9075_v36 = vld [vmem:[%s15249_s5 + $0x520] sm:$0xf]  ;;  %v9794_v58 = vld [vmem:[%s15249_s5 + $0x494] sm:$0xf0] }
 0x4b1   : > { %7147 = vmatpush.bf16.msra.mxu1 %v8820_v23  ;;  %v9834_v23 = vld [vmem:[%s15249_s5 + $0x5d4] sm:$0xf0]  ;;  %v9156_v40 = vor.u32 %v9832_v62, %v9155_v18  ;;  %v9796_v8 = vld [vmem:[%s15249_s5 + $0x4a4] sm:$0xf0]  ;;  %v9131_v5 = vld [vmem:[%s15249_s5 + $0x590] sm:$0xf] }
 0x4b2   : > { %7160 = vmatpush.bf16.msra.mxu2 %v8884_v46  ;;  %7173 = vmatpush.bf16.msra.mxu3 %v8948_v1  ;;  %v9036_v46 = vor.u32 %v9802_v52, %v9035_v7  ;;  %v9100_v1 = vor.u32 %v9818_v6, %v9099_v22  ;;  %v9164_v39 = vor.u32 %v9834_v23, %v9163_v10  ;;  %v9812_v29 = vld [vmem:[%s15249_s5 + $0x524] sm:$0xf0]  ;;  %v9810_v61 = vld [vmem:[%s15249_s5 + $0x514] sm:$0xf0]  ;;  %v9059_v63 = vld [vmem:[%s15249_s5 + $0x500] sm:$0xf] }
 0x4b3   : > { %v9828_v11 = vld [vmem:[%s15249_s5 + $0x5a4] sm:$0xf0]  ;;  %v9012_v45 = vor.u32 %v9796_v8, %v9011_v20  ;;  %v9826_v44 = vld [vmem:[%s15249_s5 + $0x594] sm:$0xf0]  ;;  %v9123_v50 = vld [vmem:[%s15249_s5 + $0x580] sm:$0xf] }
 0x4b4   : > { %v9792_v15 = vld [vmem:[%s15249_s5 + $0x484] sm:$0xf0]  ;;  %v9243_v7 = vld [vmem:[%s15249_s5 + $0x670] sm:$0xf]  ;;  %v5461_v52 = vrot.slane %v13877_v47, 1  ;;  %v9132_v22 = vor.u32 %v9826_v44, %v9131_v5  ;;  %v5453_v10 = vrot.slane %v13929_v3, 1 }
 0x4b5   : > { %7148 = vmatpush.bf16.msra.mxu1 %v8812_v9  ;;  %v9092_v9 = vor.u32 %v9816_v26, %v9091_v34  ;;  %v9808_v13 = vld [vmem:[%s15249_s5 + $0x504] sm:$0xf0]  ;;  %v9307_v6 = vld [vmem:[%s15249_s5 + $0x6f0] sm:$0xf]  ;;  %v5455_v23 = vrot.slane %v13879_v55, 7  ;;  %v5457_v27 = vrot.slane %v13901_v59, 6 }
 0x4b6   : > { %7161 = vmatpush.bf16.msra.mxu2 %v8876_v56  ;;  %7174 = vmatpush.bf16.msra.mxu3 %v8940_v60  ;;  %v9083_v56 = vld [vmem:[%s15249_s5 + $0x530] sm:$0xf]  ;;  %v9814_v60 = vld [vmem:[%s15249_s5 + $0x534] sm:$0xf0]  ;;  %v9824_v38 = vld [vmem:[%s15249_s5 + $0x584] sm:$0xf0]  ;;  %v9060_v18 = vor.u32 %v9808_v13, %v9059_v63  ;;  %v5454_v2 = vsel %vm5380_vm8, %v13877_v47, %v5453_v10 }
 0x4b7   : > { %v9084_v57 = vor.u32 %v9814_v60, %v9083_v56  ;;  %v5464_v53 = vrot.slane %v13901_v59, 7  ;;  %v5470_v34 = vrot.slane %v13879_v55, 1  ;;  %v9124_v62 = vor.u32 %v9824_v38, %v9123_v50  ;;  %v9291_v63 = vld [vmem:[%s15249_s5 + $0x6d0] sm:$0xf]  ;;  %v9866_v13 = vld [vmem:[%s15249_s5 + $0x6d4] sm:$0xf0] }
 0x4b8   : > { %v5467_v19 = vrot.slane %v13929_v3, 3  ;;  %v5456_v28 = vsel %vm5383_vm9, %v5455_v23, %v5454_v2  ;;  %v9355_v50 = vld [vmem:[%s15249_s5 + $0x750] sm:$0xf]  ;;  %v9882_v38 = vld [vmem:[%s15249_s5 + $0x754] sm:$0xf0] }
 0x4b9   : > { %7149 = vmatpush.bf16.msra.mxu1 %v8804_v12  ;;  %v9139_v12 = vld [vmem:[%s15249_s5 + $0x5a0] sm:$0xf]  ;;  %v5458_v20 = vsel %vm5386_vm10, %v5457_v27, %v5456_v28  ;;  %v9880_v23 = vld [vmem:[%s15249_s5 + $0x744] sm:$0xf0] }
 0x4ba   : > { %7162 = vmatpush.bf16.msra.mxu2 %v8868_v21  ;;  %7175 = vmatpush.bf16.msra.mxu3 %v8932_v42  ;;  %v9076_v21 = vor.u32 %v9812_v29, %v9075_v36  ;;  %v9003_v42 = vld [vmem:[%s15249_s5 + $0x490] sm:$0xf]  ;;  %v9235_v36 = vld [vmem:[%s15249_s5 + $0x660] sm:$0xf]  ;;  %v9852_v29 = vld [vmem:[%s15249_s5 + $0x664] sm:$0xf0] }
 0x4bb   : > { %v9347_v10 = vld [vmem:[%s15249_s5 + $0x740] sm:$0xf]  ;;  %v9844_v2 = vld [vmem:[%s15249_s5 + $0x624] sm:$0xf0] }
 0x4bc   : > { %7150 = vmatmul.bf16.vlgmr.msra.gmra.mxu1 %v13968_v30  ;;  %v9348_v27 = vor.u32 %v9880_v23, %v9347_v10  ;;  %v9331_v28 = vld [vmem:[%s15249_s5 + $0x720] sm:$0xf]  ;;  %v5485_v10 = vrot.slane %v13879_v55, 3  ;;  %v5493_v23 = vrot.slane %v13879_v55, 4 }
 0x4bd   : > { %7181 = vmatpush.bf16.msrb.mxu1 %v9052_v24  ;;  %7163 = vmatmul.bf16.vlgmr.msra.gmra.mxu2 %v13972_v4  ;;  %v9067_v24 = vld [vmem:[%s15249_s5 + $0x510] sm:$0xf] }
 0x4be   : > { %7194 = vmatpush.bf16.msrb.mxu2 %v9116_v32  ;;  %7207 = vmatpush.bf16.msrb.mxu3 %v9180_v31  ;;  %v9140_v32 = vor.u32 %v9828_v11, %v9139_v12  ;;  %v8995_v31 = vld [vmem:[%s15249_s5 + $0x480] sm:$0xf] }
 0x4bf   : > { %7176 = vmatmul.bf16.vlgmr.msra.gmra.mxu3 %v13974_v49  ;;  %v8996_v26 = vor.u32 %v9792_v15, %v8995_v31  ;;  %v9299_v12 = vld [vmem:[%s15249_s5 + $0x6e0] sm:$0xf]  ;;  %v9227_v31 = vld [vmem:[%s15249_s5 + $0x650] sm:$0xf]  ;;  %v9850_v15 = vld [vmem:[%s15249_s5 + $0x654] sm:$0xf0] }
 0x4c1   : > { %7182 = vmatpush.bf16.msrb.mxu1 %v9044_v17  ;;  %v9004_v17 = vor.u32 %v9794_v58, %v9003_v42  ;;  %v9884_v42 = vld [vmem:[%s15249_s5 + $0x764] sm:$0xf0]  ;;  %v14144_v58 = vpack.c.bf16 %v5458_v20, %v5458_v20  ;;  %v9842_v20 = vld [vmem:[%s15249_s5 + $0x614] sm:$0xf0] }
 0x4c2   : > { %7195 = vmatpush.bf16.msrb.mxu2 %v9108_v14  ;;  %7208 = vmatpush.bf16.msrb.mxu3 %v9172_v41  ;;  %v9068_v14 = vor.u32 %v9810_v61, %v9067_v24  ;;  %v9854_v41 = vld [vmem:[%s15249_s5 + $0x674] sm:$0xf0] }
 0x4c5   : > { %7183 = vmatpush.bf16.msrb.mxu1 %v9036_v46  ;;  %v5468_v46 = vrot.slane %v13877_v47, 2 }
 0x4c6   : > { %7196 = vmatpush.bf16.msrb.mxu2 %v9100_v1  ;;  %7209 = vmatpush.bf16.msrb.mxu3 %v9164_v39  ;;  %v9870_v1 = vld [vmem:[%s15249_s5 + $0x6f4] sm:$0xf0]  ;;  %v5460_v39 = vrot.slane %v13929_v3, 2 }
 0x4c7   : > { %v9308_v60 = vor.u32 %v9870_v1, %v9307_v6  ;;  %v9864_v6 = vld [vmem:[%s15249_s5 + $0x6c4] sm:$0xf0] }
 0x4c8   : > { %v5462_v56 = vsel %vm5380_vm8, %v5461_v52, %v5460_v39  ;;  %v9848_v52 = vld [vmem:[%s15249_s5 + $0x644] sm:$0xf0]  ;;  %v9211_v39 = vld [vmem:[%s15249_s5 + $0x630] sm:$0xf] }
 0x4c9   : > { %7184 = vmatpush.bf16.msrb.mxu1 %v9028_v43  ;;  %v9371_v43 = vld [vmem:[%s15249_s5 + $0x770] sm:$0xf]  ;;  %v5463_v48 = vsel %vm5383_vm9, %v13879_v55, %v5462_v56  ;;  %v9267_v56 = vld [vmem:[%s15249_s5 + $0x6a0] sm:$0xf] }
 0x4ca   : > { %7197 = vmatpush.bf16.msrb.mxu2 %v9092_v9  ;;  %7210 = vmatpush.bf16.msrb.mxu3 %v9156_v40  ;;  %v9886_v9 = vld [vmem:[%s15249_s5 + $0x774] sm:$0xf0]  ;;  %v9244_v40 = vor.u32 %v9854_v41, %v9243_v7  ;;  %v9356_v7 = vor.u32 %v9882_v38, %v9355_v50  ;;  %v9219_v41 = vld [vmem:[%s15249_s5 + $0x640] sm:$0xf]  ;;  %v5475_v50 = vrot.slane %v13877_v47, 3 }
 0x4cd   : > { %7185 = vmatpush.bf16.msrb.mxu1 %v9020_v25  ;;  %v5469_v25 = vsel %vm5380_vm8, %v5468_v46, %v5467_v19  ;;  %v9220_v46 = vor.u32 %v9848_v52, %v9219_v41  ;;  %v5491_v41 = vrot.slane %v13877_v47, 5  ;;  %v9661_v52 = vld [vmem:[%s15249_s5 + $0x74] sm:$0xf] }
 0x4ce   : > { %7198 = vmatpush.bf16.msrb.mxu2 %v9084_v57  ;;  %7211 = vmatpush.bf16.msrb.mxu3 %v9148_v0  ;;  %v9372_v57 = vor.u32 %v9886_v9, %v9371_v43  ;;  %v5465_v0 = vsel %vm5386_vm10, %v5464_v53, %v5463_v48  ;;  %v5471_v8 = vsel %vm5383_vm9, %v5470_v34, %v5469_v25  ;;  %v9846_v53 = vld [vmem:[%s15249_s5 + $0x634] sm:$0xf0]  ;;  %v9275_v34 = vld [vmem:[%s15249_s5 + $0x6b0] sm:$0xf]  ;;  %v9876_v48 = vld [vmem:[%s15249_s5 + $0x724] sm:$0xf0] }
 0x4cf   : > { %v5472_v11 = vsel %vm5386_vm10, %v13901_v59, %v5471_v8  ;;  %v14146_v24 = vpack.c.bf16 %v5465_v0, %v5465_v0  ;;  %v9212_v43 = vor.u32 %v9846_v53, %v9211_v39  ;;  %v9259_v0 = vld [vmem:[%s15249_s5 + $0x690] sm:$0xf]  ;;  %v5490_v39 = vrot.slane %v13929_v3, 6 }
 0x4d0   : > { %v14148_v61 = vpack.c.bf16 %v5472_v11, %v5472_v11  ;;  %v9874_v11 = vld [vmem:[%s15249_s5 + $0x714] sm:$0xf0]  ;;  %v5495_v53 = vrot.slane %v13901_v59, 3 }
 0x4d1   : > { %7186 = vmatpush.bf16.msrb.mxu1 %v9012_v45  ;;  %v9868_v45 = vld [vmem:[%s15249_s5 + $0x6e4] sm:$0xf0] }
 0x4d2   : > { %7199 = vmatpush.bf16.msrb.mxu2 %v9076_v21  ;;  %7212 = vmatpush.bf16.msrb.mxu3 %v9140_v32  ;;  %v9363_v21 = vld [vmem:[%s15249_s5 + $0x760] sm:$0xf]  ;;  %v9236_v32 = vor.u32 %v9852_v29, %v9235_v36  ;;  %v9300_v5 = vor.u32 %v9868_v45, %v9299_v12  ;;  %v9332_v36 = vor.u32 %v9876_v48, %v9331_v28  ;;  %v9858_v29 = vld [vmem:[%s15249_s5 + $0x694] sm:$0xf0]  ;;  %v9323_v12 = vld [vmem:[%s15249_s5 + $0x710] sm:$0xf] }
 0x4d3   : > { %v9364_v44 = vor.u32 %v9884_v42, %v9363_v21  ;;  %v9187_v45 = vld [vmem:[%s15249_s5 + $0x600] sm:$0xf]  ;;  %v9840_v21 = vld [vmem:[%s15249_s5 + $0x604] sm:$0xf0] }
 0x4d4   : > { %v9251_v42 = vld [vmem:[%s15249_s5 + $0x680] sm:$0xf]  ;;  %v9188_v38 = vor.u32 %v9840_v21, %v9187_v45 }
 0x4d5   : > { %7187 = vmatpush.bf16.msrb.mxu1 %v9004_v17  ;;  %v9228_v17 = vor.u32 %v9850_v15, %v9227_v31  ;;  %v9260_v31 = vor.u32 %v9858_v29, %v9259_v0  ;;  %v9324_v15 = vor.u32 %v9874_v11, %v9323_v12  ;;  %v8469_v29 = vld [vmem:[%s15249_s5 + $0x68] sm:$0xf0]  ;;  %v9675_v12 = vld [vmem:[%s15249_s5 + $0xe4] sm:$0xf] }
 0x4d6   : > { %7200 = vmatpush.bf16.msrb.mxu2 %v9068_v14  ;;  %7213 = vmatpush.bf16.msrb.mxu3 %v9132_v22  ;;  %v9292_v14 = vor.u32 %v9866_v13, %v9291_v63  ;;  %v9283_v22 = vld [vmem:[%s15249_s5 + $0x6c0] sm:$0xf]  ;;  %v9872_v63 = vld [vmem:[%s15249_s5 + $0x704] sm:$0xf0]  ;;  %v9435_v13 = vld [vmem:[%s15249_s5 + $0x7f0] sm:$0xf] }
 0x4d7   : > { %v9284_v1 = vor.u32 %v9864_v6, %v9283_v22  ;;  %v5474_v22 = vrot.slane %v13929_v3, 4  ;;  %v5479_v6 = vrot.slane %v13901_v59, 1  ;;  %v8533_v11 = vld [vmem:[%s15249_s5 + $0xe8] sm:$0xf0] }
 0x4d9   : > { %7188 = vmatpush.bf16.msrb.mxu1 %v8996_v26  ;;  %v9862_v26 = vld [vmem:[%s15249_s5 + $0x6b4] sm:$0xf0] }
 0x4da   : > { %7201 = vmatpush.bf16.msrb.mxu2 %v9060_v18  ;;  %7214 = vmatpush.bf16.msrb.mxu3 %v9124_v62  ;;  %v9339_v18 = vld [vmem:[%s15249_s5 + $0x730] sm:$0xf]  ;;  %v9878_v62 = vld [vmem:[%s15249_s5 + $0x734] sm:$0xf0]  ;;  %v9276_v9 = vor.u32 %v9862_v26, %v9275_v34 }
 0x4db   : > { %v9340_v19 = vor.u32 %v9878_v62, %v9339_v18  ;;  %v9677_v62 = vld [vmem:[%s15249_s5 + $0xf4] sm:$0xf] }
 0x4dc   : > { %7189 = vmatmul.bf16.vlgmr.msrb.gmra.mxu1 %v14144_v58 }
 0x4dd   : > { %7220 = vmatpush.bf16.msra.mxu1 %v9244_v40  ;;  %7202 = vmatmul.bf16.vlgmr.msrb.gmra.mxu2 %v14146_v24  ;;  %v9203_v40 = vld [vmem:[%s15249_s5 + $0x620] sm:$0xf] }
 0x4de   : > { %7233 = vmatpush.bf16.msra.mxu2 %v9308_v60  ;;  %7246 = vmatpush.bf16.msra.mxu3 %v9372_v57  ;;  %v9860_v60 = vld [vmem:[%s15249_s5 + $0x6a4] sm:$0xf0]  ;;  %v9204_v25 = vor.u32 %v9844_v2, %v9203_v40  ;;  %v9195_v57 = vld [vmem:[%s15249_s5 + $0x610] sm:$0xf]  ;;  %v5492_v2 = vsel %vm5380_vm8, %v5491_v41, %v5490_v39 }
 0x4df   : > { %7215 = vmatmul.bf16.vlgmr.msrb.gmra.mxu3 %v14148_v61  ;;  %v9268_v8 = vor.u32 %v9860_v60, %v9267_v56  ;;  %v5494_v48 = vsel %vm5383_vm9, %v5493_v23, %v5492_v2  ;;  %v8517_v23 = vld [vmem:[%s15249_s5 + $0xc8] sm:$0xf0]  ;;  %v9892_v2 = vld [vmem:[%s15249_s5 + $0x7a4] sm:$0xf0] }
 0x4e1   : > { %7221 = vmatpush.bf16.msra.mxu1 %v9236_v32  ;;  %v9856_v32 = vld [vmem:[%s15249_s5 + $0x684] sm:$0xf0] }
 0x4e2   : > { %7234 = vmatpush.bf16.msra.mxu2 %v9300_v5  ;;  %7247 = vmatpush.bf16.msra.mxu3 %v9364_v44  ;;  %v9315_v5 = vld [vmem:[%s15249_s5 + $0x700] sm:$0xf]  ;;  %v9196_v44 = vor.u32 %v9842_v20, %v9195_v57  ;;  %v9252_v34 = vor.u32 %v9856_v32, %v9251_v42  ;;  %v9900_v57 = vld [vmem:[%s15249_s5 + $0x7e4] sm:$0xf0] }
 0x4e3   : > { %v9316_v26 = vor.u32 %v9872_v63, %v9315_v5  ;;  %v9657_v63 = vld [vmem:[%s15249_s5 + $0x54] sm:$0xf] }
 0x4e5   : > { %7222 = vmatpush.bf16.msra.mxu1 %v9228_v17  ;;  %v9902_v17 = vld [vmem:[%s15249_s5 + $0x7f4] sm:$0xf0] }
 0x4e6   : > { %7235 = vmatpush.bf16.msra.mxu2 %v9292_v14  ;;  %7248 = vmatpush.bf16.msra.mxu3 %v9356_v7  ;;  %v5477_v14 = vrot.slane %v13879_v55, 2  ;;  %v5483_v7 = vrot.slane %v13877_v47, 4  ;;  %v9436_v18 = vor.u32 %v9902_v17, %v9435_v13  ;;  %v8461_v13 = vld [vmem:[%s15249_s5 + $0x58] sm:$0xf0] }
 0x4e9   : > { %7223 = vmatpush.bf16.msra.mxu1 %v9220_v46  ;;  %v8477_v46 = vld [vmem:[%s15249_s5 + $0x78] sm:$0xf0] }
 0x4ea   : > { %7236 = vmatpush.bf16.msra.mxu2 %v9284_v1  ;;  %7249 = vmatpush.bf16.msra.mxu3 %v9348_v27  ;;  %v5482_v1 = vrot.slane %v13929_v3, 5  ;;  %v5487_v27 = vrot.slane %v13901_v59, 2  ;;  %v8480_v56 = vor.u32 %v9661_v52, %v8477_v46  ;;  %v9896_v52 = vld [vmem:[%s15249_s5 + $0x7c4] sm:$0xf0] }
 0x4ec   : > { %v5484_v40 = vsel %vm5380_vm8, %v5483_v7, %v5482_v1  ;;  %v9411_v7 = vld [vmem:[%s15249_s5 + $0x7c0] sm:$0xf] }
 0x4ed   : > { %7224 = vmatpush.bf16.msra.mxu1 %v9212_v43  ;;  %v8541_v43 = vld [vmem:[%s15249_s5 + $0xf8] sm:$0xf0]  ;;  %v5486_v28 = vsel %vm5383_vm9, %v5485_v10, %v5484_v40  ;;  %v9671_v10 = vld [vmem:[%s15249_s5 + $0xc4] sm:$0xf]  ;;  %v9412_v46 = vor.u32 %v9896_v52, %v9411_v7  ;;  %v5501_v7 = vrot.slane %v13879_v55, 5  ;;  %v5498_v52 = vrot.slane %v13929_v3, 7 }
 0x4ee   : > { %7237 = vmatpush.bf16.msra.mxu2 %v9276_v9  ;;  %7250 = vmatpush.bf16.msra.mxu3 %v9340_v19  ;;  %v5476_v9 = vsel %vm5380_vm8, %v5475_v50, %v5474_v22  ;;  %v8544_v20 = vor.u32 %v9677_v62, %v8541_v43  ;;  %v5488_v0 = vsel %vm5386_vm10, %v5487_v27, %v5486_v28  ;;  %v9673_v50 = vld [vmem:[%s15249_s5 + $0xd4] sm:$0xf]  ;;  %v9655_v22 = vld [vmem:[%s15249_s5 + $0x44] sm:$0xf]  ;;  %v9403_v27 = vld [vmem:[%s15249_s5 + $0x7b0] sm:$0xf] }
 0x4ef   : > { %v5478_v19 = vsel %vm5383_vm9, %v5477_v14, %v5476_v9  ;;  %v14320_v42 = vpack.c.bf16 %v5488_v0, %v5488_v0  ;;  %v8464_v14 = vor.u32 %v9657_v63, %v8461_v13  ;;  %v8520_v39 = vor.u32 %v9671_v10, %v8517_v23  ;;  %v8509_v62 = vld [vmem:[%s15249_s5 + $0xb8] sm:$0xf0]  ;;  %v9667_v28 = vld [vmem:[%s15249_s5 + $0xa4] sm:$0xf]  ;;  %v8421_v63 = vld [vmem:[%s15249_s5 + $0x8] sm:$0xf0] }
 0x4f0   : > { %v5480_v60 = vsel %vm5386_vm10, %v5479_v6, %v5478_v19  ;;  %v8453_v6 = vld [vmem:[%s15249_s5 + $0x48] sm:$0xf0]  ;;  %v9395_v19 = vld [vmem:[%s15249_s5 + $0x7a0] sm:$0xf]  ;;  %v9663_v13 = vld [vmem:[%s15249_s5 + $0x84] sm:$0xf] }
 0x4f1   : > { %7225 = vmatpush.bf16.msra.mxu1 %v9204_v25  ;;  %v9427_v25 = vld [vmem:[%s15249_s5 + $0x7e0] sm:$0xf]  ;;  %v14318_v45 = vpack.c.bf16 %v5480_v60, %v5480_v60  ;;  %v8456_v1 = vor.u32 %v9655_v22, %v8453_v6  ;;  %v8437_v60 = vld [vmem:[%s15249_s5 + $0x28] sm:$0xf0]  ;;  %v5503_v22 = vrot.slane %v13901_v59, 4 }
 0x4f2   : > { %7238 = vmatpush.bf16.msra.mxu2 %v9268_v8  ;;  %7251 = vmatpush.bf16.msra.mxu3 %v9332_v36  ;;  %v5496_v8 = vsel %vm5386_vm10, %v5495_v53, %v5494_v48  ;;  %v9659_v36 = vld [vmem:[%s15249_s5 + $0x64] sm:$0xf]  ;;  %v9428_v21 = vor.u32 %v9900_v57, %v9427_v25  ;;  %v9894_v53 = vld [vmem:[%s15249_s5 + $0x7b4] sm:$0xf0]  ;;  %v8501_v48 = vld [vmem:[%s15249_s5 + $0xa8] sm:$0xf0]  ;;  %v9396_v25 = vor.u32 %v9892_v2, %v9395_v19 }
 0x4f3   : > { %v14322_v32 = vpack.c.bf16 %v5496_v8, %v5496_v8  ;;  %v8472_v5 = vor.u32 %v9659_v36, %v8469_v29  ;;  %v9404_v43 = vor.u32 %v9894_v53, %v9403_v27  ;;  %v8504_v0 = vor.u32 %v9667_v28, %v8501_v48  ;;  %v9890_v8 = vld [vmem:[%s15249_s5 + $0x794] sm:$0xf0]  ;;  %v9649_v36 = vld [vmem:[%s15249_s5 + $0x14] sm:$0xf]  ;;  %v8429_v29 = vld [vmem:[%s15249_s5 + $0x18] sm:$0xf0] }
 0x4f4   : > { %v8669_v6 = vld [vmem:[%s15249_s5 + $0x1f8] sm:$0xf0]  ;;  %v9725_v55 = vld [vmem:[%s15249_s5 + $0x274] sm:$0xf]  ;;  %v8725_v19 = vld [vmem:[%s15249_s5 + $0x268] sm:$0xf0] }
 0x4f5   : > { %7226 = vmatpush.bf16.msra.mxu1 %v9196_v44  ;;  %v9419_v44 = vld [vmem:[%s15249_s5 + $0x7d0] sm:$0xf]  ;;  %v8733_v10 = vld [vmem:[%s15249_s5 + $0x278] sm:$0xf0]  ;;  %v9689_v28 = vld [vmem:[%s15249_s5 + $0x154] sm:$0xf] }
 0x4f6   : > { %7239 = vmatpush.bf16.msra.mxu2 %v9260_v31  ;;  %7252 = vmatpush.bf16.msra.mxu3 %v9324_v15  ;;  %v8536_v31 = vor.u32 %v9675_v12, %v8533_v11  ;;  %v9898_v15 = vld [vmem:[%s15249_s5 + $0x7d4] sm:$0xf0]  ;;  %v9665_v12 = vld [vmem:[%s15249_s5 + $0x94] sm:$0xf]  ;;  %v8493_v11 = vld [vmem:[%s15249_s5 + $0x98] sm:$0xf0]  ;;  %v8736_v53 = vor.u32 %v9725_v55, %v8733_v10 }
 0x4f7   : > { %v9420_v17 = vor.u32 %v9898_v15, %v9419_v44  ;;  %v9647_v44 = vld [vmem:[%s15249_s5 + $0x4] sm:$0xf]  ;;  %v8432_v15 = vor.u32 %v9649_v36, %v8429_v29  ;;  %v8589_v48 = vld [vmem:[%s15249_s5 + $0x158] sm:$0xf0] }
 0x4f9   : > { %7227 = vmatpush.bf16.msra.mxu1 %v9188_v38  ;;  %v8525_v38 = vld [vmem:[%s15249_s5 + $0xd8] sm:$0xf0] }
 0x4fa   : > { %7240 = vmatpush.bf16.msra.mxu2 %v9252_v34  ;;  %7253 = vmatpush.bf16.msra.mxu3 %v9316_v26  ;;  %v8528_v41 = vor.u32 %v9673_v50, %v8525_v38  ;;  %v9653_v34 = vld [vmem:[%s15249_s5 + $0x34] sm:$0xf]  ;;  %v8445_v26 = vld [vmem:[%s15249_s5 + $0x38] sm:$0xf0]  ;;  %v5499_v50 = vrot.slane %v13877_v47, 6  ;;  %v8496_v38 = vor.u32 %v9665_v12, %v8493_v11 }
 0x4fb   : > { %v8448_v9 = vor.u32 %v9653_v34, %v8445_v26  ;;  %v9709_v47 = vld [vmem:[%s15249_s5 + $0x1f4] sm:$0xf]  ;;  %v9691_v26 = vld [vmem:[%s15249_s5 + $0x164] sm:$0xf]  ;;  %v8581_v11 = vld [vmem:[%s15249_s5 + $0x148] sm:$0xf0] }
 0x4fc   : > { %7228 = vmatmul.bf16.vlgmr.msra.gmra.mxu1 %v14318_v45  ;;  %v5500_v3 = vsel %vm5380_vm8, %v5499_v50, %v5498_v52  ;;  %v9687_v12 = vld [vmem:[%s15249_s5 + $0x144] sm:$0xf] }
 0x4fd   : > { %7259 = vmatpush.bf16.msrb.mxu1 %v9436_v18  ;;  %7241 = vmatmul.bf16.vlgmr.msra.gmra.mxu2 %v14320_v42  ;;  %v9669_v18 = vld [vmem:[%s15249_s5 + $0xb4] sm:$0xf]  ;;  %v5502_v27 = vsel %vm5383_vm9, %v5501_v7, %v5500_v3  ;;  %v8637_v7 = vld [vmem:[%s15249_s5 + $0x1b8] sm:$0xf0]  ;;  %v9683_v3 = vld [vmem:[%s15249_s5 + $0x124] sm:$0xf] }
 0x4fe   : > { %7272 = vmatpush.bf16.msrb.mxu2 %v8480_v56  ;;  %7285 = vmatpush.bf16.msrb.mxu3 %v8544_v20  ;;  %v8512_v40 = vor.u32 %v9669_v18, %v8509_v62  ;;  %v9651_v56 = vld [vmem:[%s15249_s5 + $0x24] sm:$0xf]  ;;  %v9387_v20 = vld [vmem:[%s15249_s5 + $0x790] sm:$0xf]  ;;  %v5504_v34 = vsel %vm5386_vm10, %v5503_v22, %v5502_v27  ;;  %v8597_v18 = vld [vmem:[%s15249_s5 + $0x168] sm:$0xf0] }
 0x4ff   : > { %7254 = vmatmul.bf16.vlgmr.msra.gmra.mxu3 %v14322_v32  ;;  %v8440_v57 = vor.u32 %v9651_v56, %v8437_v60  ;;  %v9707_v62 = vld [vmem:[%s15249_s5 + $0x1e4] sm:$0xf]  ;;  %v8600_v2 = vor.u32 %v9691_v26, %v8597_v18 }
 0x501   : > { %7260 = vmatpush.bf16.msrb.mxu1 %v9428_v21  ;;  %v9379_v21 = vld [vmem:[%s15249_s5 + $0x780] sm:$0xf] }
 0x502   : > { %7273 = vmatpush.bf16.msrb.mxu2 %v8472_v5  ;;  %7286 = vmatpush.bf16.msrb.mxu3 %v8536_v31  ;;  %v9888_v5 = vld [vmem:[%s15249_s5 + $0x784] sm:$0xf0]  ;;  %v9388_v31 = vor.u32 %v9890_v8, %v9387_v20  ;;  %v9721_v20 = vld [vmem:[%s15249_s5 + $0x254] sm:$0xf]  ;;  %v8592_v8 = vor.u32 %v9689_v28, %v8589_v48  ;;  %v8685_v28 = vld [vmem:[%s15249_s5 + $0x218] sm:$0xf0] }
 0x503   : > { %v9380_v23 = vor.u32 %v9888_v5, %v9379_v21  ;;  %v8645_v5 = vld [vmem:[%s15249_s5 + $0x1c8] sm:$0xf0] }
 0x505   : > { %7261 = vmatpush.bf16.msrb.mxu1 %v9420_v17  ;;  %v8485_v17 = vld [vmem:[%s15249_s5 + $0x88] sm:$0xf0] }
 0x506   : > { %7274 = vmatpush.bf16.msrb.mxu2 %v8464_v14  ;;  %7287 = vmatpush.bf16.msrb.mxu3 %v8528_v41  ;;  %v9693_v14 = vld [vmem:[%s15249_s5 + $0x174] sm:$0xf]  ;;  %v8605_v41 = vld [vmem:[%s15249_s5 + $0x178] sm:$0xf0]  ;;  %v8488_v59 = vor.u32 %v9663_v13, %v8485_v17 }
 0x507   : > { %v8573_v17 = vld [vmem:[%s15249_s5 + $0x138] sm:$0xf0] }
 0x509   : > { %7262 = vmatpush.bf16.msrb.mxu1 %v9412_v46  ;;  %v8424_v46 = vor.u32 %v9647_v44, %v8421_v63  ;;  %v9719_v44 = vld [vmem:[%s15249_s5 + $0x244] sm:$0xf]  ;;  %v8584_v63 = vor.u32 %v9687_v12, %v8581_v11  ;;  %v8613_v12 = vld [vmem:[%s15249_s5 + $0x188] sm:$0xf0] }
 0x50a   : > { %7275 = vmatpush.bf16.msrb.mxu2 %v8456_v1  ;;  %7288 = vmatpush.bf16.msrb.mxu3 %v8520_v39  ;;  %v8608_v1 = vor.u32 %v9693_v14, %v8605_v41  ;;  %v8672_v39 = vor.u32 %v9709_v47, %v8669_v6  ;;  %v9701_v14 = vld [vmem:[%s15249_s5 + $0x1b4] sm:$0xf]  ;;  %v8701_v47 = vld [vmem:[%s15249_s5 + $0x238] sm:$0xf0] }
 0x50b   : > { %v9717_v41 = vld [vmem:[%s15249_s5 + $0x234] sm:$0xf] }
 0x50d   : > { %7263 = vmatpush.bf16.msrb.mxu1 %v9404_v43  ;;  %v8661_v43 = vld [vmem:[%s15249_s5 + $0x1e8] sm:$0xf0] }
 0x50e   : > { %7276 = vmatpush.bf16.msrb.mxu2 %v8448_v9  ;;  %7289 = vmatpush.bf16.msrb.mxu3 %v8512_v40  ;;  %v9723_v9 = vld [vmem:[%s15249_s5 + $0x264] sm:$0xf]  ;;  %v14478_v40 = vpack.c.bf16 %v5504_v34, %v5504_v34  ;;  %v8664_v56 = vor.u32 %v9707_v62, %v8661_v43  ;;  %v8693_v34 = vld [vmem:[%s15249_s5 + $0x228] sm:$0xf0] }
 0x50f   : > { %v8728_v60 = vor.u32 %v9723_v9, %v8725_v19  ;;  %v9681_v9 = vld [vmem:[%s15249_s5 + $0x114] sm:$0xf]  ;;  %v8557_v19 = vld [vmem:[%s15249_s5 + $0x118] sm:$0xf0] }
 0x511   : > { %7264 = vmatpush.bf16.msrb.mxu1 %v9396_v25  ;;  %v9705_v25 = vld [vmem:[%s15249_s5 + $0x1d4] sm:$0xf] }
 0x512   : > { %7277 = vmatpush.bf16.msrb.mxu2 %v8440_v57  ;;  %7290 = vmatpush.bf16.msrb.mxu3 %v8504_v0  ;;  %v8653_v57 = vld [vmem:[%s15249_s5 + $0x1d8] sm:$0xf0] }
 0x513   : > { %v8717_v0 = vld [vmem:[%s15249_s5 + $0x258] sm:$0xf0]  ;;  %v8656_v36 = vor.u32 %v9705_v25, %v8653_v57  ;;  %v8560_v25 = vor.u32 %v9681_v9, %v8557_v19  ;;  %v9679_v57 = vld [vmem:[%s15249_s5 + $0x104] sm:$0xf] }
 0x514   : > { %v8720_v29 = vor.u32 %v9721_v20, %v8717_v0  ;;  %v8909_v9 = vld [vmem:[%s15249_s5 + $0x3d8] sm:$0xf0] }
 0x515   : > { %7265 = vmatpush.bf16.msrb.mxu1 %v9388_v31  ;;  %v8709_v31 = vld [vmem:[%s15249_s5 + $0x248] sm:$0xf0] }
 0x516   : > { %7278 = vmatpush.bf16.msrb.mxu2 %v8432_v15  ;;  %7291 = vmatpush.bf16.msrb.mxu3 %v8496_v38  ;;  %v8712_v50 = vor.u32 %v9719_v44, %v8709_v31  ;;  %v9685_v38 = vld [vmem:[%s15249_s5 + $0x134] sm:$0xf]  ;;  %v8797_v31 = vld [vmem:[%s15249_s5 + $0x2f8] sm:$0xf0] }
 0x517   : > { %v8576_v6 = vor.u32 %v9685_v38, %v8573_v17  ;;  %v8925_v38 = vld [vmem:[%s15249_s5 + $0x3f8] sm:$0xf0] }
 0x519   : > { %7266 = vmatpush.bf16.msrb.mxu1 %v9380_v23  ;;  %v7073_v21 = vpop.f32.mrf.mxu1  ;;  %v8640_v23 = vor.u32 %v9701_v14, %v8637_v7 }
 0x51a   : > { %7279 = vmatpush.bf16.msrb.mxu2 %v8424_v46  ;;  %7292 = vmatpush.bf16.msrb.mxu3 %v8488_v59  ;;  %v8704_v46 = vor.u32 %v9717_v41, %v8701_v47  ;;  %v8565_v59 = vld [vmem:[%s15249_s5 + $0x128] sm:$0xf0]  ;;  %v9739_v47 = vld [vmem:[%s15249_s5 + $0x2e4] sm:$0xf] }
 0x51b   : > { %v8568_v18 = vor.u32 %v9683_v3, %v8565_v59 }
 0x51c   : > { %7267 = vmatmul.bf16.vlgmr.msrb.gmra.mxu1 %v14478_v40 }
 0x51d   : > { %7298 = vmatpush.bf16.msra.mxu1 %v8608_v1  ;;  %7280 = vmatmul.bf16.vlgmr.msrb.gmra.mxu2 %v13732_v35  ;;  %v14504_v35 = vld [vmem:[%s15250_s6] sm:$0x3]  ;;  %v9699_v1 = vld [vmem:[%s15249_s5 + $0x1a4] sm:$0xf] }
 0x51e   : > { %7311 = vmatpush.bf16.msra.mxu2 %v8672_v39  ;;  %7324 = vmatpush.bf16.msra.mxu3 %v8736_v53  ;;  %v5780_v15 = vperm.slane %v14504_v35, 0  ;;  %v8629_v39 = vld [vmem:[%s15249_s5 + $0x1a8] sm:$0xf0]  ;;  %v9715_v53 = vld [vmem:[%s15249_s5 + $0x224] sm:$0xf] }
 0x51f   : > { %7293 = vmatmul.bf16.vlgmr.msrb.gmra.mxu3 %v13734_v54  ;;  %v9703_v54 = vld [vmem:[%s15249_s5 + $0x1c4] sm:$0xf]  ;;  %v7086_v22 = vpop.f32.mrf.mxu2  ;;  %v8632_v62 = vor.u32 %v9699_v1, %v8629_v39  ;;  %v8696_v43 = vor.u32 %v9715_v53, %v8693_v34  ;;  %v9737_v53 = vld [vmem:[%s15249_s5 + $0x2d4] sm:$0xf] }
 0x520   : > { %v8648_v13 = vor.u32 %v9703_v54, %v8645_v5  ;;  %v7074_v52 = vadd.f32 %v7073_v21, %v5780_v15  ;;  %v7099_v10 = vpop.f32.mrf.mxu3  ;;  %v9711_v54 = vld [vmem:[%s15249_s5 + $0x204] sm:$0xf]  ;;  %v8677_v21 = vld [vmem:[%s15249_s5 + $0x208] sm:$0xf0]  ;;  %v9741_v5 = vld [vmem:[%s15249_s5 + $0x2f4] sm:$0xf] }
 0x521   : > { %7299 = vmatpush.bf16.msra.mxu1 %v8600_v2  ;;  %v7075_v27 = vpop.f32.mrf.mxu1  ;;  %v9697_v2 = vld [vmem:[%s15249_s5 + $0x194] sm:$0xf]  ;;  %v8680_v14 = vor.u32 %v9711_v54, %v8677_v21  ;;  %v8800_v7 = vor.u32 %v9741_v5, %v8797_v31  ;;  %v8765_v54 = vld [vmem:[%s15249_s5 + $0x2b8] sm:$0xf0] }
 0x522   : > { %7312 = vmatpush.bf16.msra.mxu2 %v8664_v56  ;;  %7325 = vmatpush.bf16.msra.mxu3 %v8728_v60  ;;  %v7087_v55 = vadd.f32 %v7086_v22, %v7074_v52  ;;  %v8621_v56 = vld [vmem:[%s15249_s5 + $0x198] sm:$0xf0]  ;;  %v9713_v60 = vld [vmem:[%s15249_s5 + $0x214] sm:$0xf]  ;;  %v8789_v22 = vld [vmem:[%s15249_s5 + $0x2e8] sm:$0xf0] }
 0x523   : > { %v8624_v0 = vor.u32 %v9697_v2, %v8621_v56  ;;  %v9757_v15 = vld [vmem:[%s15249_s5 + $0x374] sm:$0xf]  ;;  %v8792_v27 = vor.u32 %v9739_v47, %v8789_v22  ;;  %v9735_v56 = vld [vmem:[%s15249_s5 + $0x2c4] sm:$0xf]  ;;  %v8829_v5 = vld [vmem:[%s15249_s5 + $0x338] sm:$0xf0] }
 0x524   : > { %v7100_v26 = vadd.f32 %v7099_v10, %v7087_v55  ;;  %v8853_v55 = vld [vmem:[%s15249_s5 + $0x368] sm:$0xf0]  ;;  %v9749_v21 = vld [vmem:[%s15249_s5 + $0x334] sm:$0xf]  ;;  %v8893_v31 = vld [vmem:[%s15249_s5 + $0x3b8] sm:$0xf0] }
 0x525   : > { %7300 = vmatpush.bf16.msra.mxu1 %v8592_v8  ;;  %v8688_v8 = vor.u32 %v9713_v60, %v8685_v28  ;;  %v9751_v60 = vld [vmem:[%s15249_s5 + $0x344] sm:$0xf]  ;;  %v8837_v28 = vld [vmem:[%s15249_s5 + $0x348] sm:$0xf0] }
 0x526   : > { %7313 = vmatpush.bf16.msra.mxu2 %v8656_v36  ;;  %7326 = vmatpush.bf16.msra.mxu3 %v8720_v29  ;;  %v8549_v36 = vld [vmem:[%s15249_s5 + $0x108] sm:$0xf0]  ;;  %v9695_v29 = vld [vmem:[%s15249_s5 + $0x184] sm:$0xf] }
 0x527   : > { %v7088_v48 = vpop.f32.mrf.mxu2  ;;  %v8616_v17 = vor.u32 %v9695_v29, %v8613_v12  ;;  %v9733_v29 = vld [vmem:[%s15249_s5 + $0x2b4] sm:$0xf] }
 0x528   : > { %v7101_v20 = vpop.f32.mrf.mxu3 }
 0x529   : > { %7301 = vmatpush.bf16.msra.mxu1 %v8584_v63  ;;  %v7112_v11 = vpop.f32.mrf.mxu1  ;;  %v8861_v63 = vld [vmem:[%s15249_s5 + $0x378] sm:$0xf0] }
 0x52a   : > { %7314 = vmatpush.bf16.msra.mxu2 %v8648_v13  ;;  %7327 = vmatpush.bf16.msra.mxu3 %v8712_v50  ;;  %v7113_v44 = vadd.f32 %v7112_v11, %v7100_v26  ;;  %v8552_v13 = vor.u32 %v9679_v57, %v8549_v36  ;;  %v9773_v50 = vld [vmem:[%s15249_s5 + $0x3f4] sm:$0xf]  ;;  %v8864_v41 = vor.u32 %v9757_v15, %v8861_v63  ;;  %v8901_v57 = vld [vmem:[%s15249_s5 + $0x3c8] sm:$0xf0] }
 0x52b   : > { %v8928_v52 = vor.u32 %v9773_v50, %v8925_v38  ;;  %v8840_v36 = vor.u32 %v9751_v60, %v8837_v28  ;;  %v8768_v15 = vor.u32 %v9733_v29, %v8765_v54  ;;  %v8832_v63 = vor.u32 %v9749_v21, %v8829_v5  ;;  %v8757_v38 = vld [vmem:[%s15249_s5 + $0x2a8] sm:$0xf0]  ;;  %v9803_v21 = vld [vmem:[%s15249_s5 + $0x4e4] sm:$0xf] }
 0x52c   : > { %v8981_v54 = vld [vmem:[%s15249_s5 + $0x468] sm:$0xf0] }
 0x52d   : > { %7302 = vmatpush.bf16.msra.mxu1 %v8576_v6  ;;  %v9755_v6 = vld [vmem:[%s15249_s5 + $0x364] sm:$0xf]  ;;  %v9045_v5 = vld [vmem:[%s15249_s5 + $0x4e8] sm:$0xf0] }
 0x52e   : > { %7315 = vmatpush.bf16.msra.mxu2 %v8640_v23  ;;  %7328 = vmatpush.bf16.msra.mxu3 %v8704_v46  ;;  %v9771_v23 = vld [vmem:[%s15249_s5 + $0x3e4] sm:$0xf]  ;;  %v8917_v46 = vld [vmem:[%s15249_s5 + $0x3e8] sm:$0xf0]  ;;  %v8856_v39 = vor.u32 %v9755_v6, %v8853_v55 }
 0x52f   : > { %v7125_v10 = vpop.f32.mrf.mxu2  ;;  %v8920_v26 = vor.u32 %v9771_v23, %v8917_v46  ;;  %v9729_v23 = vld [vmem:[%s15249_s5 + $0x294] sm:$0xf] }
 0x530   : > { %v7126_v3 = vadd.f32 %v7125_v10, %v7113_v44  ;;  %v7138_v59 = vpop.f32.mrf.mxu3  ;;  %v9765_v44 = vld [vmem:[%s15249_s5 + $0x3b4] sm:$0xf] }
 0x531   : > { %7303 = vmatpush.bf16.msra.mxu1 %v8568_v18  ;;  %v7114_v1 = vpop.f32.mrf.mxu1  ;;  %v8781_v18 = vld [vmem:[%s15249_s5 + $0x2d8] sm:$0xf0]  ;;  %v8896_v50 = vor.u32 %v9765_v44, %v8893_v31  ;;  %v9819_v44 = vld [vmem:[%s15249_s5 + $0x564] sm:$0xf]  ;;  %v9109_v31 = vld [vmem:[%s15249_s5 + $0x568] sm:$0xf0] }
 0x532   : > { %7316 = vmatpush.bf16.msra.mxu2 %v8632_v62  ;;  %7329 = vmatpush.bf16.msra.mxu3 %v8696_v43  ;;  %v7139_v34 = vadd.f32 %v7138_v59, %v7126_v3  ;;  %v9753_v62 = vld [vmem:[%s15249_s5 + $0x354] sm:$0xf]  ;;  %v8845_v43 = vld [vmem:[%s15249_s5 + $0x358] sm:$0xf0]  ;;  %v8784_v19 = vor.u32 %v9737_v53, %v8781_v18  ;;  %v9727_v18 = vld [vmem:[%s15249_s5 + $0x284] sm:$0xf] }
 0x533   : > { %v8848_v2 = vor.u32 %v9753_v62, %v8845_v43  ;;  %v8749_v3 = vld [vmem:[%s15249_s5 + $0x298] sm:$0xf0]  ;;  %v9745_v59 = vld [vmem:[%s15249_s5 + $0x314] sm:$0xf]  ;;  %v8741_v62 = vld [vmem:[%s15249_s5 + $0x288] sm:$0xf0] }
 0x534   : > { %v8813_v1 = vld [vmem:[%s15249_s5 + $0x318] sm:$0xf0]  ;;  %v9743_v43 = vld [vmem:[%s15249_s5 + $0x304] sm:$0xf] }
 0x535   : > { %7304 = vmatpush.bf16.msra.mxu1 %v8560_v25  ;;  %v9767_v25 = vld [vmem:[%s15249_s5 + $0x3c4] sm:$0xf]  ;;  %v8877_v53 = vld [vmem:[%s15249_s5 + $0x398] sm:$0xf0] }
 0x536   : > { %7317 = vmatpush.bf16.msra.mxu2 %v8624_v0  ;;  %7330 = vmatpush.bf16.msra.mxu3 %v8688_v8  ;;  %v8904_v11 = vor.u32 %v9767_v25, %v8901_v57  ;;  %v9821_v25 = vld [vmem:[%s15249_s5 + $0x574] sm:$0xf]  ;;  %v9117_v57 = vld [vmem:[%s15249_s5 + $0x578] sm:$0xf0] }
 0x537   : > { %v7127_v48 = vpop.f32.mrf.mxu2 }
 0x538   : > { %v7140_v20 = vpop.f32.mrf.mxu3  ;;  %v9053_v48 = vld [vmem:[%s15249_s5 + $0x4f8] sm:$0xf0] }
 0x539   : > { %7305 = vmatpush.bf16.msra.mxu1 %v8552_v13  ;;  %v7151_v0 = vpop.f32.mrf.mxu1  ;;  %v9731_v13 = vld [vmem:[%s15249_s5 + $0x2a4] sm:$0xf]  ;;  %v8744_v20 = vor.u32 %v9727_v18, %v8741_v62  ;;  %v9813_v18 = vld [vmem:[%s15249_s5 + $0x534] sm:$0xf]  ;;  %v9085_v62 = vld [vmem:[%s15249_s5 + $0x538] sm:$0xf0] }
 0x53a   : > { %7318 = vmatpush.bf16.msra.mxu2 %v8616_v17  ;;  %7331 = vmatpush.bf16.msra.mxu3 %v8680_v14  ;;  %v7152_v12 = vadd.f32 %v7151_v0, %v7139_v34  ;;  %v9747_v17 = vld [vmem:[%s15249_s5 + $0x324] sm:$0xf]  ;;  %v8821_v14 = vld [vmem:[%s15249_s5 + $0x328] sm:$0xf0]  ;;  %v8760_v55 = vor.u32 %v9731_v13, %v8757_v38  ;;  %v8752_v34 = vor.u32 %v9729_v23, %v8749_v3  ;;  %v8973_v38 = vld [vmem:[%s15249_s5 + $0x458] sm:$0xf0] }
 0x53b   : > { %v8824_v10 = vor.u32 %v9747_v17, %v8821_v14  ;;  %v9112_v13 = vor.u32 %v9819_v44, %v9109_v31  ;;  %v9801_v17 = vld [vmem:[%s15249_s5 + $0x4d4] sm:$0xf]  ;;  %v9037_v14 = vld [vmem:[%s15249_s5 + $0x4d8] sm:$0xf0]  ;;  %v9775_v44 = vld [vmem:[%s15249_s5 + $0x404] sm:$0xf] }
 0x53c   : > { %7306 = vmatmul.bf16.vlgmr.msra.gmra.mxu1 %v13736_v16  ;;  %v9769_v16 = vld [vmem:[%s15249_s5 + $0x3d4] sm:$0xf] }
 0x53d   : > { %7337 = vmatpush.bf16.msrb.mxu1 %v8800_v7  ;;  %7319 = vmatmul.bf16.vlgmr.msra.gmra.mxu2 %v13846_v33  ;;  %v8912_v33 = vor.u32 %v9769_v16, %v8909_v9  ;;  %v9763_v7 = vld [vmem:[%s15249_s5 + $0x3a4] sm:$0xf]  ;;  %v8805_v9 = vld [vmem:[%s15249_s5 + $0x308] sm:$0xf0] }
 0x53e   : > { %7350 = vmatpush.bf16.msrb.mxu2 %v8864_v41  ;;  %7363 = vmatpush.bf16.msrb.mxu3 %v8928_v52  ;;  %v8885_v41 = vld [vmem:[%s15249_s5 + $0x3a8] sm:$0xf0]  ;;  %v8808_v0 = vor.u32 %v9743_v43, %v8805_v9  ;;  %v9088_v9 = vor.u32 %v9813_v18, %v9085_v62  ;;  %v9833_v62 = vld [vmem:[%s15249_s5 + $0x5d4] sm:$0xf] }
 0x53f   : > { %7332 = vmatmul.bf16.vlgmr.msra.gmra.mxu3 %v13850_v51  ;;  %v8773_v51 = vld [vmem:[%s15249_s5 + $0x2c8] sm:$0xf0]  ;;  %v8888_v46 = vor.u32 %v9763_v7, %v8885_v41  ;;  %v9817_v7 = vld [vmem:[%s15249_s5 + $0x554] sm:$0xf]  ;;  %v9101_v41 = vld [vmem:[%s15249_s5 + $0x558] sm:$0xf0] }
 0x540   : > { %v8776_v8 = vor.u32 %v9735_v56, %v8773_v51  ;;  %v7164_v47 = vpop.f32.mrf.mxu2  ;;  %v9789_v56 = vld [vmem:[%s15249_s5 + $0x474] sm:$0xf] }
 0x541   : > { %7338 = vmatpush.bf16.msrb.mxu1 %v8792_v27  ;;  %v7165_v22 = vadd.f32 %v7164_v47, %v7152_v12  ;;  %v7153_v6 = vpop.f32.mrf.mxu1  ;;  %v9805_v51 = vld [vmem:[%s15249_s5 + $0x4f4] sm:$0xf]  ;;  %v9120_v12 = vor.u32 %v9821_v25, %v9117_v57 }
 0x542   : > { %7351 = vmatpush.bf16.msrb.mxu2 %v8856_v39  ;;  %7364 = vmatpush.bf16.msrb.mxu3 %v8920_v26  ;;  %v7177_v52 = vpop.f32.mrf.mxu3  ;;  %v9761_v39 = vld [vmem:[%s15249_s5 + $0x394] sm:$0xf]  ;;  %v8816_v26 = vor.u32 %v9745_v59, %v8813_v1  ;;  %v9056_v29 = vor.u32 %v9805_v51, %v9053_v48  ;;  %v9799_v6 = vld [vmem:[%s15249_s5 + $0x4c4] sm:$0xf]  ;;  %v9077_v51 = vld [vmem:[%s15249_s5 + $0x528] sm:$0xf0] }
 0x543   : > { %v14720_v27 = vadd.f32 %v7177_v52, %v7165_v22  ;;  %v8880_v16 = vor.u32 %v9761_v39, %v8877_v53  ;;  %v9783_v52 = vld [vmem:[%s15249_s5 + $0x444] sm:$0xf]  ;;  %v8965_v22 = vld [vmem:[%s15249_s5 + $0x448] sm:$0xf0]  ;;  %v9781_v1 = vld [vmem:[%s15249_s5 + $0x434] sm:$0xf] }
 0x544   : > { %v8968_v23 = vor.u32 %v9783_v52, %v8965_v22  ;;  %v8957_v39 = vld [vmem:[%s15249_s5 + $0x438] sm:$0xf0]  ;;  %v9797_v53 = vld [vmem:[%s15249_s5 + $0x4b4] sm:$0xf] }
 0x545   : > { %7339 = vmatpush.bf16.msrb.mxu1 %v8784_v19  ;;  %v9759_v19 = vld [vmem:[%s15249_s5 + $0x384] sm:$0xf]  ;;  %v8960_v43 = vor.u32 %v9781_v1, %v8957_v39  ;;  %v9869_v22 = vld [vmem:[%s15249_s5 + $0x6f4] sm:$0xf]  ;;  %v9237_v39 = vld [vmem:[%s15249_s5 + $0x668] sm:$0xf0] }
 0x546   : > { %7352 = vmatpush.bf16.msrb.mxu2 %v8848_v2  ;;  %7365 = vmatpush.bf16.msrb.mxu3 %v8912_v33  ;;  %v8869_v2 = vld [vmem:[%s15249_s5 + $0x388] sm:$0xf0]  ;;  %v8989_v33 = vld [vmem:[%s15249_s5 + $0x478] sm:$0xf0]  ;;  %v9851_v1 = vld [vmem:[%s15249_s5 + $0x664] sm:$0xf] }
 0x547   : > { %v9240_v18 = vor.u32 %v9851_v1, %v9237_v39  ;;  %v9823_v1 = vld [vmem:[%s15249_s5 + $0x584] sm:$0xf]  ;;  %v9125_v39 = vld [vmem:[%s15249_s5 + $0x588] sm:$0xf0] }
 0x548   : > { %v7166_v60 = vpop.f32.mrf.mxu2 }
 0x549   : > { %7340 = vmatpush.bf16.msrb.mxu1 %v8776_v8  ;;  %v8872_v8 = vor.u32 %v9759_v19, %v8869_v2  ;;  %v8949_v19 = vld [vmem:[%s15249_s5 + $0x428] sm:$0xf0]  ;;  %v9795_v2 = vld [vmem:[%s15249_s5 + $0x4a4] sm:$0xf] }
 0x54a   : > { %7353 = vmatpush.bf16.msrb.mxu2 %v8840_v36  ;;  %7366 = vmatpush.bf16.msrb.mxu3 %v8904_v11  ;;  %v7179_v28 = vpop.f32.mrf.mxu3  ;;  %v8992_v36 = vor.u32 %v9789_v56, %v8989_v33  ;;  %v9787_v11 = vld [vmem:[%s15249_s5 + $0x464] sm:$0xf]  ;;  %v9013_v56 = vld [vmem:[%s15249_s5 + $0x4a8] sm:$0xf0] }
 0x54b   : > { %v9811_v33 = vld [vmem:[%s15249_s5 + $0x524] sm:$0xf] }
 0x54d   : > { %7341 = vmatpush.bf16.msrb.mxu1 %v8768_v15  ;;  %v8984_v15 = vor.u32 %v9787_v11, %v8981_v54  ;;  %v9005_v11 = vld [vmem:[%s15249_s5 + $0x498] sm:$0xf0]  ;;  %v9809_v54 = vld [vmem:[%s15249_s5 + $0x514] sm:$0xf] }
 0x54e   : > { %7354 = vmatpush.bf16.msrb.mxu2 %v8832_v63  ;;  %7367 = vmatpush.bf16.msrb.mxu3 %v8896_v50  ;;  %v9048_v63 = vor.u32 %v9803_v21, %v9045_v5  ;;  %v9785_v50 = vld [vmem:[%s15249_s5 + $0x454] sm:$0xf]  ;;  %v9069_v21 = vld [vmem:[%s15249_s5 + $0x518] sm:$0xf0] }
 0x54f   : > { %v8976_v47 = vor.u32 %v9785_v50, %v8973_v38  ;;  %v8997_v50 = vld [vmem:[%s15249_s5 + $0x488] sm:$0xf0]  ;;  %v9807_v38 = vld [vmem:[%s15249_s5 + $0x504] sm:$0xf] }
 0x551   : > { %7342 = vmatpush.bf16.msrb.mxu1 %v8760_v55  ;;  %v9815_v55 = vld [vmem:[%s15249_s5 + $0x544] sm:$0xf] }
 0x552   : > { %7355 = vmatpush.bf16.msrb.mxu2 %v8824_v10  ;;  %7368 = vmatpush.bf16.msrb.mxu3 %v8888_v46  ;;  %v9093_v10 = vld [vmem:[%s15249_s5 + $0x548] sm:$0xf0] }
 0x553   : > { %v9096_v59 = vor.u32 %v9815_v55, %v9093_v10 }
 0x555   : > { %7343 = vmatpush.bf16.msrb.mxu1 %v8752_v34 }
 0x556   : > { %7356 = vmatpush.bf16.msrb.mxu2 %v8816_v26  ;;  %7369 = vmatpush.bf16.msrb.mxu3 %v8880_v16  ;;  %v9021_v26 = vld [vmem:[%s15249_s5 + $0x4b8] sm:$0xf0] }
 0x557   : > { %v9024_v16 = vor.u32 %v9797_v53, %v9021_v26  ;;  %v9867_v53 = vld [vmem:[%s15249_s5 + $0x6e4] sm:$0xf] }
 0x559   : > { %7344 = vmatpush.bf16.msrb.mxu1 %v8744_v20  ;;  %v7190_v46 = vpop.f32.mrf.mxu1  ;;  %v9016_v20 = vor.u32 %v9795_v2, %v9013_v56 }
 0x55a   : > { %7357 = vmatpush.bf16.msrb.mxu2 %v8808_v0  ;;  %7370 = vmatpush.bf16.msrb.mxu3 %v8872_v8  ;;  %v7191_v34 = vadd.f32 %v7190_v46, %v14720_v27  ;;  %v9779_v27 = vld [vmem:[%s15249_s5 + $0x424] sm:$0xf]  ;;  %v9080_v0 = vor.u32 %v9811_v33, %v9077_v51  ;;  %v9777_v8 = vld [vmem:[%s15249_s5 + $0x414] sm:$0xf] }
 0x55b   : > { %v8952_v25 = vor.u32 %v9779_v27, %v8949_v19  ;;  %v9835_v46 = vld [vmem:[%s15249_s5 + $0x5e4] sm:$0xf]  ;;  %v9229_v27 = vld [vmem:[%s15249_s5 + $0x658] sm:$0xf0] }
 0x55c   : > { %7345 = vmatmul.bf16.vlgmr.msrb.gmra.mxu1 %v13863_v37  ;;  %v9040_v37 = vor.u32 %v9801_v17, %v9037_v14  ;;  %v9061_v17 = vld [vmem:[%s15249_s5 + $0x508] sm:$0xf0]  ;;  %v9837_v14 = vld [vmem:[%s15249_s5 + $0x5f4] sm:$0xf]  ;;  %v9293_v19 = vld [vmem:[%s15249_s5 + $0x6d8] sm:$0xf0] }
 0x55d   : > { %7376 = vmatpush.bf16.msra.mxu1 %v8992_v36  ;;  %7358 = vmatmul.bf16.vlgmr.msrb.gmra.mxu2 %v13968_v30  ;;  %v9104_v30 = vor.u32 %v9817_v7, %v9101_v41  ;;  %v8941_v36 = vld [vmem:[%s15249_s5 + $0x418] sm:$0xf0]  ;;  %v9064_v55 = vor.u32 %v9807_v38, %v9061_v17  ;;  %v9831_v33 = vld [vmem:[%s15249_s5 + $0x5c4] sm:$0xf]  ;;  %v9269_v17 = vld [vmem:[%s15249_s5 + $0x6a8] sm:$0xf0] }
 0x55e   : > { %7389 = vmatpush.bf16.msra.mxu2 %v9056_v29  ;;  %7402 = vmatpush.bf16.msra.mxu3 %v9120_v12  ;;  %v9793_v29 = vld [vmem:[%s15249_s5 + $0x494] sm:$0xf]  ;;  %v8944_v5 = vor.u32 %v9777_v8, %v8941_v36  ;;  %v9181_v41 = vld [vmem:[%s15249_s5 + $0x5f8] sm:$0xf0]  ;;  %v9847_v51 = vld [vmem:[%s15249_s5 + $0x644] sm:$0xf] }
 0x55f   : > { %7371 = vmatmul.bf16.vlgmr.msrb.gmra.mxu3 %v13972_v4  ;;  %v9029_v4 = vld [vmem:[%s15249_s5 + $0x4c8] sm:$0xf0]  ;;  %v9008_v31 = vor.u32 %v9793_v29, %v9005_v11  ;;  %v9184_v10 = vor.u32 %v9837_v14, %v9181_v41  ;;  %v9149_v29 = vld [vmem:[%s15249_s5 + $0x5b8] sm:$0xf0]  ;;  %v9845_v11 = vld [vmem:[%s15249_s5 + $0x634] sm:$0xf] }
 0x560   : > { %v9032_v3 = vor.u32 %v9799_v6, %v9029_v4  ;;  %v7203_v60 = vpop.f32.mrf.mxu2  ;;  %v9309_v6 = vld [vmem:[%s15249_s5 + $0x6f8] sm:$0xf0]  ;;  %v9859_v38 = vld [vmem:[%s15249_s5 + $0x6a4] sm:$0xf] }
 0x561   : > { %7377 = vmatpush.bf16.msra.mxu1 %v8984_v15  ;;  %v7204_v28 = vadd.f32 %v7203_v60, %v7191_v34  ;;  %v7192_v57 = vpop.f32.mrf.mxu1  ;;  %v9072_v15 = vor.u32 %v9809_v54, %v9069_v21  ;;  %v9301_v34 = vld [vmem:[%s15249_s5 + $0x6e8] sm:$0xf0]  ;;  %v9213_v54 = vld [vmem:[%s15249_s5 + $0x638] sm:$0xf0]  ;;  %v9861_v21 = vld [vmem:[%s15249_s5 + $0x6b4] sm:$0xf] }
 0x562   : > { %7390 = vmatpush.bf16.msra.mxu2 %v9048_v63  ;;  %7403 = vmatpush.bf16.msra.mxu3 %v9112_v13  ;;  %v7216_v48 = vpop.f32.mrf.mxu3  ;;  %v8933_v63 = vld [vmem:[%s15249_s5 + $0x408] sm:$0xf0]  ;;  %v9791_v13 = vld [vmem:[%s15249_s5 + $0x484] sm:$0xf] }
 0x563   : > { %v14867_v12 = vadd.f32 %v7216_v48, %v7204_v28  ;;  %v8936_v52 = vor.u32 %v9775_v44, %v8933_v63  ;;  %v9000_v4 = vor.u32 %v9791_v13, %v8997_v50  ;;  %v9221_v60 = vld [vmem:[%s15249_s5 + $0x648] sm:$0xf0]  ;;  %v9863_v28 = vld [vmem:[%s15249_s5 + $0x6c4] sm:$0xf]  ;;  %v9216_v44 = vor.u32 %v9845_v11, %v9213_v54 }
 0x564   : > { %v9285_v48 = vld [vmem:[%s15249_s5 + $0x6c8] sm:$0xf0]  ;;  %v9843_v13 = vld [vmem:[%s15249_s5 + $0x624] sm:$0xf] }
 0x565   : > { %7378 = vmatpush.bf16.msra.mxu1 %v8976_v47  ;;  %v9853_v47 = vld [vmem:[%s15249_s5 + $0x674] sm:$0xf]  ;;  %v9288_v36 = vor.u32 %v9863_v28, %v9285_v48  ;;  %v9141_v63 = vld [vmem:[%s15249_s5 + $0x5a8] sm:$0xf0]  ;;  %v9899_v28 = vld [vmem:[%s15249_s5 + $0x7e4] sm:$0xf] }
 0x566   : > { %7391 = vmatpush.bf16.msra.mxu2 %v9040_v37  ;;  %7404 = vmatpush.bf16.msra.mxu3 %v9104_v30  ;;  %v9245_v37 = vld [vmem:[%s15249_s5 + $0x678] sm:$0xf0]  ;;  %v9205_v50 = vld [vmem:[%s15249_s5 + $0x628] sm:$0xf0]  ;;  %v9895_v54 = vld [vmem:[%s15249_s5 + $0x7c4] sm:$0xf] }
 0x567   : > { %v9429_v48 = vld [vmem:[%s15249_s5 + $0x7e8] sm:$0xf0] }
 0x568   : > { %v7205_v7 = vpop.f32.mrf.mxu2 }
 0x569   : > { %7379 = vmatpush.bf16.msra.mxu1 %v8968_v23  ;;  %v9248_v23 = vor.u32 %v9853_v47, %v9245_v37 }
 0x56a   : > { %7392 = vmatpush.bf16.msra.mxu2 %v9032_v3  ;;  %7405 = vmatpush.bf16.msra.mxu3 %v9096_v59  ;;  %v7218_v30 = vpop.f32.mrf.mxu3  ;;  %v9312_v3 = vor.u32 %v9869_v22, %v9309_v6  ;;  %v9173_v59 = vld [vmem:[%s15249_s5 + $0x5e8] sm:$0xf0]  ;;  %v9272_v22 = vor.u32 %v9859_v38, %v9269_v17  ;;  %v9133_v6 = vld [vmem:[%s15249_s5 + $0x598] sm:$0xf0]  ;;  %v5781_v38 = vperm.slane %v14504_v35, 1 }
 0x56b   : > { %v9176_v26 = vor.u32 %v9835_v46, %v9173_v59  ;;  %v9208_v30 = vor.u32 %v9843_v13, %v9205_v50  ;;  %v9261_v46 = vld [vmem:[%s15249_s5 + $0x698] sm:$0xf0] }
 0x56c   : > { %v9405_v13 = vld [vmem:[%s15249_s5 + $0x7b8] sm:$0xf0] }
 0x56d   : > { %7380 = vmatpush.bf16.msra.mxu1 %v8960_v43  ;;  %v9304_v43 = vor.u32 %v9867_v53, %v9301_v34  ;;  %v9839_v34 = vld [vmem:[%s15249_s5 + $0x604] sm:$0xf] }
 0x56e   : > { %7393 = vmatpush.bf16.msra.mxu2 %v9024_v16  ;;  %7406 = vmatpush.bf16.msra.mxu3 %v9088_v9  ;;  %v9165_v16 = vld [vmem:[%s15249_s5 + $0x5d8] sm:$0xf0]  ;;  %v9849_v9 = vld [vmem:[%s15249_s5 + $0x654] sm:$0xf] }
 0x56f   : > { %v9168_v2 = vor.u32 %v9833_v62, %v9165_v16  ;;  %v9232_v56 = vor.u32 %v9849_v9, %v9229_v27  ;;  %v9253_v62 = vld [vmem:[%s15249_s5 + $0x688] sm:$0xf0]  ;;  %v9373_v16 = vld [vmem:[%s15249_s5 + $0x778] sm:$0xf0] }
 0x571   : > { %7381 = vmatpush.bf16.msra.mxu1 %v8952_v25 }
 0x572   : > { %7394 = vmatpush.bf16.msra.mxu2 %v9016_v20  ;;  %7407 = vmatpush.bf16.msra.mxu3 %v9080_v0  ;;  %v9224_v20 = vor.u32 %v9847_v51, %v9221_v60  ;;  %v9829_v0 = vld [vmem:[%s15249_s5 + $0x5b4] sm:$0xf]  ;;  %v9883_v51 = vld [vmem:[%s15249_s5 + $0x764] sm:$0xf]  ;;  %v9365_v60 = vld [vmem:[%s15249_s5 + $0x768] sm:$0xf0] }
 0x575   : > { %7382 = vmatpush.bf16.msra.mxu1 %v8944_v5  ;;  %v9152_v5 = vor.u32 %v9829_v0, %v9149_v29  ;;  %v9357_v0 = vld [vmem:[%s15249_s5 + $0x758] sm:$0xf0] }
 0x576   : > { %7395 = vmatpush.bf16.msra.mxu2 %v9008_v31  ;;  %7408 = vmatpush.bf16.msra.mxu3 %v9072_v15  ;;  %v9827_v31 = vld [vmem:[%s15249_s5 + $0x5a4] sm:$0xf] }
 0x577   : > { %v9144_v37 = vor.u32 %v9827_v31, %v9141_v63  ;;  %v9341_v31 = vld [vmem:[%s15249_s5 + $0x738] sm:$0xf0]  ;;  %v9893_v63 = vld [vmem:[%s15249_s5 + $0x7b4] sm:$0xf] }
 0x578   : > { %v9408_v17 = vor.u32 %v9893_v63, %v9405_v13 }
 0x579   : > { %7383 = vmatpush.bf16.msra.mxu1 %v8936_v52  ;;  %v7229_v25 = vpop.f32.mrf.mxu1  ;;  %v9825_v52 = vld [vmem:[%s15249_s5 + $0x594] sm:$0xf] }
 0x57a   : > { %7396 = vmatpush.bf16.msra.mxu2 %v9000_v4  ;;  %7409 = vmatpush.bf16.msra.mxu3 %v9064_v55  ;;  %v7230_v8 = vadd.f32 %v7229_v25, %v14867_v12  ;;  %v9277_v12 = vld [vmem:[%s15249_s5 + $0x6b8] sm:$0xf0]  ;;  %v9841_v4 = vld [vmem:[%s15249_s5 + $0x614] sm:$0xf]  ;;  %v9368_v25 = vor.u32 %v9883_v51, %v9365_v60 }
 0x57b   : > { %v9280_v15 = vor.u32 %v9861_v21, %v9277_v12  ;;  %v9197_v55 = vld [vmem:[%s15249_s5 + $0x618] sm:$0xf0] }
 0x57c   : > { %7384 = vmatmul.bf16.vlgmr.msra.gmra.mxu1 %v13974_v49  ;;  %v9865_v49 = vld [vmem:[%s15249_s5 + $0x6d4] sm:$0xf]  ;;  %v9200_v59 = vor.u32 %v9841_v4, %v9197_v55  ;;  %v9325_v55 = vld [vmem:[%s15249_s5 + $0x718] sm:$0xf0] }
 0x57d   : > { %7415 = vmatpush.bf16.msrb.mxu1 %v9184_v10  ;;  %7397 = vmatmul.bf16.vlgmr.msra.gmra.mxu2 %v14144_v58  ;;  %v9296_v58 = vor.u32 %v9865_v49, %v9293_v19  ;;  %v9901_v49 = vld [vmem:[%s15249_s5 + $0x7f4] sm:$0xf]  ;;  %v9437_v19 = vld [vmem:[%s15249_s5 + $0x7f8] sm:$0xf0] }
 0x57e   : > { %7428 = vmatpush.bf16.msrb.mxu2 %v9248_v23  ;;  %7441 = vmatpush.bf16.msrb.mxu3 %v9312_v3  ;;  %v9857_v23 = vld [vmem:[%s15249_s5 + $0x694] sm:$0xf]  ;;  %v9136_v3 = vor.u32 %v9825_v52, %v9133_v6 }
 0x57f   : > { %7410 = vmatmul.bf16.vlgmr.msra.gmra.mxu3 %v14146_v24  ;;  %v9157_v24 = vld [vmem:[%s15249_s5 + $0x5c8] sm:$0xf0]  ;;  %v9264_v53 = vor.u32 %v9857_v23, %v9261_v46  ;;  %v9873_v4 = vld [vmem:[%s15249_s5 + $0x714] sm:$0xf]  ;;  %v9389_v46 = vld [vmem:[%s15249_s5 + $0x798] sm:$0xf0] }
 0x580   : > { %v9160_v57 = vor.u32 %v9831_v33, %v9157_v24  ;;  %v7242_v14 = vpop.f32.mrf.mxu2  ;;  %v9440_v24 = vor.u32 %v9901_v49, %v9437_v19  ;;  %v9889_v23 = vld [vmem:[%s15249_s5 + $0x794] sm:$0xf] }
 0x581   : > { %7416 = vmatpush.bf16.msrb.mxu1 %v9176_v26  ;;  %v7243_v41 = vadd.f32 %v7242_v14, %v7230_v8  ;;  %v7231_v47 = vpop.f32.mrf.mxu1  ;;  %v9189_v26 = vld [vmem:[%s15249_s5 + $0x608] sm:$0xf0]  ;;  %v9897_v8 = vld [vmem:[%s15249_s5 + $0x7d4] sm:$0xf]  ;;  %v9875_v14 = vld [vmem:[%s15249_s5 + $0x724] sm:$0xf] }
 0x582   : > { %7429 = vmatpush.bf16.msrb.mxu2 %v9240_v18  ;;  %7442 = vmatpush.bf16.msrb.mxu3 %v9304_v43  ;;  %v7255_v7 = vpop.f32.mrf.mxu3  ;;  %v9855_v18 = vld [vmem:[%s15249_s5 + $0x684] sm:$0xf]  ;;  %v9885_v43 = vld [vmem:[%s15249_s5 + $0x774] sm:$0xf]  ;;  %v9397_v47 = vld [vmem:[%s15249_s5 + $0x7a8] sm:$0xf0] }
 0x583   : > { %v7256_v10 = vadd.f32 %v7255_v7, %v7243_v41  ;;  %v9256_v33 = vor.u32 %v9855_v18, %v9253_v62  ;;  %v9333_v7 = vld [vmem:[%s15249_s5 + $0x728] sm:$0xf0]  ;;  %v9891_v41 = vld [vmem:[%s15249_s5 + $0x7a4] sm:$0xf] }
 0x584   : > { %v9336_v52 = vor.u32 %v9875_v14, %v9333_v7  ;;  %v9400_v6 = vor.u32 %v9891_v41, %v9397_v47 }
 0x585   : > { %7417 = vmatpush.bf16.msrb.mxu1 %v9168_v2  ;;  %v9128_v2 = vor.u32 %v9823_v1, %v9125_v39  ;;  %v9871_v1 = vld [vmem:[%s15249_s5 + $0x704] sm:$0xf]  ;;  %v9317_v39 = vld [vmem:[%s15249_s5 + $0x708] sm:$0xf0] }
 0x586   : > { %7430 = vmatpush.bf16.msrb.mxu2 %v9232_v56  ;;  %7443 = vmatpush.bf16.msrb.mxu3 %v9296_v58  ;;  %v9192_v56 = vor.u32 %v9839_v34, %v9189_v26  ;;  %v9376_v58 = vor.u32 %v9885_v43, %v9373_v16  ;;  %v9381_v34 = vld [vmem:[%s15249_s5 + $0x788] sm:$0xf0]  ;;  %v9320_v62 = vor.u32 %v9871_v1, %v9317_v39 }
 0x588   : > { %v7244_v9 = vpop.f32.mrf.mxu2 }
 0x589   : > { %7418 = vmatpush.bf16.msrb.mxu1 %v9160_v57  ;;  %v9432_v57 = vor.u32 %v9899_v28, %v9429_v48 }
 0x58a   : > { %7431 = vmatpush.bf16.msrb.mxu2 %v9224_v20  ;;  %7444 = vmatpush.bf16.msrb.mxu3 %v9288_v36  ;;  %v7257_v27 = vpop.f32.mrf.mxu3  ;;  %v9881_v20 = vld [vmem:[%s15249_s5 + $0x754] sm:$0xf]  ;;  %v9421_v36 = vld [vmem:[%s15249_s5 + $0x7d8] sm:$0xf0] }
 0x58b   : > { %v9360_v29 = vor.u32 %v9881_v20, %v9357_v0  ;;  %v9424_v11 = vor.u32 %v9897_v8, %v9421_v36 }
 0x58d   : > { %7419 = vmatpush.bf16.msrb.mxu1 %v9152_v5 }
 0x58e   : > { %7432 = vmatpush.bf16.msrb.mxu2 %v9216_v44  ;;  %7445 = vmatpush.bf16.msrb.mxu3 %v9280_v15  ;;  %v9877_v44 = vld [vmem:[%s15249_s5 + $0x734] sm:$0xf] }
 0x58f   : > { %v9344_v50 = vor.u32 %v9877_v44, %v9341_v31 }
 0x591   : > { %7420 = vmatpush.bf16.msrb.mxu1 %v9144_v37 }
 0x592   : > { %7433 = vmatpush.bf16.msrb.mxu2 %v9208_v30  ;;  %7446 = vmatpush.bf16.msrb.mxu3 %v9272_v22 }
 0x595   : > { %7421 = vmatpush.bf16.msrb.mxu1 %v9136_v3  ;;  %v9328_v3 = vor.u32 %v9873_v4, %v9325_v55  ;;  %v9910_v4 = vld [vmem:[%s15253_s9 + $0x38] sm:$0xff] }
 0x596   : > { %7434 = vmatpush.bf16.msrb.mxu2 %v9200_v59  ;;  %7447 = vmatpush.bf16.msrb.mxu3 %v9264_v53  ;;  %v9392_v59 = vor.u32 %v9889_v23, %v9389_v46  ;;  %v9887_v53 = vld [vmem:[%s15249_s5 + $0x784] sm:$0xf] }
 0x597   : > { %v9384_v43 = vor.u32 %v9887_v53, %v9381_v34 }
 0x599   : > { %7422 = vmatpush.bf16.msrb.mxu1 %v9128_v2  ;;  %v7268_v12 = vpop.f32.mrf.mxu1 }
 0x59a   : > { %7435 = vmatpush.bf16.msrb.mxu2 %v9192_v56  ;;  %7448 = vmatpush.bf16.msrb.mxu3 %v9256_v33  ;;  %v15101_v15 = vadd.f32 %v7268_v12, %v7256_v10 }
 0x59c   : > { %7423 = vmatmul.bf16.vlgmr.msrb.gmra.mxu1 %v14148_v61  ;;  %v9879_v61 = vld [vmem:[%s15249_s5 + $0x744] sm:$0xf]  ;;  %v7480_v7 = vmax.f32 %v15101_v15, 0.0  ;;  %v9918_v15 = vld [vmem:[%s15253_s9 + $0x78] sm:$0xff] }
 0x59d   : > { %7454 = vmatpush.bf16.msra.mxu1 %v9376_v58  ;;  %7436 = vmatmul.bf16.vlgmr.msrb.gmra.mxu2 %v14318_v45  ;;  %v9349_v45 = vld [vmem:[%s15249_s5 + $0x748] sm:$0xf0] }
 0x59e   : > { %7467 = vmatpush.bf16.msra.mxu2 %v9440_v24  ;;  %7449 = vmatmul.bf16.vlgmr.msrb.gmra.mxu3 %v14320_v42  ;;  %v9413_v42 = vld [vmem:[%s15249_s5 + $0x7c8] sm:$0xf0]  ;;  %v9352_v21 = vor.u32 %v9879_v61, %v9349_v45 }
 0x59f   : > { %v9416_v5 = vor.u32 %v9895_v54, %v9413_v42  ;;  %7668 = vmatpush.bf16.msra.mxu3 %v9910_v4 }
 0x5a0   : > { %v7281_v37 = vpop.f32.mrf.mxu2 }
 0x5a1   : > { %7455 = vmatpush.bf16.msra.mxu1 %v9368_v25  ;;  %v7282_v35 = vadd.f32 %v7281_v37, %v5781_v38  ;;  %v7270_v22 = vpop.f32.mrf.mxu1 }
 0x5a2   : > { %7468 = vmatpush.bf16.msra.mxu2 %v9432_v57  ;;  %v7294_v30 = vpop.f32.mrf.mxu3 }
 0x5a3   : > { %v7295_v10 = vadd.f32 %v7294_v30, %v7282_v35  ;;  %v7482_v35 = vsel %vm3214_vm6, %v7480_v7, 0.0 }
 0x5a5   : > { %7456 = vmatpush.bf16.msra.mxu1 %v9360_v29 }
 0x5a6   : > { %7469 = vmatpush.bf16.msra.mxu2 %v9424_v11 }
 0x5a8   : > { %v7283_v26 = vpop.f32.mrf.mxu2 }
 0x5a9   : > { %7457 = vmatpush.bf16.msra.mxu1 %v9352_v21 }
 0x5aa   : > { %7470 = vmatpush.bf16.msra.mxu2 %v9416_v5  ;;  %v7296_v18 = vpop.f32.mrf.mxu3 }
 0x5ad   : > { %7458 = vmatpush.bf16.msra.mxu1 %v9344_v50 }
 0x5ae   : > { %7471 = vmatpush.bf16.msra.mxu2 %v9408_v17 }
 0x5b1   : > { %7459 = vmatpush.bf16.msra.mxu1 %v9336_v52 }
 0x5b2   : > { %7472 = vmatpush.bf16.msra.mxu2 %v9400_v6  ;;  %v10050_v6 = vmov 256.0  }
 0x5b3   : > { %9972 = vrcp.f32 %v10050_v6 }
 0x5b5   : > { %7460 = vmatpush.bf16.msra.mxu1 %v9328_v3 }
 0x5b6   : > { %7473 = vmatpush.bf16.msra.mxu2 %v9392_v59 }
 0x5b9   : > { %7461 = vmatpush.bf16.msra.mxu1 %v9320_v62  ;;  %v7307_v16 = vpop.f32.mrf.mxu1  ;;  %v9973_v55 = vpop.eup %9972 }
 0x5ba   : > { %7474 = vmatpush.bf16.msra.mxu2 %v9384_v43  ;;  %v7308_v9 = vadd.f32 %v7307_v16, %v7295_v10  ;;  %v7488_v10 = vmul.f32 256.0, %v9973_v55  ;;  %vm7492_vm11 = vweird.f32 %v9973_v55 }
 0x5bc   : > { %7462 = vmatmul.bf16.vlgmr.msra.gmra.mxu1 %v14322_v32  ;;  %v7489_v23 = vsub.f32 1.0, %v7488_v10 }
 0x5bd   : > { %7475 = vmatmul.bf16.vlgmr.msra.gmra.mxu2 %v14478_v40  ;;  %7681 = vmatpush.bf16.msrb.mxu1 %v9918_v15 }
 0x5be   : > { %v7490_v46 = vmul.f32 %v9973_v55, %v7489_v23 }
 0x5c0   : > { %v7320_v27 = vpop.f32.mrf.mxu2  ;;  %v7491_v3 = vadd.f32 %v9973_v55, %v7490_v46 }
 0x5c1   : > { %v7321_v19 = vadd.f32 %v7320_v27, %v7308_v9  ;;  %v7309_v2 = vpop.f32.mrf.mxu1  ;;  %v9909_v9 = vld [vmem:[%s15253_s9 + $0x30] sm:$0xff] }
 0x5c2   : > { %v7333_v49 = vpop.f32.mrf.mxu3  ;;  %v7493_v59 = vsel %vm7492_vm11, %v9973_v55, %v7491_v3  ;;  %v9917_v27 = vld [vmem:[%s15253_s9 + $0x70] sm:$0xff]  ;;  %7669 = vmatpush.bf16.msra.mxu3 %v9909_v9  ;;  %v9907_v2 = vld [vmem:[%s15253_s9 + $0x20] sm:$0xff] }
 0x5c3   : > { %v7334_v56 = vadd.f32 %v7333_v49, %v7321_v19  ;;  %7682 = vmatpush.bf16.msrb.mxu1 %v9917_v27  ;;  %v9908_v49 = vld [vmem:[%s15253_s9 + $0x28] sm:$0xff] }
 0x5c4   : > { %v9916_v19 = vld [vmem:[%s15253_s9 + $0x68] sm:$0xff] }
 0x5c6   : > { %7670 = vmatpush.bf16.msra.mxu3 %v9908_v49 }
 0x5c7   : > { %7683 = vmatpush.bf16.msrb.mxu1 %v9916_v19 }
 0x5c8   : > { %v7322_v33 = vpop.f32.mrf.mxu2 }
 0x5ca   : > { %v7335_v58 = vpop.f32.mrf.mxu3  ;;  %7671 = vmatpush.bf16.msra.mxu3 %v9907_v2 }
 0x5d9   : > { %v7346_v24 = vpop.f32.mrf.mxu1 }
 0x5da   : > { %v7347_v51 = vadd.f32 %v7346_v24, %v7334_v56  ;;  %v9915_v56 = vld [vmem:[%s15253_s9 + $0x60] sm:$0xff] }
 0x5db   : > { %7684 = vmatpush.bf16.msrb.mxu1 %v9915_v56 }
 0x5e0   : > { %v7359_v60 = vpop.f32.mrf.mxu2 }
 0x5e1   : > { %v7360_v28 = vadd.f32 %v7359_v60, %v7347_v51  ;;  %v7348_v25 = vpop.f32.mrf.mxu1  ;;  %v9906_v51 = vld [vmem:[%s15253_s9 + $0x18] sm:$0xff] }
 0x5e2   : > { %v7372_v48 = vpop.f32.mrf.mxu3  ;;  %v9914_v60 = vld [vmem:[%s15253_s9 + $0x58] sm:$0xff]  ;;  %7672 = vmatpush.bf16.msra.mxu3 %v9906_v51 }
 0x5e3   : > { %v7373_v57 = vadd.f32 %v7372_v48, %v7360_v28  ;;  %7685 = vmatpush.bf16.msrb.mxu1 %v9914_v60  ;;  %v9905_v28 = vld [vmem:[%s15253_s9 + $0x10] sm:$0xff] }
 0x5e4   : > { %v9913_v48 = vld [vmem:[%s15253_s9 + $0x50] sm:$0xff] }
 0x5e6   : > { %7673 = vmatpush.bf16.msra.mxu3 %v9905_v28 }
 0x5e7   : > { %7686 = vmatpush.bf16.msrb.mxu1 %v9913_v48 }
 0x5e8   : > { %v7361_v20 = vpop.f32.mrf.mxu2 }
 0x5e9   : > { %v9912_v20 = vld [vmem:[%s15253_s9 + $0x48] sm:$0xff] }
 0x5ea   : > { %v7374_v32 = vpop.f32.mrf.mxu3 }
 0x5eb   : > { %7687 = vmatpush.bf16.msrb.mxu1 %v9912_v20 }
 0x5f9   : > { %v7385_v0 = vpop.f32.mrf.mxu1 }
 0x5fa   : > { %v7386_v5 = vadd.f32 %v7385_v0, %v7373_v57  ;;  %v9904_v57 = vld [vmem:[%s15253_s9 + $0x8] sm:$0xff] }
 0x5fb   : > { %7674 = vmatpush.bf16.msra.mxu3 %v9904_v57 }
 0x600   : > { %v7398_v40 = vpop.f32.mrf.mxu2 }
 0x601   : > { %v7387_v36 = vpop.f32.mrf.mxu1  ;;  %v7399_v44 = vadd.f32 %v7398_v40, %v7386_v5  ;;  %v9903_v40 = vld [vmem:[%s15253_s9] sm:$0xff] }
 0x602   : > { %v7411_v8 = vpop.f32.mrf.mxu3  ;;  %7675 = vmatpush.bf16.msra.mxu3 %v9903_v40 }
 0x603   : > { %v7412_v31 = vadd.f32 %v7411_v8, %v7399_v44  ;;  %v9911_v8 = vld [vmem:[%s15253_s9 + $0x40] sm:$0xff] }
 0x604   : > { %7688 = vmatpush.bf16.msrb.mxu1 %v9911_v8 }
 0x608   : > { %v7400_v29 = vpop.f32.mrf.mxu2 }
 0x609   : > { %v7518_v29 = vld [vmem:[%s15251_s7] sm:$0x3] }
 0x60a   : > { %v7413_v11 = vpop.f32.mrf.mxu3 }
 0x619   : > { %v7424_v61 = vpop.f32.mrf.mxu1 }
 0x61a   : > { %v7425_v63 = vadd.f32 %v7424_v61, %v7412_v31 }
 0x620   : > { %v7437_v45 = vpop.f32.mrf.mxu2 }
 0x621   : > { %v7450_v54 = vpop.f32.mrf.mxu3  ;;  %v7426_v42 = vpop.f32.mrf.mxu1  ;;  %v7438_v13 = vadd.f32 %v7437_v45, %v7425_v63  ;;  %v7526_v45 = vld [vmem:[%s15252_s8] sm:$0x3] }
 0x622   : > { %v7521_v42 = vperm.slane %v7518_v29, 1  ;;  %v7528_v44 = vperm.slane %v7526_v45, 0  ;;  %v7529_v31 = vperm.slane %v7526_v45, 1 }
 0x623   : > { %v7451_v38 = vadd.f32 %v7450_v54, %v7438_v13  ;;  %v7520_v54 = vperm.slane %v7518_v29, 0 }
 0x628   : > { %v7439_v21 = vpop.f32.mrf.mxu2 }
 0x629   : > { %v7452_v12 = vpop.f32.mrf.mxu3 }
 0x639   : > { %v7463_v50 = vpop.f32.mrf.mxu1 }
 0x63a   : > { %v7464_v17 = vadd.f32 %v7463_v50, %v7451_v38 }
 0x640   : > { %v7476_v14 = vpop.f32.mrf.mxu2 }
 0x641   : > { %v7477_v41 = vadd.f32 %v7476_v14, %v7464_v17  ;;  %v7465_v47 = vpop.f32.mrf.mxu1 }
 0x643   : > { %v7481_v37 = vmax.f32 %v7477_v41, 0.0  ;;  %v9971_v41 = vld [vmem:[%s15254_s10] ss:$0 sm:$0xff] }
 0x645   : > { %v7483_v30 = vsel %vm3214_vm6, %v7481_v37, 0.0 }
 0x646   : > { %v7484_v52 = vadd.f32 %v7483_v30, %v7482_v35 }
 0x648   : > { %v7478_v22 = vpop.f32.mrf.mxu2  ;;  %7485 = vadd.xlane.f32.xlu0 %v7484_v52 }
 0x6bb   : > { %v7486_v1 = vpop.xlane.xlu0 %7485 }
 0x6bc   : > { %v7494_v39 = vmul.f32 %v7493_v59, %v7486_v1 }
 0x6be   : > { %v7495_v53 = vsub.f32 %v7480_v7, %v7494_v39  ;;  %v7496_v34 = vsub.f32 %v7481_v37, %v7494_v39 }
 0x6c0   : > { %v7497_v26 = vmul.f32 %v7495_v53, %v7495_v53  ;;  %v7498_v18 = vmul.f32 %v7496_v34, %v7496_v34 }
 0x6c2   : > { %v7499_v62 = vsel %vm3214_vm6, %v7497_v26, 0.0  ;;  %v7500_v43 = vsel %vm3214_vm6, %v7498_v18, 0.0 }
 0x6c3   : > { %v7501_v16 = vadd.f32 %v7500_v43, %v7499_v62 }
 0x6c5   : > { %7502 = vadd.xlane.f32.xlu0 %v7501_v16 }
 0x738   : > { %v7503_v33 = vpop.xlane.xlu0 %7502 }
 0x739   : > { %v7504_v58 = vmul.f32 %v7503_v33, %v7493_v59 }
 0x73b   : > { %v7505_v24 = vadd.f32 1e-05, %v7504_v58 }
 0x73d   : > { %9974 = vrsqrt.f32 %v7505_v24  ;;  %vm7512_vm13 = vweird.f32 %v7505_v24 }
 0x743   : > { %v9975_v25 = vpop.eup %9974 }
 0x744   : > { %v7507_v32 = vmul.f32 %v9975_v25, %v7505_v24  ;;  %vm7513_vm12 = vweird.f32 %v9975_v25 }
 0x745   : > { %vm7514_vm14 = vmor %vm7512_vm13, %vm7513_vm12 }
 0x746   : > { %v7508_v0 = vmul.f32 %v9975_v25, %v7507_v32 }
 0x748   : > { %v7509_v36 = vmul.f32 0.5, %v7508_v0 }
 0x74a   : > { %v7510_v11 = vsub.f32 1.5, %v7509_v36 }
 0x74c   : > { %v7511_v61 = vmul.f32 %v9975_v25, %v7510_v11 }
 0x74e   : > { %v7515_v21 = vsel %vm7514_vm14, %v9975_v25, %v7511_v61 }
 0x74f   : > { %v7516_v12 = vmul.f32 %v7515_v21, %v7495_v53  ;;  %v7517_v5 = vmul.f32 %v7515_v21, %v7496_v34 }
 0x751   : > { %v7524_v63 = vmul.f32 %v7520_v54, %v7516_v12  ;;  %v7525_v13 = vmul.f32 %v7521_v42, %v7517_v5 }
 0x753   : > { %v7532_v50 = vadd.f32 %v7528_v44, %v7524_v63  ;;  %v7533_v38 = vadd.f32 %v7529_v31, %v7525_v13 }
 0x755   : > { %v7534_v17 = vpack.c.bf16 %v7532_v50, %v7532_v50  ;;  %v7535_v14 = vpack.c.bf16 %v7533_v38, %v7533_v38 }
 0x757   : > { %7676 = vmatmul.bf16.vlgmr.msra.gmra.mxu3 %v7534_v17  ;;  %7689 = vmatmul.bf16.vlgmr.msrb.gmra.mxu1 %v7535_v14 }
 0x7d4   : > { %v7690_v7 = vpop.f32.mrf.mxu1 }
 0x7da   : > { %v7677_v47 = vpop.f32.mrf.mxu3 }
 0x7db   : > { %v7678_v37 = vadd.f32 %v9971_v41, %v7677_v47 }
 0x7dc   : > { %v7692_v35 = vpop.f32.mrf.mxu1 }
 0x7dd   : > { %v7691_v30 = vadd.f32 %v7690_v7, %v7678_v37 }
 0x7df   : > { %v7694_v52 = vsel %vm3214_vm6, %v7691_v30, -inf }
 0x7e0   : > { %7695 = vmax.xlane.f32.xlu1 %v7694_v52 }
 0x7e2   : > { %v7679_v22 = vpop.f32.mrf.mxu3 }
 0x853   : > { %v7696_v6 = vpop.xlane.xlu1 %7695 }
 0x854   : > { %v7697_v4 = vsub.f32 %v7691_v30, %v7696_v6 }
 0x856   : > { %v7698_v15 = vmul.f32 1.442695, %v7697_v4 }
 0x858   : > { %9976 = vpow2.f32 %v7698_v15 }
 0x85e   : > { %v9977_v55 = vpop.eup %9976 }
 0x85f   : > { %v7700_v10 = vsel %vm3214_vm6, %v9977_v55, 0.0 }
 0x860   : > { %7701 = vadd.xlane.f32.xlu1 %v7700_v10 }
 0x8d3   : > { %v7702_v23 = vpop.xlane.xlu1 %7701 }
 0x8d4   : > { %9978 = vrcp.f32 %v7702_v23  ;;  %v7714_v1 = vand.u32 2147483648, %v7702_v23  ;;  %v7712_v53 = vand.u32 2147483647, %v7702_v23  ;;  %vm7708_vm0 = vweird.f32 %v7702_v23 }
 0x8d6   : > { %v7715_v26 = vor.u32 1.1754944e-38, %v7714_v1  ;;  %vm7713_vm2 = vcmp.eq.f32.partialorder %v7712_v53, 8.507059e+37 }
 0x8da   : > { %v9979_v46 = vpop.eup %9978 }
 0x8db   : > { %v7704_v3 = vmul.f32 %v9979_v46, %v7702_v23  ;;  %vm7709_vm15 = vweird.f32 %v9979_v46 }
 0x8dc   : > { %vm7710_vm1 = vmor %vm7708_vm0, %vm7709_vm15 }
 0x8dd   : > { %v7705_v59 = vsub.f32 1.0, %v7704_v3 }
 0x8df   : > { %v7706_v39 = vmul.f32 %v9979_v46, %v7705_v59 }
 0x8e1   : > { %v7707_v34 = vadd.f32 %v9979_v46, %v7706_v39 }
 0x8e3   : > { %v7711_v18 = vsel %vm7710_vm1, %v9979_v46, %v7707_v34 }
 0x8e4   : > { %v7716_v62 = vsel %vm7713_vm2, %v7715_v26, %v7711_v18 }
 0x8e5   : > { %v7717_v43 = vmul.f32 %v9977_v55, %v7716_v62 }
 0x8e7   : > { %7718 = vst [vmem:[%s380_s16] sm:$0xf] %v7717_v43 }
 0x8e8   : > { %10012 = shalt.err (!%p10009_p3)
}
 0x8e9   : > { %9928 = dma.vmem_to_hbm [thread:$0]  (%p10149_p5), %s7733_s22, 64, %s7735_s24, %s7720_s21  }
 0x8ea PF: > { %p9934_p4 = scmp.ge.s32.totalorder %s10047_s20, 2  ;;  %s7746_s0 = sand.u32 1, %s10035_s17  }
 0x8eb   : > { %s7747_s15 = scalar_lea.sflag [#allocation3], %s7746_s0 }
 0x8ec   : > { %p9931_p7 = pnand %p9934_p4, %p10153_p6 }
 0x8ee   : > { %p9932_p8 = pneg %p9931_p7 }
 0x8f0   : > { %10030 = dma.done.wait (%p9932_p8), %s7747_s15, 64  }
 0x8f1   : > { %10032 = vsyncadd (%p9932_p8), %s7747_s15, 4294967232  ;;  %p21_p9 = scmp.ge.s32.totalorder %s10136_s23, 4   ;;  %s15679_s17 = smov %s10039_s18 }
 0x8f2   : > { %s15680_s18 = smov %s10043_s19  ;;  %s15681_s19 = smov %s10147_s26 }
 0x8f3   : > { %s15682_s20 = smov %s10136_s23  ;;  %23 = sbr.rel (!%p21_p9) target bundleno = 6 (0x6), region = 99 }
 0x8f8   :  { %7753 = vsyncpa [#allocation3], 1 }
 0x8f9   :  { %7755 = vsyncpa [#allocation3 + $0x1], 1 }

</bundles_post_ra>
